<compile_context>
chip_gen: v6e
topology: v6e:2x2x1
jax: 0.10.0
libtpu: 0.0.40
codegen_flags: <defaults>
</compile_context>

<pallas_src>
import jax
import jax.numpy as jnp
from jax import lax
from jax.experimental import pallas as pl
from jax.experimental.pallas import tpu as pltpu

LN_EPS = 1e-5
KWTA_SPARSITY = 0.1


def _layer_norm(y, gamma, beta):
    # One-pass LN: mean and mean-of-squares are independent reductions.
    n = y.shape[-1]
    inv_n = 1.0 / float(n)
    s1 = jnp.sum(y, axis=-1, keepdims=True)
    s2 = jnp.sum(y * y, axis=-1, keepdims=True)
    mu = s1 * inv_n
    var = s2 * inv_n - mu * mu
    return (y - mu) * lax.rsqrt(var + LN_EPS) * gamma + beta


def _sgru_kernel(scal_ref, x_ref,
                 h0_ref, v0_ref, dU0_ref, e0_ref, E0_ref, ha0_ref,
                 wx_ref, bx_ref, wh_ref, bh_ref, wa_ref, ba_ref,
                 gx_ref, betx_ref, gh_ref, beth_ref, ga_ref, beta_ref,
                 wm_ref, bm_ref,
                 out_h_ref, out_mod_ref,
                 h_ref, v_ref, dU_ref, e_ref, E_ref, ha_ref,
                 wx_scr_ref):
    g = pl.program_id(0)

    # Initialize the VMEM-resident final-state blocks from the init states
    # (init-state HBM buffers are donated to the final-state outputs).
    @pl.when(g == 0)
    def _():
        h_ref[...] = h0_ref[...]
        v_ref[...] = v0_ref[...]
        dU_ref[...] = dU0_ref[...]
        e_ref[...] = e0_ref[...]
        E_ref[...] = E0_ref[...]
        ha_ref[...] = ha0_ref[...]

    TC, Bp, I = x_ref.shape            # timesteps per chunk, padded batch, in dim
    H = h_ref.shape[-1]
    M = ha_ref.shape[-1]
    H3 = 3 * H

    # Pre-sigmoided learnable scalars from SMEM.
    sig_lambd = scal_ref[0]
    sig_eta = scal_ref[1]
    sig_tau = scal_ref[2]

    # Hoist only the small (1, 3H)/(1, M+3) vectors; keep the big weight reads
    # at the dot sites (VMEM loads are cheap, value-hoisting bloats live ranges).
    bx = bx_ref[...]; bh = bh_ref[...]; ba = ba_ref[...]
    gx = gx_ref[...]; betx = betx_ref[...]
    gh = gh_ref[...]; beth = beth_ref[...]
    ga = ga_ref[...]; beta_a = beta_ref[...]
    bm = bm_ref[...]

    # --- x path hoisted out of the recurrence: one chunk-wide MXU pass ------
    x_chunk = x_ref[...].reshape(TC * Bp, I).astype(jnp.bfloat16)
    wx_all = _layer_norm(
        jnp.dot(x_chunk, wx_ref[...], preferred_element_type=jnp.float32) + bx,
        gx, betx)
    wx_scr_ref[...] = wx_all.reshape(TC, Bp, H3)

    kk = max(1, int(round(KWTA_SPARSITY * M)))

    def step(t, carry):
        h, v, dU, trace_e, trace_E, h_att = carry

        Wx = wx_scr_ref[t]                                      # (Bp, 3H), precomputed
        Wh = _layer_norm(
            jnp.dot(h.astype(jnp.bfloat16), wh_ref[...],
                    preferred_element_type=jnp.float32) + bh, gh, beth)
        Wa = _layer_norm(
            jnp.dot(h_att.astype(jnp.bfloat16), wa_ref[...],
                    preferred_element_type=jnp.float32) + ba, ga, beta_a)

        z = jax.nn.sigmoid(Wx[:, 0:H] + Wh[:, 0:H] + Wa[:, 0:H])
        r = jax.nn.sigmoid(Wx[:, H:2 * H] + Wh[:, H:2 * H] + Wa[:, H:2 * H])
        dv = Wx[:, 2 * H:3 * H] + Wh[:, 2 * H:3 * H] + Wa[:, 2 * H:3 * H]

        v_new = (1.0 - z) * v + z * r * dv
        new_h = jnp.maximum(v_new, 0.0)                         # activation == 'relu'

        mod = jnp.maximum(
            jnp.dot(new_h.astype(jnp.bfloat16), wm_ref[...],
                    preferred_element_type=jnp.float32) + bm, 0.0)   # (Bp, M+3)

        d = jax.nn.sigmoid(mod[:, 0:1])                         # (Bp, 1)
        s = jax.nn.sigmoid(mod[:, 1:2])                         # (Bp, 1)
        m = jnp.tanh(mod[:, 2:3])                               # (Bp, 1)
        att_in = mod[:, 3:3 + M]                                # (Bp, M)

        # bmm(dU, h_att.unsqueeze(2)).squeeze(2)
        recur = jnp.sum(dU * h_att[:, None, :], axis=-1)        # (Bp, M)
        att_pre = att_in + recur

        # kWTA(sparsity=0.1): keep entries >= (approx.) k-th largest per row.
        if kk == 1:
            thr = jnp.max(att_pre, axis=-1, keepdims=True)
        else:
            lo = jnp.min(att_pre, axis=-1, keepdims=True)
            hi = jnp.max(att_pre, axis=-1, keepdims=True)
            for _ in range(12):                                  # fixed-iteration bisection
                mid = 0.5 * (lo + hi)
                cnt = jnp.sum((att_pre >= mid).astype(jnp.float32),
                              axis=-1, keepdims=True)
                ge = cnt >= float(kk)
                lo = jnp.where(ge, mid, lo)
                hi = jnp.where(ge, hi, mid)
            thr = lo
        kwta = jnp.where(att_pre >= thr, att_pre, 0.0)

        h_att_new = (1.0 - sig_tau) * h_att + sig_tau * kwta
        new_e = (1.0 - d) * trace_e + d * h_att
        outer = (h_att_new[:, :, None] * new_e[:, None, :]
                 - new_e[:, :, None] * h_att_new[:, None, :])
        new_E = (1.0 - s[:, :, None]) * trace_E + s[:, :, None] * outer
        dU_new = (1.0 - sig_lambd) * dU + sig_eta * m[:, :, None] * new_E

        out_h_ref[t] = new_h
        out_mod_ref[t] = mod
        return (new_h, v_new, dU_new, new_e, new_E, h_att_new)

    carry0 = (h_ref[...], v_ref[...], dU_ref[...],
              e_ref[...], E_ref[...], ha_ref[...])
    unroll = True if TC <= 8 else 8                     # partial unroll for big chunks
    hF, vF, dUF, eF, EF, haF = lax.fori_loop(0, TC, step, carry0, unroll=unroll)

    h_ref[...] = hF
    v_ref[...] = vF
    dU_ref[...] = dUF
    e_ref[...] = eF
    E_ref[...] = EF
    ha_ref[...] = haF


def _pad_axis(a, axis, new_size):
    if a.shape[axis] == new_size:
        return a
    pads = [(0, 0)] * a.ndim
    pads[axis] = (0, new_size - a.shape[axis])
    return jnp.pad(a, pads)


def sgru_forward(x, states, params, *, time_chunk=8):
    """x: (T, B, input_dim). states: dict of h, v, dU, trace_e, trace_E, h_att."""
    T, B, I = x.shape
    H = params["w_h2h"].shape[0]
    M = params["w_att2h"].shape[0]
    H3 = 3 * H
    MP3 = M + 3
    B_pad = max(8, ((B + 7) // 8) * 8)               # full sublanes
    f32 = jnp.float32
    bf16 = jnp.bfloat16

    # Largest chunk size <= time_chunk that divides T.
    TC = 1
    for c in range(min(T, time_chunk), 0, -1):
        if T % c == 0:
            TC = c
            break
    G = T // TC

    # Host-side padding (batch -> B_pad).
    x_p = _pad_axis(x.astype(f32), 1, B_pad)
    h0 = _pad_axis(states["h"].astype(f32), 0, B_pad)
    v0 = _pad_axis(states["v"].astype(f32), 0, B_pad)
    dU0 = _pad_axis(states["dU"].astype(f32), 0, B_pad)
    e0 = _pad_axis(states["trace_e"].astype(f32), 0, B_pad)
    E0 = _pad_axis(states["trace_E"].astype(f32), 0, B_pad)
    ha0 = _pad_axis(states["h_att"].astype(f32), 0, B_pad)

    # bf16 matmul operands (MXU-native); biases / LN params stay f32.
    wx = params["w_x2h"].astype(bf16)
    wh = params["w_h2h"].astype(bf16)
    wa = params["w_att2h"].astype(bf16)
    wm = params["w_h2mod"].astype(bf16)

    # Pre-sigmoided learnable scalars (lambd, eta, tau_att) -> SMEM.
    scal = jax.nn.sigmoid(jnp.array(
        [params["lambd"], params["eta"], params["tau_att"], 0.0], f32))

    def const_spec(shape):
        n = len(shape)
        return pl.BlockSpec(shape, lambda g, _n=n: (0,) * _n)

    in_specs = [
        pl.BlockSpec(memory_space=pltpu.MemorySpace.SMEM),       # scal (4,)
        pl.BlockSpec((TC, B_pad, I), lambda g: (g, 0, 0)),       # x chunk
        const_spec((B_pad, H)), const_spec((B_pad, H)),          # h0, v0
        const_spec((B_pad, M, M)), const_spec((B_pad, M)),       # dU0, trace_e0
        const_spec((B_pad, M, M)), const_spec((B_pad, M)),       # trace_E0, h_att0
        const_spec((I, H3)), const_spec((1, H3)),                # x2h (bf16 W)
        const_spec((H, H3)), const_spec((1, H3)),                # h2h (bf16 W)
        const_spec((M, H3)), const_spec((1, H3)),                # att2h (bf16 W)
        const_spec((1, H3)), const_spec((1, H3)),                # lnx gamma/beta
        const_spec((1, H3)), const_spec((1, H3)),                # lnh gamma/beta
        const_spec((1, H3)), const_spec((1, H3)),                # lnatt gamma/beta
        const_spec((H, MP3)), const_spec((1, MP3)),              # h2mod (bf16 W)
    ]
    out_shape = (
        jax.ShapeDtypeStruct((T, B_pad, H), f32),                # stacked h
        jax.ShapeDtypeStruct((T, B_pad, MP3), f32),              # stacked mod (narrow)
        jax.ShapeDtypeStruct((B_pad, H), f32),                   # final h
        jax.ShapeDtypeStruct((B_pad, H), f32),                   # final v
        jax.ShapeDtypeStruct((B_pad, M, M), f32),                # final dU
        jax.ShapeDtypeStruct((B_pad, M), f32),                   # final trace_e
        jax.ShapeDtypeStruct((B_pad, M, M), f32),                # final trace_E
        jax.ShapeDtypeStruct((B_pad, M), f32),                   # final h_att
    )
    out_specs = (
        pl.BlockSpec((TC, B_pad, H), lambda g: (g, 0, 0)),
        pl.BlockSpec((TC, B_pad, MP3), lambda g: (g, 0, 0)),
        const_spec((B_pad, H)), const_spec((B_pad, H)),
        const_spec((B_pad, M, M)), const_spec((B_pad, M)),
        const_spec((B_pad, M, M)), const_spec((B_pad, M)),
    )

    outs = pl.pallas_call(
        _sgru_kernel,
        grid=(G,),
        in_specs=in_specs,
        out_specs=out_specs,
        out_shape=out_shape,
        scratch_shapes=[pltpu.VMEM((TC, B_pad, H3), f32)],       # chunk Wx buffer
        # init states (inputs 2..7) donate their HBM buffers to final states.
        input_output_aliases={2: 2, 3: 3, 4: 4, 5: 5, 6: 6, 7: 7},
        compiler_params=pltpu.CompilerParams(
            dimension_semantics=("arbitrary",),
            vmem_limit_bytes=32 * 1024 * 1024),
    )(
        scal, x_p,
        h0, v0, dU0, e0, E0, ha0,
        wx, params["b_x2h"],
        wh, params["b_h2h"],
        wa, params["b_att2h"],
        params["g_lnx"], params["beta_lnx"],
        params["g_lnh"], params["beta_lnh"],
        params["g_lnatt"], params["beta_lnatt"],
        wm, params["b_h2mod"],
    )
    out_h_p, out_mod_p, hF, vF, dUF, eF, EF, haF = outs

    out_h = out_h_p[:, :B, :]
    out_mod = out_mod_p[:, :B, :]
    final_states = {"h": hF[:B], "v": vF[:B], "dU": dUF[:B],
                    "trace_e": eF[:B], "trace_E": EF[:B], "h_att": haF[:B]}
    return final_states, out_h, out_mod


def make_params(key, input_dim, hidden_dim, mod_rank):
    """Deterministic synthetic init (shapes match the PyTorch module)."""
    f32 = jnp.float32
    H3 = 3 * hidden_dim
    MP3 = mod_rank + 3
    ks = jax.random.split(key, 4)

    def lin_w(k, fan_in, fan_out):
        # weights stored (in, out) so the kernel computes x @ W + b
        std = (2.0 / (fan_in + fan_out)) ** 0.5
        return std * jax.random.normal(k, (fan_in, fan_out), f32)

    params = {
        "w_x2h": lin_w(ks[0], input_dim, H3),
        "b_x2h": jnp.zeros((1, H3), f32),
        "w_h2h": lin_w(ks[1], hidden_dim, H3),
        "b_h2h": jnp.zeros((1, H3), f32),
        "w_att2h": lin_w(ks[2], mod_rank, H3),
        "b_att2h": jnp.zeros((1, H3), f32),
        "g_lnx": jnp.ones((1, H3), f32), "beta_lnx": jnp.zeros((1, H3), f32),
        "g_lnh": jnp.ones((1, H3), f32), "beta_lnh": jnp.zeros((1, H3), f32),
        "g_lnatt": jnp.ones((1, H3), f32), "beta_lnatt": jnp.zeros((1, H3), f32),
        "w_h2mod": lin_w(ks[3], hidden_dim, MP3),
        "b_h2mod": jnp.zeros((1, MP3), f32),
        "lambd": -3.0, "eta": 3.0, "tau_att": -2.0,
    }
    return params


def get_init_states(batch_size, hidden_dim, mod_rank):
    f32 = jnp.float32
    return {
        "h": jnp.zeros((batch_size, hidden_dim), f32),
        "v": jnp.zeros((batch_size, hidden_dim), f32),
        "dU": jnp.zeros((batch_size, mod_rank, mod_rank), f32),
        "trace_e": jnp.zeros((batch_size, mod_rank), f32),
        "trace_E": jnp.zeros((batch_size, mod_rank, mod_rank), f32),
        "h_att": jnp.zeros((batch_size, mod_rank), f32),
    }


if __name__ == "__main__":
    T, B, INPUT_DIM, HIDDEN_DIM, MOD_RANK = 16, 4, 16, 32, 8

    key = jax.random.PRNGKey(0)
    kx, kp = jax.random.split(key)
    x = jax.random.normal(kx, (T, B, INPUT_DIM), jnp.float32)
    params = make_params(kp, INPUT_DIM, HIDDEN_DIM, MOD_RANK)
    states = get_init_states(B, HIDDEN_DIM, MOD_RANK)

    final_states, out_h, out_mod = sgru_forward(x, states, params)
    jax.block_until_ready((final_states, out_h, out_mod))

    assert out_h.shape == (T, B, HIDDEN_DIM)
    assert out_mod.shape == (T, B, MOD_RANK + 3)
    assert final_states["dU"].shape == (B, MOD_RANK, MOD_RANK)
    assert final_states["h"].shape == (B, HIDDEN_DIM)
    assert bool(jnp.all(jnp.isfinite(out_h)))
    assert bool(jnp.all(jnp.isfinite(out_mod)))
    print("KERNEL_OK")
</pallas_src>

<mosaic_0001>
module attributes {stable_mosaic.version = 11 : i64} {
  func.func @_sgru_kernel(%arg0: i32, %arg1: memref<4xf32, #tpu.memory_space<smem>>, %arg2: memref<8x8x16xf32, #tpu.memory_space<vmem>>, %arg3: memref<8x32xf32, #tpu.memory_space<vmem>>, %arg4: memref<8x32xf32, #tpu.memory_space<vmem>>, %arg5: memref<8x8x8xf32, #tpu.memory_space<vmem>>, %arg6: memref<8x8xf32, #tpu.memory_space<vmem>>, %arg7: memref<8x8x8xf32, #tpu.memory_space<vmem>>, %arg8: memref<8x8xf32, #tpu.memory_space<vmem>>, %arg9: memref<16x96xbf16, #tpu.memory_space<vmem>>, %arg10: memref<1x96xf32, #tpu.memory_space<vmem>>, %arg11: memref<32x96xbf16, #tpu.memory_space<vmem>>, %arg12: memref<1x96xf32, #tpu.memory_space<vmem>>, %arg13: memref<8x96xbf16, #tpu.memory_space<vmem>>, %arg14: memref<1x96xf32, #tpu.memory_space<vmem>>, %arg15: memref<1x96xf32, #tpu.memory_space<vmem>>, %arg16: memref<1x96xf32, #tpu.memory_space<vmem>>, %arg17: memref<1x96xf32, #tpu.memory_space<vmem>>, %arg18: memref<1x96xf32, #tpu.memory_space<vmem>>, %arg19: memref<1x96xf32, #tpu.memory_space<vmem>>, %arg20: memref<1x96xf32, #tpu.memory_space<vmem>>, %arg21: memref<32x11xbf16, #tpu.memory_space<vmem>>, %arg22: memref<1x11xf32, #tpu.memory_space<vmem>>, %arg23: memref<8x8x32xf32, #tpu.memory_space<vmem>>, %arg24: memref<8x8x11xf32, #tpu.memory_space<vmem>>, %arg25: memref<8x32xf32, #tpu.memory_space<vmem>>, %arg26: memref<8x32xf32, #tpu.memory_space<vmem>>, %arg27: memref<8x8x8xf32, #tpu.memory_space<vmem>>, %arg28: memref<8x8xf32, #tpu.memory_space<vmem>>, %arg29: memref<8x8x8xf32, #tpu.memory_space<vmem>>, %arg30: memref<8x8xf32, #tpu.memory_space<vmem>>, %arg31: memref<8x8x96xf32, #tpu.memory_space<vmem>>) attributes {dimension_semantics = [#tpu.dimension_semantics<arbitrary>], iteration_bounds = array<i64: 2>, scalar_prefetch = 0 : i64, scratch_operands = 1 : i64, tpu.core_type = #tpu.core_type<tc>, window_params = [{transform_indices = @transform_0, window_bounds = array<i64: 4>}, {transform_indices = @transform_1, window_bounds = array<i64: 8, 8, 16>}, {pipeline_mode = #tpu.pipeline_mode<synchronous>, transform_indices = @transform_2, window_bounds = array<i64: 8, 32>}, {pipeline_mode = #tpu.pipeline_mode<synchronous>, transform_indices = @transform_3, window_bounds = array<i64: 8, 32>}, {pipeline_mode = #tpu.pipeline_mode<synchronous>, transform_indices = @transform_4, window_bounds = array<i64: 8, 8, 8>}, {pipeline_mode = #tpu.pipeline_mode<synchronous>, transform_indices = @transform_5, window_bounds = array<i64: 8, 8>}, {pipeline_mode = #tpu.pipeline_mode<synchronous>, transform_indices = @transform_6, window_bounds = array<i64: 8, 8, 8>}, {pipeline_mode = #tpu.pipeline_mode<synchronous>, transform_indices = @transform_7, window_bounds = array<i64: 8, 8>}, {pipeline_mode = #tpu.pipeline_mode<synchronous>, transform_indices = @transform_8, window_bounds = array<i64: 16, 96>}, {pipeline_mode = #tpu.pipeline_mode<synchronous>, transform_indices = @transform_9, window_bounds = array<i64: 1, 96>}, {pipeline_mode = #tpu.pipeline_mode<synchronous>, transform_indices = @transform_10, window_bounds = array<i64: 32, 96>}, {pipeline_mode = #tpu.pipeline_mode<synchronous>, transform_indices = @transform_11, window_bounds = array<i64: 1, 96>}, {pipeline_mode = #tpu.pipeline_mode<synchronous>, transform_indices = @transform_12, window_bounds = array<i64: 8, 96>}, {pipeline_mode = #tpu.pipeline_mode<synchronous>, transform_indices = @transform_13, window_bounds = array<i64: 1, 96>}, {pipeline_mode = #tpu.pipeline_mode<synchronous>, transform_indices = @transform_14, window_bounds = array<i64: 1, 96>}, {pipeline_mode = #tpu.pipeline_mode<synchronous>, transform_indices = @transform_15, window_bounds = array<i64: 1, 96>}, {pipeline_mode = #tpu.pipeline_mode<synchronous>, transform_indices = @transform_16, window_bounds = array<i64: 1, 96>}, {pipeline_mode = #tpu.pipeline_mode<synchronous>, transform_indices = @transform_17, window_bounds = array<i64: 1, 96>}, {pipeline_mode = #tpu.pipeline_mode<synchronous>, transform_indices = @transform_18, window_bounds = array<i64: 1, 96>}, {pipeline_mode = #tpu.pipeline_mode<synchronous>, transform_indices = @transform_19, window_bounds = array<i64: 1, 96>}, {pipeline_mode = #tpu.pipeline_mode<synchronous>, transform_indices = @transform_20, window_bounds = array<i64: 32, 11>}, {pipeline_mode = #tpu.pipeline_mode<synchronous>, transform_indices = @transform_21, window_bounds = array<i64: 1, 11>}, {transform_indices = @transform_22, window_bounds = array<i64: 8, 8, 32>}, {transform_indices = @transform_23, window_bounds = array<i64: 8, 8, 11>}, {pipeline_mode = #tpu.pipeline_mode<synchronous>, transform_indices = @transform_24, window_bounds = array<i64: 8, 32>}, {pipeline_mode = #tpu.pipeline_mode<synchronous>, transform_indices = @transform_25, window_bounds = array<i64: 8, 32>}, {pipeline_mode = #tpu.pipeline_mode<synchronous>, transform_indices = @transform_26, window_bounds = array<i64: 8, 8, 8>}, {pipeline_mode = #tpu.pipeline_mode<synchronous>, transform_indices = @transform_27, window_bounds = array<i64: 8, 8>}, {pipeline_mode = #tpu.pipeline_mode<synchronous>, transform_indices = @transform_28, window_bounds = array<i64: 8, 8, 8>}, {pipeline_mode = #tpu.pipeline_mode<synchronous>, transform_indices = @transform_29, window_bounds = array<i64: 8, 8>}]} {
    %c0_i32 = arith.constant 0 : i32
    %0 = arith.cmpi eq, %arg0, %c0_i32 : i32
    %1 = arith.extui %0 : i1 to i32
    %c0_i32_0 = arith.constant 0 : i32
    %2 = arith.cmpi ne, %1, %c0_i32_0 : i32
    scf.if %2 {
      %c0_375 = arith.constant 0 : index
      %c0_376 = arith.constant 0 : index
      %1443 = vector.load %arg3[%c0_375, %c0_376] : memref<8x32xf32, #tpu.memory_space<vmem>>, vector<8x32xf32>
      %c0_377 = arith.constant 0 : index
      %c0_378 = arith.constant 0 : index
      %1444 = vector.load %arg25[%c0_377, %c0_378] : memref<8x32xf32, #tpu.memory_space<vmem>>, vector<8x32xf32>
      tpu.vector_store %arg25[%c0_377, %c0_378], %1443 {strides = array<i32>} : memref<8x32xf32, #tpu.memory_space<vmem>>, vector<8x32xf32>,
      %c0_379 = arith.constant 0 : index
      %c0_380 = arith.constant 0 : index
      %1445 = vector.load %arg4[%c0_379, %c0_380] : memref<8x32xf32, #tpu.memory_space<vmem>>, vector<8x32xf32>
      %c0_381 = arith.constant 0 : index
      %c0_382 = arith.constant 0 : index
      %1446 = vector.load %arg26[%c0_381, %c0_382] : memref<8x32xf32, #tpu.memory_space<vmem>>, vector<8x32xf32>
      tpu.vector_store %arg26[%c0_381, %c0_382], %1445 {strides = array<i32>} : memref<8x32xf32, #tpu.memory_space<vmem>>, vector<8x32xf32>,
      %c0_383 = arith.constant 0 : index
      %c0_384 = arith.constant 0 : index
      %c0_385 = arith.constant 0 : index
      %1447 = vector.load %arg5[%c0_383, %c0_384, %c0_385] : memref<8x8x8xf32, #tpu.memory_space<vmem>>, vector<8x8x8xf32>
      %c0_386 = arith.constant 0 : index
      %c0_387 = arith.constant 0 : index
      %c0_388 = arith.constant 0 : index
      %1448 = vector.load %arg27[%c0_386, %c0_387, %c0_388] : memref<8x8x8xf32, #tpu.memory_space<vmem>>, vector<8x8x8xf32>
      tpu.vector_store %arg27[%c0_386, %c0_387, %c0_388], %1447 {strides = array<i32>} : memref<8x8x8xf32, #tpu.memory_space<vmem>>, vector<8x8x8xf32>,
      %c0_389 = arith.constant 0 : index
      %c0_390 = arith.constant 0 : index
      %1449 = vector.load %arg6[%c0_389, %c0_390] : memref<8x8xf32, #tpu.memory_space<vmem>>, vector<8x8xf32>
      %c0_391 = arith.constant 0 : index
      %c0_392 = arith.constant 0 : index
      %1450 = vector.load %arg28[%c0_391, %c0_392] : memref<8x8xf32, #tpu.memory_space<vmem>>, vector<8x8xf32>
      tpu.vector_store %arg28[%c0_391, %c0_392], %1449 {strides = array<i32>} : memref<8x8xf32, #tpu.memory_space<vmem>>, vector<8x8xf32>,
      %c0_393 = arith.constant 0 : index
      %c0_394 = arith.constant 0 : index
      %c0_395 = arith.constant 0 : index
      %1451 = vector.load %arg7[%c0_393, %c0_394, %c0_395] : memref<8x8x8xf32, #tpu.memory_space<vmem>>, vector<8x8x8xf32>
      %c0_396 = arith.constant 0 : index
      %c0_397 = arith.constant 0 : index
      %c0_398 = arith.constant 0 : index
      %1452 = vector.load %arg29[%c0_396, %c0_397, %c0_398] : memref<8x8x8xf32, #tpu.memory_space<vmem>>, vector<8x8x8xf32>
      tpu.vector_store %arg29[%c0_396, %c0_397, %c0_398], %1451 {strides = array<i32>} : memref<8x8x8xf32, #tpu.memory_space<vmem>>, vector<8x8x8xf32>,
      %c0_399 = arith.constant 0 : index
      %c0_400 = arith.constant 0 : index
      %1453 = vector.load %arg8[%c0_399, %c0_400] : memref<8x8xf32, #tpu.memory_space<vmem>>, vector<8x8xf32>
      %c0_401 = arith.constant 0 : index
      %c0_402 = arith.constant 0 : index
      %1454 = vector.load %arg30[%c0_401, %c0_402] : memref<8x8xf32, #tpu.memory_space<vmem>>, vector<8x8xf32>
      tpu.vector_store %arg30[%c0_401, %c0_402], %1453 {strides = array<i32>} : memref<8x8xf32, #tpu.memory_space<vmem>>, vector<8x8xf32>,
    } else {
    }
    %c0 = arith.constant 0 : index
    %3 = memref.load %arg1[%c0] : memref<4xf32, #tpu.memory_space<smem>>
    %c1 = arith.constant 1 : index
    %4 = memref.load %arg1[%c1] : memref<4xf32, #tpu.memory_space<smem>>
    %c2 = arith.constant 2 : index
    %5 = memref.load %arg1[%c2] : memref<4xf32, #tpu.memory_space<smem>>
    %c0_1 = arith.constant 0 : index
    %c0_2 = arith.constant 0 : index
    %6 = vector.load %arg10[%c0_1, %c0_2] : memref<1x96xf32, #tpu.memory_space<vmem>>, vector<1x96xf32>
    %c0_3 = arith.constant 0 : index
    %c0_4 = arith.constant 0 : index
    %7 = vector.load %arg12[%c0_3, %c0_4] : memref<1x96xf32, #tpu.memory_space<vmem>>, vector<1x96xf32>
    %c0_5 = arith.constant 0 : index
    %c0_6 = arith.constant 0 : index
    %8 = vector.load %arg14[%c0_5, %c0_6] : memref<1x96xf32, #tpu.memory_space<vmem>>, vector<1x96xf32>
    %c0_7 = arith.constant 0 : index
    %c0_8 = arith.constant 0 : index
    %9 = vector.load %arg15[%c0_7, %c0_8] : memref<1x96xf32, #tpu.memory_space<vmem>>, vector<1x96xf32>
    %c0_9 = arith.constant 0 : index
    %c0_10 = arith.constant 0 : index
    %10 = vector.load %arg16[%c0_9, %c0_10] : memref<1x96xf32, #tpu.memory_space<vmem>>, vector<1x96xf32>
    %c0_11 = arith.constant 0 : index
    %c0_12 = arith.constant 0 : index
    %11 = vector.load %arg17[%c0_11, %c0_12] : memref<1x96xf32, #tpu.memory_space<vmem>>, vector<1x96xf32>
    %c0_13 = arith.constant 0 : index
    %c0_14 = arith.constant 0 : index
    %12 = vector.load %arg18[%c0_13, %c0_14] : memref<1x96xf32, #tpu.memory_space<vmem>>, vector<1x96xf32>
    %c0_15 = arith.constant 0 : index
    %c0_16 = arith.constant 0 : index
    %13 = vector.load %arg19[%c0_15, %c0_16] : memref<1x96xf32, #tpu.memory_space<vmem>>, vector<1x96xf32>
    %c0_17 = arith.constant 0 : index
    %c0_18 = arith.constant 0 : index
    %14 = vector.load %arg20[%c0_17, %c0_18] : memref<1x96xf32, #tpu.memory_space<vmem>>, vector<1x96xf32>
    %c0_19 = arith.constant 0 : index
    %c0_20 = arith.constant 0 : index
    %15 = vector.load %arg22[%c0_19, %c0_20] : memref<1x11xf32, #tpu.memory_space<vmem>>, vector<1x11xf32>
    %c0_21 = arith.constant 0 : index
    %c0_22 = arith.constant 0 : index
    %c0_23 = arith.constant 0 : index
    %16 = vector.load %arg2[%c0_21, %c0_22, %c0_23] : memref<8x8x16xf32, #tpu.memory_space<vmem>>, vector<8x8x16xf32>
    %17 = vector.shape_cast %16 : vector<8x8x16xf32> to vector<64x16xf32>
    %18 = arith.truncf %17 : vector<64x16xf32> to vector<64x16xbf16>
    %c0_24 = arith.constant 0 : index
    %c0_25 = arith.constant 0 : index
    %19 = vector.load %arg9[%c0_24, %c0_25] : memref<16x96xbf16, #tpu.memory_space<vmem>>, vector<16x96xbf16>
    %cst = arith.constant dense<0.000000e+00> : vector<64x96xf32>
    %20 = tpu.matmul %18, %19, %cst {dimension_numbers = #tpu.dot_dimension_numbers<[1], [0], [0], [1], [0, 0, 1, 1], [], []>} : vector<64x16xbf16>, vector<16x96xbf16>, vector<64x96xf32> -> vector<64x96xf32>
    %21 = vector.broadcast %6 : vector<1x96xf32> to vector<64x96xf32>
    %22 = arith.addf %20, %21 : vector<64x96xf32>
    %cst_26 = arith.constant dense<0.000000e+00> : vector<64xf32>
    %23 = vector.multi_reduction <add>, %22, %cst_26 [1] : vector<64x96xf32> to vector<64xf32>
    %24 = vector.shape_cast %23 : vector<64xf32> to vector<64x1xf32>
    %25 = arith.mulf %22, %22 : vector<64x96xf32>
    %cst_27 = arith.constant dense<0.000000e+00> : vector<64xf32>
    %26 = vector.multi_reduction <add>, %25, %cst_27 [1] : vector<64x96xf32> to vector<64xf32>
    %27 = vector.shape_cast %26 : vector<64xf32> to vector<64x1xf32>
    %cst_28 = arith.constant 0.010416667 : f32
    %28 = vector.broadcast %cst_28 : f32 to vector<64x1xf32>
    %29 = arith.mulf %24, %28 : vector<64x1xf32>
    %cst_29 = arith.constant 0.010416667 : f32
    %30 = vector.broadcast %cst_29 : f32 to vector<64x1xf32>
    %31 = arith.mulf %27, %30 : vector<64x1xf32>
    %32 = arith.mulf %29, %29 : vector<64x1xf32>
    %33 = arith.subf %31, %32 : vector<64x1xf32>
    %34 = vector.broadcast %29 : vector<64x1xf32> to vector<64x96xf32>
    %35 = arith.subf %22, %34 : vector<64x96xf32>
    %cst_30 = arith.constant 9.99999974E-6 : f32
    %36 = vector.broadcast %cst_30 : f32 to vector<64x1xf32>
    %37 = arith.addf %33, %36 : vector<64x1xf32>
    %38 = math.rsqrt %37 : vector<64x1xf32>
    %39 = vector.broadcast %38 : vector<64x1xf32> to vector<64x96xf32>
    %40 = arith.mulf %35, %39 : vector<64x96xf32>
    %41 = vector.broadcast %9 : vector<1x96xf32> to vector<64x96xf32>
    %42 = arith.mulf %40, %41 : vector<64x96xf32>
    %43 = vector.broadcast %10 : vector<1x96xf32> to vector<64x96xf32>
    %44 = arith.addf %42, %43 : vector<64x96xf32>
    %45 = vector.shape_cast %44 : vector<64x96xf32> to vector<8x8x96xf32>
    %c0_31 = arith.constant 0 : index
    %c0_32 = arith.constant 0 : index
    %c0_33 = arith.constant 0 : index
    %46 = vector.load %arg31[%c0_31, %c0_32, %c0_33] : memref<8x8x96xf32, #tpu.memory_space<vmem>>, vector<8x8x96xf32>
    tpu.vector_store %arg31[%c0_31, %c0_32, %c0_33], %45 {strides = array<i32>} : memref<8x8x96xf32, #tpu.memory_space<vmem>>, vector<8x8x96xf32>,
    %c0_34 = arith.constant 0 : index
    %c0_35 = arith.constant 0 : index
    %47 = vector.load %arg25[%c0_34, %c0_35] : memref<8x32xf32, #tpu.memory_space<vmem>>, vector<8x32xf32>
    %c0_36 = arith.constant 0 : index
    %c0_37 = arith.constant 0 : index
    %48 = vector.load %arg26[%c0_36, %c0_37] : memref<8x32xf32, #tpu.memory_space<vmem>>, vector<8x32xf32>
    %c0_38 = arith.constant 0 : index
    %c0_39 = arith.constant 0 : index
    %c0_40 = arith.constant 0 : index
    %49 = vector.load %arg27[%c0_38, %c0_39, %c0_40] : memref<8x8x8xf32, #tpu.memory_space<vmem>>, vector<8x8x8xf32>
    %c0_41 = arith.constant 0 : index
    %c0_42 = arith.constant 0 : index
    %50 = vector.load %arg28[%c0_41, %c0_42] : memref<8x8xf32, #tpu.memory_space<vmem>>, vector<8x8xf32>
    %c0_43 = arith.constant 0 : index
    %c0_44 = arith.constant 0 : index
    %c0_45 = arith.constant 0 : index
    %51 = vector.load %arg29[%c0_43, %c0_44, %c0_45] : memref<8x8x8xf32, #tpu.memory_space<vmem>>, vector<8x8x8xf32>
    %c0_46 = arith.constant 0 : index
    %c0_47 = arith.constant 0 : index
    %52 = vector.load %arg30[%c0_46, %c0_47] : memref<8x8xf32, #tpu.memory_space<vmem>>, vector<8x8xf32>
    %c0_i32_48 = arith.constant 0 : i32
    %53 = arith.index_cast %c0_i32_48 : i32 to index
    %c0_49 = arith.constant 0 : index
    %c0_50 = arith.constant 0 : index
    %54 = vector.load %arg31[%53, %c0_49, %c0_50] : memref<8x8x96xf32, #tpu.memory_space<vmem>>, vector<1x8x96xf32>
    %55 = vector.shape_cast %54 : vector<1x8x96xf32> to vector<8x96xf32>
    %56 = arith.truncf %47 : vector<8x32xf32> to vector<8x32xbf16>
    %c0_51 = arith.constant 0 : index
    %c0_52 = arith.constant 0 : index
    %57 = vector.load %arg11[%c0_51, %c0_52] : memref<32x96xbf16, #tpu.memory_space<vmem>>, vector<32x96xbf16>
    %cst_53 = arith.constant dense<0.000000e+00> : vector<8x96xf32>
    %58 = tpu.matmul %56, %57, %cst_53 {dimension_numbers = #tpu.dot_dimension_numbers<[1], [0], [0], [1], [0, 0, 1, 1], [], []>} : vector<8x32xbf16>, vector<32x96xbf16>, vector<8x96xf32> -> vector<8x96xf32>
    %59 = vector.broadcast %7 : vector<1x96xf32> to vector<8x96xf32>
    %60 = arith.addf %58, %59 : vector<8x96xf32>
    %cst_54 = arith.constant dense<0.000000e+00> : vector<8xf32>
    %61 = vector.multi_reduction <add>, %60, %cst_54 [1] : vector<8x96xf32> to vector<8xf32>
    %62 = vector.shape_cast %61 : vector<8xf32> to vector<8x1xf32>
    %63 = arith.mulf %60, %60 : vector<8x96xf32>
    %cst_55 = arith.constant dense<0.000000e+00> : vector<8xf32>
    %64 = vector.multi_reduction <add>, %63, %cst_55 [1] : vector<8x96xf32> to vector<8xf32>
    %65 = vector.shape_cast %64 : vector<8xf32> to vector<8x1xf32>
    %cst_56 = arith.constant 0.010416667 : f32
    %66 = vector.broadcast %cst_56 : f32 to vector<8x1xf32>
    %67 = arith.mulf %62, %66 : vector<8x1xf32>
    %cst_57 = arith.constant 0.010416667 : f32
    %68 = vector.broadcast %cst_57 : f32 to vector<8x1xf32>
    %69 = arith.mulf %65, %68 : vector<8x1xf32>
    %70 = arith.mulf %67, %67 : vector<8x1xf32>
    %71 = arith.subf %69, %70 : vector<8x1xf32>
    %72 = vector.broadcast %67 : vector<8x1xf32> to vector<8x96xf32>
    %73 = arith.subf %60, %72 : vector<8x96xf32>
    %cst_58 = arith.constant 9.99999974E-6 : f32
    %74 = vector.broadcast %cst_58 : f32 to vector<8x1xf32>
    %75 = arith.addf %71, %74 : vector<8x1xf32>
    %76 = math.rsqrt %75 : vector<8x1xf32>
    %77 = vector.broadcast %76 : vector<8x1xf32> to vector<8x96xf32>
    %78 = arith.mulf %73, %77 : vector<8x96xf32>
    %79 = vector.broadcast %11 : vector<1x96xf32> to vector<8x96xf32>
    %80 = arith.mulf %78, %79 : vector<8x96xf32>
    %81 = vector.broadcast %12 : vector<1x96xf32> to vector<8x96xf32>
    %82 = arith.addf %80, %81 : vector<8x96xf32>
    %83 = arith.truncf %52 : vector<8x8xf32> to vector<8x8xbf16>
    %c0_59 = arith.constant 0 : index
    %c0_60 = arith.constant 0 : index
    %84 = vector.load %arg13[%c0_59, %c0_60] : memref<8x96xbf16, #tpu.memory_space<vmem>>, vector<8x96xbf16>
    %cst_61 = arith.constant dense<0.000000e+00> : vector<8x96xf32>
    %85 = tpu.matmul %83, %84, %cst_61 {dimension_numbers = #tpu.dot_dimension_numbers<[1], [0], [0], [1], [0, 0, 1, 1], [], []>} : vector<8x8xbf16>, vector<8x96xbf16>, vector<8x96xf32> -> vector<8x96xf32>
    %86 = vector.broadcast %8 : vector<1x96xf32> to vector<8x96xf32>
    %87 = arith.addf %85, %86 : vector<8x96xf32>
    %cst_62 = arith.constant dense<0.000000e+00> : vector<8xf32>
    %88 = vector.multi_reduction <add>, %87, %cst_62 [1] : vector<8x96xf32> to vector<8xf32>
    %89 = vector.shape_cast %88 : vector<8xf32> to vector<8x1xf32>
    %90 = arith.mulf %87, %87 : vector<8x96xf32>
    %cst_63 = arith.constant dense<0.000000e+00> : vector<8xf32>
    %91 = vector.multi_reduction <add>, %90, %cst_63 [1] : vector<8x96xf32> to vector<8xf32>
    %92 = vector.shape_cast %91 : vector<8xf32> to vector<8x1xf32>
    %cst_64 = arith.constant 0.010416667 : f32
    %93 = vector.broadcast %cst_64 : f32 to vector<8x1xf32>
    %94 = arith.mulf %89, %93 : vector<8x1xf32>
    %cst_65 = arith.constant 0.010416667 : f32
    %95 = vector.broadcast %cst_65 : f32 to vector<8x1xf32>
    %96 = arith.mulf %92, %95 : vector<8x1xf32>
    %97 = arith.mulf %94, %94 : vector<8x1xf32>
    %98 = arith.subf %96, %97 : vector<8x1xf32>
    %99 = vector.broadcast %94 : vector<8x1xf32> to vector<8x96xf32>
    %100 = arith.subf %87, %99 : vector<8x96xf32>
    %cst_66 = arith.constant 9.99999974E-6 : f32
    %101 = vector.broadcast %cst_66 : f32 to vector<8x1xf32>
    %102 = arith.addf %98, %101 : vector<8x1xf32>
    %103 = math.rsqrt %102 : vector<8x1xf32>
    %104 = vector.broadcast %103 : vector<8x1xf32> to vector<8x96xf32>
    %105 = arith.mulf %100, %104 : vector<8x96xf32>
    %106 = vector.broadcast %13 : vector<1x96xf32> to vector<8x96xf32>
    %107 = arith.mulf %105, %106 : vector<8x96xf32>
    %108 = vector.broadcast %14 : vector<1x96xf32> to vector<8x96xf32>
    %109 = arith.addf %107, %108 : vector<8x96xf32>
    %110 = vector.extract_strided_slice %55 {offsets = [0, 0], sizes = [8, 32], strides = [1, 1]} : vector<8x96xf32> to vector<8x32xf32>
    %111 = vector.extract_strided_slice %82 {offsets = [0, 0], sizes = [8, 32], strides = [1, 1]} : vector<8x96xf32> to vector<8x32xf32>
    %112 = arith.addf %110, %111 : vector<8x32xf32>
    %113 = vector.extract_strided_slice %109 {offsets = [0, 0], sizes = [8, 32], strides = [1, 1]} : vector<8x96xf32> to vector<8x32xf32>
    %114 = arith.addf %112, %113 : vector<8x32xf32>
    %115 = arith.negf %114 : vector<8x32xf32>
    %116 = math.exp %115 : vector<8x32xf32>
    %cst_67 = arith.constant 1.000000e+00 : f32
    %117 = vector.broadcast %cst_67 : f32 to vector<8x32xf32>
    %118 = arith.addf %117, %116 : vector<8x32xf32>
    %119 = arith.divf %117, %118 : vector<8x32xf32>
    %120 = vector.extract_strided_slice %55 {offsets = [0, 32], sizes = [8, 32], strides = [1, 1]} : vector<8x96xf32> to vector<8x32xf32>
    %121 = vector.extract_strided_slice %82 {offsets = [0, 32], sizes = [8, 32], strides = [1, 1]} : vector<8x96xf32> to vector<8x32xf32>
    %122 = arith.addf %120, %121 : vector<8x32xf32>
    %123 = vector.extract_strided_slice %109 {offsets = [0, 32], sizes = [8, 32], strides = [1, 1]} : vector<8x96xf32> to vector<8x32xf32>
    %124 = arith.addf %122, %123 : vector<8x32xf32>
    %125 = arith.negf %124 : vector<8x32xf32>
    %126 = math.exp %125 : vector<8x32xf32>
    %cst_68 = arith.constant 1.000000e+00 : f32
    %127 = vector.broadcast %cst_68 : f32 to vector<8x32xf32>
    %128 = arith.addf %127, %126 : vector<8x32xf32>
    %129 = arith.divf %127, %128 : vector<8x32xf32>
    %130 = vector.extract_strided_slice %55 {offsets = [0, 64], sizes = [8, 32], strides = [1, 1]} : vector<8x96xf32> to vector<8x32xf32>
    %131 = vector.extract_strided_slice %82 {offsets = [0, 64], sizes = [8, 32], strides = [1, 1]} : vector<8x96xf32> to vector<8x32xf32>
    %132 = arith.addf %130, %131 : vector<8x32xf32>
    %133 = vector.extract_strided_slice %109 {offsets = [0, 64], sizes = [8, 32], strides = [1, 1]} : vector<8x96xf32> to vector<8x32xf32>
    %134 = arith.addf %132, %133 : vector<8x32xf32>
    %cst_69 = arith.constant 1.000000e+00 : f32
    %135 = vector.broadcast %cst_69 : f32 to vector<8x32xf32>
    %136 = arith.subf %135, %119 : vector<8x32xf32>
    %137 = arith.mulf %136, %48 : vector<8x32xf32>
    %138 = arith.mulf %119, %129 : vector<8x32xf32>
    %139 = arith.mulf %138, %134 : vector<8x32xf32>
    %140 = arith.addf %137, %139 : vector<8x32xf32>
    %cst_70 = arith.constant 0.000000e+00 : f32
    %141 = vector.broadcast %cst_70 : f32 to vector<8x32xf32>
    %142 = arith.maximumf %140, %141 : vector<8x32xf32>
    %143 = arith.truncf %142 : vector<8x32xf32> to vector<8x32xbf16>
    %c0_71 = arith.constant 0 : index
    %c0_72 = arith.constant 0 : index
    %144 = vector.load %arg21[%c0_71, %c0_72] : memref<32x11xbf16, #tpu.memory_space<vmem>>, vector<32x11xbf16>
    %cst_73 = arith.constant dense<0.000000e+00> : vector<8x11xf32>
    %145 = tpu.matmul %143, %144, %cst_73 {dimension_numbers = #tpu.dot_dimension_numbers<[1], [0], [0], [1], [0, 0, 1, 1], [], []>} : vector<8x32xbf16>, vector<32x11xbf16>, vector<8x11xf32> -> vector<8x11xf32>
    %146 = vector.broadcast %15 : vector<1x11xf32> to vector<8x11xf32>
    %147 = arith.addf %145, %146 : vector<8x11xf32>
    %cst_74 = arith.constant 0.000000e+00 : f32
    %148 = vector.broadcast %cst_74 : f32 to vector<8x11xf32>
    %149 = arith.maximumf %147, %148 : vector<8x11xf32>
    %150 = vector.extract_strided_slice %149 {offsets = [0, 0], sizes = [8, 1], strides = [1, 1]} : vector<8x11xf32> to vector<8x1xf32>
    %151 = arith.negf %150 : vector<8x1xf32>
    %152 = math.exp %151 : vector<8x1xf32>
    %cst_75 = arith.constant 1.000000e+00 : f32
    %153 = vector.broadcast %cst_75 : f32 to vector<8x1xf32>
    %154 = arith.addf %153, %152 : vector<8x1xf32>
    %155 = arith.divf %153, %154 : vector<8x1xf32>
    %156 = vector.extract_strided_slice %149 {offsets = [0, 1], sizes = [8, 1], strides = [1, 1]} : vector<8x11xf32> to vector<8x1xf32>
    %157 = arith.negf %156 : vector<8x1xf32>
    %158 = math.exp %157 : vector<8x1xf32>
    %cst_76 = arith.constant 1.000000e+00 : f32
    %159 = vector.broadcast %cst_76 : f32 to vector<8x1xf32>
    %160 = arith.addf %159, %158 : vector<8x1xf32>
    %161 = arith.divf %159, %160 : vector<8x1xf32>
    %162 = vector.extract_strided_slice %149 {offsets = [0, 2], sizes = [8, 1], strides = [1, 1]} : vector<8x11xf32> to vector<8x1xf32>
    %163 = math.tanh %162 : vector<8x1xf32>
    %164 = vector.extract_strided_slice %149 {offsets = [0, 3], sizes = [8, 8], strides = [1, 1]} : vector<8x11xf32> to vector<8x8xf32>
    %165 = vector.shape_cast %52 : vector<8x8xf32> to vector<8x1x8xf32>
    %166 = vector.broadcast %165 : vector<8x1x8xf32> to vector<8x8x8xf32>
    %167 = arith.mulf %49, %166 : vector<8x8x8xf32>
    %cst_77 = arith.constant dense<0.000000e+00> : vector<8x8xf32>
    %168 = vector.multi_reduction <add>, %167, %cst_77 [2] : vector<8x8x8xf32> to vector<8x8xf32>
    %169 = arith.addf %164, %168 : vector<8x8xf32>
    %cst_78 = arith.constant dense<0xFF800000> : vector<8xf32>
    %170 = vector.multi_reduction <maximumf>, %169, %cst_78 [1] : vector<8x8xf32> to vector<8xf32>
    %171 = vector.shape_cast %170 : vector<8xf32> to vector<8x1xf32>
    %172 = vector.broadcast %171 : vector<8x1xf32> to vector<8x8xf32>
    %173 = arith.cmpf oge, %169, %172 : vector<8x8xf32>
    %cst_79 = arith.constant 0.000000e+00 : f32
    %174 = vector.broadcast %cst_79 : f32 to vector<8x8xf32>
    %175 = arith.select %173, %169, %174 : vector<8x8xi1>, vector<8x8xf32>
    %cst_80 = arith.constant 1.000000e+00 : f32
    %176 = arith.subf %cst_80, %5 : f32
    %177 = vector.broadcast %176 : f32 to vector<8x8xf32>
    %178 = arith.mulf %177, %52 : vector<8x8xf32>
    %179 = vector.broadcast %5 : f32 to vector<8x8xf32>
    %180 = arith.mulf %179, %175 : vector<8x8xf32>
    %181 = arith.addf %178, %180 : vector<8x8xf32>
    %cst_81 = arith.constant 1.000000e+00 : f32
    %182 = vector.broadcast %cst_81 : f32 to vector<8x1xf32>
    %183 = arith.subf %182, %155 : vector<8x1xf32>
    %184 = vector.broadcast %183 : vector<8x1xf32> to vector<8x8xf32>
    %185 = arith.mulf %184, %50 : vector<8x8xf32>
    %186 = vector.broadcast %155 : vector<8x1xf32> to vector<8x8xf32>
    %187 = arith.mulf %186, %52 : vector<8x8xf32>
    %188 = arith.addf %185, %187 : vector<8x8xf32>
    %189 = vector.shape_cast %181 : vector<8x8xf32> to vector<8x8x1xf32>
    %190 = vector.shape_cast %188 : vector<8x8xf32> to vector<8x1x8xf32>
    %191 = vector.broadcast %189 : vector<8x8x1xf32> to vector<8x8x8xf32>
    %192 = vector.broadcast %190 : vector<8x1x8xf32> to vector<8x8x8xf32>
    %193 = arith.mulf %191, %192 : vector<8x8x8xf32>
    %194 = vector.shape_cast %188 : vector<8x8xf32> to vector<8x8x1xf32>
    %195 = vector.shape_cast %181 : vector<8x8xf32> to vector<8x1x8xf32>
    %196 = vector.broadcast %194 : vector<8x8x1xf32> to vector<8x8x8xf32>
    %197 = vector.broadcast %195 : vector<8x1x8xf32> to vector<8x8x8xf32>
    %198 = arith.mulf %196, %197 : vector<8x8x8xf32>
    %199 = arith.subf %193, %198 : vector<8x8x8xf32>
    %200 = vector.shape_cast %161 : vector<8x1xf32> to vector<8x1x1xf32>
    %cst_82 = arith.constant 1.000000e+00 : f32
    %201 = vector.broadcast %cst_82 : f32 to vector<8x1x1xf32>
    %202 = arith.subf %201, %200 : vector<8x1x1xf32>
    %203 = vector.broadcast %202 : vector<8x1x1xf32> to vector<8x8x8xf32>
    %204 = arith.mulf %203, %51 : vector<8x8x8xf32>
    %205 = vector.shape_cast %161 : vector<8x1xf32> to vector<8x1x1xf32>
    %206 = vector.broadcast %205 : vector<8x1x1xf32> to vector<8x8x8xf32>
    %207 = arith.mulf %206, %199 : vector<8x8x8xf32>
    %208 = arith.addf %204, %207 : vector<8x8x8xf32>
    %cst_83 = arith.constant 1.000000e+00 : f32
    %209 = arith.subf %cst_83, %3 : f32
    %210 = vector.broadcast %209 : f32 to vector<8x8x8xf32>
    %211 = arith.mulf %210, %49 : vector<8x8x8xf32>
    %212 = vector.shape_cast %163 : vector<8x1xf32> to vector<8x1x1xf32>
    %213 = vector.broadcast %4 : f32 to vector<8x1x1xf32>
    %214 = arith.mulf %213, %212 : vector<8x1x1xf32>
    %215 = vector.broadcast %214 : vector<8x1x1xf32> to vector<8x8x8xf32>
    %216 = arith.mulf %215, %208 : vector<8x8x8xf32>
    %217 = arith.addf %211, %216 : vector<8x8x8xf32>
    %218 = arith.index_cast %c0_i32_48 : i32 to index
    %c0_84 = arith.constant 0 : index
    %c0_85 = arith.constant 0 : index
    %219 = vector.load %arg23[%218, %c0_84, %c0_85] : memref<8x8x32xf32, #tpu.memory_space<vmem>>, vector<1x8x32xf32>
    %220 = vector.shape_cast %219 : vector<1x8x32xf32> to vector<8x32xf32>
    %221 = vector.shape_cast %142 : vector<8x32xf32> to vector<1x8x32xf32>
    tpu.vector_store %arg23[%218, %c0_84, %c0_85], %221 {strides = array<i32>} : memref<8x8x32xf32, #tpu.memory_space<vmem>>, vector<1x8x32xf32>,
    %222 = arith.index_cast %c0_i32_48 : i32 to index
    %c0_86 = arith.constant 0 : index
    %c0_87 = arith.constant 0 : index
    %223 = vector.load %arg24[%222, %c0_86, %c0_87] : memref<8x8x11xf32, #tpu.memory_space<vmem>>, vector<1x8x11xf32>
    %224 = vector.shape_cast %223 : vector<1x8x11xf32> to vector<8x11xf32>
    %225 = vector.shape_cast %149 : vector<8x11xf32> to vector<1x8x11xf32>
    tpu.vector_store %arg24[%222, %c0_86, %c0_87], %225 {strides = array<i32>} : memref<8x8x11xf32, #tpu.memory_space<vmem>>, vector<1x8x11xf32>,
    %c1_i32 = arith.constant 1 : i32
    %226 = arith.index_cast %c1_i32 : i32 to index
    %c0_88 = arith.constant 0 : index
    %c0_89 = arith.constant 0 : index
    %227 = vector.load %arg31[%226, %c0_88, %c0_89] : memref<8x8x96xf32, #tpu.memory_space<vmem>>, vector<1x8x96xf32>
    %228 = vector.shape_cast %227 : vector<1x8x96xf32> to vector<8x96xf32>
    %229 = arith.truncf %142 : vector<8x32xf32> to vector<8x32xbf16>
    %c0_90 = arith.constant 0 : index
    %c0_91 = arith.constant 0 : index
    %230 = vector.load %arg11[%c0_90, %c0_91] : memref<32x96xbf16, #tpu.memory_space<vmem>>, vector<32x96xbf16>
    %cst_92 = arith.constant dense<0.000000e+00> : vector<8x96xf32>
    %231 = tpu.matmul %229, %230, %cst_92 {dimension_numbers = #tpu.dot_dimension_numbers<[1], [0], [0], [1], [0, 0, 1, 1], [], []>} : vector<8x32xbf16>, vector<32x96xbf16>, vector<8x96xf32> -> vector<8x96xf32>
    %232 = vector.broadcast %7 : vector<1x96xf32> to vector<8x96xf32>
    %233 = arith.addf %231, %232 : vector<8x96xf32>
    %cst_93 = arith.constant dense<0.000000e+00> : vector<8xf32>
    %234 = vector.multi_reduction <add>, %233, %cst_93 [1] : vector<8x96xf32> to vector<8xf32>
    %235 = vector.shape_cast %234 : vector<8xf32> to vector<8x1xf32>
    %236 = arith.mulf %233, %233 : vector<8x96xf32>
    %cst_94 = arith.constant dense<0.000000e+00> : vector<8xf32>
    %237 = vector.multi_reduction <add>, %236, %cst_94 [1] : vector<8x96xf32> to vector<8xf32>
    %238 = vector.shape_cast %237 : vector<8xf32> to vector<8x1xf32>
    %cst_95 = arith.constant 0.010416667 : f32
    %239 = vector.broadcast %cst_95 : f32 to vector<8x1xf32>
    %240 = arith.mulf %235, %239 : vector<8x1xf32>
    %cst_96 = arith.constant 0.010416667 : f32
    %241 = vector.broadcast %cst_96 : f32 to vector<8x1xf32>
    %242 = arith.mulf %238, %241 : vector<8x1xf32>
    %243 = arith.mulf %240, %240 : vector<8x1xf32>
    %244 = arith.subf %242, %243 : vector<8x1xf32>
    %245 = vector.broadcast %240 : vector<8x1xf32> to vector<8x96xf32>
    %246 = arith.subf %233, %245 : vector<8x96xf32>
    %cst_97 = arith.constant 9.99999974E-6 : f32
    %247 = vector.broadcast %cst_97 : f32 to vector<8x1xf32>
    %248 = arith.addf %244, %247 : vector<8x1xf32>
    %249 = math.rsqrt %248 : vector<8x1xf32>
    %250 = vector.broadcast %249 : vector<8x1xf32> to vector<8x96xf32>
    %251 = arith.mulf %246, %250 : vector<8x96xf32>
    %252 = vector.broadcast %11 : vector<1x96xf32> to vector<8x96xf32>
    %253 = arith.mulf %251, %252 : vector<8x96xf32>
    %254 = vector.broadcast %12 : vector<1x96xf32> to vector<8x96xf32>
    %255 = arith.addf %253, %254 : vector<8x96xf32>
    %256 = arith.truncf %181 : vector<8x8xf32> to vector<8x8xbf16>
    %c0_98 = arith.constant 0 : index
    %c0_99 = arith.constant 0 : index
    %257 = vector.load %arg13[%c0_98, %c0_99] : memref<8x96xbf16, #tpu.memory_space<vmem>>, vector<8x96xbf16>
    %cst_100 = arith.constant dense<0.000000e+00> : vector<8x96xf32>
    %258 = tpu.matmul %256, %257, %cst_100 {dimension_numbers = #tpu.dot_dimension_numbers<[1], [0], [0], [1], [0, 0, 1, 1], [], []>} : vector<8x8xbf16>, vector<8x96xbf16>, vector<8x96xf32> -> vector<8x96xf32>
    %259 = vector.broadcast %8 : vector<1x96xf32> to vector<8x96xf32>
    %260 = arith.addf %258, %259 : vector<8x96xf32>
    %cst_101 = arith.constant dense<0.000000e+00> : vector<8xf32>
    %261 = vector.multi_reduction <add>, %260, %cst_101 [1] : vector<8x96xf32> to vector<8xf32>
    %262 = vector.shape_cast %261 : vector<8xf32> to vector<8x1xf32>
    %263 = arith.mulf %260, %260 : vector<8x96xf32>
    %cst_102 = arith.constant dense<0.000000e+00> : vector<8xf32>
    %264 = vector.multi_reduction <add>, %263, %cst_102 [1] : vector<8x96xf32> to vector<8xf32>
    %265 = vector.shape_cast %264 : vector<8xf32> to vector<8x1xf32>
    %cst_103 = arith.constant 0.010416667 : f32
    %266 = vector.broadcast %cst_103 : f32 to vector<8x1xf32>
    %267 = arith.mulf %262, %266 : vector<8x1xf32>
    %cst_104 = arith.constant 0.010416667 : f32
    %268 = vector.broadcast %cst_104 : f32 to vector<8x1xf32>
    %269 = arith.mulf %265, %268 : vector<8x1xf32>
    %270 = arith.mulf %267, %267 : vector<8x1xf32>
    %271 = arith.subf %269, %270 : vector<8x1xf32>
    %272 = vector.broadcast %267 : vector<8x1xf32> to vector<8x96xf32>
    %273 = arith.subf %260, %272 : vector<8x96xf32>
    %cst_105 = arith.constant 9.99999974E-6 : f32
    %274 = vector.broadcast %cst_105 : f32 to vector<8x1xf32>
    %275 = arith.addf %271, %274 : vector<8x1xf32>
    %276 = math.rsqrt %275 : vector<8x1xf32>
    %277 = vector.broadcast %276 : vector<8x1xf32> to vector<8x96xf32>
    %278 = arith.mulf %273, %277 : vector<8x96xf32>
    %279 = vector.broadcast %13 : vector<1x96xf32> to vector<8x96xf32>
    %280 = arith.mulf %278, %279 : vector<8x96xf32>
    %281 = vector.broadcast %14 : vector<1x96xf32> to vector<8x96xf32>
    %282 = arith.addf %280, %281 : vector<8x96xf32>
    %283 = vector.extract_strided_slice %228 {offsets = [0, 0], sizes = [8, 32], strides = [1, 1]} : vector<8x96xf32> to vector<8x32xf32>
    %284 = vector.extract_strided_slice %255 {offsets = [0, 0], sizes = [8, 32], strides = [1, 1]} : vector<8x96xf32> to vector<8x32xf32>
    %285 = arith.addf %283, %284 : vector<8x32xf32>
    %286 = vector.extract_strided_slice %282 {offsets = [0, 0], sizes = [8, 32], strides = [1, 1]} : vector<8x96xf32> to vector<8x32xf32>
    %287 = arith.addf %285, %286 : vector<8x32xf32>
    %288 = arith.negf %287 : vector<8x32xf32>
    %289 = math.exp %288 : vector<8x32xf32>
    %cst_106 = arith.constant 1.000000e+00 : f32
    %290 = vector.broadcast %cst_106 : f32 to vector<8x32xf32>
    %291 = arith.addf %290, %289 : vector<8x32xf32>
    %292 = arith.divf %290, %291 : vector<8x32xf32>
    %293 = vector.extract_strided_slice %228 {offsets = [0, 32], sizes = [8, 32], strides = [1, 1]} : vector<8x96xf32> to vector<8x32xf32>
    %294 = vector.extract_strided_slice %255 {offsets = [0, 32], sizes = [8, 32], strides = [1, 1]} : vector<8x96xf32> to vector<8x32xf32>
    %295 = arith.addf %293, %294 : vector<8x32xf32>
    %296 = vector.extract_strided_slice %282 {offsets = [0, 32], sizes = [8, 32], strides = [1, 1]} : vector<8x96xf32> to vector<8x32xf32>
    %297 = arith.addf %295, %296 : vector<8x32xf32>
    %298 = arith.negf %297 : vector<8x32xf32>
    %299 = math.exp %298 : vector<8x32xf32>
    %cst_107 = arith.constant 1.000000e+00 : f32
    %300 = vector.broadcast %cst_107 : f32 to vector<8x32xf32>
    %301 = arith.addf %300, %299 : vector<8x32xf32>
    %302 = arith.divf %300, %301 : vector<8x32xf32>
    %303 = vector.extract_strided_slice %228 {offsets = [0, 64], sizes = [8, 32], strides = [1, 1]} : vector<8x96xf32> to vector<8x32xf32>
    %304 = vector.extract_strided_slice %255 {offsets = [0, 64], sizes = [8, 32], strides = [1, 1]} : vector<8x96xf32> to vector<8x32xf32>
    %305 = arith.addf %303, %304 : vector<8x32xf32>
    %306 = vector.extract_strided_slice %282 {offsets = [0, 64], sizes = [8, 32], strides = [1, 1]} : vector<8x96xf32> to vector<8x32xf32>
    %307 = arith.addf %305, %306 : vector<8x32xf32>
    %cst_108 = arith.constant 1.000000e+00 : f32
    %308 = vector.broadcast %cst_108 : f32 to vector<8x32xf32>
    %309 = arith.subf %308, %292 : vector<8x32xf32>
    %310 = arith.mulf %309, %140 : vector<8x32xf32>
    %311 = arith.mulf %292, %302 : vector<8x32xf32>
    %312 = arith.mulf %311, %307 : vector<8x32xf32>
    %313 = arith.addf %310, %312 : vector<8x32xf32>
    %cst_109 = arith.constant 0.000000e+00 : f32
    %314 = vector.broadcast %cst_109 : f32 to vector<8x32xf32>
    %315 = arith.maximumf %313, %314 : vector<8x32xf32>
    %316 = arith.truncf %315 : vector<8x32xf32> to vector<8x32xbf16>
    %c0_110 = arith.constant 0 : index
    %c0_111 = arith.constant 0 : index
    %317 = vector.load %arg21[%c0_110, %c0_111] : memref<32x11xbf16, #tpu.memory_space<vmem>>, vector<32x11xbf16>
    %cst_112 = arith.constant dense<0.000000e+00> : vector<8x11xf32>
    %318 = tpu.matmul %316, %317, %cst_112 {dimension_numbers = #tpu.dot_dimension_numbers<[1], [0], [0], [1], [0, 0, 1, 1], [], []>} : vector<8x32xbf16>, vector<32x11xbf16>, vector<8x11xf32> -> vector<8x11xf32>
    %319 = vector.broadcast %15 : vector<1x11xf32> to vector<8x11xf32>
    %320 = arith.addf %318, %319 : vector<8x11xf32>
    %cst_113 = arith.constant 0.000000e+00 : f32
    %321 = vector.broadcast %cst_113 : f32 to vector<8x11xf32>
    %322 = arith.maximumf %320, %321 : vector<8x11xf32>
    %323 = vector.extract_strided_slice %322 {offsets = [0, 0], sizes = [8, 1], strides = [1, 1]} : vector<8x11xf32> to vector<8x1xf32>
    %324 = arith.negf %323 : vector<8x1xf32>
    %325 = math.exp %324 : vector<8x1xf32>
    %cst_114 = arith.constant 1.000000e+00 : f32
    %326 = vector.broadcast %cst_114 : f32 to vector<8x1xf32>
    %327 = arith.addf %326, %325 : vector<8x1xf32>
    %328 = arith.divf %326, %327 : vector<8x1xf32>
    %329 = vector.extract_strided_slice %322 {offsets = [0, 1], sizes = [8, 1], strides = [1, 1]} : vector<8x11xf32> to vector<8x1xf32>
    %330 = arith.negf %329 : vector<8x1xf32>
    %331 = math.exp %330 : vector<8x1xf32>
    %cst_115 = arith.constant 1.000000e+00 : f32
    %332 = vector.broadcast %cst_115 : f32 to vector<8x1xf32>
    %333 = arith.addf %332, %331 : vector<8x1xf32>
    %334 = arith.divf %332, %333 : vector<8x1xf32>
    %335 = vector.extract_strided_slice %322 {offsets = [0, 2], sizes = [8, 1], strides = [1, 1]} : vector<8x11xf32> to vector<8x1xf32>
    %336 = math.tanh %335 : vector<8x1xf32>
    %337 = vector.extract_strided_slice %322 {offsets = [0, 3], sizes = [8, 8], strides = [1, 1]} : vector<8x11xf32> to vector<8x8xf32>
    %338 = vector.shape_cast %181 : vector<8x8xf32> to vector<8x1x8xf32>
    %339 = vector.broadcast %338 : vector<8x1x8xf32> to vector<8x8x8xf32>
    %340 = arith.mulf %217, %339 : vector<8x8x8xf32>
    %cst_116 = arith.constant dense<0.000000e+00> : vector<8x8xf32>
    %341 = vector.multi_reduction <add>, %340, %cst_116 [2] : vector<8x8x8xf32> to vector<8x8xf32>
    %342 = arith.addf %337, %341 : vector<8x8xf32>
    %cst_117 = arith.constant dense<0xFF800000> : vector<8xf32>
    %343 = vector.multi_reduction <maximumf>, %342, %cst_117 [1] : vector<8x8xf32> to vector<8xf32>
    %344 = vector.shape_cast %343 : vector<8xf32> to vector<8x1xf32>
    %345 = vector.broadcast %344 : vector<8x1xf32> to vector<8x8xf32>
    %346 = arith.cmpf oge, %342, %345 : vector<8x8xf32>
    %cst_118 = arith.constant 0.000000e+00 : f32
    %347 = vector.broadcast %cst_118 : f32 to vector<8x8xf32>
    %348 = arith.select %346, %342, %347 : vector<8x8xi1>, vector<8x8xf32>
    %cst_119 = arith.constant 1.000000e+00 : f32
    %349 = arith.subf %cst_119, %5 : f32
    %350 = vector.broadcast %349 : f32 to vector<8x8xf32>
    %351 = arith.mulf %350, %181 : vector<8x8xf32>
    %352 = vector.broadcast %5 : f32 to vector<8x8xf32>
    %353 = arith.mulf %352, %348 : vector<8x8xf32>
    %354 = arith.addf %351, %353 : vector<8x8xf32>
    %cst_120 = arith.constant 1.000000e+00 : f32
    %355 = vector.broadcast %cst_120 : f32 to vector<8x1xf32>
    %356 = arith.subf %355, %328 : vector<8x1xf32>
    %357 = vector.broadcast %356 : vector<8x1xf32> to vector<8x8xf32>
    %358 = arith.mulf %357, %188 : vector<8x8xf32>
    %359 = vector.broadcast %328 : vector<8x1xf32> to vector<8x8xf32>
    %360 = arith.mulf %359, %181 : vector<8x8xf32>
    %361 = arith.addf %358, %360 : vector<8x8xf32>
    %362 = vector.shape_cast %354 : vector<8x8xf32> to vector<8x8x1xf32>
    %363 = vector.shape_cast %361 : vector<8x8xf32> to vector<8x1x8xf32>
    %364 = vector.broadcast %362 : vector<8x8x1xf32> to vector<8x8x8xf32>
    %365 = vector.broadcast %363 : vector<8x1x8xf32> to vector<8x8x8xf32>
    %366 = arith.mulf %364, %365 : vector<8x8x8xf32>
    %367 = vector.shape_cast %361 : vector<8x8xf32> to vector<8x8x1xf32>
    %368 = vector.shape_cast %354 : vector<8x8xf32> to vector<8x1x8xf32>
    %369 = vector.broadcast %367 : vector<8x8x1xf32> to vector<8x8x8xf32>
    %370 = vector.broadcast %368 : vector<8x1x8xf32> to vector<8x8x8xf32>
    %371 = arith.mulf %369, %370 : vector<8x8x8xf32>
    %372 = arith.subf %366, %371 : vector<8x8x8xf32>
    %373 = vector.shape_cast %334 : vector<8x1xf32> to vector<8x1x1xf32>
    %cst_121 = arith.constant 1.000000e+00 : f32
    %374 = vector.broadcast %cst_121 : f32 to vector<8x1x1xf32>
    %375 = arith.subf %374, %373 : vector<8x1x1xf32>
    %376 = vector.broadcast %375 : vector<8x1x1xf32> to vector<8x8x8xf32>
    %377 = arith.mulf %376, %208 : vector<8x8x8xf32>
    %378 = vector.shape_cast %334 : vector<8x1xf32> to vector<8x1x1xf32>
    %379 = vector.broadcast %378 : vector<8x1x1xf32> to vector<8x8x8xf32>
    %380 = arith.mulf %379, %372 : vector<8x8x8xf32>
    %381 = arith.addf %377, %380 : vector<8x8x8xf32>
    %cst_122 = arith.constant 1.000000e+00 : f32
    %382 = arith.subf %cst_122, %3 : f32
    %383 = vector.broadcast %382 : f32 to vector<8x8x8xf32>
    %384 = arith.mulf %383, %217 : vector<8x8x8xf32>
    %385 = vector.shape_cast %336 : vector<8x1xf32> to vector<8x1x1xf32>
    %386 = vector.broadcast %4 : f32 to vector<8x1x1xf32>
    %387 = arith.mulf %386, %385 : vector<8x1x1xf32>
    %388 = vector.broadcast %387 : vector<8x1x1xf32> to vector<8x8x8xf32>
    %389 = arith.mulf %388, %381 : vector<8x8x8xf32>
    %390 = arith.addf %384, %389 : vector<8x8x8xf32>
    %391 = arith.index_cast %c1_i32 : i32 to index
    %c0_123 = arith.constant 0 : index
    %c0_124 = arith.constant 0 : index
    %392 = vector.load %arg23[%391, %c0_123, %c0_124] : memref<8x8x32xf32, #tpu.memory_space<vmem>>, vector<1x8x32xf32>
    %393 = vector.shape_cast %392 : vector<1x8x32xf32> to vector<8x32xf32>
    %394 = vector.shape_cast %315 : vector<8x32xf32> to vector<1x8x32xf32>
    tpu.vector_store %arg23[%391, %c0_123, %c0_124], %394 {strides = array<i32>} : memref<8x8x32xf32, #tpu.memory_space<vmem>>, vector<1x8x32xf32>,
    %395 = arith.index_cast %c1_i32 : i32 to index
    %c0_125 = arith.constant 0 : index
    %c0_126 = arith.constant 0 : index
    %396 = vector.load %arg24[%395, %c0_125, %c0_126] : memref<8x8x11xf32, #tpu.memory_space<vmem>>, vector<1x8x11xf32>
    %397 = vector.shape_cast %396 : vector<1x8x11xf32> to vector<8x11xf32>
    %398 = vector.shape_cast %322 : vector<8x11xf32> to vector<1x8x11xf32>
    tpu.vector_store %arg24[%395, %c0_125, %c0_126], %398 {strides = array<i32>} : memref<8x8x11xf32, #tpu.memory_space<vmem>>, vector<1x8x11xf32>,
    %c2_i32 = arith.constant 2 : i32
    %399 = arith.index_cast %c2_i32 : i32 to index
    %c0_127 = arith.constant 0 : index
    %c0_128 = arith.constant 0 : index
    %400 = vector.load %arg31[%399, %c0_127, %c0_128] : memref<8x8x96xf32, #tpu.memory_space<vmem>>, vector<1x8x96xf32>
    %401 = vector.shape_cast %400 : vector<1x8x96xf32> to vector<8x96xf32>
    %402 = arith.truncf %315 : vector<8x32xf32> to vector<8x32xbf16>
    %c0_129 = arith.constant 0 : index
    %c0_130 = arith.constant 0 : index
    %403 = vector.load %arg11[%c0_129, %c0_130] : memref<32x96xbf16, #tpu.memory_space<vmem>>, vector<32x96xbf16>
    %cst_131 = arith.constant dense<0.000000e+00> : vector<8x96xf32>
    %404 = tpu.matmul %402, %403, %cst_131 {dimension_numbers = #tpu.dot_dimension_numbers<[1], [0], [0], [1], [0, 0, 1, 1], [], []>} : vector<8x32xbf16>, vector<32x96xbf16>, vector<8x96xf32> -> vector<8x96xf32>
    %405 = vector.broadcast %7 : vector<1x96xf32> to vector<8x96xf32>
    %406 = arith.addf %404, %405 : vector<8x96xf32>
    %cst_132 = arith.constant dense<0.000000e+00> : vector<8xf32>
    %407 = vector.multi_reduction <add>, %406, %cst_132 [1] : vector<8x96xf32> to vector<8xf32>
    %408 = vector.shape_cast %407 : vector<8xf32> to vector<8x1xf32>
    %409 = arith.mulf %406, %406 : vector<8x96xf32>
    %cst_133 = arith.constant dense<0.000000e+00> : vector<8xf32>
    %410 = vector.multi_reduction <add>, %409, %cst_133 [1] : vector<8x96xf32> to vector<8xf32>
    %411 = vector.shape_cast %410 : vector<8xf32> to vector<8x1xf32>
    %cst_134 = arith.constant 0.010416667 : f32
    %412 = vector.broadcast %cst_134 : f32 to vector<8x1xf32>
    %413 = arith.mulf %408, %412 : vector<8x1xf32>
    %cst_135 = arith.constant 0.010416667 : f32
    %414 = vector.broadcast %cst_135 : f32 to vector<8x1xf32>
    %415 = arith.mulf %411, %414 : vector<8x1xf32>
    %416 = arith.mulf %413, %413 : vector<8x1xf32>
    %417 = arith.subf %415, %416 : vector<8x1xf32>
    %418 = vector.broadcast %413 : vector<8x1xf32> to vector<8x96xf32>
    %419 = arith.subf %406, %418 : vector<8x96xf32>
    %cst_136 = arith.constant 9.99999974E-6 : f32
    %420 = vector.broadcast %cst_136 : f32 to vector<8x1xf32>
    %421 = arith.addf %417, %420 : vector<8x1xf32>
    %422 = math.rsqrt %421 : vector<8x1xf32>
    %423 = vector.broadcast %422 : vector<8x1xf32> to vector<8x96xf32>
    %424 = arith.mulf %419, %423 : vector<8x96xf32>
    %425 = vector.broadcast %11 : vector<1x96xf32> to vector<8x96xf32>
    %426 = arith.mulf %424, %425 : vector<8x96xf32>
    %427 = vector.broadcast %12 : vector<1x96xf32> to vector<8x96xf32>
    %428 = arith.addf %426, %427 : vector<8x96xf32>
    %429 = arith.truncf %354 : vector<8x8xf32> to vector<8x8xbf16>
    %c0_137 = arith.constant 0 : index
    %c0_138 = arith.constant 0 : index
    %430 = vector.load %arg13[%c0_137, %c0_138] : memref<8x96xbf16, #tpu.memory_space<vmem>>, vector<8x96xbf16>
    %cst_139 = arith.constant dense<0.000000e+00> : vector<8x96xf32>
    %431 = tpu.matmul %429, %430, %cst_139 {dimension_numbers = #tpu.dot_dimension_numbers<[1], [0], [0], [1], [0, 0, 1, 1], [], []>} : vector<8x8xbf16>, vector<8x96xbf16>, vector<8x96xf32> -> vector<8x96xf32>
    %432 = vector.broadcast %8 : vector<1x96xf32> to vector<8x96xf32>
    %433 = arith.addf %431, %432 : vector<8x96xf32>
    %cst_140 = arith.constant dense<0.000000e+00> : vector<8xf32>
    %434 = vector.multi_reduction <add>, %433, %cst_140 [1] : vector<8x96xf32> to vector<8xf32>
    %435 = vector.shape_cast %434 : vector<8xf32> to vector<8x1xf32>
    %436 = arith.mulf %433, %433 : vector<8x96xf32>
    %cst_141 = arith.constant dense<0.000000e+00> : vector<8xf32>
    %437 = vector.multi_reduction <add>, %436, %cst_141 [1] : vector<8x96xf32> to vector<8xf32>
    %438 = vector.shape_cast %437 : vector<8xf32> to vector<8x1xf32>
    %cst_142 = arith.constant 0.010416667 : f32
    %439 = vector.broadcast %cst_142 : f32 to vector<8x1xf32>
    %440 = arith.mulf %435, %439 : vector<8x1xf32>
    %cst_143 = arith.constant 0.010416667 : f32
    %441 = vector.broadcast %cst_143 : f32 to vector<8x1xf32>
    %442 = arith.mulf %438, %441 : vector<8x1xf32>
    %443 = arith.mulf %440, %440 : vector<8x1xf32>
    %444 = arith.subf %442, %443 : vector<8x1xf32>
    %445 = vector.broadcast %440 : vector<8x1xf32> to vector<8x96xf32>
    %446 = arith.subf %433, %445 : vector<8x96xf32>
    %cst_144 = arith.constant 9.99999974E-6 : f32
    %447 = vector.broadcast %cst_144 : f32 to vector<8x1xf32>
    %448 = arith.addf %444, %447 : vector<8x1xf32>
    %449 = math.rsqrt %448 : vector<8x1xf32>
    %450 = vector.broadcast %449 : vector<8x1xf32> to vector<8x96xf32>
    %451 = arith.mulf %446, %450 : vector<8x96xf32>
    %452 = vector.broadcast %13 : vector<1x96xf32> to vector<8x96xf32>
    %453 = arith.mulf %451, %452 : vector<8x96xf32>
    %454 = vector.broadcast %14 : vector<1x96xf32> to vector<8x96xf32>
    %455 = arith.addf %453, %454 : vector<8x96xf32>
    %456 = vector.extract_strided_slice %401 {offsets = [0, 0], sizes = [8, 32], strides = [1, 1]} : vector<8x96xf32> to vector<8x32xf32>
    %457 = vector.extract_strided_slice %428 {offsets = [0, 0], sizes = [8, 32], strides = [1, 1]} : vector<8x96xf32> to vector<8x32xf32>
    %458 = arith.addf %456, %457 : vector<8x32xf32>
    %459 = vector.extract_strided_slice %455 {offsets = [0, 0], sizes = [8, 32], strides = [1, 1]} : vector<8x96xf32> to vector<8x32xf32>
    %460 = arith.addf %458, %459 : vector<8x32xf32>
    %461 = arith.negf %460 : vector<8x32xf32>
    %462 = math.exp %461 : vector<8x32xf32>
    %cst_145 = arith.constant 1.000000e+00 : f32
    %463 = vector.broadcast %cst_145 : f32 to vector<8x32xf32>
    %464 = arith.addf %463, %462 : vector<8x32xf32>
    %465 = arith.divf %463, %464 : vector<8x32xf32>
    %466 = vector.extract_strided_slice %401 {offsets = [0, 32], sizes = [8, 32], strides = [1, 1]} : vector<8x96xf32> to vector<8x32xf32>
    %467 = vector.extract_strided_slice %428 {offsets = [0, 32], sizes = [8, 32], strides = [1, 1]} : vector<8x96xf32> to vector<8x32xf32>
    %468 = arith.addf %466, %467 : vector<8x32xf32>
    %469 = vector.extract_strided_slice %455 {offsets = [0, 32], sizes = [8, 32], strides = [1, 1]} : vector<8x96xf32> to vector<8x32xf32>
    %470 = arith.addf %468, %469 : vector<8x32xf32>
    %471 = arith.negf %470 : vector<8x32xf32>
    %472 = math.exp %471 : vector<8x32xf32>
    %cst_146 = arith.constant 1.000000e+00 : f32
    %473 = vector.broadcast %cst_146 : f32 to vector<8x32xf32>
    %474 = arith.addf %473, %472 : vector<8x32xf32>
    %475 = arith.divf %473, %474 : vector<8x32xf32>
    %476 = vector.extract_strided_slice %401 {offsets = [0, 64], sizes = [8, 32], strides = [1, 1]} : vector<8x96xf32> to vector<8x32xf32>
    %477 = vector.extract_strided_slice %428 {offsets = [0, 64], sizes = [8, 32], strides = [1, 1]} : vector<8x96xf32> to vector<8x32xf32>
    %478 = arith.addf %476, %477 : vector<8x32xf32>
    %479 = vector.extract_strided_slice %455 {offsets = [0, 64], sizes = [8, 32], strides = [1, 1]} : vector<8x96xf32> to vector<8x32xf32>
    %480 = arith.addf %478, %479 : vector<8x32xf32>
    %cst_147 = arith.constant 1.000000e+00 : f32
    %481 = vector.broadcast %cst_147 : f32 to vector<8x32xf32>
    %482 = arith.subf %481, %465 : vector<8x32xf32>
    %483 = arith.mulf %482, %313 : vector<8x32xf32>
    %484 = arith.mulf %465, %475 : vector<8x32xf32>
    %485 = arith.mulf %484, %480 : vector<8x32xf32>
    %486 = arith.addf %483, %485 : vector<8x32xf32>
    %cst_148 = arith.constant 0.000000e+00 : f32
    %487 = vector.broadcast %cst_148 : f32 to vector<8x32xf32>
    %488 = arith.maximumf %486, %487 : vector<8x32xf32>
    %489 = arith.truncf %488 : vector<8x32xf32> to vector<8x32xbf16>
    %c0_149 = arith.constant 0 : index
    %c0_150 = arith.constant 0 : index
    %490 = vector.load %arg21[%c0_149, %c0_150] : memref<32x11xbf16, #tpu.memory_space<vmem>>, vector<32x11xbf16>
    %cst_151 = arith.constant dense<0.000000e+00> : vector<8x11xf32>
    %491 = tpu.matmul %489, %490, %cst_151 {dimension_numbers = #tpu.dot_dimension_numbers<[1], [0], [0], [1], [0, 0, 1, 1], [], []>} : vector<8x32xbf16>, vector<32x11xbf16>, vector<8x11xf32> -> vector<8x11xf32>
    %492 = vector.broadcast %15 : vector<1x11xf32> to vector<8x11xf32>
    %493 = arith.addf %491, %492 : vector<8x11xf32>
    %cst_152 = arith.constant 0.000000e+00 : f32
    %494 = vector.broadcast %cst_152 : f32 to vector<8x11xf32>
    %495 = arith.maximumf %493, %494 : vector<8x11xf32>
    %496 = vector.extract_strided_slice %495 {offsets = [0, 0], sizes = [8, 1], strides = [1, 1]} : vector<8x11xf32> to vector<8x1xf32>
    %497 = arith.negf %496 : vector<8x1xf32>
    %498 = math.exp %497 : vector<8x1xf32>
    %cst_153 = arith.constant 1.000000e+00 : f32
    %499 = vector.broadcast %cst_153 : f32 to vector<8x1xf32>
    %500 = arith.addf %499, %498 : vector<8x1xf32>
    %501 = arith.divf %499, %500 : vector<8x1xf32>
    %502 = vector.extract_strided_slice %495 {offsets = [0, 1], sizes = [8, 1], strides = [1, 1]} : vector<8x11xf32> to vector<8x1xf32>
    %503 = arith.negf %502 : vector<8x1xf32>
    %504 = math.exp %503 : vector<8x1xf32>
    %cst_154 = arith.constant 1.000000e+00 : f32
    %505 = vector.broadcast %cst_154 : f32 to vector<8x1xf32>
    %506 = arith.addf %505, %504 : vector<8x1xf32>
    %507 = arith.divf %505, %506 : vector<8x1xf32>
    %508 = vector.extract_strided_slice %495 {offsets = [0, 2], sizes = [8, 1], strides = [1, 1]} : vector<8x11xf32> to vector<8x1xf32>
    %509 = math.tanh %508 : vector<8x1xf32>
    %510 = vector.extract_strided_slice %495 {offsets = [0, 3], sizes = [8, 8], strides = [1, 1]} : vector<8x11xf32> to vector<8x8xf32>
    %511 = vector.shape_cast %354 : vector<8x8xf32> to vector<8x1x8xf32>
    %512 = vector.broadcast %511 : vector<8x1x8xf32> to vector<8x8x8xf32>
    %513 = arith.mulf %390, %512 : vector<8x8x8xf32>
    %cst_155 = arith.constant dense<0.000000e+00> : vector<8x8xf32>
    %514 = vector.multi_reduction <add>, %513, %cst_155 [2] : vector<8x8x8xf32> to vector<8x8xf32>
    %515 = arith.addf %510, %514 : vector<8x8xf32>
    %cst_156 = arith.constant dense<0xFF800000> : vector<8xf32>
    %516 = vector.multi_reduction <maximumf>, %515, %cst_156 [1] : vector<8x8xf32> to vector<8xf32>
    %517 = vector.shape_cast %516 : vector<8xf32> to vector<8x1xf32>
    %518 = vector.broadcast %517 : vector<8x1xf32> to vector<8x8xf32>
    %519 = arith.cmpf oge, %515, %518 : vector<8x8xf32>
    %cst_157 = arith.constant 0.000000e+00 : f32
    %520 = vector.broadcast %cst_157 : f32 to vector<8x8xf32>
    %521 = arith.select %519, %515, %520 : vector<8x8xi1>, vector<8x8xf32>
    %cst_158 = arith.constant 1.000000e+00 : f32
    %522 = arith.subf %cst_158, %5 : f32
    %523 = vector.broadcast %522 : f32 to vector<8x8xf32>
    %524 = arith.mulf %523, %354 : vector<8x8xf32>
    %525 = vector.broadcast %5 : f32 to vector<8x8xf32>
    %526 = arith.mulf %525, %521 : vector<8x8xf32>
    %527 = arith.addf %524, %526 : vector<8x8xf32>
    %cst_159 = arith.constant 1.000000e+00 : f32
    %528 = vector.broadcast %cst_159 : f32 to vector<8x1xf32>
    %529 = arith.subf %528, %501 : vector<8x1xf32>
    %530 = vector.broadcast %529 : vector<8x1xf32> to vector<8x8xf32>
    %531 = arith.mulf %530, %361 : vector<8x8xf32>
    %532 = vector.broadcast %501 : vector<8x1xf32> to vector<8x8xf32>
    %533 = arith.mulf %532, %354 : vector<8x8xf32>
    %534 = arith.addf %531, %533 : vector<8x8xf32>
    %535 = vector.shape_cast %527 : vector<8x8xf32> to vector<8x8x1xf32>
    %536 = vector.shape_cast %534 : vector<8x8xf32> to vector<8x1x8xf32>
    %537 = vector.broadcast %535 : vector<8x8x1xf32> to vector<8x8x8xf32>
    %538 = vector.broadcast %536 : vector<8x1x8xf32> to vector<8x8x8xf32>
    %539 = arith.mulf %537, %538 : vector<8x8x8xf32>
    %540 = vector.shape_cast %534 : vector<8x8xf32> to vector<8x8x1xf32>
    %541 = vector.shape_cast %527 : vector<8x8xf32> to vector<8x1x8xf32>
    %542 = vector.broadcast %540 : vector<8x8x1xf32> to vector<8x8x8xf32>
    %543 = vector.broadcast %541 : vector<8x1x8xf32> to vector<8x8x8xf32>
    %544 = arith.mulf %542, %543 : vector<8x8x8xf32>
    %545 = arith.subf %539, %544 : vector<8x8x8xf32>
    %546 = vector.shape_cast %507 : vector<8x1xf32> to vector<8x1x1xf32>
    %cst_160 = arith.constant 1.000000e+00 : f32
    %547 = vector.broadcast %cst_160 : f32 to vector<8x1x1xf32>
    %548 = arith.subf %547, %546 : vector<8x1x1xf32>
    %549 = vector.broadcast %548 : vector<8x1x1xf32> to vector<8x8x8xf32>
    %550 = arith.mulf %549, %381 : vector<8x8x8xf32>
    %551 = vector.shape_cast %507 : vector<8x1xf32> to vector<8x1x1xf32>
    %552 = vector.broadcast %551 : vector<8x1x1xf32> to vector<8x8x8xf32>
    %553 = arith.mulf %552, %545 : vector<8x8x8xf32>
    %554 = arith.addf %550, %553 : vector<8x8x8xf32>
    %cst_161 = arith.constant 1.000000e+00 : f32
    %555 = arith.subf %cst_161, %3 : f32
    %556 = vector.broadcast %555 : f32 to vector<8x8x8xf32>
    %557 = arith.mulf %556, %390 : vector<8x8x8xf32>
    %558 = vector.shape_cast %509 : vector<8x1xf32> to vector<8x1x1xf32>
    %559 = vector.broadcast %4 : f32 to vector<8x1x1xf32>
    %560 = arith.mulf %559, %558 : vector<8x1x1xf32>
    %561 = vector.broadcast %560 : vector<8x1x1xf32> to vector<8x8x8xf32>
    %562 = arith.mulf %561, %554 : vector<8x8x8xf32>
    %563 = arith.addf %557, %562 : vector<8x8x8xf32>
    %564 = arith.index_cast %c2_i32 : i32 to index
    %c0_162 = arith.constant 0 : index
    %c0_163 = arith.constant 0 : index
    %565 = vector.load %arg23[%564, %c0_162, %c0_163] : memref<8x8x32xf32, #tpu.memory_space<vmem>>, vector<1x8x32xf32>
    %566 = vector.shape_cast %565 : vector<1x8x32xf32> to vector<8x32xf32>
    %567 = vector.shape_cast %488 : vector<8x32xf32> to vector<1x8x32xf32>
    tpu.vector_store %arg23[%564, %c0_162, %c0_163], %567 {strides = array<i32>} : memref<8x8x32xf32, #tpu.memory_space<vmem>>, vector<1x8x32xf32>,
    %568 = arith.index_cast %c2_i32 : i32 to index
    %c0_164 = arith.constant 0 : index
    %c0_165 = arith.constant 0 : index
    %569 = vector.load %arg24[%568, %c0_164, %c0_165] : memref<8x8x11xf32, #tpu.memory_space<vmem>>, vector<1x8x11xf32>
    %570 = vector.shape_cast %569 : vector<1x8x11xf32> to vector<8x11xf32>
    %571 = vector.shape_cast %495 : vector<8x11xf32> to vector<1x8x11xf32>
    tpu.vector_store %arg24[%568, %c0_164, %c0_165], %571 {strides = array<i32>} : memref<8x8x11xf32, #tpu.memory_space<vmem>>, vector<1x8x11xf32>,
    %c3_i32 = arith.constant 3 : i32
    %572 = arith.index_cast %c3_i32 : i32 to index
    %c0_166 = arith.constant 0 : index
    %c0_167 = arith.constant 0 : index
    %573 = vector.load %arg31[%572, %c0_166, %c0_167] : memref<8x8x96xf32, #tpu.memory_space<vmem>>, vector<1x8x96xf32>
    %574 = vector.shape_cast %573 : vector<1x8x96xf32> to vector<8x96xf32>
    %575 = arith.truncf %488 : vector<8x32xf32> to vector<8x32xbf16>
    %c0_168 = arith.constant 0 : index
    %c0_169 = arith.constant 0 : index
    %576 = vector.load %arg11[%c0_168, %c0_169] : memref<32x96xbf16, #tpu.memory_space<vmem>>, vector<32x96xbf16>
    %cst_170 = arith.constant dense<0.000000e+00> : vector<8x96xf32>
    %577 = tpu.matmul %575, %576, %cst_170 {dimension_numbers = #tpu.dot_dimension_numbers<[1], [0], [0], [1], [0, 0, 1, 1], [], []>} : vector<8x32xbf16>, vector<32x96xbf16>, vector<8x96xf32> -> vector<8x96xf32>
    %578 = vector.broadcast %7 : vector<1x96xf32> to vector<8x96xf32>
    %579 = arith.addf %577, %578 : vector<8x96xf32>
    %cst_171 = arith.constant dense<0.000000e+00> : vector<8xf32>
    %580 = vector.multi_reduction <add>, %579, %cst_171 [1] : vector<8x96xf32> to vector<8xf32>
    %581 = vector.shape_cast %580 : vector<8xf32> to vector<8x1xf32>
    %582 = arith.mulf %579, %579 : vector<8x96xf32>
    %cst_172 = arith.constant dense<0.000000e+00> : vector<8xf32>
    %583 = vector.multi_reduction <add>, %582, %cst_172 [1] : vector<8x96xf32> to vector<8xf32>
    %584 = vector.shape_cast %583 : vector<8xf32> to vector<8x1xf32>
    %cst_173 = arith.constant 0.010416667 : f32
    %585 = vector.broadcast %cst_173 : f32 to vector<8x1xf32>
    %586 = arith.mulf %581, %585 : vector<8x1xf32>
    %cst_174 = arith.constant 0.010416667 : f32
    %587 = vector.broadcast %cst_174 : f32 to vector<8x1xf32>
    %588 = arith.mulf %584, %587 : vector<8x1xf32>
    %589 = arith.mulf %586, %586 : vector<8x1xf32>
    %590 = arith.subf %588, %589 : vector<8x1xf32>
    %591 = vector.broadcast %586 : vector<8x1xf32> to vector<8x96xf32>
    %592 = arith.subf %579, %591 : vector<8x96xf32>
    %cst_175 = arith.constant 9.99999974E-6 : f32
    %593 = vector.broadcast %cst_175 : f32 to vector<8x1xf32>
    %594 = arith.addf %590, %593 : vector<8x1xf32>
    %595 = math.rsqrt %594 : vector<8x1xf32>
    %596 = vector.broadcast %595 : vector<8x1xf32> to vector<8x96xf32>
    %597 = arith.mulf %592, %596 : vector<8x96xf32>
    %598 = vector.broadcast %11 : vector<1x96xf32> to vector<8x96xf32>
    %599 = arith.mulf %597, %598 : vector<8x96xf32>
    %600 = vector.broadcast %12 : vector<1x96xf32> to vector<8x96xf32>
    %601 = arith.addf %599, %600 : vector<8x96xf32>
    %602 = arith.truncf %527 : vector<8x8xf32> to vector<8x8xbf16>
    %c0_176 = arith.constant 0 : index
    %c0_177 = arith.constant 0 : index
    %603 = vector.load %arg13[%c0_176, %c0_177] : memref<8x96xbf16, #tpu.memory_space<vmem>>, vector<8x96xbf16>
    %cst_178 = arith.constant dense<0.000000e+00> : vector<8x96xf32>
    %604 = tpu.matmul %602, %603, %cst_178 {dimension_numbers = #tpu.dot_dimension_numbers<[1], [0], [0], [1], [0, 0, 1, 1], [], []>} : vector<8x8xbf16>, vector<8x96xbf16>, vector<8x96xf32> -> vector<8x96xf32>
    %605 = vector.broadcast %8 : vector<1x96xf32> to vector<8x96xf32>
    %606 = arith.addf %604, %605 : vector<8x96xf32>
    %cst_179 = arith.constant dense<0.000000e+00> : vector<8xf32>
    %607 = vector.multi_reduction <add>, %606, %cst_179 [1] : vector<8x96xf32> to vector<8xf32>
    %608 = vector.shape_cast %607 : vector<8xf32> to vector<8x1xf32>
    %609 = arith.mulf %606, %606 : vector<8x96xf32>
    %cst_180 = arith.constant dense<0.000000e+00> : vector<8xf32>
    %610 = vector.multi_reduction <add>, %609, %cst_180 [1] : vector<8x96xf32> to vector<8xf32>
    %611 = vector.shape_cast %610 : vector<8xf32> to vector<8x1xf32>
    %cst_181 = arith.constant 0.010416667 : f32
    %612 = vector.broadcast %cst_181 : f32 to vector<8x1xf32>
    %613 = arith.mulf %608, %612 : vector<8x1xf32>
    %cst_182 = arith.constant 0.010416667 : f32
    %614 = vector.broadcast %cst_182 : f32 to vector<8x1xf32>
    %615 = arith.mulf %611, %614 : vector<8x1xf32>
    %616 = arith.mulf %613, %613 : vector<8x1xf32>
    %617 = arith.subf %615, %616 : vector<8x1xf32>
    %618 = vector.broadcast %613 : vector<8x1xf32> to vector<8x96xf32>
    %619 = arith.subf %606, %618 : vector<8x96xf32>
    %cst_183 = arith.constant 9.99999974E-6 : f32
    %620 = vector.broadcast %cst_183 : f32 to vector<8x1xf32>
    %621 = arith.addf %617, %620 : vector<8x1xf32>
    %622 = math.rsqrt %621 : vector<8x1xf32>
    %623 = vector.broadcast %622 : vector<8x1xf32> to vector<8x96xf32>
    %624 = arith.mulf %619, %623 : vector<8x96xf32>
    %625 = vector.broadcast %13 : vector<1x96xf32> to vector<8x96xf32>
    %626 = arith.mulf %624, %625 : vector<8x96xf32>
    %627 = vector.broadcast %14 : vector<1x96xf32> to vector<8x96xf32>
    %628 = arith.addf %626, %627 : vector<8x96xf32>
    %629 = vector.extract_strided_slice %574 {offsets = [0, 0], sizes = [8, 32], strides = [1, 1]} : vector<8x96xf32> to vector<8x32xf32>
    %630 = vector.extract_strided_slice %601 {offsets = [0, 0], sizes = [8, 32], strides = [1, 1]} : vector<8x96xf32> to vector<8x32xf32>
    %631 = arith.addf %629, %630 : vector<8x32xf32>
    %632 = vector.extract_strided_slice %628 {offsets = [0, 0], sizes = [8, 32], strides = [1, 1]} : vector<8x96xf32> to vector<8x32xf32>
    %633 = arith.addf %631, %632 : vector<8x32xf32>
    %634 = arith.negf %633 : vector<8x32xf32>
    %635 = math.exp %634 : vector<8x32xf32>
    %cst_184 = arith.constant 1.000000e+00 : f32
    %636 = vector.broadcast %cst_184 : f32 to vector<8x32xf32>
    %637 = arith.addf %636, %635 : vector<8x32xf32>
    %638 = arith.divf %636, %637 : vector<8x32xf32>
    %639 = vector.extract_strided_slice %574 {offsets = [0, 32], sizes = [8, 32], strides = [1, 1]} : vector<8x96xf32> to vector<8x32xf32>
    %640 = vector.extract_strided_slice %601 {offsets = [0, 32], sizes = [8, 32], strides = [1, 1]} : vector<8x96xf32> to vector<8x32xf32>
    %641 = arith.addf %639, %640 : vector<8x32xf32>
    %642 = vector.extract_strided_slice %628 {offsets = [0, 32], sizes = [8, 32], strides = [1, 1]} : vector<8x96xf32> to vector<8x32xf32>
    %643 = arith.addf %641, %642 : vector<8x32xf32>
    %644 = arith.negf %643 : vector<8x32xf32>
    %645 = math.exp %644 : vector<8x32xf32>
    %cst_185 = arith.constant 1.000000e+00 : f32
    %646 = vector.broadcast %cst_185 : f32 to vector<8x32xf32>
    %647 = arith.addf %646, %645 : vector<8x32xf32>
    %648 = arith.divf %646, %647 : vector<8x32xf32>
    %649 = vector.extract_strided_slice %574 {offsets = [0, 64], sizes = [8, 32], strides = [1, 1]} : vector<8x96xf32> to vector<8x32xf32>
    %650 = vector.extract_strided_slice %601 {offsets = [0, 64], sizes = [8, 32], strides = [1, 1]} : vector<8x96xf32> to vector<8x32xf32>
    %651 = arith.addf %649, %650 : vector<8x32xf32>
    %652 = vector.extract_strided_slice %628 {offsets = [0, 64], sizes = [8, 32], strides = [1, 1]} : vector<8x96xf32> to vector<8x32xf32>
    %653 = arith.addf %651, %652 : vector<8x32xf32>
    %cst_186 = arith.constant 1.000000e+00 : f32
    %654 = vector.broadcast %cst_186 : f32 to vector<8x32xf32>
    %655 = arith.subf %654, %638 : vector<8x32xf32>
    %656 = arith.mulf %655, %486 : vector<8x32xf32>
    %657 = arith.mulf %638, %648 : vector<8x32xf32>
    %658 = arith.mulf %657, %653 : vector<8x32xf32>
    %659 = arith.addf %656, %658 : vector<8x32xf32>
    %cst_187 = arith.constant 0.000000e+00 : f32
    %660 = vector.broadcast %cst_187 : f32 to vector<8x32xf32>
    %661 = arith.maximumf %659, %660 : vector<8x32xf32>
    %662 = arith.truncf %661 : vector<8x32xf32> to vector<8x32xbf16>
    %c0_188 = arith.constant 0 : index
    %c0_189 = arith.constant 0 : index
    %663 = vector.load %arg21[%c0_188, %c0_189] : memref<32x11xbf16, #tpu.memory_space<vmem>>, vector<32x11xbf16>
    %cst_190 = arith.constant dense<0.000000e+00> : vector<8x11xf32>
    %664 = tpu.matmul %662, %663, %cst_190 {dimension_numbers = #tpu.dot_dimension_numbers<[1], [0], [0], [1], [0, 0, 1, 1], [], []>} : vector<8x32xbf16>, vector<32x11xbf16>, vector<8x11xf32> -> vector<8x11xf32>
    %665 = vector.broadcast %15 : vector<1x11xf32> to vector<8x11xf32>
    %666 = arith.addf %664, %665 : vector<8x11xf32>
    %cst_191 = arith.constant 0.000000e+00 : f32
    %667 = vector.broadcast %cst_191 : f32 to vector<8x11xf32>
    %668 = arith.maximumf %666, %667 : vector<8x11xf32>
    %669 = vector.extract_strided_slice %668 {offsets = [0, 0], sizes = [8, 1], strides = [1, 1]} : vector<8x11xf32> to vector<8x1xf32>
    %670 = arith.negf %669 : vector<8x1xf32>
    %671 = math.exp %670 : vector<8x1xf32>
    %cst_192 = arith.constant 1.000000e+00 : f32
    %672 = vector.broadcast %cst_192 : f32 to vector<8x1xf32>
    %673 = arith.addf %672, %671 : vector<8x1xf32>
    %674 = arith.divf %672, %673 : vector<8x1xf32>
    %675 = vector.extract_strided_slice %668 {offsets = [0, 1], sizes = [8, 1], strides = [1, 1]} : vector<8x11xf32> to vector<8x1xf32>
    %676 = arith.negf %675 : vector<8x1xf32>
    %677 = math.exp %676 : vector<8x1xf32>
    %cst_193 = arith.constant 1.000000e+00 : f32
    %678 = vector.broadcast %cst_193 : f32 to vector<8x1xf32>
    %679 = arith.addf %678, %677 : vector<8x1xf32>
    %680 = arith.divf %678, %679 : vector<8x1xf32>
    %681 = vector.extract_strided_slice %668 {offsets = [0, 2], sizes = [8, 1], strides = [1, 1]} : vector<8x11xf32> to vector<8x1xf32>
    %682 = math.tanh %681 : vector<8x1xf32>
    %683 = vector.extract_strided_slice %668 {offsets = [0, 3], sizes = [8, 8], strides = [1, 1]} : vector<8x11xf32> to vector<8x8xf32>
    %684 = vector.shape_cast %527 : vector<8x8xf32> to vector<8x1x8xf32>
    %685 = vector.broadcast %684 : vector<8x1x8xf32> to vector<8x8x8xf32>
    %686 = arith.mulf %563, %685 : vector<8x8x8xf32>
    %cst_194 = arith.constant dense<0.000000e+00> : vector<8x8xf32>
    %687 = vector.multi_reduction <add>, %686, %cst_194 [2] : vector<8x8x8xf32> to vector<8x8xf32>
    %688 = arith.addf %683, %687 : vector<8x8xf32>
    %cst_195 = arith.constant dense<0xFF800000> : vector<8xf32>
    %689 = vector.multi_reduction <maximumf>, %688, %cst_195 [1] : vector<8x8xf32> to vector<8xf32>
    %690 = vector.shape_cast %689 : vector<8xf32> to vector<8x1xf32>
    %691 = vector.broadcast %690 : vector<8x1xf32> to vector<8x8xf32>
    %692 = arith.cmpf oge, %688, %691 : vector<8x8xf32>
    %cst_196 = arith.constant 0.000000e+00 : f32
    %693 = vector.broadcast %cst_196 : f32 to vector<8x8xf32>
    %694 = arith.select %692, %688, %693 : vector<8x8xi1>, vector<8x8xf32>
    %cst_197 = arith.constant 1.000000e+00 : f32
    %695 = arith.subf %cst_197, %5 : f32
    %696 = vector.broadcast %695 : f32 to vector<8x8xf32>
    %697 = arith.mulf %696, %527 : vector<8x8xf32>
    %698 = vector.broadcast %5 : f32 to vector<8x8xf32>
    %699 = arith.mulf %698, %694 : vector<8x8xf32>
    %700 = arith.addf %697, %699 : vector<8x8xf32>
    %cst_198 = arith.constant 1.000000e+00 : f32
    %701 = vector.broadcast %cst_198 : f32 to vector<8x1xf32>
    %702 = arith.subf %701, %674 : vector<8x1xf32>
    %703 = vector.broadcast %702 : vector<8x1xf32> to vector<8x8xf32>
    %704 = arith.mulf %703, %534 : vector<8x8xf32>
    %705 = vector.broadcast %674 : vector<8x1xf32> to vector<8x8xf32>
    %706 = arith.mulf %705, %527 : vector<8x8xf32>
    %707 = arith.addf %704, %706 : vector<8x8xf32>
    %708 = vector.shape_cast %700 : vector<8x8xf32> to vector<8x8x1xf32>
    %709 = vector.shape_cast %707 : vector<8x8xf32> to vector<8x1x8xf32>
    %710 = vector.broadcast %708 : vector<8x8x1xf32> to vector<8x8x8xf32>
    %711 = vector.broadcast %709 : vector<8x1x8xf32> to vector<8x8x8xf32>
    %712 = arith.mulf %710, %711 : vector<8x8x8xf32>
    %713 = vector.shape_cast %707 : vector<8x8xf32> to vector<8x8x1xf32>
    %714 = vector.shape_cast %700 : vector<8x8xf32> to vector<8x1x8xf32>
    %715 = vector.broadcast %713 : vector<8x8x1xf32> to vector<8x8x8xf32>
    %716 = vector.broadcast %714 : vector<8x1x8xf32> to vector<8x8x8xf32>
    %717 = arith.mulf %715, %716 : vector<8x8x8xf32>
    %718 = arith.subf %712, %717 : vector<8x8x8xf32>
    %719 = vector.shape_cast %680 : vector<8x1xf32> to vector<8x1x1xf32>
    %cst_199 = arith.constant 1.000000e+00 : f32
    %720 = vector.broadcast %cst_199 : f32 to vector<8x1x1xf32>
    %721 = arith.subf %720, %719 : vector<8x1x1xf32>
    %722 = vector.broadcast %721 : vector<8x1x1xf32> to vector<8x8x8xf32>
    %723 = arith.mulf %722, %554 : vector<8x8x8xf32>
    %724 = vector.shape_cast %680 : vector<8x1xf32> to vector<8x1x1xf32>
    %725 = vector.broadcast %724 : vector<8x1x1xf32> to vector<8x8x8xf32>
    %726 = arith.mulf %725, %718 : vector<8x8x8xf32>
    %727 = arith.addf %723, %726 : vector<8x8x8xf32>
    %cst_200 = arith.constant 1.000000e+00 : f32
    %728 = arith.subf %cst_200, %3 : f32
    %729 = vector.broadcast %728 : f32 to vector<8x8x8xf32>
    %730 = arith.mulf %729, %563 : vector<8x8x8xf32>
    %731 = vector.shape_cast %682 : vector<8x1xf32> to vector<8x1x1xf32>
    %732 = vector.broadcast %4 : f32 to vector<8x1x1xf32>
    %733 = arith.mulf %732, %731 : vector<8x1x1xf32>
    %734 = vector.broadcast %733 : vector<8x1x1xf32> to vector<8x8x8xf32>
    %735 = arith.mulf %734, %727 : vector<8x8x8xf32>
    %736 = arith.addf %730, %735 : vector<8x8x8xf32>
    %737 = arith.index_cast %c3_i32 : i32 to index
    %c0_201 = arith.constant 0 : index
    %c0_202 = arith.constant 0 : index
    %738 = vector.load %arg23[%737, %c0_201, %c0_202] : memref<8x8x32xf32, #tpu.memory_space<vmem>>, vector<1x8x32xf32>
    %739 = vector.shape_cast %738 : vector<1x8x32xf32> to vector<8x32xf32>
    %740 = vector.shape_cast %661 : vector<8x32xf32> to vector<1x8x32xf32>
    tpu.vector_store %arg23[%737, %c0_201, %c0_202], %740 {strides = array<i32>} : memref<8x8x32xf32, #tpu.memory_space<vmem>>, vector<1x8x32xf32>,
    %741 = arith.index_cast %c3_i32 : i32 to index
    %c0_203 = arith.constant 0 : index
    %c0_204 = arith.constant 0 : index
    %742 = vector.load %arg24[%741, %c0_203, %c0_204] : memref<8x8x11xf32, #tpu.memory_space<vmem>>, vector<1x8x11xf32>
    %743 = vector.shape_cast %742 : vector<1x8x11xf32> to vector<8x11xf32>
    %744 = vector.shape_cast %668 : vector<8x11xf32> to vector<1x8x11xf32>
    tpu.vector_store %arg24[%741, %c0_203, %c0_204], %744 {strides = array<i32>} : memref<8x8x11xf32, #tpu.memory_space<vmem>>, vector<1x8x11xf32>,
    %c4_i32 = arith.constant 4 : i32
    %745 = arith.index_cast %c4_i32 : i32 to index
    %c0_205 = arith.constant 0 : index
    %c0_206 = arith.constant 0 : index
    %746 = vector.load %arg31[%745, %c0_205, %c0_206] : memref<8x8x96xf32, #tpu.memory_space<vmem>>, vector<1x8x96xf32>
    %747 = vector.shape_cast %746 : vector<1x8x96xf32> to vector<8x96xf32>
    %748 = arith.truncf %661 : vector<8x32xf32> to vector<8x32xbf16>
    %c0_207 = arith.constant 0 : index
    %c0_208 = arith.constant 0 : index
    %749 = vector.load %arg11[%c0_207, %c0_208] : memref<32x96xbf16, #tpu.memory_space<vmem>>, vector<32x96xbf16>
    %cst_209 = arith.constant dense<0.000000e+00> : vector<8x96xf32>
    %750 = tpu.matmul %748, %749, %cst_209 {dimension_numbers = #tpu.dot_dimension_numbers<[1], [0], [0], [1], [0, 0, 1, 1], [], []>} : vector<8x32xbf16>, vector<32x96xbf16>, vector<8x96xf32> -> vector<8x96xf32>
    %751 = vector.broadcast %7 : vector<1x96xf32> to vector<8x96xf32>
    %752 = arith.addf %750, %751 : vector<8x96xf32>
    %cst_210 = arith.constant dense<0.000000e+00> : vector<8xf32>
    %753 = vector.multi_reduction <add>, %752, %cst_210 [1] : vector<8x96xf32> to vector<8xf32>
    %754 = vector.shape_cast %753 : vector<8xf32> to vector<8x1xf32>
    %755 = arith.mulf %752, %752 : vector<8x96xf32>
    %cst_211 = arith.constant dense<0.000000e+00> : vector<8xf32>
    %756 = vector.multi_reduction <add>, %755, %cst_211 [1] : vector<8x96xf32> to vector<8xf32>
    %757 = vector.shape_cast %756 : vector<8xf32> to vector<8x1xf32>
    %cst_212 = arith.constant 0.010416667 : f32
    %758 = vector.broadcast %cst_212 : f32 to vector<8x1xf32>
    %759 = arith.mulf %754, %758 : vector<8x1xf32>
    %cst_213 = arith.constant 0.010416667 : f32
    %760 = vector.broadcast %cst_213 : f32 to vector<8x1xf32>
    %761 = arith.mulf %757, %760 : vector<8x1xf32>
    %762 = arith.mulf %759, %759 : vector<8x1xf32>
    %763 = arith.subf %761, %762 : vector<8x1xf32>
    %764 = vector.broadcast %759 : vector<8x1xf32> to vector<8x96xf32>
    %765 = arith.subf %752, %764 : vector<8x96xf32>
    %cst_214 = arith.constant 9.99999974E-6 : f32
    %766 = vector.broadcast %cst_214 : f32 to vector<8x1xf32>
    %767 = arith.addf %763, %766 : vector<8x1xf32>
    %768 = math.rsqrt %767 : vector<8x1xf32>
    %769 = vector.broadcast %768 : vector<8x1xf32> to vector<8x96xf32>
    %770 = arith.mulf %765, %769 : vector<8x96xf32>
    %771 = vector.broadcast %11 : vector<1x96xf32> to vector<8x96xf32>
    %772 = arith.mulf %770, %771 : vector<8x96xf32>
    %773 = vector.broadcast %12 : vector<1x96xf32> to vector<8x96xf32>
    %774 = arith.addf %772, %773 : vector<8x96xf32>
    %775 = arith.truncf %700 : vector<8x8xf32> to vector<8x8xbf16>
    %c0_215 = arith.constant 0 : index
    %c0_216 = arith.constant 0 : index
    %776 = vector.load %arg13[%c0_215, %c0_216] : memref<8x96xbf16, #tpu.memory_space<vmem>>, vector<8x96xbf16>
    %cst_217 = arith.constant dense<0.000000e+00> : vector<8x96xf32>
    %777 = tpu.matmul %775, %776, %cst_217 {dimension_numbers = #tpu.dot_dimension_numbers<[1], [0], [0], [1], [0, 0, 1, 1], [], []>} : vector<8x8xbf16>, vector<8x96xbf16>, vector<8x96xf32> -> vector<8x96xf32>
    %778 = vector.broadcast %8 : vector<1x96xf32> to vector<8x96xf32>
    %779 = arith.addf %777, %778 : vector<8x96xf32>
    %cst_218 = arith.constant dense<0.000000e+00> : vector<8xf32>
    %780 = vector.multi_reduction <add>, %779, %cst_218 [1] : vector<8x96xf32> to vector<8xf32>
    %781 = vector.shape_cast %780 : vector<8xf32> to vector<8x1xf32>
    %782 = arith.mulf %779, %779 : vector<8x96xf32>
    %cst_219 = arith.constant dense<0.000000e+00> : vector<8xf32>
    %783 = vector.multi_reduction <add>, %782, %cst_219 [1] : vector<8x96xf32> to vector<8xf32>
    %784 = vector.shape_cast %783 : vector<8xf32> to vector<8x1xf32>
    %cst_220 = arith.constant 0.010416667 : f32
    %785 = vector.broadcast %cst_220 : f32 to vector<8x1xf32>
    %786 = arith.mulf %781, %785 : vector<8x1xf32>
    %cst_221 = arith.constant 0.010416667 : f32
    %787 = vector.broadcast %cst_221 : f32 to vector<8x1xf32>
    %788 = arith.mulf %784, %787 : vector<8x1xf32>
    %789 = arith.mulf %786, %786 : vector<8x1xf32>
    %790 = arith.subf %788, %789 : vector<8x1xf32>
    %791 = vector.broadcast %786 : vector<8x1xf32> to vector<8x96xf32>
    %792 = arith.subf %779, %791 : vector<8x96xf32>
    %cst_222 = arith.constant 9.99999974E-6 : f32
    %793 = vector.broadcast %cst_222 : f32 to vector<8x1xf32>
    %794 = arith.addf %790, %793 : vector<8x1xf32>
    %795 = math.rsqrt %794 : vector<8x1xf32>
    %796 = vector.broadcast %795 : vector<8x1xf32> to vector<8x96xf32>
    %797 = arith.mulf %792, %796 : vector<8x96xf32>
    %798 = vector.broadcast %13 : vector<1x96xf32> to vector<8x96xf32>
    %799 = arith.mulf %797, %798 : vector<8x96xf32>
    %800 = vector.broadcast %14 : vector<1x96xf32> to vector<8x96xf32>
    %801 = arith.addf %799, %800 : vector<8x96xf32>
    %802 = vector.extract_strided_slice %747 {offsets = [0, 0], sizes = [8, 32], strides = [1, 1]} : vector<8x96xf32> to vector<8x32xf32>
    %803 = vector.extract_strided_slice %774 {offsets = [0, 0], sizes = [8, 32], strides = [1, 1]} : vector<8x96xf32> to vector<8x32xf32>
    %804 = arith.addf %802, %803 : vector<8x32xf32>
    %805 = vector.extract_strided_slice %801 {offsets = [0, 0], sizes = [8, 32], strides = [1, 1]} : vector<8x96xf32> to vector<8x32xf32>
    %806 = arith.addf %804, %805 : vector<8x32xf32>
    %807 = arith.negf %806 : vector<8x32xf32>
    %808 = math.exp %807 : vector<8x32xf32>
    %cst_223 = arith.constant 1.000000e+00 : f32
    %809 = vector.broadcast %cst_223 : f32 to vector<8x32xf32>
    %810 = arith.addf %809, %808 : vector<8x32xf32>
    %811 = arith.divf %809, %810 : vector<8x32xf32>
    %812 = vector.extract_strided_slice %747 {offsets = [0, 32], sizes = [8, 32], strides = [1, 1]} : vector<8x96xf32> to vector<8x32xf32>
    %813 = vector.extract_strided_slice %774 {offsets = [0, 32], sizes = [8, 32], strides = [1, 1]} : vector<8x96xf32> to vector<8x32xf32>
    %814 = arith.addf %812, %813 : vector<8x32xf32>
    %815 = vector.extract_strided_slice %801 {offsets = [0, 32], sizes = [8, 32], strides = [1, 1]} : vector<8x96xf32> to vector<8x32xf32>
    %816 = arith.addf %814, %815 : vector<8x32xf32>
    %817 = arith.negf %816 : vector<8x32xf32>
    %818 = math.exp %817 : vector<8x32xf32>
    %cst_224 = arith.constant 1.000000e+00 : f32
    %819 = vector.broadcast %cst_224 : f32 to vector<8x32xf32>
    %820 = arith.addf %819, %818 : vector<8x32xf32>
    %821 = arith.divf %819, %820 : vector<8x32xf32>
    %822 = vector.extract_strided_slice %747 {offsets = [0, 64], sizes = [8, 32], strides = [1, 1]} : vector<8x96xf32> to vector<8x32xf32>
    %823 = vector.extract_strided_slice %774 {offsets = [0, 64], sizes = [8, 32], strides = [1, 1]} : vector<8x96xf32> to vector<8x32xf32>
    %824 = arith.addf %822, %823 : vector<8x32xf32>
    %825 = vector.extract_strided_slice %801 {offsets = [0, 64], sizes = [8, 32], strides = [1, 1]} : vector<8x96xf32> to vector<8x32xf32>
    %826 = arith.addf %824, %825 : vector<8x32xf32>
    %cst_225 = arith.constant 1.000000e+00 : f32
    %827 = vector.broadcast %cst_225 : f32 to vector<8x32xf32>
    %828 = arith.subf %827, %811 : vector<8x32xf32>
    %829 = arith.mulf %828, %659 : vector<8x32xf32>
    %830 = arith.mulf %811, %821 : vector<8x32xf32>
    %831 = arith.mulf %830, %826 : vector<8x32xf32>
    %832 = arith.addf %829, %831 : vector<8x32xf32>
    %cst_226 = arith.constant 0.000000e+00 : f32
    %833 = vector.broadcast %cst_226 : f32 to vector<8x32xf32>
    %834 = arith.maximumf %832, %833 : vector<8x32xf32>
    %835 = arith.truncf %834 : vector<8x32xf32> to vector<8x32xbf16>
    %c0_227 = arith.constant 0 : index
    %c0_228 = arith.constant 0 : index
    %836 = vector.load %arg21[%c0_227, %c0_228] : memref<32x11xbf16, #tpu.memory_space<vmem>>, vector<32x11xbf16>
    %cst_229 = arith.constant dense<0.000000e+00> : vector<8x11xf32>
    %837 = tpu.matmul %835, %836, %cst_229 {dimension_numbers = #tpu.dot_dimension_numbers<[1], [0], [0], [1], [0, 0, 1, 1], [], []>} : vector<8x32xbf16>, vector<32x11xbf16>, vector<8x11xf32> -> vector<8x11xf32>
    %838 = vector.broadcast %15 : vector<1x11xf32> to vector<8x11xf32>
    %839 = arith.addf %837, %838 : vector<8x11xf32>
    %cst_230 = arith.constant 0.000000e+00 : f32
    %840 = vector.broadcast %cst_230 : f32 to vector<8x11xf32>
    %841 = arith.maximumf %839, %840 : vector<8x11xf32>
    %842 = vector.extract_strided_slice %841 {offsets = [0, 0], sizes = [8, 1], strides = [1, 1]} : vector<8x11xf32> to vector<8x1xf32>
    %843 = arith.negf %842 : vector<8x1xf32>
    %844 = math.exp %843 : vector<8x1xf32>
    %cst_231 = arith.constant 1.000000e+00 : f32
    %845 = vector.broadcast %cst_231 : f32 to vector<8x1xf32>
    %846 = arith.addf %845, %844 : vector<8x1xf32>
    %847 = arith.divf %845, %846 : vector<8x1xf32>
    %848 = vector.extract_strided_slice %841 {offsets = [0, 1], sizes = [8, 1], strides = [1, 1]} : vector<8x11xf32> to vector<8x1xf32>
    %849 = arith.negf %848 : vector<8x1xf32>
    %850 = math.exp %849 : vector<8x1xf32>
    %cst_232 = arith.constant 1.000000e+00 : f32
    %851 = vector.broadcast %cst_232 : f32 to vector<8x1xf32>
    %852 = arith.addf %851, %850 : vector<8x1xf32>
    %853 = arith.divf %851, %852 : vector<8x1xf32>
    %854 = vector.extract_strided_slice %841 {offsets = [0, 2], sizes = [8, 1], strides = [1, 1]} : vector<8x11xf32> to vector<8x1xf32>
    %855 = math.tanh %854 : vector<8x1xf32>
    %856 = vector.extract_strided_slice %841 {offsets = [0, 3], sizes = [8, 8], strides = [1, 1]} : vector<8x11xf32> to vector<8x8xf32>
    %857 = vector.shape_cast %700 : vector<8x8xf32> to vector<8x1x8xf32>
    %858 = vector.broadcast %857 : vector<8x1x8xf32> to vector<8x8x8xf32>
    %859 = arith.mulf %736, %858 : vector<8x8x8xf32>
    %cst_233 = arith.constant dense<0.000000e+00> : vector<8x8xf32>
    %860 = vector.multi_reduction <add>, %859, %cst_233 [2] : vector<8x8x8xf32> to vector<8x8xf32>
    %861 = arith.addf %856, %860 : vector<8x8xf32>
    %cst_234 = arith.constant dense<0xFF800000> : vector<8xf32>
    %862 = vector.multi_reduction <maximumf>, %861, %cst_234 [1] : vector<8x8xf32> to vector<8xf32>
    %863 = vector.shape_cast %862 : vector<8xf32> to vector<8x1xf32>
    %864 = vector.broadcast %863 : vector<8x1xf32> to vector<8x8xf32>
    %865 = arith.cmpf oge, %861, %864 : vector<8x8xf32>
    %cst_235 = arith.constant 0.000000e+00 : f32
    %866 = vector.broadcast %cst_235 : f32 to vector<8x8xf32>
    %867 = arith.select %865, %861, %866 : vector<8x8xi1>, vector<8x8xf32>
    %cst_236 = arith.constant 1.000000e+00 : f32
    %868 = arith.subf %cst_236, %5 : f32
    %869 = vector.broadcast %868 : f32 to vector<8x8xf32>
    %870 = arith.mulf %869, %700 : vector<8x8xf32>
    %871 = vector.broadcast %5 : f32 to vector<8x8xf32>
    %872 = arith.mulf %871, %867 : vector<8x8xf32>
    %873 = arith.addf %870, %872 : vector<8x8xf32>
    %cst_237 = arith.constant 1.000000e+00 : f32
    %874 = vector.broadcast %cst_237 : f32 to vector<8x1xf32>
    %875 = arith.subf %874, %847 : vector<8x1xf32>
    %876 = vector.broadcast %875 : vector<8x1xf32> to vector<8x8xf32>
    %877 = arith.mulf %876, %707 : vector<8x8xf32>
    %878 = vector.broadcast %847 : vector<8x1xf32> to vector<8x8xf32>
    %879 = arith.mulf %878, %700 : vector<8x8xf32>
    %880 = arith.addf %877, %879 : vector<8x8xf32>
    %881 = vector.shape_cast %873 : vector<8x8xf32> to vector<8x8x1xf32>
    %882 = vector.shape_cast %880 : vector<8x8xf32> to vector<8x1x8xf32>
    %883 = vector.broadcast %881 : vector<8x8x1xf32> to vector<8x8x8xf32>
    %884 = vector.broadcast %882 : vector<8x1x8xf32> to vector<8x8x8xf32>
    %885 = arith.mulf %883, %884 : vector<8x8x8xf32>
    %886 = vector.shape_cast %880 : vector<8x8xf32> to vector<8x8x1xf32>
    %887 = vector.shape_cast %873 : vector<8x8xf32> to vector<8x1x8xf32>
    %888 = vector.broadcast %886 : vector<8x8x1xf32> to vector<8x8x8xf32>
    %889 = vector.broadcast %887 : vector<8x1x8xf32> to vector<8x8x8xf32>
    %890 = arith.mulf %888, %889 : vector<8x8x8xf32>
    %891 = arith.subf %885, %890 : vector<8x8x8xf32>
    %892 = vector.shape_cast %853 : vector<8x1xf32> to vector<8x1x1xf32>
    %cst_238 = arith.constant 1.000000e+00 : f32
    %893 = vector.broadcast %cst_238 : f32 to vector<8x1x1xf32>
    %894 = arith.subf %893, %892 : vector<8x1x1xf32>
    %895 = vector.broadcast %894 : vector<8x1x1xf32> to vector<8x8x8xf32>
    %896 = arith.mulf %895, %727 : vector<8x8x8xf32>
    %897 = vector.shape_cast %853 : vector<8x1xf32> to vector<8x1x1xf32>
    %898 = vector.broadcast %897 : vector<8x1x1xf32> to vector<8x8x8xf32>
    %899 = arith.mulf %898, %891 : vector<8x8x8xf32>
    %900 = arith.addf %896, %899 : vector<8x8x8xf32>
    %cst_239 = arith.constant 1.000000e+00 : f32
    %901 = arith.subf %cst_239, %3 : f32
    %902 = vector.broadcast %901 : f32 to vector<8x8x8xf32>
    %903 = arith.mulf %902, %736 : vector<8x8x8xf32>
    %904 = vector.shape_cast %855 : vector<8x1xf32> to vector<8x1x1xf32>
    %905 = vector.broadcast %4 : f32 to vector<8x1x1xf32>
    %906 = arith.mulf %905, %904 : vector<8x1x1xf32>
    %907 = vector.broadcast %906 : vector<8x1x1xf32> to vector<8x8x8xf32>
    %908 = arith.mulf %907, %900 : vector<8x8x8xf32>
    %909 = arith.addf %903, %908 : vector<8x8x8xf32>
    %910 = arith.index_cast %c4_i32 : i32 to index
    %c0_240 = arith.constant 0 : index
    %c0_241 = arith.constant 0 : index
    %911 = vector.load %arg23[%910, %c0_240, %c0_241] : memref<8x8x32xf32, #tpu.memory_space<vmem>>, vector<1x8x32xf32>
    %912 = vector.shape_cast %911 : vector<1x8x32xf32> to vector<8x32xf32>
    %913 = vector.shape_cast %834 : vector<8x32xf32> to vector<1x8x32xf32>
    tpu.vector_store %arg23[%910, %c0_240, %c0_241], %913 {strides = array<i32>} : memref<8x8x32xf32, #tpu.memory_space<vmem>>, vector<1x8x32xf32>,
    %914 = arith.index_cast %c4_i32 : i32 to index
    %c0_242 = arith.constant 0 : index
    %c0_243 = arith.constant 0 : index
    %915 = vector.load %arg24[%914, %c0_242, %c0_243] : memref<8x8x11xf32, #tpu.memory_space<vmem>>, vector<1x8x11xf32>
    %916 = vector.shape_cast %915 : vector<1x8x11xf32> to vector<8x11xf32>
    %917 = vector.shape_cast %841 : vector<8x11xf32> to vector<1x8x11xf32>
    tpu.vector_store %arg24[%914, %c0_242, %c0_243], %917 {strides = array<i32>} : memref<8x8x11xf32, #tpu.memory_space<vmem>>, vector<1x8x11xf32>,
    %c5_i32 = arith.constant 5 : i32
    %918 = arith.index_cast %c5_i32 : i32 to index
    %c0_244 = arith.constant 0 : index
    %c0_245 = arith.constant 0 : index
    %919 = vector.load %arg31[%918, %c0_244, %c0_245] : memref<8x8x96xf32, #tpu.memory_space<vmem>>, vector<1x8x96xf32>
    %920 = vector.shape_cast %919 : vector<1x8x96xf32> to vector<8x96xf32>
    %921 = arith.truncf %834 : vector<8x32xf32> to vector<8x32xbf16>
    %c0_246 = arith.constant 0 : index
    %c0_247 = arith.constant 0 : index
    %922 = vector.load %arg11[%c0_246, %c0_247] : memref<32x96xbf16, #tpu.memory_space<vmem>>, vector<32x96xbf16>
    %cst_248 = arith.constant dense<0.000000e+00> : vector<8x96xf32>
    %923 = tpu.matmul %921, %922, %cst_248 {dimension_numbers = #tpu.dot_dimension_numbers<[1], [0], [0], [1], [0, 0, 1, 1], [], []>} : vector<8x32xbf16>, vector<32x96xbf16>, vector<8x96xf32> -> vector<8x96xf32>
    %924 = vector.broadcast %7 : vector<1x96xf32> to vector<8x96xf32>
    %925 = arith.addf %923, %924 : vector<8x96xf32>
    %cst_249 = arith.constant dense<0.000000e+00> : vector<8xf32>
    %926 = vector.multi_reduction <add>, %925, %cst_249 [1] : vector<8x96xf32> to vector<8xf32>
    %927 = vector.shape_cast %926 : vector<8xf32> to vector<8x1xf32>
    %928 = arith.mulf %925, %925 : vector<8x96xf32>
    %cst_250 = arith.constant dense<0.000000e+00> : vector<8xf32>
    %929 = vector.multi_reduction <add>, %928, %cst_250 [1] : vector<8x96xf32> to vector<8xf32>
    %930 = vector.shape_cast %929 : vector<8xf32> to vector<8x1xf32>
    %cst_251 = arith.constant 0.010416667 : f32
    %931 = vector.broadcast %cst_251 : f32 to vector<8x1xf32>
    %932 = arith.mulf %927, %931 : vector<8x1xf32>
    %cst_252 = arith.constant 0.010416667 : f32
    %933 = vector.broadcast %cst_252 : f32 to vector<8x1xf32>
    %934 = arith.mulf %930, %933 : vector<8x1xf32>
    %935 = arith.mulf %932, %932 : vector<8x1xf32>
    %936 = arith.subf %934, %935 : vector<8x1xf32>
    %937 = vector.broadcast %932 : vector<8x1xf32> to vector<8x96xf32>
    %938 = arith.subf %925, %937 : vector<8x96xf32>
    %cst_253 = arith.constant 9.99999974E-6 : f32
    %939 = vector.broadcast %cst_253 : f32 to vector<8x1xf32>
    %940 = arith.addf %936, %939 : vector<8x1xf32>
    %941 = math.rsqrt %940 : vector<8x1xf32>
    %942 = vector.broadcast %941 : vector<8x1xf32> to vector<8x96xf32>
    %943 = arith.mulf %938, %942 : vector<8x96xf32>
    %944 = vector.broadcast %11 : vector<1x96xf32> to vector<8x96xf32>
    %945 = arith.mulf %943, %944 : vector<8x96xf32>
    %946 = vector.broadcast %12 : vector<1x96xf32> to vector<8x96xf32>
    %947 = arith.addf %945, %946 : vector<8x96xf32>
    %948 = arith.truncf %873 : vector<8x8xf32> to vector<8x8xbf16>
    %c0_254 = arith.constant 0 : index
    %c0_255 = arith.constant 0 : index
    %949 = vector.load %arg13[%c0_254, %c0_255] : memref<8x96xbf16, #tpu.memory_space<vmem>>, vector<8x96xbf16>
    %cst_256 = arith.constant dense<0.000000e+00> : vector<8x96xf32>
    %950 = tpu.matmul %948, %949, %cst_256 {dimension_numbers = #tpu.dot_dimension_numbers<[1], [0], [0], [1], [0, 0, 1, 1], [], []>} : vector<8x8xbf16>, vector<8x96xbf16>, vector<8x96xf32> -> vector<8x96xf32>
    %951 = vector.broadcast %8 : vector<1x96xf32> to vector<8x96xf32>
    %952 = arith.addf %950, %951 : vector<8x96xf32>
    %cst_257 = arith.constant dense<0.000000e+00> : vector<8xf32>
    %953 = vector.multi_reduction <add>, %952, %cst_257 [1] : vector<8x96xf32> to vector<8xf32>
    %954 = vector.shape_cast %953 : vector<8xf32> to vector<8x1xf32>
    %955 = arith.mulf %952, %952 : vector<8x96xf32>
    %cst_258 = arith.constant dense<0.000000e+00> : vector<8xf32>
    %956 = vector.multi_reduction <add>, %955, %cst_258 [1] : vector<8x96xf32> to vector<8xf32>
    %957 = vector.shape_cast %956 : vector<8xf32> to vector<8x1xf32>
    %cst_259 = arith.constant 0.010416667 : f32
    %958 = vector.broadcast %cst_259 : f32 to vector<8x1xf32>
    %959 = arith.mulf %954, %958 : vector<8x1xf32>
    %cst_260 = arith.constant 0.010416667 : f32
    %960 = vector.broadcast %cst_260 : f32 to vector<8x1xf32>
    %961 = arith.mulf %957, %960 : vector<8x1xf32>
    %962 = arith.mulf %959, %959 : vector<8x1xf32>
    %963 = arith.subf %961, %962 : vector<8x1xf32>
    %964 = vector.broadcast %959 : vector<8x1xf32> to vector<8x96xf32>
    %965 = arith.subf %952, %964 : vector<8x96xf32>
    %cst_261 = arith.constant 9.99999974E-6 : f32
    %966 = vector.broadcast %cst_261 : f32 to vector<8x1xf32>
    %967 = arith.addf %963, %966 : vector<8x1xf32>
    %968 = math.rsqrt %967 : vector<8x1xf32>
    %969 = vector.broadcast %968 : vector<8x1xf32> to vector<8x96xf32>
    %970 = arith.mulf %965, %969 : vector<8x96xf32>
    %971 = vector.broadcast %13 : vector<1x96xf32> to vector<8x96xf32>
    %972 = arith.mulf %970, %971 : vector<8x96xf32>
    %973 = vector.broadcast %14 : vector<1x96xf32> to vector<8x96xf32>
    %974 = arith.addf %972, %973 : vector<8x96xf32>
    %975 = vector.extract_strided_slice %920 {offsets = [0, 0], sizes = [8, 32], strides = [1, 1]} : vector<8x96xf32> to vector<8x32xf32>
    %976 = vector.extract_strided_slice %947 {offsets = [0, 0], sizes = [8, 32], strides = [1, 1]} : vector<8x96xf32> to vector<8x32xf32>
    %977 = arith.addf %975, %976 : vector<8x32xf32>
    %978 = vector.extract_strided_slice %974 {offsets = [0, 0], sizes = [8, 32], strides = [1, 1]} : vector<8x96xf32> to vector<8x32xf32>
    %979 = arith.addf %977, %978 : vector<8x32xf32>
    %980 = arith.negf %979 : vector<8x32xf32>
    %981 = math.exp %980 : vector<8x32xf32>
    %cst_262 = arith.constant 1.000000e+00 : f32
    %982 = vector.broadcast %cst_262 : f32 to vector<8x32xf32>
    %983 = arith.addf %982, %981 : vector<8x32xf32>
    %984 = arith.divf %982, %983 : vector<8x32xf32>
    %985 = vector.extract_strided_slice %920 {offsets = [0, 32], sizes = [8, 32], strides = [1, 1]} : vector<8x96xf32> to vector<8x32xf32>
    %986 = vector.extract_strided_slice %947 {offsets = [0, 32], sizes = [8, 32], strides = [1, 1]} : vector<8x96xf32> to vector<8x32xf32>
    %987 = arith.addf %985, %986 : vector<8x32xf32>
    %988 = vector.extract_strided_slice %974 {offsets = [0, 32], sizes = [8, 32], strides = [1, 1]} : vector<8x96xf32> to vector<8x32xf32>
    %989 = arith.addf %987, %988 : vector<8x32xf32>
    %990 = arith.negf %989 : vector<8x32xf32>
    %991 = math.exp %990 : vector<8x32xf32>
    %cst_263 = arith.constant 1.000000e+00 : f32
    %992 = vector.broadcast %cst_263 : f32 to vector<8x32xf32>
    %993 = arith.addf %992, %991 : vector<8x32xf32>
    %994 = arith.divf %992, %993 : vector<8x32xf32>
    %995 = vector.extract_strided_slice %920 {offsets = [0, 64], sizes = [8, 32], strides = [1, 1]} : vector<8x96xf32> to vector<8x32xf32>
    %996 = vector.extract_strided_slice %947 {offsets = [0, 64], sizes = [8, 32], strides = [1, 1]} : vector<8x96xf32> to vector<8x32xf32>
    %997 = arith.addf %995, %996 : vector<8x32xf32>
    %998 = vector.extract_strided_slice %974 {offsets = [0, 64], sizes = [8, 32], strides = [1, 1]} : vector<8x96xf32> to vector<8x32xf32>
    %999 = arith.addf %997, %998 : vector<8x32xf32>
    %cst_264 = arith.constant 1.000000e+00 : f32
    %1000 = vector.broadcast %cst_264 : f32 to vector<8x32xf32>
    %1001 = arith.subf %1000, %984 : vector<8x32xf32>
    %1002 = arith.mulf %1001, %832 : vector<8x32xf32>
    %1003 = arith.mulf %984, %994 : vector<8x32xf32>
    %1004 = arith.mulf %1003, %999 : vector<8x32xf32>
    %1005 = arith.addf %1002, %1004 : vector<8x32xf32>
    %cst_265 = arith.constant 0.000000e+00 : f32
    %1006 = vector.broadcast %cst_265 : f32 to vector<8x32xf32>
    %1007 = arith.maximumf %1005, %1006 : vector<8x32xf32>
    %1008 = arith.truncf %1007 : vector<8x32xf32> to vector<8x32xbf16>
    %c0_266 = arith.constant 0 : index
    %c0_267 = arith.constant 0 : index
    %1009 = vector.load %arg21[%c0_266, %c0_267] : memref<32x11xbf16, #tpu.memory_space<vmem>>, vector<32x11xbf16>
    %cst_268 = arith.constant dense<0.000000e+00> : vector<8x11xf32>
    %1010 = tpu.matmul %1008, %1009, %cst_268 {dimension_numbers = #tpu.dot_dimension_numbers<[1], [0], [0], [1], [0, 0, 1, 1], [], []>} : vector<8x32xbf16>, vector<32x11xbf16>, vector<8x11xf32> -> vector<8x11xf32>
    %1011 = vector.broadcast %15 : vector<1x11xf32> to vector<8x11xf32>
    %1012 = arith.addf %1010, %1011 : vector<8x11xf32>
    %cst_269 = arith.constant 0.000000e+00 : f32
    %1013 = vector.broadcast %cst_269 : f32 to vector<8x11xf32>
    %1014 = arith.maximumf %1012, %1013 : vector<8x11xf32>
    %1015 = vector.extract_strided_slice %1014 {offsets = [0, 0], sizes = [8, 1], strides = [1, 1]} : vector<8x11xf32> to vector<8x1xf32>
    %1016 = arith.negf %1015 : vector<8x1xf32>
    %1017 = math.exp %1016 : vector<8x1xf32>
    %cst_270 = arith.constant 1.000000e+00 : f32
    %1018 = vector.broadcast %cst_270 : f32 to vector<8x1xf32>
    %1019 = arith.addf %1018, %1017 : vector<8x1xf32>
    %1020 = arith.divf %1018, %1019 : vector<8x1xf32>
    %1021 = vector.extract_strided_slice %1014 {offsets = [0, 1], sizes = [8, 1], strides = [1, 1]} : vector<8x11xf32> to vector<8x1xf32>
    %1022 = arith.negf %1021 : vector<8x1xf32>
    %1023 = math.exp %1022 : vector<8x1xf32>
    %cst_271 = arith.constant 1.000000e+00 : f32
    %1024 = vector.broadcast %cst_271 : f32 to vector<8x1xf32>
    %1025 = arith.addf %1024, %1023 : vector<8x1xf32>
    %1026 = arith.divf %1024, %1025 : vector<8x1xf32>
    %1027 = vector.extract_strided_slice %1014 {offsets = [0, 2], sizes = [8, 1], strides = [1, 1]} : vector<8x11xf32> to vector<8x1xf32>
    %1028 = math.tanh %1027 : vector<8x1xf32>
    %1029 = vector.extract_strided_slice %1014 {offsets = [0, 3], sizes = [8, 8], strides = [1, 1]} : vector<8x11xf32> to vector<8x8xf32>
    %1030 = vector.shape_cast %873 : vector<8x8xf32> to vector<8x1x8xf32>
    %1031 = vector.broadcast %1030 : vector<8x1x8xf32> to vector<8x8x8xf32>
    %1032 = arith.mulf %909, %1031 : vector<8x8x8xf32>
    %cst_272 = arith.constant dense<0.000000e+00> : vector<8x8xf32>
    %1033 = vector.multi_reduction <add>, %1032, %cst_272 [2] : vector<8x8x8xf32> to vector<8x8xf32>
    %1034 = arith.addf %1029, %1033 : vector<8x8xf32>
    %cst_273 = arith.constant dense<0xFF800000> : vector<8xf32>
    %1035 = vector.multi_reduction <maximumf>, %1034, %cst_273 [1] : vector<8x8xf32> to vector<8xf32>
    %1036 = vector.shape_cast %1035 : vector<8xf32> to vector<8x1xf32>
    %1037 = vector.broadcast %1036 : vector<8x1xf32> to vector<8x8xf32>
    %1038 = arith.cmpf oge, %1034, %1037 : vector<8x8xf32>
    %cst_274 = arith.constant 0.000000e+00 : f32
    %1039 = vector.broadcast %cst_274 : f32 to vector<8x8xf32>
    %1040 = arith.select %1038, %1034, %1039 : vector<8x8xi1>, vector<8x8xf32>
    %cst_275 = arith.constant 1.000000e+00 : f32
    %1041 = arith.subf %cst_275, %5 : f32
    %1042 = vector.broadcast %1041 : f32 to vector<8x8xf32>
    %1043 = arith.mulf %1042, %873 : vector<8x8xf32>
    %1044 = vector.broadcast %5 : f32 to vector<8x8xf32>
    %1045 = arith.mulf %1044, %1040 : vector<8x8xf32>
    %1046 = arith.addf %1043, %1045 : vector<8x8xf32>
    %cst_276 = arith.constant 1.000000e+00 : f32
    %1047 = vector.broadcast %cst_276 : f32 to vector<8x1xf32>
    %1048 = arith.subf %1047, %1020 : vector<8x1xf32>
    %1049 = vector.broadcast %1048 : vector<8x1xf32> to vector<8x8xf32>
    %1050 = arith.mulf %1049, %880 : vector<8x8xf32>
    %1051 = vector.broadcast %1020 : vector<8x1xf32> to vector<8x8xf32>
    %1052 = arith.mulf %1051, %873 : vector<8x8xf32>
    %1053 = arith.addf %1050, %1052 : vector<8x8xf32>
    %1054 = vector.shape_cast %1046 : vector<8x8xf32> to vector<8x8x1xf32>
    %1055 = vector.shape_cast %1053 : vector<8x8xf32> to vector<8x1x8xf32>
    %1056 = vector.broadcast %1054 : vector<8x8x1xf32> to vector<8x8x8xf32>
    %1057 = vector.broadcast %1055 : vector<8x1x8xf32> to vector<8x8x8xf32>
    %1058 = arith.mulf %1056, %1057 : vector<8x8x8xf32>
    %1059 = vector.shape_cast %1053 : vector<8x8xf32> to vector<8x8x1xf32>
    %1060 = vector.shape_cast %1046 : vector<8x8xf32> to vector<8x1x8xf32>
    %1061 = vector.broadcast %1059 : vector<8x8x1xf32> to vector<8x8x8xf32>
    %1062 = vector.broadcast %1060 : vector<8x1x8xf32> to vector<8x8x8xf32>
    %1063 = arith.mulf %1061, %1062 : vector<8x8x8xf32>
    %1064 = arith.subf %1058, %1063 : vector<8x8x8xf32>
    %1065 = vector.shape_cast %1026 : vector<8x1xf32> to vector<8x1x1xf32>
    %cst_277 = arith.constant 1.000000e+00 : f32
    %1066 = vector.broadcast %cst_277 : f32 to vector<8x1x1xf32>
    %1067 = arith.subf %1066, %1065 : vector<8x1x1xf32>
    %1068 = vector.broadcast %1067 : vector<8x1x1xf32> to vector<8x8x8xf32>
    %1069 = arith.mulf %1068, %900 : vector<8x8x8xf32>
    %1070 = vector.shape_cast %1026 : vector<8x1xf32> to vector<8x1x1xf32>
    %1071 = vector.broadcast %1070 : vector<8x1x1xf32> to vector<8x8x8xf32>
    %1072 = arith.mulf %1071, %1064 : vector<8x8x8xf32>
    %1073 = arith.addf %1069, %1072 : vector<8x8x8xf32>
    %cst_278 = arith.constant 1.000000e+00 : f32
    %1074 = arith.subf %cst_278, %3 : f32
    %1075 = vector.broadcast %1074 : f32 to vector<8x8x8xf32>
    %1076 = arith.mulf %1075, %909 : vector<8x8x8xf32>
    %1077 = vector.shape_cast %1028 : vector<8x1xf32> to vector<8x1x1xf32>
    %1078 = vector.broadcast %4 : f32 to vector<8x1x1xf32>
    %1079 = arith.mulf %1078, %1077 : vector<8x1x1xf32>
    %1080 = vector.broadcast %1079 : vector<8x1x1xf32> to vector<8x8x8xf32>
    %1081 = arith.mulf %1080, %1073 : vector<8x8x8xf32>
    %1082 = arith.addf %1076, %1081 : vector<8x8x8xf32>
    %1083 = arith.index_cast %c5_i32 : i32 to index
    %c0_279 = arith.constant 0 : index
    %c0_280 = arith.constant 0 : index
    %1084 = vector.load %arg23[%1083, %c0_279, %c0_280] : memref<8x8x32xf32, #tpu.memory_space<vmem>>, vector<1x8x32xf32>
    %1085 = vector.shape_cast %1084 : vector<1x8x32xf32> to vector<8x32xf32>
    %1086 = vector.shape_cast %1007 : vector<8x32xf32> to vector<1x8x32xf32>
    tpu.vector_store %arg23[%1083, %c0_279, %c0_280], %1086 {strides = array<i32>} : memref<8x8x32xf32, #tpu.memory_space<vmem>>, vector<1x8x32xf32>,
    %1087 = arith.index_cast %c5_i32 : i32 to index
    %c0_281 = arith.constant 0 : index
    %c0_282 = arith.constant 0 : index
    %1088 = vector.load %arg24[%1087, %c0_281, %c0_282] : memref<8x8x11xf32, #tpu.memory_space<vmem>>, vector<1x8x11xf32>
    %1089 = vector.shape_cast %1088 : vector<1x8x11xf32> to vector<8x11xf32>
    %1090 = vector.shape_cast %1014 : vector<8x11xf32> to vector<1x8x11xf32>
    tpu.vector_store %arg24[%1087, %c0_281, %c0_282], %1090 {strides = array<i32>} : memref<8x8x11xf32, #tpu.memory_space<vmem>>, vector<1x8x11xf32>,
    %c6_i32 = arith.constant 6 : i32
    %1091 = arith.index_cast %c6_i32 : i32 to index
    %c0_283 = arith.constant 0 : index
    %c0_284 = arith.constant 0 : index
    %1092 = vector.load %arg31[%1091, %c0_283, %c0_284] : memref<8x8x96xf32, #tpu.memory_space<vmem>>, vector<1x8x96xf32>
    %1093 = vector.shape_cast %1092 : vector<1x8x96xf32> to vector<8x96xf32>
    %1094 = arith.truncf %1007 : vector<8x32xf32> to vector<8x32xbf16>
    %c0_285 = arith.constant 0 : index
    %c0_286 = arith.constant 0 : index
    %1095 = vector.load %arg11[%c0_285, %c0_286] : memref<32x96xbf16, #tpu.memory_space<vmem>>, vector<32x96xbf16>
    %cst_287 = arith.constant dense<0.000000e+00> : vector<8x96xf32>
    %1096 = tpu.matmul %1094, %1095, %cst_287 {dimension_numbers = #tpu.dot_dimension_numbers<[1], [0], [0], [1], [0, 0, 1, 1], [], []>} : vector<8x32xbf16>, vector<32x96xbf16>, vector<8x96xf32> -> vector<8x96xf32>
    %1097 = vector.broadcast %7 : vector<1x96xf32> to vector<8x96xf32>
    %1098 = arith.addf %1096, %1097 : vector<8x96xf32>
    %cst_288 = arith.constant dense<0.000000e+00> : vector<8xf32>
    %1099 = vector.multi_reduction <add>, %1098, %cst_288 [1] : vector<8x96xf32> to vector<8xf32>
    %1100 = vector.shape_cast %1099 : vector<8xf32> to vector<8x1xf32>
    %1101 = arith.mulf %1098, %1098 : vector<8x96xf32>
    %cst_289 = arith.constant dense<0.000000e+00> : vector<8xf32>
    %1102 = vector.multi_reduction <add>, %1101, %cst_289 [1] : vector<8x96xf32> to vector<8xf32>
    %1103 = vector.shape_cast %1102 : vector<8xf32> to vector<8x1xf32>
    %cst_290 = arith.constant 0.010416667 : f32
    %1104 = vector.broadcast %cst_290 : f32 to vector<8x1xf32>
    %1105 = arith.mulf %1100, %1104 : vector<8x1xf32>
    %cst_291 = arith.constant 0.010416667 : f32
    %1106 = vector.broadcast %cst_291 : f32 to vector<8x1xf32>
    %1107 = arith.mulf %1103, %1106 : vector<8x1xf32>
    %1108 = arith.mulf %1105, %1105 : vector<8x1xf32>
    %1109 = arith.subf %1107, %1108 : vector<8x1xf32>
    %1110 = vector.broadcast %1105 : vector<8x1xf32> to vector<8x96xf32>
    %1111 = arith.subf %1098, %1110 : vector<8x96xf32>
    %cst_292 = arith.constant 9.99999974E-6 : f32
    %1112 = vector.broadcast %cst_292 : f32 to vector<8x1xf32>
    %1113 = arith.addf %1109, %1112 : vector<8x1xf32>
    %1114 = math.rsqrt %1113 : vector<8x1xf32>
    %1115 = vector.broadcast %1114 : vector<8x1xf32> to vector<8x96xf32>
    %1116 = arith.mulf %1111, %1115 : vector<8x96xf32>
    %1117 = vector.broadcast %11 : vector<1x96xf32> to vector<8x96xf32>
    %1118 = arith.mulf %1116, %1117 : vector<8x96xf32>
    %1119 = vector.broadcast %12 : vector<1x96xf32> to vector<8x96xf32>
    %1120 = arith.addf %1118, %1119 : vector<8x96xf32>
    %1121 = arith.truncf %1046 : vector<8x8xf32> to vector<8x8xbf16>
    %c0_293 = arith.constant 0 : index
    %c0_294 = arith.constant 0 : index
    %1122 = vector.load %arg13[%c0_293, %c0_294] : memref<8x96xbf16, #tpu.memory_space<vmem>>, vector<8x96xbf16>
    %cst_295 = arith.constant dense<0.000000e+00> : vector<8x96xf32>
    %1123 = tpu.matmul %1121, %1122, %cst_295 {dimension_numbers = #tpu.dot_dimension_numbers<[1], [0], [0], [1], [0, 0, 1, 1], [], []>} : vector<8x8xbf16>, vector<8x96xbf16>, vector<8x96xf32> -> vector<8x96xf32>
    %1124 = vector.broadcast %8 : vector<1x96xf32> to vector<8x96xf32>
    %1125 = arith.addf %1123, %1124 : vector<8x96xf32>
    %cst_296 = arith.constant dense<0.000000e+00> : vector<8xf32>
    %1126 = vector.multi_reduction <add>, %1125, %cst_296 [1] : vector<8x96xf32> to vector<8xf32>
    %1127 = vector.shape_cast %1126 : vector<8xf32> to vector<8x1xf32>
    %1128 = arith.mulf %1125, %1125 : vector<8x96xf32>
    %cst_297 = arith.constant dense<0.000000e+00> : vector<8xf32>
    %1129 = vector.multi_reduction <add>, %1128, %cst_297 [1] : vector<8x96xf32> to vector<8xf32>
    %1130 = vector.shape_cast %1129 : vector<8xf32> to vector<8x1xf32>
    %cst_298 = arith.constant 0.010416667 : f32
    %1131 = vector.broadcast %cst_298 : f32 to vector<8x1xf32>
    %1132 = arith.mulf %1127, %1131 : vector<8x1xf32>
    %cst_299 = arith.constant 0.010416667 : f32
    %1133 = vector.broadcast %cst_299 : f32 to vector<8x1xf32>
    %1134 = arith.mulf %1130, %1133 : vector<8x1xf32>
    %1135 = arith.mulf %1132, %1132 : vector<8x1xf32>
    %1136 = arith.subf %1134, %1135 : vector<8x1xf32>
    %1137 = vector.broadcast %1132 : vector<8x1xf32> to vector<8x96xf32>
    %1138 = arith.subf %1125, %1137 : vector<8x96xf32>
    %cst_300 = arith.constant 9.99999974E-6 : f32
    %1139 = vector.broadcast %cst_300 : f32 to vector<8x1xf32>
    %1140 = arith.addf %1136, %1139 : vector<8x1xf32>
    %1141 = math.rsqrt %1140 : vector<8x1xf32>
    %1142 = vector.broadcast %1141 : vector<8x1xf32> to vector<8x96xf32>
    %1143 = arith.mulf %1138, %1142 : vector<8x96xf32>
    %1144 = vector.broadcast %13 : vector<1x96xf32> to vector<8x96xf32>
    %1145 = arith.mulf %1143, %1144 : vector<8x96xf32>
    %1146 = vector.broadcast %14 : vector<1x96xf32> to vector<8x96xf32>
    %1147 = arith.addf %1145, %1146 : vector<8x96xf32>
    %1148 = vector.extract_strided_slice %1093 {offsets = [0, 0], sizes = [8, 32], strides = [1, 1]} : vector<8x96xf32> to vector<8x32xf32>
    %1149 = vector.extract_strided_slice %1120 {offsets = [0, 0], sizes = [8, 32], strides = [1, 1]} : vector<8x96xf32> to vector<8x32xf32>
    %1150 = arith.addf %1148, %1149 : vector<8x32xf32>
    %1151 = vector.extract_strided_slice %1147 {offsets = [0, 0], sizes = [8, 32], strides = [1, 1]} : vector<8x96xf32> to vector<8x32xf32>
    %1152 = arith.addf %1150, %1151 : vector<8x32xf32>
    %1153 = arith.negf %1152 : vector<8x32xf32>
    %1154 = math.exp %1153 : vector<8x32xf32>
    %cst_301 = arith.constant 1.000000e+00 : f32
    %1155 = vector.broadcast %cst_301 : f32 to vector<8x32xf32>
    %1156 = arith.addf %1155, %1154 : vector<8x32xf32>
    %1157 = arith.divf %1155, %1156 : vector<8x32xf32>
    %1158 = vector.extract_strided_slice %1093 {offsets = [0, 32], sizes = [8, 32], strides = [1, 1]} : vector<8x96xf32> to vector<8x32xf32>
    %1159 = vector.extract_strided_slice %1120 {offsets = [0, 32], sizes = [8, 32], strides = [1, 1]} : vector<8x96xf32> to vector<8x32xf32>
    %1160 = arith.addf %1158, %1159 : vector<8x32xf32>
    %1161 = vector.extract_strided_slice %1147 {offsets = [0, 32], sizes = [8, 32], strides = [1, 1]} : vector<8x96xf32> to vector<8x32xf32>
    %1162 = arith.addf %1160, %1161 : vector<8x32xf32>
    %1163 = arith.negf %1162 : vector<8x32xf32>
    %1164 = math.exp %1163 : vector<8x32xf32>
    %cst_302 = arith.constant 1.000000e+00 : f32
    %1165 = vector.broadcast %cst_302 : f32 to vector<8x32xf32>
    %1166 = arith.addf %1165, %1164 : vector<8x32xf32>
    %1167 = arith.divf %1165, %1166 : vector<8x32xf32>
    %1168 = vector.extract_strided_slice %1093 {offsets = [0, 64], sizes = [8, 32], strides = [1, 1]} : vector<8x96xf32> to vector<8x32xf32>
    %1169 = vector.extract_strided_slice %1120 {offsets = [0, 64], sizes = [8, 32], strides = [1, 1]} : vector<8x96xf32> to vector<8x32xf32>
    %1170 = arith.addf %1168, %1169 : vector<8x32xf32>
    %1171 = vector.extract_strided_slice %1147 {offsets = [0, 64], sizes = [8, 32], strides = [1, 1]} : vector<8x96xf32> to vector<8x32xf32>
    %1172 = arith.addf %1170, %1171 : vector<8x32xf32>
    %cst_303 = arith.constant 1.000000e+00 : f32
    %1173 = vector.broadcast %cst_303 : f32 to vector<8x32xf32>
    %1174 = arith.subf %1173, %1157 : vector<8x32xf32>
    %1175 = arith.mulf %1174, %1005 : vector<8x32xf32>
    %1176 = arith.mulf %1157, %1167 : vector<8x32xf32>
    %1177 = arith.mulf %1176, %1172 : vector<8x32xf32>
    %1178 = arith.addf %1175, %1177 : vector<8x32xf32>
    %cst_304 = arith.constant 0.000000e+00 : f32
    %1179 = vector.broadcast %cst_304 : f32 to vector<8x32xf32>
    %1180 = arith.maximumf %1178, %1179 : vector<8x32xf32>
    %1181 = arith.truncf %1180 : vector<8x32xf32> to vector<8x32xbf16>
    %c0_305 = arith.constant 0 : index
    %c0_306 = arith.constant 0 : index
    %1182 = vector.load %arg21[%c0_305, %c0_306] : memref<32x11xbf16, #tpu.memory_space<vmem>>, vector<32x11xbf16>
    %cst_307 = arith.constant dense<0.000000e+00> : vector<8x11xf32>
    %1183 = tpu.matmul %1181, %1182, %cst_307 {dimension_numbers = #tpu.dot_dimension_numbers<[1], [0], [0], [1], [0, 0, 1, 1], [], []>} : vector<8x32xbf16>, vector<32x11xbf16>, vector<8x11xf32> -> vector<8x11xf32>
    %1184 = vector.broadcast %15 : vector<1x11xf32> to vector<8x11xf32>
    %1185 = arith.addf %1183, %1184 : vector<8x11xf32>
    %cst_308 = arith.constant 0.000000e+00 : f32
    %1186 = vector.broadcast %cst_308 : f32 to vector<8x11xf32>
    %1187 = arith.maximumf %1185, %1186 : vector<8x11xf32>
    %1188 = vector.extract_strided_slice %1187 {offsets = [0, 0], sizes = [8, 1], strides = [1, 1]} : vector<8x11xf32> to vector<8x1xf32>
    %1189 = arith.negf %1188 : vector<8x1xf32>
    %1190 = math.exp %1189 : vector<8x1xf32>
    %cst_309 = arith.constant 1.000000e+00 : f32
    %1191 = vector.broadcast %cst_309 : f32 to vector<8x1xf32>
    %1192 = arith.addf %1191, %1190 : vector<8x1xf32>
    %1193 = arith.divf %1191, %1192 : vector<8x1xf32>
    %1194 = vector.extract_strided_slice %1187 {offsets = [0, 1], sizes = [8, 1], strides = [1, 1]} : vector<8x11xf32> to vector<8x1xf32>
    %1195 = arith.negf %1194 : vector<8x1xf32>
    %1196 = math.exp %1195 : vector<8x1xf32>
    %cst_310 = arith.constant 1.000000e+00 : f32
    %1197 = vector.broadcast %cst_310 : f32 to vector<8x1xf32>
    %1198 = arith.addf %1197, %1196 : vector<8x1xf32>
    %1199 = arith.divf %1197, %1198 : vector<8x1xf32>
    %1200 = vector.extract_strided_slice %1187 {offsets = [0, 2], sizes = [8, 1], strides = [1, 1]} : vector<8x11xf32> to vector<8x1xf32>
    %1201 = math.tanh %1200 : vector<8x1xf32>
    %1202 = vector.extract_strided_slice %1187 {offsets = [0, 3], sizes = [8, 8], strides = [1, 1]} : vector<8x11xf32> to vector<8x8xf32>
    %1203 = vector.shape_cast %1046 : vector<8x8xf32> to vector<8x1x8xf32>
    %1204 = vector.broadcast %1203 : vector<8x1x8xf32> to vector<8x8x8xf32>
    %1205 = arith.mulf %1082, %1204 : vector<8x8x8xf32>
    %cst_311 = arith.constant dense<0.000000e+00> : vector<8x8xf32>
    %1206 = vector.multi_reduction <add>, %1205, %cst_311 [2] : vector<8x8x8xf32> to vector<8x8xf32>
    %1207 = arith.addf %1202, %1206 : vector<8x8xf32>
    %cst_312 = arith.constant dense<0xFF800000> : vector<8xf32>
    %1208 = vector.multi_reduction <maximumf>, %1207, %cst_312 [1] : vector<8x8xf32> to vector<8xf32>
    %1209 = vector.shape_cast %1208 : vector<8xf32> to vector<8x1xf32>
    %1210 = vector.broadcast %1209 : vector<8x1xf32> to vector<8x8xf32>
    %1211 = arith.cmpf oge, %1207, %1210 : vector<8x8xf32>
    %cst_313 = arith.constant 0.000000e+00 : f32
    %1212 = vector.broadcast %cst_313 : f32 to vector<8x8xf32>
    %1213 = arith.select %1211, %1207, %1212 : vector<8x8xi1>, vector<8x8xf32>
    %cst_314 = arith.constant 1.000000e+00 : f32
    %1214 = arith.subf %cst_314, %5 : f32
    %1215 = vector.broadcast %1214 : f32 to vector<8x8xf32>
    %1216 = arith.mulf %1215, %1046 : vector<8x8xf32>
    %1217 = vector.broadcast %5 : f32 to vector<8x8xf32>
    %1218 = arith.mulf %1217, %1213 : vector<8x8xf32>
    %1219 = arith.addf %1216, %1218 : vector<8x8xf32>
    %cst_315 = arith.constant 1.000000e+00 : f32
    %1220 = vector.broadcast %cst_315 : f32 to vector<8x1xf32>
    %1221 = arith.subf %1220, %1193 : vector<8x1xf32>
    %1222 = vector.broadcast %1221 : vector<8x1xf32> to vector<8x8xf32>
    %1223 = arith.mulf %1222, %1053 : vector<8x8xf32>
    %1224 = vector.broadcast %1193 : vector<8x1xf32> to vector<8x8xf32>
    %1225 = arith.mulf %1224, %1046 : vector<8x8xf32>
    %1226 = arith.addf %1223, %1225 : vector<8x8xf32>
    %1227 = vector.shape_cast %1219 : vector<8x8xf32> to vector<8x8x1xf32>
    %1228 = vector.shape_cast %1226 : vector<8x8xf32> to vector<8x1x8xf32>
    %1229 = vector.broadcast %1227 : vector<8x8x1xf32> to vector<8x8x8xf32>
    %1230 = vector.broadcast %1228 : vector<8x1x8xf32> to vector<8x8x8xf32>
    %1231 = arith.mulf %1229, %1230 : vector<8x8x8xf32>
    %1232 = vector.shape_cast %1226 : vector<8x8xf32> to vector<8x8x1xf32>
    %1233 = vector.shape_cast %1219 : vector<8x8xf32> to vector<8x1x8xf32>
    %1234 = vector.broadcast %1232 : vector<8x8x1xf32> to vector<8x8x8xf32>
    %1235 = vector.broadcast %1233 : vector<8x1x8xf32> to vector<8x8x8xf32>
    %1236 = arith.mulf %1234, %1235 : vector<8x8x8xf32>
    %1237 = arith.subf %1231, %1236 : vector<8x8x8xf32>
    %1238 = vector.shape_cast %1199 : vector<8x1xf32> to vector<8x1x1xf32>
    %cst_316 = arith.constant 1.000000e+00 : f32
    %1239 = vector.broadcast %cst_316 : f32 to vector<8x1x1xf32>
    %1240 = arith.subf %1239, %1238 : vector<8x1x1xf32>
    %1241 = vector.broadcast %1240 : vector<8x1x1xf32> to vector<8x8x8xf32>
    %1242 = arith.mulf %1241, %1073 : vector<8x8x8xf32>
    %1243 = vector.shape_cast %1199 : vector<8x1xf32> to vector<8x1x1xf32>
    %1244 = vector.broadcast %1243 : vector<8x1x1xf32> to vector<8x8x8xf32>
    %1245 = arith.mulf %1244, %1237 : vector<8x8x8xf32>
    %1246 = arith.addf %1242, %1245 : vector<8x8x8xf32>
    %cst_317 = arith.constant 1.000000e+00 : f32
    %1247 = arith.subf %cst_317, %3 : f32
    %1248 = vector.broadcast %1247 : f32 to vector<8x8x8xf32>
    %1249 = arith.mulf %1248, %1082 : vector<8x8x8xf32>
    %1250 = vector.shape_cast %1201 : vector<8x1xf32> to vector<8x1x1xf32>
    %1251 = vector.broadcast %4 : f32 to vector<8x1x1xf32>
    %1252 = arith.mulf %1251, %1250 : vector<8x1x1xf32>
    %1253 = vector.broadcast %1252 : vector<8x1x1xf32> to vector<8x8x8xf32>
    %1254 = arith.mulf %1253, %1246 : vector<8x8x8xf32>
    %1255 = arith.addf %1249, %1254 : vector<8x8x8xf32>
    %1256 = arith.index_cast %c6_i32 : i32 to index
    %c0_318 = arith.constant 0 : index
    %c0_319 = arith.constant 0 : index
    %1257 = vector.load %arg23[%1256, %c0_318, %c0_319] : memref<8x8x32xf32, #tpu.memory_space<vmem>>, vector<1x8x32xf32>
    %1258 = vector.shape_cast %1257 : vector<1x8x32xf32> to vector<8x32xf32>
    %1259 = vector.shape_cast %1180 : vector<8x32xf32> to vector<1x8x32xf32>
    tpu.vector_store %arg23[%1256, %c0_318, %c0_319], %1259 {strides = array<i32>} : memref<8x8x32xf32, #tpu.memory_space<vmem>>, vector<1x8x32xf32>,
    %1260 = arith.index_cast %c6_i32 : i32 to index
    %c0_320 = arith.constant 0 : index
    %c0_321 = arith.constant 0 : index
    %1261 = vector.load %arg24[%1260, %c0_320, %c0_321] : memref<8x8x11xf32, #tpu.memory_space<vmem>>, vector<1x8x11xf32>
    %1262 = vector.shape_cast %1261 : vector<1x8x11xf32> to vector<8x11xf32>
    %1263 = vector.shape_cast %1187 : vector<8x11xf32> to vector<1x8x11xf32>
    tpu.vector_store %arg24[%1260, %c0_320, %c0_321], %1263 {strides = array<i32>} : memref<8x8x11xf32, #tpu.memory_space<vmem>>, vector<1x8x11xf32>,
    %c7_i32 = arith.constant 7 : i32
    %1264 = arith.index_cast %c7_i32 : i32 to index
    %c0_322 = arith.constant 0 : index
    %c0_323 = arith.constant 0 : index
    %1265 = vector.load %arg31[%1264, %c0_322, %c0_323] : memref<8x8x96xf32, #tpu.memory_space<vmem>>, vector<1x8x96xf32>
    %1266 = vector.shape_cast %1265 : vector<1x8x96xf32> to vector<8x96xf32>
    %1267 = arith.truncf %1180 : vector<8x32xf32> to vector<8x32xbf16>
    %c0_324 = arith.constant 0 : index
    %c0_325 = arith.constant 0 : index
    %1268 = vector.load %arg11[%c0_324, %c0_325] : memref<32x96xbf16, #tpu.memory_space<vmem>>, vector<32x96xbf16>
    %cst_326 = arith.constant dense<0.000000e+00> : vector<8x96xf32>
    %1269 = tpu.matmul %1267, %1268, %cst_326 {dimension_numbers = #tpu.dot_dimension_numbers<[1], [0], [0], [1], [0, 0, 1, 1], [], []>} : vector<8x32xbf16>, vector<32x96xbf16>, vector<8x96xf32> -> vector<8x96xf32>
    %1270 = vector.broadcast %7 : vector<1x96xf32> to vector<8x96xf32>
    %1271 = arith.addf %1269, %1270 : vector<8x96xf32>
    %cst_327 = arith.constant dense<0.000000e+00> : vector<8xf32>
    %1272 = vector.multi_reduction <add>, %1271, %cst_327 [1] : vector<8x96xf32> to vector<8xf32>
    %1273 = vector.shape_cast %1272 : vector<8xf32> to vector<8x1xf32>
    %1274 = arith.mulf %1271, %1271 : vector<8x96xf32>
    %cst_328 = arith.constant dense<0.000000e+00> : vector<8xf32>
    %1275 = vector.multi_reduction <add>, %1274, %cst_328 [1] : vector<8x96xf32> to vector<8xf32>
    %1276 = vector.shape_cast %1275 : vector<8xf32> to vector<8x1xf32>
    %cst_329 = arith.constant 0.010416667 : f32
    %1277 = vector.broadcast %cst_329 : f32 to vector<8x1xf32>
    %1278 = arith.mulf %1273, %1277 : vector<8x1xf32>
    %cst_330 = arith.constant 0.010416667 : f32
    %1279 = vector.broadcast %cst_330 : f32 to vector<8x1xf32>
    %1280 = arith.mulf %1276, %1279 : vector<8x1xf32>
    %1281 = arith.mulf %1278, %1278 : vector<8x1xf32>
    %1282 = arith.subf %1280, %1281 : vector<8x1xf32>
    %1283 = vector.broadcast %1278 : vector<8x1xf32> to vector<8x96xf32>
    %1284 = arith.subf %1271, %1283 : vector<8x96xf32>
    %cst_331 = arith.constant 9.99999974E-6 : f32
    %1285 = vector.broadcast %cst_331 : f32 to vector<8x1xf32>
    %1286 = arith.addf %1282, %1285 : vector<8x1xf32>
    %1287 = math.rsqrt %1286 : vector<8x1xf32>
    %1288 = vector.broadcast %1287 : vector<8x1xf32> to vector<8x96xf32>
    %1289 = arith.mulf %1284, %1288 : vector<8x96xf32>
    %1290 = vector.broadcast %11 : vector<1x96xf32> to vector<8x96xf32>
    %1291 = arith.mulf %1289, %1290 : vector<8x96xf32>
    %1292 = vector.broadcast %12 : vector<1x96xf32> to vector<8x96xf32>
    %1293 = arith.addf %1291, %1292 : vector<8x96xf32>
    %1294 = arith.truncf %1219 : vector<8x8xf32> to vector<8x8xbf16>
    %c0_332 = arith.constant 0 : index
    %c0_333 = arith.constant 0 : index
    %1295 = vector.load %arg13[%c0_332, %c0_333] : memref<8x96xbf16, #tpu.memory_space<vmem>>, vector<8x96xbf16>
    %cst_334 = arith.constant dense<0.000000e+00> : vector<8x96xf32>
    %1296 = tpu.matmul %1294, %1295, %cst_334 {dimension_numbers = #tpu.dot_dimension_numbers<[1], [0], [0], [1], [0, 0, 1, 1], [], []>} : vector<8x8xbf16>, vector<8x96xbf16>, vector<8x96xf32> -> vector<8x96xf32>
    %1297 = vector.broadcast %8 : vector<1x96xf32> to vector<8x96xf32>
    %1298 = arith.addf %1296, %1297 : vector<8x96xf32>
    %cst_335 = arith.constant dense<0.000000e+00> : vector<8xf32>
    %1299 = vector.multi_reduction <add>, %1298, %cst_335 [1] : vector<8x96xf32> to vector<8xf32>
    %1300 = vector.shape_cast %1299 : vector<8xf32> to vector<8x1xf32>
    %1301 = arith.mulf %1298, %1298 : vector<8x96xf32>
    %cst_336 = arith.constant dense<0.000000e+00> : vector<8xf32>
    %1302 = vector.multi_reduction <add>, %1301, %cst_336 [1] : vector<8x96xf32> to vector<8xf32>
    %1303 = vector.shape_cast %1302 : vector<8xf32> to vector<8x1xf32>
    %cst_337 = arith.constant 0.010416667 : f32
    %1304 = vector.broadcast %cst_337 : f32 to vector<8x1xf32>
    %1305 = arith.mulf %1300, %1304 : vector<8x1xf32>
    %cst_338 = arith.constant 0.010416667 : f32
    %1306 = vector.broadcast %cst_338 : f32 to vector<8x1xf32>
    %1307 = arith.mulf %1303, %1306 : vector<8x1xf32>
    %1308 = arith.mulf %1305, %1305 : vector<8x1xf32>
    %1309 = arith.subf %1307, %1308 : vector<8x1xf32>
    %1310 = vector.broadcast %1305 : vector<8x1xf32> to vector<8x96xf32>
    %1311 = arith.subf %1298, %1310 : vector<8x96xf32>
    %cst_339 = arith.constant 9.99999974E-6 : f32
    %1312 = vector.broadcast %cst_339 : f32 to vector<8x1xf32>
    %1313 = arith.addf %1309, %1312 : vector<8x1xf32>
    %1314 = math.rsqrt %1313 : vector<8x1xf32>
    %1315 = vector.broadcast %1314 : vector<8x1xf32> to vector<8x96xf32>
    %1316 = arith.mulf %1311, %1315 : vector<8x96xf32>
    %1317 = vector.broadcast %13 : vector<1x96xf32> to vector<8x96xf32>
    %1318 = arith.mulf %1316, %1317 : vector<8x96xf32>
    %1319 = vector.broadcast %14 : vector<1x96xf32> to vector<8x96xf32>
    %1320 = arith.addf %1318, %1319 : vector<8x96xf32>
    %1321 = vector.extract_strided_slice %1266 {offsets = [0, 0], sizes = [8, 32], strides = [1, 1]} : vector<8x96xf32> to vector<8x32xf32>
    %1322 = vector.extract_strided_slice %1293 {offsets = [0, 0], sizes = [8, 32], strides = [1, 1]} : vector<8x96xf32> to vector<8x32xf32>
    %1323 = arith.addf %1321, %1322 : vector<8x32xf32>
    %1324 = vector.extract_strided_slice %1320 {offsets = [0, 0], sizes = [8, 32], strides = [1, 1]} : vector<8x96xf32> to vector<8x32xf32>
    %1325 = arith.addf %1323, %1324 : vector<8x32xf32>
    %1326 = arith.negf %1325 : vector<8x32xf32>
    %1327 = math.exp %1326 : vector<8x32xf32>
    %cst_340 = arith.constant 1.000000e+00 : f32
    %1328 = vector.broadcast %cst_340 : f32 to vector<8x32xf32>
    %1329 = arith.addf %1328, %1327 : vector<8x32xf32>
    %1330 = arith.divf %1328, %1329 : vector<8x32xf32>
    %1331 = vector.extract_strided_slice %1266 {offsets = [0, 32], sizes = [8, 32], strides = [1, 1]} : vector<8x96xf32> to vector<8x32xf32>
    %1332 = vector.extract_strided_slice %1293 {offsets = [0, 32], sizes = [8, 32], strides = [1, 1]} : vector<8x96xf32> to vector<8x32xf32>
    %1333 = arith.addf %1331, %1332 : vector<8x32xf32>
    %1334 = vector.extract_strided_slice %1320 {offsets = [0, 32], sizes = [8, 32], strides = [1, 1]} : vector<8x96xf32> to vector<8x32xf32>
    %1335 = arith.addf %1333, %1334 : vector<8x32xf32>
    %1336 = arith.negf %1335 : vector<8x32xf32>
    %1337 = math.exp %1336 : vector<8x32xf32>
    %cst_341 = arith.constant 1.000000e+00 : f32
    %1338 = vector.broadcast %cst_341 : f32 to vector<8x32xf32>
    %1339 = arith.addf %1338, %1337 : vector<8x32xf32>
    %1340 = arith.divf %1338, %1339 : vector<8x32xf32>
    %1341 = vector.extract_strided_slice %1266 {offsets = [0, 64], sizes = [8, 32], strides = [1, 1]} : vector<8x96xf32> to vector<8x32xf32>
    %1342 = vector.extract_strided_slice %1293 {offsets = [0, 64], sizes = [8, 32], strides = [1, 1]} : vector<8x96xf32> to vector<8x32xf32>
    %1343 = arith.addf %1341, %1342 : vector<8x32xf32>
    %1344 = vector.extract_strided_slice %1320 {offsets = [0, 64], sizes = [8, 32], strides = [1, 1]} : vector<8x96xf32> to vector<8x32xf32>
    %1345 = arith.addf %1343, %1344 : vector<8x32xf32>
    %cst_342 = arith.constant 1.000000e+00 : f32
    %1346 = vector.broadcast %cst_342 : f32 to vector<8x32xf32>
    %1347 = arith.subf %1346, %1330 : vector<8x32xf32>
    %1348 = arith.mulf %1347, %1178 : vector<8x32xf32>
    %1349 = arith.mulf %1330, %1340 : vector<8x32xf32>
    %1350 = arith.mulf %1349, %1345 : vector<8x32xf32>
    %1351 = arith.addf %1348, %1350 : vector<8x32xf32>
    %cst_343 = arith.constant 0.000000e+00 : f32
    %1352 = vector.broadcast %cst_343 : f32 to vector<8x32xf32>
    %1353 = arith.maximumf %1351, %1352 : vector<8x32xf32>
    %1354 = arith.truncf %1353 : vector<8x32xf32> to vector<8x32xbf16>
    %c0_344 = arith.constant 0 : index
    %c0_345 = arith.constant 0 : index
    %1355 = vector.load %arg21[%c0_344, %c0_345] : memref<32x11xbf16, #tpu.memory_space<vmem>>, vector<32x11xbf16>
    %cst_346 = arith.constant dense<0.000000e+00> : vector<8x11xf32>
    %1356 = tpu.matmul %1354, %1355, %cst_346 {dimension_numbers = #tpu.dot_dimension_numbers<[1], [0], [0], [1], [0, 0, 1, 1], [], []>} : vector<8x32xbf16>, vector<32x11xbf16>, vector<8x11xf32> -> vector<8x11xf32>
    %1357 = vector.broadcast %15 : vector<1x11xf32> to vector<8x11xf32>
    %1358 = arith.addf %1356, %1357 : vector<8x11xf32>
    %cst_347 = arith.constant 0.000000e+00 : f32
    %1359 = vector.broadcast %cst_347 : f32 to vector<8x11xf32>
    %1360 = arith.maximumf %1358, %1359 : vector<8x11xf32>
    %1361 = vector.extract_strided_slice %1360 {offsets = [0, 0], sizes = [8, 1], strides = [1, 1]} : vector<8x11xf32> to vector<8x1xf32>
    %1362 = arith.negf %1361 : vector<8x1xf32>
    %1363 = math.exp %1362 : vector<8x1xf32>
    %cst_348 = arith.constant 1.000000e+00 : f32
    %1364 = vector.broadcast %cst_348 : f32 to vector<8x1xf32>
    %1365 = arith.addf %1364, %1363 : vector<8x1xf32>
    %1366 = arith.divf %1364, %1365 : vector<8x1xf32>
    %1367 = vector.extract_strided_slice %1360 {offsets = [0, 1], sizes = [8, 1], strides = [1, 1]} : vector<8x11xf32> to vector<8x1xf32>
    %1368 = arith.negf %1367 : vector<8x1xf32>
    %1369 = math.exp %1368 : vector<8x1xf32>
    %cst_349 = arith.constant 1.000000e+00 : f32
    %1370 = vector.broadcast %cst_349 : f32 to vector<8x1xf32>
    %1371 = arith.addf %1370, %1369 : vector<8x1xf32>
    %1372 = arith.divf %1370, %1371 : vector<8x1xf32>
    %1373 = vector.extract_strided_slice %1360 {offsets = [0, 2], sizes = [8, 1], strides = [1, 1]} : vector<8x11xf32> to vector<8x1xf32>
    %1374 = math.tanh %1373 : vector<8x1xf32>
    %1375 = vector.extract_strided_slice %1360 {offsets = [0, 3], sizes = [8, 8], strides = [1, 1]} : vector<8x11xf32> to vector<8x8xf32>
    %1376 = vector.shape_cast %1219 : vector<8x8xf32> to vector<8x1x8xf32>
    %1377 = vector.broadcast %1376 : vector<8x1x8xf32> to vector<8x8x8xf32>
    %1378 = arith.mulf %1255, %1377 : vector<8x8x8xf32>
    %cst_350 = arith.constant dense<0.000000e+00> : vector<8x8xf32>
    %1379 = vector.multi_reduction <add>, %1378, %cst_350 [2] : vector<8x8x8xf32> to vector<8x8xf32>
    %1380 = arith.addf %1375, %1379 : vector<8x8xf32>
    %cst_351 = arith.constant dense<0xFF800000> : vector<8xf32>
    %1381 = vector.multi_reduction <maximumf>, %1380, %cst_351 [1] : vector<8x8xf32> to vector<8xf32>
    %1382 = vector.shape_cast %1381 : vector<8xf32> to vector<8x1xf32>
    %1383 = vector.broadcast %1382 : vector<8x1xf32> to vector<8x8xf32>
    %1384 = arith.cmpf oge, %1380, %1383 : vector<8x8xf32>
    %cst_352 = arith.constant 0.000000e+00 : f32
    %1385 = vector.broadcast %cst_352 : f32 to vector<8x8xf32>
    %1386 = arith.select %1384, %1380, %1385 : vector<8x8xi1>, vector<8x8xf32>
    %cst_353 = arith.constant 1.000000e+00 : f32
    %1387 = arith.subf %cst_353, %5 : f32
    %1388 = vector.broadcast %1387 : f32 to vector<8x8xf32>
    %1389 = arith.mulf %1388, %1219 : vector<8x8xf32>
    %1390 = vector.broadcast %5 : f32 to vector<8x8xf32>
    %1391 = arith.mulf %1390, %1386 : vector<8x8xf32>
    %1392 = arith.addf %1389, %1391 : vector<8x8xf32>
    %cst_354 = arith.constant 1.000000e+00 : f32
    %1393 = vector.broadcast %cst_354 : f32 to vector<8x1xf32>
    %1394 = arith.subf %1393, %1366 : vector<8x1xf32>
    %1395 = vector.broadcast %1394 : vector<8x1xf32> to vector<8x8xf32>
    %1396 = arith.mulf %1395, %1226 : vector<8x8xf32>
    %1397 = vector.broadcast %1366 : vector<8x1xf32> to vector<8x8xf32>
    %1398 = arith.mulf %1397, %1219 : vector<8x8xf32>
    %1399 = arith.addf %1396, %1398 : vector<8x8xf32>
    %1400 = vector.shape_cast %1392 : vector<8x8xf32> to vector<8x8x1xf32>
    %1401 = vector.shape_cast %1399 : vector<8x8xf32> to vector<8x1x8xf32>
    %1402 = vector.broadcast %1400 : vector<8x8x1xf32> to vector<8x8x8xf32>
    %1403 = vector.broadcast %1401 : vector<8x1x8xf32> to vector<8x8x8xf32>
    %1404 = arith.mulf %1402, %1403 : vector<8x8x8xf32>
    %1405 = vector.shape_cast %1399 : vector<8x8xf32> to vector<8x8x1xf32>
    %1406 = vector.shape_cast %1392 : vector<8x8xf32> to vector<8x1x8xf32>
    %1407 = vector.broadcast %1405 : vector<8x8x1xf32> to vector<8x8x8xf32>
    %1408 = vector.broadcast %1406 : vector<8x1x8xf32> to vector<8x8x8xf32>
    %1409 = arith.mulf %1407, %1408 : vector<8x8x8xf32>
    %1410 = arith.subf %1404, %1409 : vector<8x8x8xf32>
    %1411 = vector.shape_cast %1372 : vector<8x1xf32> to vector<8x1x1xf32>
    %cst_355 = arith.constant 1.000000e+00 : f32
    %1412 = vector.broadcast %cst_355 : f32 to vector<8x1x1xf32>
    %1413 = arith.subf %1412, %1411 : vector<8x1x1xf32>
    %1414 = vector.broadcast %1413 : vector<8x1x1xf32> to vector<8x8x8xf32>
    %1415 = arith.mulf %1414, %1246 : vector<8x8x8xf32>
    %1416 = vector.shape_cast %1372 : vector<8x1xf32> to vector<8x1x1xf32>
    %1417 = vector.broadcast %1416 : vector<8x1x1xf32> to vector<8x8x8xf32>
    %1418 = arith.mulf %1417, %1410 : vector<8x8x8xf32>
    %1419 = arith.addf %1415, %1418 : vector<8x8x8xf32>
    %cst_356 = arith.constant 1.000000e+00 : f32
    %1420 = arith.subf %cst_356, %3 : f32
    %1421 = vector.broadcast %1420 : f32 to vector<8x8x8xf32>
    %1422 = arith.mulf %1421, %1255 : vector<8x8x8xf32>
    %1423 = vector.shape_cast %1374 : vector<8x1xf32> to vector<8x1x1xf32>
    %1424 = vector.broadcast %4 : f32 to vector<8x1x1xf32>
    %1425 = arith.mulf %1424, %1423 : vector<8x1x1xf32>
    %1426 = vector.broadcast %1425 : vector<8x1x1xf32> to vector<8x8x8xf32>
    %1427 = arith.mulf %1426, %1419 : vector<8x8x8xf32>
    %1428 = arith.addf %1422, %1427 : vector<8x8x8xf32>
    %1429 = arith.index_cast %c7_i32 : i32 to index
    %c0_357 = arith.constant 0 : index
    %c0_358 = arith.constant 0 : index
    %1430 = vector.load %arg23[%1429, %c0_357, %c0_358] : memref<8x8x32xf32, #tpu.memory_space<vmem>>, vector<1x8x32xf32>
    %1431 = vector.shape_cast %1430 : vector<1x8x32xf32> to vector<8x32xf32>
    %1432 = vector.shape_cast %1353 : vector<8x32xf32> to vector<1x8x32xf32>
    tpu.vector_store %arg23[%1429, %c0_357, %c0_358], %1432 {strides = array<i32>} : memref<8x8x32xf32, #tpu.memory_space<vmem>>, vector<1x8x32xf32>,
    %1433 = arith.index_cast %c7_i32 : i32 to index
    %c0_359 = arith.constant 0 : index
    %c0_360 = arith.constant 0 : index
    %1434 = vector.load %arg24[%1433, %c0_359, %c0_360] : memref<8x8x11xf32, #tpu.memory_space<vmem>>, vector<1x8x11xf32>
    %1435 = vector.shape_cast %1434 : vector<1x8x11xf32> to vector<8x11xf32>
    %1436 = vector.shape_cast %1360 : vector<8x11xf32> to vector<1x8x11xf32>
    tpu.vector_store %arg24[%1433, %c0_359, %c0_360], %1436 {strides = array<i32>} : memref<8x8x11xf32, #tpu.memory_space<vmem>>, vector<1x8x11xf32>,
    %c8_i32 = arith.constant 8 : i32
    %c0_361 = arith.constant 0 : index
    %c0_362 = arith.constant 0 : index
    %1437 = vector.load %arg25[%c0_361, %c0_362] : memref<8x32xf32, #tpu.memory_space<vmem>>, vector<8x32xf32>
    tpu.vector_store %arg25[%c0_361, %c0_362], %1353 {strides = array<i32>} : memref<8x32xf32, #tpu.memory_space<vmem>>, vector<8x32xf32>,
    %c0_363 = arith.constant 0 : index
    %c0_364 = arith.constant 0 : index
    %1438 = vector.load %arg26[%c0_363, %c0_364] : memref<8x32xf32, #tpu.memory_space<vmem>>, vector<8x32xf32>
    tpu.vector_store %arg26[%c0_363, %c0_364], %1351 {strides = array<i32>} : memref<8x32xf32, #tpu.memory_space<vmem>>, vector<8x32xf32>,
    %c0_365 = arith.constant 0 : index
    %c0_366 = arith.constant 0 : index
    %c0_367 = arith.constant 0 : index
    %1439 = vector.load %arg27[%c0_365, %c0_366, %c0_367] : memref<8x8x8xf32, #tpu.memory_space<vmem>>, vector<8x8x8xf32>
    tpu.vector_store %arg27[%c0_365, %c0_366, %c0_367], %1428 {strides = array<i32>} : memref<8x8x8xf32, #tpu.memory_space<vmem>>, vector<8x8x8xf32>,
    %c0_368 = arith.constant 0 : index
    %c0_369 = arith.constant 0 : index
    %1440 = vector.load %arg28[%c0_368, %c0_369] : memref<8x8xf32, #tpu.memory_space<vmem>>, vector<8x8xf32>
    tpu.vector_store %arg28[%c0_368, %c0_369], %1399 {strides = array<i32>} : memref<8x8xf32, #tpu.memory_space<vmem>>, vector<8x8xf32>,
    %c0_370 = arith.constant 0 : index
    %c0_371 = arith.constant 0 : index
    %c0_372 = arith.constant 0 : index
    %1441 = vector.load %arg29[%c0_370, %c0_371, %c0_372] : memref<8x8x8xf32, #tpu.memory_space<vmem>>, vector<8x8x8xf32>
    tpu.vector_store %arg29[%c0_370, %c0_371, %c0_372], %1419 {strides = array<i32>} : memref<8x8x8xf32, #tpu.memory_space<vmem>>, vector<8x8x8xf32>,
    %c0_373 = arith.constant 0 : index
    %c0_374 = arith.constant 0 : index
    %1442 = vector.load %arg30[%c0_373, %c0_374] : memref<8x8xf32, #tpu.memory_space<vmem>>, vector<8x8xf32>
    tpu.vector_store %arg30[%c0_373, %c0_374], %1392 {strides = array<i32>} : memref<8x8xf32, #tpu.memory_space<vmem>>, vector<8x8xf32>,
    return
  }
  func.func @transform_0(%arg0: i32) -> i32 {
    %c0_i32 = arith.constant 0 : i32
    %c0_i32_0 = arith.constant 0 : i32
    return %c0_i32 : i32
  }
  func.func @transform_1(%arg0: i32) -> (i32, i32, i32) {
    %c0_i32 = arith.constant 0 : i32
    %c0_i32_0 = arith.constant 0 : i32
    %c0_i32_1 = arith.constant 0 : i32
    return %arg0, %c0_i32, %c0_i32_0 : i32, i32, i32
  }
  func.func @transform_2(%arg0: i32) -> (i32, i32) {
    %c0_i32 = arith.constant 0 : i32
    %c0_i32_0 = arith.constant 0 : i32
    %c0_i32_1 = arith.constant 0 : i32
    return %c0_i32, %c0_i32_0 : i32, i32
  }
  func.func @transform_3(%arg0: i32) -> (i32, i32) {
    %c0_i32 = arith.constant 0 : i32
    %c0_i32_0 = arith.constant 0 : i32
    %c0_i32_1 = arith.constant 0 : i32
    return %c0_i32, %c0_i32_0 : i32, i32
  }
  func.func @transform_4(%arg0: i32) -> (i32, i32, i32) {
    %c0_i32 = arith.constant 0 : i32
    %c0_i32_0 = arith.constant 0 : i32
    %c0_i32_1 = arith.constant 0 : i32
    %c0_i32_2 = arith.constant 0 : i32
    return %c0_i32, %c0_i32_0, %c0_i32_1 : i32, i32, i32
  }
  func.func @transform_5(%arg0: i32) -> (i32, i32) {
    %c0_i32 = arith.constant 0 : i32
    %c0_i32_0 = arith.constant 0 : i32
    %c0_i32_1 = arith.constant 0 : i32
    return %c0_i32, %c0_i32_0 : i32, i32
  }
  func.func @transform_6(%arg0: i32) -> (i32, i32, i32) {
    %c0_i32 = arith.constant 0 : i32
    %c0_i32_0 = arith.constant 0 : i32
    %c0_i32_1 = arith.constant 0 : i32
    %c0_i32_2 = arith.constant 0 : i32
    return %c0_i32, %c0_i32_0, %c0_i32_1 : i32, i32, i32
  }
  func.func @transform_7(%arg0: i32) -> (i32, i32) {
    %c0_i32 = arith.constant 0 : i32
    %c0_i32_0 = arith.constant 0 : i32
    %c0_i32_1 = arith.constant 0 : i32
    return %c0_i32, %c0_i32_0 : i32, i32
  }
  func.func @transform_8(%arg0: i32) -> (i32, i32) {
    %c0_i32 = arith.constant 0 : i32
    %c0_i32_0 = arith.constant 0 : i32
    %c0_i32_1 = arith.constant 0 : i32
    return %c0_i32, %c0_i32_0 : i32, i32
  }
  func.func @transform_9(%arg0: i32) -> (i32, i32) {
    %c0_i32 = arith.constant 0 : i32
    %c0_i32_0 = arith.constant 0 : i32
    %c0_i32_1 = arith.constant 0 : i32
    return %c0_i32, %c0_i32_0 : i32, i32
  }
  func.func @transform_10(%arg0: i32) -> (i32, i32) {
    %c0_i32 = arith.constant 0 : i32
    %c0_i32_0 = arith.constant 0 : i32
    %c0_i32_1 = arith.constant 0 : i32
    return %c0_i32, %c0_i32_0 : i32, i32
  }
  func.func @transform_11(%arg0: i32) -> (i32, i32) {
    %c0_i32 = arith.constant 0 : i32
    %c0_i32_0 = arith.constant 0 : i32
    %c0_i32_1 = arith.constant 0 : i32
    return %c0_i32, %c0_i32_0 : i32, i32
  }
  func.func @transform_12(%arg0: i32) -> (i32, i32) {
    %c0_i32 = arith.constant 0 : i32
    %c0_i32_0 = arith.constant 0 : i32
    %c0_i32_1 = arith.constant 0 : i32
    return %c0_i32, %c0_i32_0 : i32, i32
  }
  func.func @transform_13(%arg0: i32) -> (i32, i32) {
    %c0_i32 = arith.constant 0 : i32
    %c0_i32_0 = arith.constant 0 : i32
    %c0_i32_1 = arith.constant 0 : i32
    return %c0_i32, %c0_i32_0 : i32, i32
  }
  func.func @transform_14(%arg0: i32) -> (i32, i32) {
    %c0_i32 = arith.constant 0 : i32
    %c0_i32_0 = arith.constant 0 : i32
    %c0_i32_1 = arith.constant 0 : i32
    return %c0_i32, %c0_i32_0 : i32, i32
  }
  func.func @transform_15(%arg0: i32) -> (i32, i32) {
    %c0_i32 = arith.constant 0 : i32
    %c0_i32_0 = arith.constant 0 : i32
    %c0_i32_1 = arith.constant 0 : i32
    return %c0_i32, %c0_i32_0 : i32, i32
  }
  func.func @transform_16(%arg0: i32) -> (i32, i32) {
    %c0_i32 = arith.constant 0 : i32
    %c0_i32_0 = arith.constant 0 : i32
    %c0_i32_1 = arith.constant 0 : i32
    return %c0_i32, %c0_i32_0 : i32, i32
  }
  func.func @transform_17(%arg0: i32) -> (i32, i32) {
    %c0_i32 = arith.constant 0 : i32
    %c0_i32_0 = arith.constant 0 : i32
    %c0_i32_1 = arith.constant 0 : i32
    return %c0_i32, %c0_i32_0 : i32, i32
  }
  func.func @transform_18(%arg0: i32) -> (i32, i32) {
    %c0_i32 = arith.constant 0 : i32
    %c0_i32_0 = arith.constant 0 : i32
    %c0_i32_1 = arith.constant 0 : i32
    return %c0_i32, %c0_i32_0 : i32, i32
  }
  func.func @transform_19(%arg0: i32) -> (i32, i32) {
    %c0_i32 = arith.constant 0 : i32
    %c0_i32_0 = arith.constant 0 : i32
    %c0_i32_1 = arith.constant 0 : i32
    return %c0_i32, %c0_i32_0 : i32, i32
  }
  func.func @transform_20(%arg0: i32) -> (i32, i32) {
    %c0_i32 = arith.constant 0 : i32
    %c0_i32_0 = arith.constant 0 : i32
    %c0_i32_1 = arith.constant 0 : i32
    return %c0_i32, %c0_i32_0 : i32, i32
  }
  func.func @transform_21(%arg0: i32) -> (i32, i32) {
    %c0_i32 = arith.constant 0 : i32
    %c0_i32_0 = arith.constant 0 : i32
    %c0_i32_1 = arith.constant 0 : i32
    return %c0_i32, %c0_i32_0 : i32, i32
  }
  func.func @transform_22(%arg0: i32) -> (i32, i32, i32) {
    %c0_i32 = arith.constant 0 : i32
    %c0_i32_0 = arith.constant 0 : i32
    %c0_i32_1 = arith.constant 0 : i32
    return %arg0, %c0_i32, %c0_i32_0 : i32, i32, i32
  }
  func.func @transform_23(%arg0: i32) -> (i32, i32, i32) {
    %c0_i32 = arith.constant 0 : i32
    %c0_i32_0 = arith.constant 0 : i32
    %c0_i32_1 = arith.constant 0 : i32
    return %arg0, %c0_i32, %c0_i32_0 : i32, i32, i32
  }
  func.func @transform_24(%arg0: i32) -> (i32, i32) {
    %c0_i32 = arith.constant 0 : i32
    %c0_i32_0 = arith.constant 0 : i32
    %c0_i32_1 = arith.constant 0 : i32
    return %c0_i32, %c0_i32_0 : i32, i32
  }
  func.func @transform_25(%arg0: i32) -> (i32, i32) {
    %c0_i32 = arith.constant 0 : i32
    %c0_i32_0 = arith.constant 0 : i32
    %c0_i32_1 = arith.constant 0 : i32
    return %c0_i32, %c0_i32_0 : i32, i32
  }
  func.func @transform_26(%arg0: i32) -> (i32, i32, i32) {
    %c0_i32 = arith.constant 0 : i32
    %c0_i32_0 = arith.constant 0 : i32
    %c0_i32_1 = arith.constant 0 : i32
    %c0_i32_2 = arith.constant 0 : i32
    return %c0_i32, %c0_i32_0, %c0_i32_1 : i32, i32, i32
  }
  func.func @transform_27(%arg0: i32) -> (i32, i32) {
    %c0_i32 = arith.constant 0 : i32
    %c0_i32_0 = arith.constant 0 : i32
    %c0_i32_1 = arith.constant 0 : i32
    return %c0_i32, %c0_i32_0 : i32, i32
  }
  func.func @transform_28(%arg0: i32) -> (i32, i32, i32) {
    %c0_i32 = arith.constant 0 : i32
    %c0_i32_0 = arith.constant 0 : i32
    %c0_i32_1 = arith.constant 0 : i32
    %c0_i32_2 = arith.constant 0 : i32
    return %c0_i32, %c0_i32_0, %c0_i32_1 : i32, i32, i32
  }
  func.func @transform_29(%arg0: i32) -> (i32, i32) {
    %c0_i32 = arith.constant 0 : i32
    %c0_i32_0 = arith.constant 0 : i32
    %c0_i32_1 = arith.constant 0 : i32
    return %c0_i32, %c0_i32_0 : i32, i32
  }
}

</mosaic_0001>

<bundles_post_ra>
// kernel: tpu_custom_call.1
= control target key start
LH: loop header
LB: loop body
LE: loop exit
PB: predicated region body
PF: predicated region fallthrough
CT: control target
= control target key end

     0   :  { %s10785_s6 = smov 1   ;;  %s10786_s10 = smov 2   ;;  %s14386_s0 = inlined_call_operand.smem [shape: u32[30], index: -1, kind: input, shape index: {}] }
   0x1   :  { %s10835_s5 = sld [smem:[%s14386_s0]]   ;;  %s10787_s14 = smov 3  }
   0x2   :  { %s10840_s9 = sld [smem:[%s14386_s0 + %s10785_s6]]   ;;  %s10788_s18 = smov 4  }
   0x3   :  { %s10845_s13 = sld [smem:[%s14386_s0 + %s10786_s10]]   ;;  %s10789_s22 = smov 5  }
   0x4   :  { %s10850_s17 = sld [smem:[%s14386_s0 + %s10787_s14]]   ;;  %s10790_s26 = smov 6  }
   0x5   :  { %s10855_s21 = sld [smem:[%s14386_s0 + %s10788_s18]]   ;;  %s10791_s30 = smov 7  }
   0x6   :  { %s10860_s25 = sld [smem:[%s14386_s0 + %s10789_s22]]   ;;  %s10792_s4 = smov 8  }
   0x7   :  { %14558 = sst [smem:[#allocation9_spill]] %s10835_s5  ;;  %s10793_s10 = smov 9  }
   0x8   :  { %14559 = sst [smem:[#allocation10_spill]] %s10840_s9  ;;  %s10794_s15 = smov 10  }
   0x9   :  { %14560 = sst [smem:[#allocation11_spill]] %s10845_s13  ;;  %s10795_s20 = smov 11  }
   0xa   :  { %14561 = sst [smem:[#allocation12_spill]] %s10850_s17  ;;  %s10797_s1 = smov 13  }
   0xb   :  { %14562 = sst [smem:[#allocation13_spill]] %s10855_s21  ;;  %s10798_s7 = smov 14  }
   0xc   :  { %14563 = sst [smem:[#allocation14_spill]] %s10860_s25  ;;  %s10800_s22 = smov 16  }
   0xd   :  { %s10865_s29 = sld [smem:[%s14386_s0 + %s10790_s26]]   ;;  %s10796_s26 = smov 12  }
   0xe   :  { %s10870_s3 = sld [smem:[%s14386_s0 + %s10791_s30]]   ;;  %s10801_s28 = smov 17  }
   0xf   :  { %s10875_s8 = sld [smem:[%s14386_s0 + %s10792_s4]]  }
  0x10   :  { %s10880_s14 = sld [smem:[%s14386_s0 + %s10793_s10]]  }
  0x11   :  { %s10885_s19 = sld [smem:[%s14386_s0 + %s10794_s15]]   ;;  %s10799_s15 = smov 15  }
  0x12   :  { %s10890_s24 = sld [smem:[%s14386_s0 + %s10795_s20]]  }
  0x13   :  { %14564 = sst [smem:[#allocation15_spill]] %s10865_s29 }
  0x14   :  { %14565 = sst [smem:[#allocation16_spill]] %s10870_s3 }
  0x15   :  { %14566 = sst [smem:[#allocation17_spill]] %s10875_s8 }
  0x16   :  { %14567 = sst [smem:[#allocation18_spill]] %s10880_s14 }
  0x17   :  { %s10895_s30 = sld [smem:[%s14386_s0 + %s10796_s26]]  }
  0x18   :  { %14568 = sst [smem:[#allocation19_spill]] %s10890_s24 }
  0x19   :  { %s10900_s6 = sld [smem:[%s14386_s0 + %s10797_s1]]  }
  0x1a   :  { %s10905_s12 = sld [smem:[%s14386_s0 + %s10798_s7]]   ;;  %s10802_s7 = smov 18  }
  0x1b   :  { %s10910_s20 = sld [smem:[%s14386_s0 + %s10799_s15]]   ;;  %s10803_s15 = smov 19  }
  0x1c   :  { %s10915_s27 = sld [smem:[%s14386_s0 + %s10800_s22]]   ;;  %s10804_s22 = smov 20  }
  0x1d   :  { %s10920_s4 = sld [smem:[%s14386_s0 + %s10801_s28]]   ;;  %s10805_s28 = smov 21  }
  0x1f   :  { %14569 = sst [smem:[#allocation20_spill]] %s10900_s6 }
  0x20   :  { %14570 = sst [smem:[#allocation21_spill]] %s10905_s12 }
  0x21   :  { %14571 = sst [smem:[#allocation22_spill]] %s10910_s20 }
  0x22   :  { %14572 = sst [smem:[#allocation23_spill]] %s10915_s27 }
  0x23   :  { %14573 = sst [smem:[#allocation24_spill]] %s10920_s4 }
  0x24   :  { %s10925_s12 = sld [smem:[%s14386_s0 + %s10802_s7]]   ;;  %s10806_s7 = smov 22  }
  0x25   :  { %s10930_s20 = sld [smem:[%s14386_s0 + %s10803_s15]]   ;;  %s10807_s15 = smov 23  }
  0x26   :  { %s10935_s27 = sld [smem:[%s14386_s0 + %s10804_s22]]   ;;  %s10808_s22 = smov 24  }
  0x27   :  { %s10940_s4 = sld [smem:[%s14386_s0 + %s10805_s28]]   ;;  %s10809_s28 = smov 25  }
  0x2a   :  { %14574 = sst [smem:[#allocation25_spill]] %s10925_s12 }
  0x2b   :  { %14575 = sst [smem:[#allocation26_spill]] %s10930_s20 }
  0x2c   :  { %14576 = sst [smem:[#allocation27_spill]] %s10935_s27 }
  0x2d   :  { %14577 = sst [smem:[#allocation28_spill]] %s10940_s4 }
  0x2e   :  { %s10945_s12 = sld [smem:[%s14386_s0 + %s10806_s7]]   ;;  %s10810_s7 = smov 26  }
  0x2f   :  { %s10950_s20 = sld [smem:[%s14386_s0 + %s10807_s15]]   ;;  %s10811_s15 = smov 27  }
  0x30   :  { %s10955_s27 = sld [smem:[%s14386_s0 + %s10808_s22]]   ;;  %s10812_s22 = smov 28  }
  0x31   :  { %s10960_s4 = sld [smem:[%s14386_s0 + %s10809_s28]]   ;;  %s10813_s28 = smov 29  }
  0x32   :  { %s10970_s6 = sld [smem:[%s14386_s0 + %s10811_s15]]  }
  0x33   :  { %s10975_s24 = sld [smem:[%s14386_s0 + %s10812_s22]]  }
  0x34   :  { %14578 = sst [smem:[#allocation29_spill]] %s10945_s12 }
  0x35   :  { %14579 = sst [smem:[#allocation30_spill]] %s10950_s20 }
  0x36   :  { %s10965_s12 = sld [smem:[%s14386_s0 + %s10810_s7]]  }
  0x37   :  { %14580 = sst [smem:[#allocation31_spill]] %s10960_s4 }
  0x38   :  { %s10980_s14 = sld [smem:[%s14386_s0 + %s10813_s28]]  }
  0x39   :  { %65 = vsyncpa [#allocation5], 0 }
  0x3a   :  { %66 = vsyncpa [#allocation4], 0 }
  0x3b   :  { %68 = vsyncpa [#allocation4 + $0x1], 0  ;;  %s10982_s7 = smov 0   ;;  %s10984_s10 = smov 0  }
  0x3c   :  { %s10986_s11 = smov 0   ;;  %s10988_s15 = smov 0  }
  0x3d LB: > { %s14581_s4 = sld [smem:[#allocation31_spill]]  ;;  %s11003_s0 = sadd.s32 4294967295, %s10783_s15   ;;  %s10779_s11 = sphi %s10986_s11, %s14833_s11   ;;  %s10775_s10 = sphi %s10984_s10, %s14835_s10   ;;  %s10771_s7 = sphi %s10982_s7, %s14834_s7   ;;  %s10783_s15 = sphi %s10988_s15, %s14831_s15  }
  0x3e   : > { %s14582_s29 = sld [smem:[#allocation15_spill]]  ;;  %s9968_s16 = sadd.s32 4294967294, %s10783_s15  }
  0x3f   : > { %s14583_s21 = sld [smem:[#allocation13_spill]]  ;;  %s11007_s18 = sadd.s32 1, %s10783_s15  }
  0x40   : > { %14584 = sst [smem:[#allocation32_spill]] %s10779_s11  ;;  %s548_s22 = sadd.s32 1, %s10779_s11 }
  0x41   : > { %14585 = sst [smem:[#allocation33_spill]] %s11007_s18  ;;  %s545_s23 = ssub.s32 %s10783_s15, %s11007_s18 }
  0x42   : > { %s14586_s5 = sld [smem:[#allocation9_spill]]  ;;  %p558_p0 = scmp.ne.s32.totalorder %s10779_s11, %s10775_s10 }
  0x43   : > { %p546_p1 = scmp.eq.s32.totalorder %s545_s23, 0  ;;  %p559_p2 = scmp.eq.s32.totalorder %s11003_s0, 1 }
  0x44   : > { %p564_p3 = scmp.ne.s32.totalorder %s10775_s10, %s10771_s7  ;;  %p565_p4 = scmp.eq.s32.totalorder %s9968_s16, 1 }
  0x45   : > { %s11018_s26 = scalar_select %p546_p1, %s10779_s11, %s548_s22  }
  0x46   : > { %p11020_p5 = por %p559_p2, %p558_p0  ;;  %p11024_p6 = por %p565_p4, %p564_p3 }
  0x47   : > { %14587 = sst [smem:[#allocation34_spill]] %s11018_s26  ;;  %p9969_p7 = scmp.ge.s32.totalorder %s10783_s15, 1 }
  0x48   : > { %s14588_s28 = scalar_select %p11020_p5, 1, 0 }
  0x49   : > { %s14589_s1 = scalar_select %p11024_p6, 1, 0 }
  0x4a   : > { %p724_p8 = scmp.lt.s32.totalorder %s10783_s15, 3  ;;  %p10358_p10 = scmp.eq.s32.totalorder %s11003_s0, 0 }
  0x4b   : > { %s737_s16 = sshll.u32 %s14586_s5, 4  ;;  %s738_s16 = int_to_ptr.vmem [resolvable:$true] %s737_s16 }
  0x4c   : > { %p11032_p11 = pnand %p9969_p7, %p724_p8  ;;  %s10704_s22 = scalar_lea.vmem %s738_s16, 16 }
  0x4d   : > { %p10705_p0 = scmp.ne.s32.totalorder %s738_s16, %s10704_s22  ;;  %p10712_p4 = scmp.lt.s32.totalorder %s738_s16, %s738_s16 }
  0x4e   : > { %p10350_p12 = pneg %p11032_p11  ;;  %p10713_p6 = scmp.lt.s32.totalorder %s10704_s22, %s10704_s22 }
  0x50   : > { %p10351_p13 = pnand %p10358_p10, %p10350_p12  ;;  %p10714_p9 = por %p10713_p6, %p10712_p4 }
  0x52   : > { %p10706_p1 = pneg %p10351_p13 }
  0x54   : > { %p10707_p2 = pnand %p10706_p1, %p10705_p0 }
  0x56   : > { %p10708_p3 = pneg %p10707_p2 }
  0x58   : > { %p10715_p5 = pnand %p10714_p9, %p10708_p3 }
  0x5a   : > { %10718 = shalt.err (!%p10715_p5)
}
  0x5b   : > { %s10814_s23 = smov [#allocation3]   ;;  %819 = sbr.rel (%p11032_p11) target bundleno = 9284 (0x2444), region = 108 }
  0x5c   : > { %10353 = dma.vmem_to_smem (!%p10351_p13), %s738_s16, 16, %s10814_s23, [#allocation5]  }
  0x60   : > { %10762 = dma.done.wait (%p10358_p10), [#allocation5], 16  }
  0x61   : > { %10764 = vsyncadd (%p10358_p10), [#allocation5], 4294967280 }
  0x62   : > { %825 = sfence }
  0x63   : > { %s14591_s9 = sld [smem:[#allocation10_spill]]  ;;  %s14401_s22 = sand.u32 1, %s10775_s10  }
  0x64   : > { %s14592_s20 = sld [smem:[#allocation30_spill]]  ;;  %s9975_s5 = sshll.u32 %s11003_s0, 3 }
  0x65   : > { %s9974_s26 = sshll.u32 %s14401_s22, 6  ;;  %p902_p5 = scmp.lt.s32.totalorder %s9975_s5, 15 }
  0x66   : > { %s11057_s11 = scalar_lea.vmem [#allocation6], %s9974_s26  ;;  %p14593_p6 = scmp.ne.s32.totalorder %s11003_s0, 0 }
  0x67   : > { %s14837_s5 = smov (!%p902_p5, %s9975_s5), 15  ;;  %s14594_s13 = sld [smem:[#allocation11_spill]] (!%p14593_p6) }
  0x68   : > { %s9976_s2 = sshll.u32 %s14837_s5, 3  ;;  %918 = sbr.rel (%p14593_p6) target bundleno = 122 (0x7a), region = 116 }
  0x69   : > { %s11052_s16 = scalar_lea.vmem %s14591_s9, %s9976_s2  ;;  %s14595_s17 = sld [smem:[#allocation12_spill]] (!%p14593_p6) }
  0x6a   : > { %s11055_s23 = scalar_lea.vmem %s14592_s20, %s9976_s2  ;;  %s14596_s25 = sld [smem:[#allocation14_spill]] (!%p14593_p6) }
  0x6b   : > { %s14597_s3 = sld [smem:[#allocation16_spill]] (!%p14593_p6) }
  0x6d   : > { %v919_v0 = vld [vmem:[%s14594_s13] sm:$0xff]  ;;  %vm920_vm0 = vcmask 261120   ;;  %v925_v3 = vld [vmem:[%s14583_s21 + $0x8] sm:$0xff]  ;;  %v926_v4 = vld [vmem:[%s14583_s21 + $0x10] sm:$0xff]  ;;  %vm932_vm1 = vcmask 64512  }
  0x6e   : > { %v924_v2 = vld [vmem:[%s14583_s21] sm:$0xff]  ;;  %921 = vst.msk [vmem:[%s10955_s27] sm:$0xff] %vm920_vm0, %v919_v0  ;;  %v927_v5 = vld [vmem:[%s14583_s21 + $0x18] sm:$0xff]  ;;  %v929_v7 = vld [vmem:[%s14583_s21 + $0x28] sm:$0xff] }
  0x6f   : > { %v922_v1 = vld [vmem:[%s14595_s17] sm:$0xff]  ;;  %v930_v8 = vld [vmem:[%s14583_s21 + $0x30] sm:$0xff]  ;;  %v931_v9 = vld [vmem:[%s14583_s21 + $0x38] sm:$0xff] }
  0x70   : > { %923 = vst.msk [vmem:[%s14581_s4] sm:$0xff] %vm920_vm0, %v922_v1  ;;  %v928_v6 = vld [vmem:[%s14583_s21 + $0x20] sm:$0xff]  ;;  %v944_v12 = vld [vmem:[%s14582_s29 + $0x8] sm:$0xff]  ;;  %v945_v13 = vld [vmem:[%s14582_s29 + $0x10] sm:$0xff] }
  0x71   : > { %v941_v10 = vld [vmem:[%s14596_s25] sm:$0xff]  ;;  %933 = vst.msk [vmem:[%s10965_s12] sm:$0xff] %vm932_vm1, %v924_v2  ;;  %934 = vst.msk [vmem:[%s10965_s12 + $0x8] sm:$0xff] %vm932_vm1, %v925_v3  ;;  %v946_v14 = vld [vmem:[%s14582_s29 + $0x18] sm:$0xff] }
  0x72   : > { %v943_v11 = vld [vmem:[%s14582_s29] sm:$0xff]  ;;  %935 = vst.msk [vmem:[%s10965_s12 + $0x10] sm:$0xff] %vm932_vm1, %v926_v4  ;;  %936 = vst.msk [vmem:[%s10965_s12 + $0x18] sm:$0xff] %vm932_vm1, %v927_v5  ;;  %v948_v16 = vld [vmem:[%s14582_s29 + $0x28] sm:$0xff] }
  0x73   : > { %937 = vst.msk [vmem:[%s10965_s12 + $0x20] sm:$0xff] %vm932_vm1, %v928_v6  ;;  %938 = vst.msk [vmem:[%s10965_s12 + $0x28] sm:$0xff] %vm932_vm1, %v929_v7  ;;  %v947_v15 = vld [vmem:[%s14582_s29 + $0x20] sm:$0xff]  ;;  %v949_v17 = vld [vmem:[%s14582_s29 + $0x30] sm:$0xff] }
  0x74   : > { %939 = vst.msk [vmem:[%s10965_s12 + $0x30] sm:$0xff] %vm932_vm1, %v930_v8  ;;  %940 = vst.msk [vmem:[%s10965_s12 + $0x38] sm:$0xff] %vm932_vm1, %v931_v9  ;;  %v950_v18 = vld [vmem:[%s14582_s29 + $0x38] sm:$0xff]  ;;  %v959_v19 = vld [vmem:[%s14597_s3] sm:$0xff] }
  0x75   : > { %942 = vst.msk [vmem:[%s10970_s6] sm:$0xff] %vm932_vm1, %v941_v10  ;;  %951 = vst.msk [vmem:[%s10975_s24] sm:$0xff] %vm932_vm1, %v943_v11 }
  0x76   : > { %952 = vst.msk [vmem:[%s10975_s24 + $0x8] sm:$0xff] %vm932_vm1, %v944_v12  ;;  %953 = vst.msk [vmem:[%s10975_s24 + $0x10] sm:$0xff] %vm932_vm1, %v945_v13 }
  0x77   : > { %954 = vst.msk [vmem:[%s10975_s24 + $0x18] sm:$0xff] %vm932_vm1, %v946_v14  ;;  %955 = vst.msk [vmem:[%s10975_s24 + $0x20] sm:$0xff] %vm932_vm1, %v947_v15 }
  0x78   : > { %956 = vst.msk [vmem:[%s10975_s24 + $0x28] sm:$0xff] %vm932_vm1, %v948_v16  ;;  %957 = vst.msk [vmem:[%s10975_s24 + $0x30] sm:$0xff] %vm932_vm1, %v949_v17 }
  0x79   : > { %958 = vst.msk [vmem:[%s10975_s24 + $0x38] sm:$0xff] %vm932_vm1, %v950_v18  ;;  %960 = vst.msk [vmem:[%s10980_s14] sm:$0xff] %vm932_vm1, %v959_v19 }
  0x7a PF: > { %s14598_s8 = sld [smem:[#allocation17_spill]]  ;;  %v14418_v21 = vmov 0.0   ;;  %v10510_v22 = vld [vmem:[%s10885_s19 + $0x8] sm:$0xff]   ;;  %v974_v23 = vld [vmem:[%s11052_s16] sm:$0xff]  ;;  %vm1000_vm2 = vcmask 130048   ;;  %v976_v25 = vld [vmem:[%s11052_s16 + $0x10] sm:$0xff] }
  0x7b   : > { %10168 = vmatprep.subr.bf16.mxu1 %v14418_v21  ;;  %v975_v24 = vld [vmem:[%s11052_s16 + $0x8] sm:$0xff]  ;;  %vm1364_vm3 = vcmask 1043456   ;;  %v977_v27 = vld [vmem:[%s11052_s16 + $0x18] sm:$0xff]  ;;  %v10511_v29 = vld [vmem:[%s10885_s19] sm:$0xff]   ;;  %vm10816_vm4 = vmmov 0   ;;  %vm1279_vm5 = vcmask 261120  }
  0x7c   : > { %10169 = vmatpush3.bf16.msra.mxu1 %v10510_v22  ;;  %v982_v26 = vpack.c.bf16 %v975_v24, %v974_v23  ;;  %v983_v28 = vpack.c.bf16 %v977_v27, %v976_v25  ;;  %10172 = vmatprep.mubr.msk.bf16.mxu1 %vm10816_vm4, %v14418_v21  ;;  %v1235_v30 = vld [vmem:[%s10955_s27] sm:$0xff]  ;;  %s14599_s5 = sld [smem:[#allocation18_spill]]  ;;  %vm1360_vm6 = vcmask 64512   ;;  %vm1078_vm7 = vcmask 785408   ;;  %s14408_s25 = smov 125  }
  0x7d   : > { %10170 = vmatprep.subr.bf16.mxu1 %v14418_v21  ;;  %v1353_v31 = vld [vmem:[%s10895_s30] sm:$0xf]  ;;  %s14600_s26 = sld [smem:[#allocation19_spill]]  ;;  %v1256_v33 = vpack.c.bf16 %v1235_v30, %v1235_v30  ;;  %vm1698_vm8 = vcmask 1041409   ;;  %vm1700_vm9 = vcmask 1042434   ;;  %vm1702_vm10 = vcmask 1043459  }
  0x7e   : > { %10160 = vmatprep.mubr.msk.bf16.mxu0 %vm1000_vm2, %v982_v26  ;;  %v1366_v32 = vsel %vm1364_vm3, %v1353_v31, 0  ;;  %s14601_s2 = sld [smem:[#allocation20_spill]]  ;;  %v978_v30 = vld [vmem:[%s11052_s16 + $0x20] sm:$0xff]  ;;  %v979_v31 = vld [vmem:[%s11052_s16 + $0x28] sm:$0xff]  ;;  %vm1704_vm11 = vcmask 1044484   ;;  %vm1706_vm12 = vcmask 1045509  }
  0x7f   : > { %s14602_s22 = sld [smem:[#allocation21_spill]]  ;;  %vm1708_vm13 = vcmask 1046534   ;;  %vm1710_vm14 = vcmask 1047559   ;;  %vm2451_vm15 = vcmask 89088   ;;  %vm1714_vm0 = vcmask 89112   ;;  %p14808_p8 = scmp.ne.s32.totalorder %s14588_s28, 0 }
  0x80   : > { %v10509_v20 = vld [vmem:[%s14598_s8] sm:$0xff]   ;;  %10171 = vmatpush3.bf16.msra.mxu1 %v10511_v29  ;;  %s14603_s3 = sld [smem:[#allocation22_spill]] }
  0x81   : > { %10158 = vmatprep.subr.bf16.mxu0 %v10509_v20  ;;  %10176 = vmatprep.subr.bf16.mxu1 %v14418_v21  ;;  %v11138_v34 = vld [vmem:[%s10980_s14] sm:$0xff]  ;;  %s14604_s8 = sld [smem:[#allocation27_spill]] }
  0x82   : > { %10159 = vmatpush3.bf16.msra.mxu0 %v10509_v20  ;;  %v1352_v35 = vpack.c.bf16 %v11138_v34, %v11138_v34  ;;  %v11152_v37 = vld [vmem:[%s14599_s5] ss:$0 sm:$0xff]  ;;  %s14605_s9 = sld [smem:[#allocation23_spill]] }
  0x83   : > { %10182 = vmatprep.subr.bf16.mxu0 %v14418_v21  ;;  %10173 = vmatmul.mubr.msk.bf16.vlgmr.msra.gmra.mxu1 %vm1279_vm5, %v1256_v33  ;;  %v11155_v39 = vld [vmem:[%s14600_s26] ss:$0 sm:$0xff]  ;;  %s14606_s13 = sld [smem:[#allocation25_spill]]  ;;  %v984_v33 = vpack.c.bf16 %v979_v31, %v978_v30 }
  0x84   : > { %10177 = vmatpush3.bf16.msra.mxu1 %v1366_v32  ;;  %10178 = vmatprep.mubr.msk.bf16.mxu1 %vm10816_vm4, %v14418_v21  ;;  %v11164_v52 = vld [vmem:[%s14601_s2] ss:$0 sm:$0xff]  ;;  %s14607_s17 = sld [smem:[#allocation24_spill]] }
  0x85   : > { %10161 = vmatmul.mubr.msk.bf16.vlgmr.msra.gmra.mxu0 %vm1000_vm2, %v983_v28  ;;  %10190 = vmatprep.subr.bf16.mxu1 %v14418_v21  ;;  %v11170_v20 = vld [vmem:[%s14602_s22] ss:$0 sm:$0xff]  ;;  %s14608_s20 = sld [smem:[#allocation26_spill]] }
  0x86   : > { %v11173_v24 = vld [vmem:[%s14603_s3] ss:$0 sm:$0xff]  ;;  %10164 = vmatprep.mubr.msk.bf16.mxu0 %vm1000_vm2, %v984_v33  ;;  %s9981_s21 = sld [smem:[#allocation3 + $0x2]] }
  0x87   : > { %v10512_v29 = vld [vmem:[%s14604_s8 + $0x8] sm:$0xff]  }
  0x88   : > { %v11181_v32 = vld [vmem:[%s14605_s9] ss:$0 sm:$0xff]  ;;  %10183 = vmatpush3.bf16.msra.mxu0 %v10512_v29  ;;  %v1244_v29 = vld [vmem:[%s10965_s12 + $0x38] sm:$0xff] }
  0x89   : > { %10184 = vmatprep.subr.bf16.mxu0 %v14418_v21 }
  0x8b   : > { %10179 = vmatmul.mubr.msk.bf16.vlgmr.msra.gmra.mxu1 %vm1360_vm6, %v1352_v35  ;;  %v980_v35 = vld [vmem:[%s11052_s16 + $0x30] sm:$0xff] }
  0x8c   : > { %10194 = vmatprep.mubr.msk.bf16.mxu1 %vm10816_vm4, %v14418_v21  ;;  %s1720_s29 = ssub.f32 1.0, %s9981_s21 }
 0x143   : > { %v1317_v41 = vpop.f32.mrf.mxu1 }
 0x144   : > { %v1318_v42 = vadd.f32 %v11155_v39, %v1317_v41 }
 0x145   : > { %v11149_v36 = vpop.f32.mrf.mxu0  ;;  %v10174_v45 = vpop.f32.mrf.mxu1 }
 0x146   : > { %v1323_v46 = vsel %vm1078_vm7, %v1318_v42, 0.0  ;;  %v1326_v47 = vmul.f32 %v1318_v42, %v1318_v42 }
 0x147   : > { %v1047_v38 = vpop.f32.mrf.mxu0  ;;  %v1320_v48 = vpop.f32.mrf.mxu1  ;;  %1324 = vadd.xlane.f32.xlu1 %v1323_v46  ;;  %v11194_v46 = vld [vmem:[%s14607_s17] ss:$0 sm:$0xff] }
 0x148   : > { %v1048_v40 = vadd.f32 %v11152_v37, %v1047_v38  ;;  %v1327_v50 = vsel %vm1078_vm7, %v1326_v47, 0.0  ;;  %v981_v38 = vld [vmem:[%s11052_s16 + $0x38] sm:$0xff]  ;;  %v11200_v48 = vld [vmem:[%s14608_s20] ss:$0 sm:$0xff]  ;;  %s14402_s16 = smov 64  }
 0x149   : > { %v10175_v51 = vpop.f32.mrf.mxu1  ;;  %v985_v41 = vpack.c.bf16 %v981_v38, %v980_v35 }
 0x14a   : > { %v1079_v43 = vsel %vm1078_vm7, %v1048_v40, 0.0  ;;  %v1103_v44 = vmul.f32 %v1048_v40, %v1048_v40 }
 0x14b   : > { %1080 = vadd.xlane.f32.xlu0 %v1079_v43  ;;  %v1402_v53 = vpop.f32.mrf.mxu1  ;;  %1328 = vadd.xlane.f32.xlu1 %v1327_v50  ;;  %v11187_v43 = vld [vmem:[%s14606_s13] ss:$0 sm:$0xff] }
 0x14c   : > { %v1111_v49 = vsel %vm1078_vm7, %v1103_v44, 0.0  ;;  %v1403_v54 = vadd.f32 %v11164_v52, %v1402_v53  ;;  %10165 = vmatmul.mubr.msk.bf16.gmra.mxu0 %vm1000_vm2, %v985_v41 }
 0x14d   : > { %v10180_v55 = vpop.f32.mrf.mxu1  ;;  %10186 = vmatprep.mubr.msk.bf16.mxu0 %vm10816_vm4, %v14418_v21 }
 0x14e   : > { %v1408_v56 = vsel %vm1078_vm7, %v1403_v54, 0.0  ;;  %v1411_v57 = vmul.f32 %v1403_v54, %v1403_v54 }
 0x14f   : > { %1112 = vadd.xlane.f32.xlu0 %v1111_v49  ;;  %v1405_v58 = vpop.f32.mrf.mxu1 }
 0x150   : > { %v1412_v59 = vsel %vm1078_vm7, %v1411_v57, 0.0  ;;  %v10514_v58 = vld [vmem:[%s10885_s19 + $0x8] sm:$0xff]  }
 0x151   : > { %v10181_v60 = vpop.f32.mrf.mxu1  ;;  %1413 = vadd.xlane.f32.xlu1 %v1412_v59  ;;  %10191 = vmatpush3.bf16.msra.mxu1 %v10514_v58  ;;  %v10513_v59 = vld [vmem:[%s14604_s8] sm:$0xff]   ;;  %v1243_v58 = vld [vmem:[%s10965_s12 + $0x30] sm:$0xff] }
 0x152   : > { %10192 = vmatprep.subr.bf16.mxu1 %v14418_v21  ;;  %v10515_v60 = vld [vmem:[%s10885_s19] sm:$0xff]   ;;  %10185 = vmatpush3.bf16.msra.mxu0 %v10513_v59 }
 0x153   : > { %1409 = vadd.xlane.f32.xlu0 %v1408_v56  ;;  %10198 = vmatprep.subr.bf16.mxu0 %v14418_v21 }
 0x155   : > { %10193 = vmatpush3.bf16.msra.mxu1 %v10515_v60 }
 0x156   : > { %10204 = vmatprep.subr.bf16.mxu1 %v14418_v21 }
 0x1d0   : > { %v1325_v63 = vpop.xlane.xlu1 %1324 }
 0x1d1   : > { %v1330_v0 = vmul.f32 0.010416667, %v1325_v63 }
 0x1d3   : > { %v1332_v3 = vmul.f32 %v1330_v0, %v1330_v0  ;;  %v1334_v25 = vsub.f32 %v1318_v42, %v1330_v0 }
 0x1d4   : > { %v1081_v61 = vpop.xlane.xlu0 %1080  ;;  %v1329_v5 = vpop.xlane.xlu1 %1328 }
 0x1d5   : > { %v1135_v62 = vmul.f32 0.010416667, %v1081_v61  ;;  %v1331_v7 = vmul.f32 0.010416667, %v1329_v5  ;;  %v1538_v61 = vlaneseq }
 0x1d7   : > { %v1151_v2 = vmul.f32 %v1135_v62, %v1135_v62  ;;  %v1333_v9 = vsub.f32 %v1331_v7, %v1332_v3  ;;  %v1167_v18 = vsub.f32 %v1048_v40, %v1135_v62  ;;  %v10818_v62 = vmov 1966171168  }
 0x1d8   : > { %v1113_v1 = vpop.xlane.xlu0 %1112  ;;  %v1536_v63 = vunpack.c.l.s4 %v10818_v62  ;;  %v1534_v3 = vcombine.high %v11138_v34, %v11138_v34 }
 0x1d9   : > { %v1143_v4 = vmul.f32 0.010416667, %v1113_v1  ;;  %v1335_v11 = vadd.f32 1e-05, %v1333_v9  ;;  %v11214_v1 = vshrl.u32 %v1538_v61, 7 }
 0x1da   : > { %v1414_v13 = vpop.xlane.xlu1 %1413 }
 0x1db   : > { %v1159_v6 = vsub.f32 %v1143_v4, %v1151_v2  ;;  %v1416_v15 = vmul.f32 0.010416667, %v1414_v13  ;;  %v1537_v2 = vunpack.c.0.s8 %v1536_v63 }
 0x1dc   : > { %v1410_v10 = vpop.xlane.xlu0 %1409 }
 0x1dd   : > { %v1175_v8 = vadd.f32 1e-05, %v1159_v6  ;;  %v1415_v12 = vmul.f32 0.010416667, %v1410_v10  ;;  %v11221_v4 = vsub.s32 %v1537_v2, %v11214_v1  ;;  %v11226_v6 = vsub.s32 0, %v11214_v1  ;;  %v1236_v2 = vld [vmem:[%s14581_s4] sm:$0xff] }
 0x1df   : > { %10542 = vrsqrt.f32 %v1175_v8  ;;  %v1417_v14 = vmul.f32 %v1415_v12, %v1415_v12  ;;  %v1419_v40 = vsub.f32 %v1403_v54, %v1415_v12  ;;  %v1541_v5 = vrot.slane %v11138_v34, %v11221_v4 }
 0x1e0   : > { %10544 = vrsqrt.f32 %v1335_v11  ;;  %v1548_v7 = vrot.slane %v1534_v3, %v11221_v4  ;;  %v11231_v11 = vld [vmem:[%s10965_s12] sm:$0xff] }
 0x1e1   : > { %v1418_v16 = vsub.f32 %v1416_v15, %v1417_v14  ;;  %v1549_v8 = vcombine.high %v1541_v5, %v1541_v5  ;;  %v1557_v9 = vrot.slane %v1541_v5, %v11221_v4 }
 0x1e2   : > { %v1550_v10 = vcombine.high %v1548_v7, %v1548_v7 }
 0x1e3   : > { %v1420_v17 = vadd.f32 1e-05, %v1418_v16  ;;  %v1571_v12 = vrot.slane %v1549_v8, %v11221_v4  ;;  %v1586_v13 = vrot.slane %v1557_v9, %v11226_v6  ;;  %v1579_v38 = vcombine.high %v1557_v9, %v1557_v9 }
 0x1e4   : > { %v1578_v14 = vrot.slane %v1550_v10, %v11221_v4 }
 0x1e5   : > { %10546 = vrsqrt.f32 %v1420_v17  ;;  %v1623_v15 = vmul.f32 %v1586_v13, %v11231_v11  ;;  %v1581_v16 = vcombine.high %v1571_v12, %v1571_v12  ;;  %v1240_v17 = vld [vmem:[%s10965_s12 + $0x18] sm:$0xff]  ;;  %v1590_v35 = vrot.slane %v1571_v12, %v11226_v6 }
 0x1ec   : > { %v10543_v19 = vpop.eup %10542 }
 0x1ed   : > { %v1191_v22 = vmul.f32 %v10543_v19, %v1167_v18  ;;  %v10545_v23 = vpop.eup %10544  ;;  %v1242_v18 = vld [vmem:[%s10965_s12 + $0x28] sm:$0xff]  ;;  %v1606_v19 = vrot.slane %v1578_v14, %v11226_v6 }
 0x1ee   : > { %v1337_v28 = vmul.f32 %v10545_v23, %v1334_v25  ;;  %v1631_v23 = vsel %vm1360_vm6, %v1623_v15, 0.0  ;;  %v1598_v25 = vrot.slane %v1581_v16, %v11226_v6 }
 0x1ef   : > { %v1205_v26 = vmul.f32 %v11170_v20, %v1191_v22  ;;  %v1582_v22 = vcombine.high %v1578_v14, %v1578_v14 }
 0x1f0   : > { %v1344_v44 = vmul.f32 %v11181_v32, %v1337_v28 }
 0x1f1   : > { %v1219_v27 = vadd.f32 %v11173_v24, %v1205_v26  ;;  %v1626_v26 = vmul.f32 %v1598_v25, %v1240_v17  ;;  %v1614_v28 = vrot.slane %v1582_v22, %v11226_v6 }
 0x1f2   : > { %v10547_v42 = vpop.eup %10546  ;;  %v1351_v49 = vadd.f32 %v11194_v46, %v1344_v44  ;;  %v1594_v44 = vrot.slane %v1579_v38, %v11226_v6 }
 0x1f3   : > { %1227 = vst.msk [vmem:[#allocation2] sm:$0xff] %vm1078_vm7, %v1219_v27  ;;  %v1422_v45 = vmul.f32 %v10547_v42, %v1419_v40  ;;  %v1628_v27 = vmul.f32 %v1606_v19, %v1242_v18  ;;  %v1640_v30 = vsel %vm1360_vm6, %v1626_v26, 0.0  ;;  %v1630_v33 = vmul.f32 %v1614_v28, %v1244_v29  ;;  %v11248_v40 = vld [vmem:[%s10965_s12 + $0x8] sm:$0xff]  ;;  %v11287_v18 = vpop.f32.mrf.mxu0 }
 0x1f4   : > { %v1624_v42 = vmul.f32 %v1590_v35, %v11248_v40  ;;  %14609 = vst [vmem:[#allocation35_spill] sm:$0xff] %v11287_v18 }
 0x1f5   : > { %v1429_v47 = vmul.f32 %v11187_v43, %v1422_v45  ;;  %v1646_v31 = vsel %vm1360_vm6, %v1628_v27, 0.0  ;;  %v1652_v41 = vsel %vm1360_vm6, %v1630_v33, 0.0  ;;  %v1564_v45 = vrot.slane %v1548_v7, %v11221_v4  ;;  %v1050_v25 = vpop.f32.mrf.mxu0 }
 0x1f7   : > { %v1436_v51 = vadd.f32 %v11200_v48, %v1429_v47  ;;  %v11255_v47 = vld [vmem:[%s10965_s12 + $0x10] sm:$0xff] }
 0x1fa   : > { %v1255_v50 = vld [vmem:[#allocation2] sm:$0xff] }
 0x1fb   : > { %v1437_v53 = vadd.f32 %v1351_v49, %v1255_v50  ;;  %v1634_v49 = vsel %vm1360_vm6, %v1624_v42, 0.0  ;;  %v1625_v50 = vmul.f32 %v1594_v44, %v11255_v47 }
 0x1fd   : > { %v1438_v54 = vadd.f32 %v1437_v53, %v1436_v51  ;;  %v1602_v51 = vrot.slane %v1564_v45, %v11226_v6  ;;  %v1580_v53 = vcombine.high %v1564_v45, %v1564_v45 }
 0x1ff   : > { %1453 = vrot.lane.b32.xlu1 %v1438_v54, %s14402_s16  ;;  %v10000_v55 = vmul.f32 -1.442695, %v1438_v54  ;;  %s14404_s16 = smov 96   ;;  %v11261_v54 = vld [vmem:[%s10965_s12 + $0x20] sm:$0xff] }
 0x201   : > { %10548 = vpow2.f32 %v10000_v55  ;;  %v1637_v55 = vsel %vm1360_vm6, %v1625_v50, 0.0 }
 0x20c   : > { %v11293_v28 = vpop.f32.mrf.mxu0 }
 0x20d   : > { %14610 = vst [vmem:[#allocation36_spill] sm:$0xff] %v11293_v28 }
 0x20e   : > { %v10549_v56 = vpop.eup %10548  ;;  %v11297_v33 = vpop.f32.mrf.mxu0 }
 0x20f   : > { %v1442_v57 = vadd.f32 1.0, %v10549_v56  ;;  %v1627_v56 = vmul.f32 %v1602_v51, %v11261_v54  ;;  %14612 = vst [vmem:[#allocation37_spill] sm:$0xff] %v11297_v33 }
 0x210   : > { %v11301_v42 = vpop.f32.mrf.mxu0 }
 0x211   : > { %10550 = vrcp.f32 %v1442_v57  ;;  %v1610_v57 = vrot.slane %v1580_v53, %v11226_v6  ;;  %v1643_v59 = vsel %vm1360_vm6, %v1627_v56, 0.0  ;;  %14613 = vst [vmem:[#allocation38_spill] sm:$0xff] %v11301_v42 }
 0x213   : > { %v1629_v60 = vmul.f32 %v1610_v57, %v1243_v58 }
 0x215   : > { %v1649_v62 = vsel %vm1360_vm6, %v1629_v60, 0.0 }
 0x21e   : > { %v11211_v0 = vpop.eup %10550 }
 0x21f   : > { %1448 = vrot.lane.b32.xlu0 %v11211_v0, %s14404_s16  ;;  %v1445_v63 = vsub.f32 1.0, %v11211_v0  ;;  %s14611_s16 = sld [smem:[#allocation28_spill]] }
 0x221   : > { %v1446_v8 = vmul.f32 %v1445_v63, %v1236_v2 }
 0x223   : > { %1632 = vadd.xlane.f32.xlu1 %v1631_v23 }
 0x225   : > { %v11310_v56 = vld [vmem:[%s14611_s16] ss:$0 sm:$0xff] }
 0x227   : > { %1641 = vadd.xlane.f32.xlu1 %v1640_v30 }
 0x22b   : > { %1647 = vadd.xlane.f32.xlu1 %v1646_v31 }
 0x22f   : > { %1653 = vadd.xlane.f32.xlu1 %v1652_v41 }
 0x23e   : > { %1635 = vadd.xlane.f32.xlu0 %v1634_v49 }
 0x242   : > { %1638 = vadd.xlane.f32.xlu0 %v1637_v55  ;;  %v11307_v55 = vpop.f32.mrf.mxu0 }
 0x243   : > { %14614 = vst [vmem:[#allocation39_spill] sm:$0xff] %v11307_v55 }
 0x246   : > { %1644 = vadd.xlane.f32.xlu0 %v1643_v59 }
 0x24a   : > { %1650 = vadd.xlane.f32.xlu0 %v1649_v62 }
 0x271   : > { %v1454_v7 = vpop.permute.xlu1 %1453 }
 0x291   : > { %v1449_v3 = vpop.permute.xlu0 %1448 }
 0x292   : > { %v1451_v5 = vmul.f32 %v11211_v0, %v1449_v3  ;;  %v1664_v0 = vand.u32 127, %v1538_v61 }
 0x294   : > { %v1456_v9 = vmul.f32 %v1454_v7, %v1451_v5  ;;  %v1665_v14 = vadd.s32 4294967293, %v1664_v0  ;;  %v1051_v0 = vadd.f32 %v11152_v37, %v1050_v25  ;;  %v2529_v25 = vld [vmem:[%s10895_s30] sm:$0xf] }
 0x296   : > { %v11272_v10 = vadd.f32 %v1456_v9, %v1446_v8  ;;  %v11285_v16 = vsub.s32 %v1665_v14, %v11214_v1 }
 0x298   : > { %v1458_v12 = vmax.f32 %v11272_v10, 0.0 }
 0x29a   : > { %v1459_v13 = vpack.c.bf16 %v1458_v12, %v1458_v12  ;;  %2450 = vst.msk [vmem:[%s11057_s11] sm:$0xff] %vm1279_vm5, %v1458_v12 }
 0x29c   : > { %10187 = vmatmul.mubr.msk.bf16.vlgmr.msra.gmra.mxu0 %vm1279_vm5, %v1459_v13  ;;  %10195 = vmatmul.mubr.msk.bf16.vlgmr.msra.gmra.mxu1 %vm1279_vm5, %v1459_v13 }
 0x29d   : > { %10200 = vmatprep.mubr.msk.bf16.mxu0 %vm10816_vm4, %v14418_v21  ;;  %10208 = vmatprep.mubr.msk.bf16.mxu1 %vm10816_vm4, %v14418_v21 }
 0x2ac   : > { %v1633_v17 = vpop.xlane.xlu1 %1632 }
 0x2ad   : > { %v1669_v22 = vrot.slane %v1633_v17, %v11285_v16  ;;  %v1104_v17 = vmul.f32 %v1051_v0, %v1051_v0 }
 0x2b0   : > { %v1642_v27 = vpop.xlane.xlu1 %1641 }
 0x2b1   : > { %v1681_v29 = vrot.slane %v1642_v27, %v11285_v16  ;;  %v2534_v27 = vsel %vm1364_vm3, %v2529_v25, 0  ;;  %v11372_v25 = vsub.s32 1, %v11214_v1 }
 0x2b2   : > { %10199 = vmatpush3.bf16.msra.mxu0 %v2534_v27  ;;  %v14416_v27 = vmov 1  }
 0x2b3   : > { %10212 = vmatprep.subr.bf16.mxu0 %v14418_v21  ;;  %14617 = vst [vmem:[#allocation42_spill] sm:$0xff] %v11372_v25 }
 0x2b4   : > { %v1648_v38 = vpop.xlane.xlu1 %1647 }
 0x2b5   : > { %v1689_v44 = vrot.slane %v1648_v38, %v11285_v16 }
 0x2b8   : > { %v1654_v51 = vpop.xlane.xlu1 %1653 }
 0x2b9   : > { %v1697_v57 = vrot.slane %v1654_v51, %v11285_v16 }
 0x2c7   : > { %v1636_v15 = vpop.xlane.xlu0 %1635 }
 0x2c8   : > { %v1673_v19 = vrot.slane %v1636_v15, %v11285_v16  ;;  %v1082_v15 = vsel %vm1078_vm7, %v1051_v0, 0.0 }
 0x2ca   : > { %v1699_v61 = vsel %vm1698_vm8, %v1673_v19, %v1669_v22  ;;  %v1114_v22 = vsel %vm1078_vm7, %v1104_v17, 0.0 }
 0x2cb   : > { %v1639_v23 = vpop.xlane.xlu0 %1638 }
 0x2cc   : > { %v1677_v26 = vrot.slane %v1639_v23, %v11285_v16 }
 0x2ce   : > { %v1701_v31 = vsel %vm1700_vm9, %v1677_v26, %v1699_v61  ;;  %v11337_v61 = vstv %s9981_s21  ;;  %s14618_s21 = smov 96  }
 0x2cf   : > { %v1645_v30 = vpop.xlane.xlu0 %1644  ;;  %v1703_v41 = vsel %vm1702_vm10, %v1681_v29, %v1701_v31  ;;  %14615 = vst [vmem:[#allocation40_spill] sm:$0xff] %v11337_v61 }
 0x2d0   : > { %v1685_v35 = vrot.slane %v1645_v30, %v11285_v16 }
 0x2d2   : > { %v1705_v49 = vsel %vm1704_vm11, %v1685_v35, %v1703_v41 }
 0x2d3   : > { %v1651_v45 = vpop.xlane.xlu0 %1650  ;;  %v1707_v53 = vsel %vm1706_vm12, %v1689_v44, %v1705_v49 }
 0x2d4   : > { %v1693_v50 = vrot.slane %v1651_v45, %v11285_v16 }
 0x2d6   : > { %v1709_v60 = vsel %vm1708_vm13, %v1693_v50, %v1707_v53 }
 0x2d7   : > { %v1711_v8 = vsel %vm1710_vm14, %v1697_v57, %v1709_v60 }
 0x35c   : > { %v1519_v58 = vpop.f32.mrf.mxu0  ;;  %v2505_v59 = vpop.f32.mrf.mxu1 }
 0x35d   : > { %v1520_v62 = vadd.f32 %v11310_v56, %v1519_v58  ;;  %v11326_v19 = vadd.f32 %v11155_v39, %v2505_v59  ;;  %v11344_v59 = vstv %s1720_s29  ;;  %s14619_s29 = smov 64  }
 0x35e   : > { %v10188_v63 = vpop.f32.mrf.mxu0  ;;  %v10196_v2 = vpop.f32.mrf.mxu1  ;;  %14616 = vst [vmem:[#allocation41_spill] sm:$0xff] %v11344_v59  ;;  %v1722_v60 = vmul.f32 %v11344_v59, %v11138_v34 }
 0x35f   : > { %v11315_v3 = vmax.f32 %v1520_v62, 0.0  ;;  %v2511_v23 = vsel %vm1078_vm7, %v11326_v19, 0.0  ;;  %v2514_v26 = vmul.f32 %v11326_v19, %v11326_v19 }
 0x360   : > { %v1522_v5 = vpop.f32.mrf.mxu0  ;;  %v2508_v7 = vpop.f32.mrf.mxu1 }
 0x361   : > { %2452 = vst.msk [vmem:[%s11055_s23] sm:$0xff] %vm2451_vm15, %v11315_v3  ;;  %v1713_v9 = vadd.f32 %v1711_v8, %v11315_v3  ;;  %v2515_v37 = vsel %vm1078_vm7, %v2514_v26, 0.0 }
 0x362   : > { %v10189_v12 = vpop.f32.mrf.mxu0  ;;  %v10197_v13 = vpop.f32.mrf.mxu1 }
 0x363   : > { %v1715_v14 = vsel %vm1714_vm0, %v1713_v9, -inf }
 0x364   : > { %1716 = vmax.xlane.f32.xlu0 %v1715_v14 }
 0x368   : > { %1083 = vadd.xlane.f32.xlu0 %v1082_v15 }
 0x36c   : > { %1115 = vadd.xlane.f32.xlu0 %v1114_v22 }
 0x370   : > { %2512 = vadd.xlane.f32.xlu0 %v2511_v23 }
 0x374   : > { %2516 = vadd.xlane.f32.xlu0 %v2515_v37 }
 0x3ed   : > { %v1717_v39 = vpop.xlane.xlu0 %1716 }
 0x3ee   : > { %vm1718_vm1 = vcmp.ge.f32.partialorder %v1713_v9, %v1717_v39 }
 0x3ef   : > { %v1719_v29 = vsel %vm1718_vm1, %v1713_v9, 0.0 }
 0x3f0   : > { %v1724_v30 = vmul.f32 %v11337_v61, %v1719_v29 }
 0x3f1   : > { %v1084_v31 = vpop.xlane.xlu0 %1083 }
 0x3f2   : > { %v1136_v35 = vmul.f32 0.010416667, %v1084_v31  ;;  %1726 = vrot.lane.b32.xlu1 %v1724_v30, %s14408_s25  ;;  %s9980_s25 = sld [smem:[#allocation3 + $0x1]] }
 0x3f4   : > { %v1152_v41 = vmul.f32 %v1136_v35, %v1136_v35  ;;  %v1168_v50 = vsub.f32 %v1051_v0, %v1136_v35 }
 0x3f5   : > { %v1116_v38 = vpop.xlane.xlu0 %1115 }
 0x3f6   : > { %v1144_v44 = vmul.f32 0.010416667, %v1116_v38 }
 0x3f8   : > { %v1160_v45 = vsub.f32 %v1144_v44, %v1152_v41 }
 0x3f9   : > { %v2513_v29 = vpop.xlane.xlu0 %2512 }
 0x3fa   : > { %v1176_v49 = vadd.f32 1e-05, %v1160_v45  ;;  %v2518_v31 = vmul.f32 0.010416667, %v2513_v29 }
 0x3fc   : > { %10552 = vrsqrt.f32 %v1176_v49  ;;  %v2520_v38 = vmul.f32 %v2518_v31, %v2518_v31 }
 0x3fd   : > { %v2517_v30 = vpop.xlane.xlu0 %2516 }
 0x3fe   : > { %v2519_v35 = vmul.f32 0.010416667, %v2517_v30 }
 0x400   : > { %v2521_v41 = vsub.f32 %v2519_v35, %v2520_v38 }
 0x402   : > { %v2523_v44 = vadd.f32 1e-05, %v2521_v41 }
 0x409   : > { %v10553_v51 = vpop.eup %10552 }
 0x40a   : > { %v1192_v53 = vmul.f32 %v10553_v51, %v1168_v50 }
 0x40c   : > { %v1206_v57 = vmul.f32 %v11170_v20, %v1192_v53  ;;  %v14412_v20 = vmov 0  }
 0x40d   : > { %10435 = vset.pattern.permute.xlu1 %v14412_v20  ;;  %10434 = vset.pattern.permute.xlu0 %v14412_v20 }
 0x40e   : > { %v1220_v58 = vadd.f32 %v11173_v24, %v1206_v57  ;;  %v10005_v24 = vmul.f32 -1.442695, %v11315_v3 }
 0x410   : > { %1228 = vst.msk [vmem:[#allocation2 + $0x8] sm:$0xff] %vm1078_vm7, %v1220_v58  ;;  %10554 = vpow2.f32 %v10005_v24 }
 0x41d   : > { %v10555_v5 = vpop.eup %10554 }
 0x41e   : > { %v1529_v7 = vadd.f32 1.0, %v10555_v5 }
 0x420   : > { %10556 = vrcp.f32 %v1529_v7 }
 0x421   : > { %10558 = vrsqrt.f32 %v2523_v44 }
 0x42d   : > { %v11361_v22 = vpop.eup %10556 }
 0x42e   : > { %v2067_v23 = vrot.slane %v11361_v22, %v11221_v4  ;;  %v1730_v29 = vsub.f32 1.0, %v11361_v22 }
 0x430   : > { %v2075_v26 = vcombine.high %v2067_v23, %v2067_v23 }
 0x432   : > { %v11366_v37 = vrot.slane %v2075_v26, %v11221_v4 }
 0x434   : > { %v2118_v35 = vsub.f32 1.0, %v11366_v37 }
 0x436   : > { %v2140_v38 = vrot.slane %v2118_v35, %v11226_v6 }
 0x464   : > { %v1727_v62 = vpop.permute.xlu1 %1726 }
 0x465   : > { %v11348_v63 = vadd.f32 %v1727_v62, %v1722_v60  ;;  %v10559_v60 = vpop.eup %10558  ;;  %v2522_v62 = vsub.f32 %v11326_v19, %v2518_v31 }
 0x467   : > { %v2528_v2 = vpack.c.bf16 %v11348_v63, %v11348_v63  ;;  %v1754_v39 = vrot.slane %v11348_v63, %v11372_v25 }
 0x469   : > { %10201 = vmatmul.mubr.msk.bf16.vlgmr.msra.gmra.mxu0 %vm1360_vm6, %v2528_v2  ;;  %v2525_v2 = vmul.f32 %v10559_v60, %v2522_v62 }
 0x46a   : > { %10216 = vmatprep.mubr.msk.bf16.mxu0 %vm10816_vm4, %v14418_v21 }
 0x46b   : > { %v2526_v24 = vmul.f32 %v11181_v32, %v2525_v2  ;;  %v10516_v32 = vld [vmem:[%s14604_s8 + $0x8] sm:$0xff]  }
 0x46c   : > { %10205 = vmatpush3.bf16.msra.mxu1 %v10516_v32 }
 0x46d   : > { %10206 = vmatprep.subr.bf16.mxu1 %v14418_v21 }
 0x529   : > { %v2570_v8 = vpop.f32.mrf.mxu0 }
 0x52a   : > { %v2571_v9 = vadd.f32 %v11164_v52, %v2570_v8  ;;  %v2212_v52 = vrot.slane %v11366_v37, %v11226_v6  ;;  %v2527_v8 = vadd.f32 %v11194_v46, %v2526_v24  ;;  %v10518_v46 = vld [vmem:[%s14604_s8] sm:$0xff]  }
 0x52b   : > { %v10202_v12 = vpop.f32.mrf.mxu0  ;;  %10207 = vmatpush3.bf16.msra.mxu1 %v10518_v46  ;;  %v11439_v46 = vsub.s32 3, %v11214_v1 }
 0x52c   : > { %v2576_v13 = vsel %vm1078_vm7, %v2571_v9, 0.0  ;;  %v2579_v0 = vmul.f32 %v2571_v9, %v2571_v9  ;;  %10220 = vmatprep.subr.bf16.mxu1 %v14418_v21 }
 0x52d   : > { %2577 = vadd.xlane.f32.xlu1 %v2576_v13  ;;  %v2573_v14 = vpop.f32.mrf.mxu0  ;;  %v2454_v13 = vld [vmem:[#allocation2 + $0x8] sm:$0xff]  ;;  %14621 = vst [vmem:[#allocation44_spill] sm:$0xff] %v11439_v46 }
 0x52e   : > { %v2580_v15 = vsel %vm1078_vm7, %v2579_v0, 0.0  ;;  %v2593_v14 = vadd.f32 %v2527_v8, %v2454_v13 }
 0x52f   : > { %2581 = vadd.xlane.f32.xlu0 %v2580_v15  ;;  %v10203_v17 = vpop.f32.mrf.mxu0 }
 0x53e   : > { %1739 = vperm.xlu1 %10435, %v11361_v22  }
 0x542   : > { %10437 = vset.pattern.permute.xlu1 %v14416_v27 }
 0x543   : > { %2242 = vperm.xlu1 %10437, %v2212_v52  }
 0x547   : > { %1756 = vbcast.lane.b32.xlu1 %v1754_v39, 256  ;;  %v2083_v39 = vrot.slane %v2067_v23, %v11221_v4  ;;  %v1747_v23 = vrot.slane %v11348_v63, %v11226_v6 }
 0x549   : > { %v2117_v30 = vsub.f32 1.0, %v2083_v39  ;;  %v2208_v41 = vrot.slane %v2083_v39, %v11226_v6 }
 0x54b   : > { %v2136_v31 = vrot.slane %v2117_v30, %v11226_v6 }
 0x5b6   : > { %v2578_v45 = vpop.xlane.xlu1 %2577 }
 0x5b7   : > { %v2583_v49 = vmul.f32 0.010416667, %v2578_v45 }
 0x5b8   : > { %v2582_v50 = vpop.xlane.xlu0 %2581 }
 0x5b9   : > { %v2585_v51 = vmul.f32 %v2583_v49, %v2583_v49  ;;  %v2584_v53 = vmul.f32 0.010416667, %v2582_v50  ;;  %v2587_v5 = vsub.f32 %v2571_v9, %v2583_v49  ;;  %v10517_v9 = vld [vmem:[%s10885_s19 + $0x8] sm:$0xff]  }
 0x5ba   : > { %10213 = vmatpush3.bf16.msra.mxu0 %v10517_v9  ;;  %v1740_v62 = vpop.permute.xlu1 %1739 }
 0x5bb   : > { %v2586_v57 = vsub.f32 %v2584_v53, %v2585_v51  ;;  %10214 = vmatprep.subr.bf16.mxu0 %v14418_v21  ;;  %v1742_v24 = vmul.f32 %v1740_v62, %v11138_v34 }
 0x5bd   : > { %v2588_v58 = vadd.f32 1e-05, %v2586_v57 }
 0x5bf   : > { %10560 = vrsqrt.f32 %v2588_v58 }
 0x5cc   : > { %v10561_v7 = vpop.eup %10560 }
 0x5cd   : > { %v2590_v12 = vmul.f32 %v10561_v7, %v2587_v5  ;;  %v2105_v7 = vcombine.high %v2083_v39, %v2083_v39  ;;  %v1768_v39 = vrot.slane %v11348_v63, %v11439_v46 }
 0x5cf   : > { %v2591_v0 = vmul.f32 %v11187_v43, %v2590_v12  ;;  %v10519_v43 = vld [vmem:[%s10885_s19] sm:$0xff]   ;;  %v2216_v34 = vrot.slane %v2105_v7, %v11226_v6 }
 0x5d0   : > { %10215 = vmatpush3.bf16.msra.mxu0 %v10519_v43 }
 0x5d1   : > { %v2592_v15 = vadd.f32 %v11200_v48, %v2591_v0  ;;  %10226 = vmatprep.subr.bf16.mxu0 %v14418_v21  ;;  %v2119_v0 = vsub.f32 1.0, %v2105_v7  ;;  %v14414_v7 = vmov 2  }
 0x5d3   : > { %v2594_v17 = vadd.f32 %v2593_v14, %v2592_v15  ;;  %v2060_v14 = vcombine.high %v11361_v22, %v11361_v22  ;;  %v2144_v15 = vrot.slane %v2119_v0, %v11226_v6 }
 0x5d5   : > { %v10010_v19 = vmul.f32 -1.442695, %v2594_v17  ;;  %v2074_v22 = vrot.slane %v2060_v14, %v11221_v4 }
 0x5d7   : > { %10562 = vpow2.f32 %v10010_v19  ;;  %v2107_v19 = vcombine.high %v11366_v37, %v11366_v37  ;;  %v2090_v37 = vrot.slane %v2074_v22, %v11221_v4  ;;  %v2076_v30 = vcombine.high %v2074_v22, %v2074_v22 }
 0x5d9   : > { %v2220_v32 = vrot.slane %v2107_v19, %v11226_v6  ;;  %v2224_v35 = vrot.slane %v2090_v37, %v11226_v6 }
 0x5e4   : > { %v10563_v26 = vpop.eup %10562 }
 0x5e5   : > { %v2598_v52 = vadd.f32 1.0, %v10563_v26 }
 0x5e7   : > { %10564 = vrcp.f32 %v2598_v52  ;;  %v2120_v52 = vsub.f32 1.0, %v2107_v19 }
 0x5e8   : > { %10566 = vtanh.f32 %v11315_v3 }
 0x5e9   : > { %v2148_v9 = vrot.slane %v2120_v52, %v11226_v6 }
 0x5f4   : > { %v10565_v48 = vpop.eup %10564 }
 0x5f5   : > { %2604 = vrot.lane.b32.xlu0 %v10565_v48, %s14618_s21  ;;  %v2601_v45 = vsub.f32 1.0, %v10565_v48  ;;  %v10567_v43 = vpop.eup %10566 }
 0x5f7   : > { %v2602_v51 = vmul.f32 %v2601_v45, %v11272_v10  ;;  %v1245_v10 = vld [vmem:[%s10970_s6] sm:$0xff] }
 0x5f9   : > { %2609 = vrot.lane.b32.xlu0 %v2594_v17, %s14619_s29  ;;  %v11427_v17 = vsub.s32 2, %v11214_v1 }
 0x5fb   : > { %14620 = vst [vmem:[#allocation43_spill] sm:$0xff] %v11427_v17  ;;  %v1761_v26 = vrot.slane %v11348_v63, %v11427_v17 }
 0x5fd   : > { %1733 = vperm.xlu0 %10434, %v1730_v29   ;;  %v2121_v29 = vsub.f32 1.0, %v2090_v37 }
 0x601   : > { %10436 = vset.pattern.permute.xlu0 %v14416_v27 }
 0x602   : > { %2166 = vperm.xlu0 %10436, %v2136_v31   ;;  %v2303_v31 = vrot.slane %v10567_v43, %v11221_v4 }
 0x606   : > { %2170 = vperm.xlu0 %10436, %v2140_v38   ;;  %v2152_v38 = vrot.slane %v2121_v29, %v11226_v6  ;;  %v11489_v29 = vsub.s32 7, %v11214_v1 }
 0x608   : > { %14626 = vst [vmem:[#allocation49_spill] sm:$0xff] %v11489_v29 }
 0x60a   : > { %2238 = vperm.xlu0 %10436, %v2208_v41   ;;  %v11450_v41 = vsub.s32 4, %v11214_v1 }
 0x60c   : > { %14622 = vst [vmem:[#allocation45_spill] sm:$0xff] %v11450_v41 }
 0x60e   : > { %1749 = vbcast.lane.b32.xlu0 %v1747_v23, 256  ;;  %v2104_v23 = vrot.slane %v2076_v30, %v11221_v4 }
 0x667   : > { %v2605_v44 = vpop.permute.xlu0 %2604 }
 0x668   : > { %v2607_v49 = vmul.f32 %v10565_v48, %v2605_v44  ;;  %v2311_v44 = vcombine.high %v2303_v31, %v2303_v31 }
 0x66b   : > { %v2610_v50 = vpop.permute.xlu0 %2609 }
 0x66c   : > { %v2612_v53 = vmul.f32 %v2610_v50, %v2607_v49  ;;  %v1775_v49 = vrot.slane %v11348_v63, %v11450_v41  ;;  %v2122_v50 = vsub.f32 1.0, %v2104_v23 }
 0x66e   : > { %v11402_v57 = vadd.f32 %v2612_v53, %v2602_v51  ;;  %v2333_v51 = vrot.slane %v2311_v44, %v11221_v4  ;;  %v2228_v53 = vrot.slane %v2104_v23, %v11226_v6  ;;  %v1796_v44 = vrot.slane %v11348_v63, %v11489_v29 }
 0x670   : > { %v2614_v58 = vmax.f32 %v11402_v57, 0.0 }
 0x672   : > { %v2615_v60 = vpack.c.bf16 %v2614_v58, %v2614_v58  ;;  %10015 = vst.msk [vmem:[%s11057_s11 + $0x8] sm:$0xff] %vm1279_vm5, %v2614_v58  ;;  %v2156_v58 = vrot.slane %v2122_v50, %v11226_v6 }
 0x674   : > { %10209 = vmatmul.mubr.msk.bf16.vlgmr.msra.gmra.mxu1 %vm1279_vm5, %v2615_v60  ;;  %10217 = vmatmul.mubr.msk.bf16.vlgmr.msra.gmra.mxu0 %vm1279_vm5, %v2615_v60  ;;  %v11460_v60 = vstv %s9980_s25  ;;  %s961_s25 = sld [smem:[#allocation3]] }
 0x675   : > { %10222 = vmatprep.mubr.msk.bf16.mxu1 %vm10816_vm4, %v14418_v21  ;;  %10230 = vmatprep.mubr.msk.bf16.mxu0 %vm10816_vm4, %v14418_v21  ;;  %14623 = vst [vmem:[#allocation46_spill] sm:$0xff] %v11460_v60  ;;  %v2355_v62 = vmul.f32 %v11460_v60, %v2333_v51 }
 0x678   : > { %v1734_v2 = vpop.permute.xlu0 %1733 }
 0x679   : > { %v1736_v5 = vmul.f32 %v1734_v2, %v1245_v10  ;;  %v11464_v10 = vsub.s32 5, %v11214_v1 }
 0x67a   : > { %s2285_s18 = ssub.f32 1.0, %s961_s25  ;;  %s9800_s25 = sshll.u32 %s11057_s11, 4  ;;  %s14188_s25 = int_to_ptr.vmem [resolvable:$true] %s9800_s25 }
 0x67b   : > { %v11415_v8 = vadd.f32 %v1742_v24, %v1736_v5  ;;  %14624 = vst [vmem:[#allocation47_spill] sm:$0xff] %v11464_v10  ;;  %v2106_v24 = vcombine.high %v2090_v37, %v2090_v37  ;;  %v2377_v5 = vrot.slane %v2355_v62, %v11226_v6  ;;  %v1782_v0 = vrot.slane %v11348_v63, %v11464_v10 }
 0x67c   : > { %v11553_v21 = vstv %s2285_s18  ;;  %s14630_s18 = smov 125  }
 0x67d   : > { %v1908_v12 = vrot.slane %v11415_v8, %v11372_v25  ;;  %v1901_v13 = vrot.slane %v11415_v8, %v11226_v6  ;;  %v1915_v3 = vrot.slane %v11415_v8, %v11427_v17  ;;  %v1922_v48 = vrot.slane %v11415_v8, %v11439_v46 }
 0x67e   : > { %v1929_v45 = vrot.slane %v11415_v8, %v11450_v41  ;;  %v1936_v2 = vrot.slane %v11415_v8, %v11464_v10  ;;  %v2123_v14 = vsub.f32 1.0, %v2106_v24 }
 0x67f   : > { %1910 = vbcast.lane.b32.xlu1 %v1908_v12, 256  ;;  %1903 = vbcast.lane.b32.xlu0 %v1901_v13, 256  ;;  %v2319_v12 = vrot.slane %v2303_v31, %v11221_v4  ;;  %v2232_v13 = vrot.slane %v2106_v24, %v11226_v6 }
 0x680   : > { %v2160_v52 = vrot.slane %v2123_v14, %v11226_v6  ;;  %v11515_v14 = vpop.permute.xlu0 %2166 }
 0x681   : > { %v2341_v19 = vcombine.high %v2319_v12, %v2319_v12  ;;  %v2354_v37 = vmul.f32 %v11460_v60, %v2319_v12 }
 0x683   : > { %2246 = vperm.xlu1 %10437, %v2216_v34   ;;  %2174 = vperm.xlu0 %10436, %v2144_v15   ;;  %v2296_v34 = vcombine.high %v10567_v43, %v10567_v43  ;;  %v11475_v15 = vsub.s32 6, %v11214_v1 }
 0x685   : > { %14625 = vst [vmem:[#allocation48_spill] sm:$0xff] %v11475_v15  ;;  %v2310_v22 = vrot.slane %v2296_v34, %v11221_v4  ;;  %v2171_v34 = vpop.permute.xlu0 %2170 }
 0x687   : > { %1917 = vbcast.lane.b32.xlu1 %v1915_v3, 256  ;;  %1763 = vbcast.lane.b32.xlu0 %v1761_v26, 256  ;;  %v1943_v3 = vrot.slane %v11415_v8, %v11475_v15  ;;  %v2108_v26 = vcombine.high %v2104_v23, %v2104_v23  ;;  %v2312_v43 = vcombine.high %v2310_v22, %v2310_v22 }
 0x688   : > { %v2326_v30 = vrot.slane %v2310_v22, %v11221_v4  ;;  %v2343_v23 = vcombine.high %v2333_v51, %v2333_v51 }
 0x689   : > { %v2340_v31 = vrot.slane %v2312_v43, %v11221_v4  ;;  %v1808_v43 = vrot.slane %v11415_v8, %v11221_v4 }
 0x68a   : > { %v2358_v1 = vmul.f32 %v11460_v60, %v2326_v30  ;;  %v2357_v50 = vmul.f32 %v11460_v60, %v2343_v23 }
 0x68b   : > { %2250 = vperm.xlu1 %10437, %v2220_v32   ;;  %2178 = vperm.xlu0 %10436, %v2148_v9   ;;  %v2356_v32 = vmul.f32 %v11460_v60, %v2341_v19  ;;  %v2236_v9 = vrot.slane %v2108_v26, %v11226_v6  ;;  %v2359_v24 = vmul.f32 %v11460_v60, %v2340_v31  ;;  %v2243_v19 = vpop.permute.xlu1 %2242 }
 0x68c   : > { %v2385_v51 = vrot.slane %v2357_v50, %v11226_v6 }
 0x68d   : > { %v2393_v12 = vrot.slane %v2359_v24, %v11226_v6  ;;  %v1824_v24 = vrot.slane %v1808_v43, %v11221_v4 }
 0x68f   : > { %1924 = vbcast.lane.b32.xlu1 %v1922_v48, 256  ;;  %1770 = vbcast.lane.b32.xlu0 %v1768_v39, 256  ;;  %v2381_v48 = vrot.slane %v2356_v32, %v11226_v6  ;;  %v2373_v39 = vrot.slane %v2354_v37, %v11226_v6  ;;  %v1853_v33 = vrot.slane %v1824_v24, %v11226_v6 }
 0x693   : > { %2254 = vperm.xlu1 %10437, %v2224_v35   ;;  %2182 = vperm.xlu0 %10436, %v2152_v38   ;;  %v1789_v35 = vrot.slane %v11348_v63, %v11475_v15  ;;  %v2124_v38 = vsub.f32 1.0, %v2108_v26  ;;  %v1757_v26 = vpop.permute.xlu1 %1756 }
 0x697   : > { %1931 = vbcast.lane.b32.xlu1 %v1929_v45, 256  ;;  %1777 = vbcast.lane.b32.xlu0 %v1775_v49, 256  ;;  %v2344_v45 = vcombine.high %v2340_v31, %v2340_v31  ;;  %v2164_v49 = vrot.slane %v2124_v38, %v11226_v6  ;;  %v1816_v31 = vcombine.high %v1808_v43, %v1808_v43 }
 0x698   : > { %v1801_v43 = vcombine.high %v11415_v8, %v11415_v8 }
 0x69b   : > { %2258 = vperm.xlu1 %10437, %v2228_v53   ;;  %2186 = vperm.xlu0 %10436, %v2156_v58   ;;  %v2389_v53 = vrot.slane %v2358_v1, %v11226_v6  ;;  %v2361_v58 = vmul.f32 %v11460_v60, %v2344_v45 }
 0x69d   : > { %v2401_v62 = vrot.slane %v2361_v58, %v11226_v6 }
 0x69f   : > { %10438 = vset.pattern.permute.xlu1 %v14414_v7  ;;  %1938 = vbcast.lane.b32.xlu0 %v1936_v2, 256  ;;  %v1950_v2 = vrot.slane %v11415_v8, %v11489_v29  ;;  %v2289_v29 = vmul.f32 %v11553_v21, %v11255_v47  ;;  %v2287_v47 = vmul.f32 %v11553_v21, %v11231_v11  ;;  %v1249_v11 = vld [vmem:[%s10975_s24 + $0x18] sm:$0xff] }
 0x6a0   : > { %2407 = vperm.xlu1 %10438, %v2377_v5   ;;  %v2342_v5 = vcombine.high %v2326_v30, %v2326_v30 }
 0x6a3   : > { %2262 = vperm.xlu0 %10436, %v2232_v13   ;;  %v2360_v13 = vmul.f32 %v11460_v60, %v2342_v5 }
 0x6a4   : > { %1784 = vbcast.lane.b32.xlu1 %v1782_v0, 256 }
 0x6a5   : > { %10439 = vset.pattern.permute.xlu1 %v14416_v27  ;;  %v2397_v0 = vrot.slane %v2360_v13, %v11226_v6 }
 0x6a7   : > { %1945 = vbcast.lane.b32.xlu0 %v1943_v3, 256  ;;  %v11517_v3 = vpop.permute.xlu0 %2238 }
 0x6a8   : > { %2190 = vperm.xlu1 %10439, %v2160_v52  }
 0x6ab   : > { %2266 = vperm.xlu0 %10436, %v2236_v9   ;;  %v1750_v52 = vpop.permute.xlu0 %1749 }
 0x6ac   : > { %10440 = vset.pattern.permute.xlu1 %v14414_v7 }
 0x6ad   : > { %2411 = vperm.xlu1 %10440, %v2381_v48   ;;  %v1962_v48 = vrot.slane %v11348_v63, %v11221_v4 }
 0x6af   : > { %10442 = vset.pattern.permute.xlu0 %v14414_v7  ;;  %v1978_v5 = vrot.slane %v1962_v48, %v11221_v4 }
 0x6b0   : > { %2403 = vperm.xlu0 %10442, %v2373_v39  }
 0x6b1   : > { %1791 = vbcast.lane.b32.xlu1 %v1789_v35, 256  ;;  %v1970_v35 = vcombine.high %v1962_v48, %v1962_v48 }
 0x6b2   : > { %10441 = vset.pattern.permute.xlu1 %v14416_v27 }
 0x6b3   : > { %v1992_v1 = vrot.slane %v1970_v35, %v11221_v4  ;;  %v2000_v35 = vcombine.high %v1978_v5, %v1978_v5 }
 0x6b4   : > { %1798 = vbcast.lane.b32.xlu0 %v1796_v44, 256  ;;  %v11532_v44 = vrot.slane %v1816_v31, %v11221_v4  ;;  %v1247_v31 = vld [vmem:[%s10975_s24 + $0x8] sm:$0xff] }
 0x6b5   : > { %2194 = vperm.xlu1 %10441, %v2164_v49   ;;  %v2198_v42 = vmul.f32 %v2171_v34, %v1247_v31  ;;  %v2015_v48 = vrot.slane %v2000_v35, %v11226_v6  ;;  %v11568_v31 = vrot.slane %v1978_v5, %v11226_v6  ;;  %v1815_v35 = vrot.slane %v1801_v43, %v11221_v4 }
 0x6b6   : > { %v1857_v50 = vrot.slane %v11532_v44, %v11226_v6  ;;  %v1890_v5 = vmul.f32 %v1853_v33, %v1750_v52 }
 0x6b8   : > { %2419 = vperm.xlu0 %10442, %v2389_v53   ;;  %v2011_v53 = vrot.slane %v1992_v1, %v11226_v6 }
 0x6b9   : > { %10443 = vset.pattern.permute.xlu1 %v14414_v7 }
 0x6ba   : > { %2415 = vperm.xlu1 %10443, %v2385_v51  }
 0x6bc   : > { %2431 = vperm.xlu0 %10442, %v2401_v62  }
 0x6be   : > { %1952 = vbcast.lane.b32.xlu1 %v1950_v2, 256  ;;  %v1891_v2 = vmul.f32 %v1857_v50, %v1757_v26  ;;  %v1955_v26 = vcombine.high %v11348_v63, %v11348_v63 }
 0x6c0   : > { %10444 = vset.pattern.permute.xlu0 %v14412_v20  ;;  %v1969_v55 = vrot.slane %v1955_v26, %v11221_v4  ;;  %v1831_v26 = vrot.slane %v1815_v35, %v11221_v4 }
 0x6c2   : > { %2423 = vperm.xlu1 %10443, %v2393_v12  }
 0x6c6   : > { %2427 = vperm.xlu1 %10443, %v2397_v0  }
 0x6ca   : > { %10445 = vset.pattern.permute.xlu1 %v14412_v20  ;;  %v1846_v20 = vcombine.high %v1824_v24, %v1824_v24  ;;  %v1248_v24 = vld [vmem:[%s10975_s24 + $0x10] sm:$0xff] }
 0x6cc   : > { %v1861_v50 = vrot.slane %v1846_v20, %v11226_v6 }
 0x6f1   : > { %v1911_v22 = vpop.permute.xlu1 %1910  ;;  %v1904_v32 = vpop.permute.xlu0 %1903 }
 0x6f2   : > { %v2045_v58 = vmul.f32 %v2011_v53, %v1911_v22 }
 0x6f4   : > { %v2053_v12 = vsub.f32 %v1891_v2, %v2045_v58 }
 0x6f6   : > { %v2270_v22 = vmul.f32 %v2243_v19, %v2053_v12  ;;  %v2288_v19 = vmul.f32 %v11553_v21, %v11248_v40 }
 0x6f8   : > { %v11563_v2 = vadd.f32 %v2270_v22, %v2198_v42  ;;  %v2044_v42 = vmul.f32 %v11568_v31, %v1904_v32  ;;  %v1848_v32 = vcombine.high %v11532_v44, %v11532_v44 }
 0x6fa   : > { %14627 = vst [vmem:[#allocation50_spill] sm:$0xff] %v11563_v2  ;;  %v2052_v18 = vsub.f32 %v1890_v5, %v2044_v42  ;;  %v1817_v42 = vcombine.high %v1815_v35, %v1815_v35  ;;  %v1865_v5 = vrot.slane %v1848_v32, %v11226_v6 }
 0x6fe   : > { %v11519_v9 = vpop.permute.xlu1 %2246  ;;  %v11521_v37 = vpop.permute.xlu0 %2174 }
 0x702   : > { %v1918_v39 = vpop.permute.xlu1 %1917  ;;  %v1764_v30 = vpop.permute.xlu0 %1763 }
 0x703   : > { %v2046_v12 = vmul.f32 %v2015_v48, %v1918_v39  ;;  %v1892_v28 = vmul.f32 %v1861_v50, %v1764_v30  ;;  %v11580_v50 = vrot.slane %v1969_v55, %v11221_v4 }
 0x705   : > { %v2054_v39 = vsub.f32 %v1892_v28, %v2046_v12  ;;  %v11595_v52 = vrot.slane %v11580_v50, %v11226_v6 }
 0x706   : > { %v11527_v38 = vpop.permute.xlu1 %2250  ;;  %v11529_v23 = vpop.permute.xlu0 %2178 }
 0x707   : > { %v2271_v33 = vmul.f32 %v11519_v9, %v2054_v39  ;;  %v2269_v9 = vmul.f32 %v11517_v3, %v2052_v18  ;;  %v1971_v39 = vcombine.high %v1969_v55, %v1969_v55  ;;  %v1845_v18 = vrot.slane %v1817_v42, %v11221_v4 }
 0x709   : > { %v1999_v3 = vrot.slane %v1971_v39, %v11221_v4  ;;  %v1873_v42 = vrot.slane %v1845_v18, %v11226_v6 }
 0x70a   : > { %v11535_v45 = vpop.permute.xlu1 %1924  ;;  %v11537_v49 = vpop.permute.xlu0 %1770 }
 0x70e   : > { %v11542_v51 = vpop.permute.xlu1 %2254  ;;  %v11544_v62 = vpop.permute.xlu0 %2182 }
 0x712   : > { %v1932_v13 = vpop.permute.xlu1 %1931  ;;  %v1778_v0 = vpop.permute.xlu0 %1777 }
 0x716   : > { %v11549_v7 = vpop.permute.xlu1 %2258  ;;  %v11551_v27 = vpop.permute.xlu0 %2186 }
 0x71a   : > { %v11561_v58 = vpop.permute.xlu0 %1938 }
 0x71b   : > { %v2408_v34 = vpop.permute.xlu1 %2407 }
 0x71c   : > { %v2435_v20 = vmul.f32 %v2408_v34, %v11563_v2  ;;  %v2002_v34 = vcombine.high %v1992_v1, %v1992_v1  ;;  %v1869_v1 = vrot.slane %v1831_v26, %v11226_v6 }
 0x71e   : > { %v11575_v22 = vadd.f32 %v2435_v20, %v2288_v19  ;;  %v11577_v40 = vpop.permute.xlu0 %2262  ;;  %v2199_v20 = vmul.f32 %v11521_v37, %v1248_v24  ;;  %v11601_v44 = vrot.slane %v2002_v34, %v11226_v6  ;;  %v1893_v34 = vmul.f32 %v1865_v5, %v11537_v49 }
 0x71f   : > { %v1785_v30 = vpop.permute.xlu1 %1784 }
 0x720   : > { %14628 = vst [vmem:[#allocation51_spill] sm:$0xff] %v11575_v22  ;;  %v2684_v43 = vmul.f32 %v11575_v22, %v2011_v53  ;;  %v1246_v53 = vld [vmem:[%s10975_s24] sm:$0xff]  ;;  %v11608_v2 = vadd.f32 %v2271_v33, %v2199_v20  ;;  %v2047_v35 = vmul.f32 %v11601_v44, %v11535_v45 }
 0x721   : > { %v2197_v37 = vmul.f32 %v11515_v14, %v1246_v53  ;;  %v1847_v53 = vcombine.high %v1831_v26, %v1831_v26 }
 0x722   : > { %v11587_v19 = vpop.permute.xlu0 %1945  ;;  %v2694_v28 = vsel %vm1360_vm6, %v2684_v43, 0.0  ;;  %v2048_v43 = vmul.f32 %v11595_v52, %v1932_v13  ;;  %v2055_v45 = vsub.f32 %v1893_v34, %v2047_v35 }
 0x723   : > { %v11590_v12 = vpop.permute.xlu1 %2190  ;;  %2695 = vadd.xlane.f32.xlu0 %v2694_v28  ;;  %v1894_v28 = vmul.f32 %v1869_v1, %v1778_v0  ;;  %v11618_v55 = vadd.f32 %v2269_v9, %v2197_v37  ;;  %v1250_v1 = vld [vmem:[%s10975_s24 + $0x20] sm:$0xff]  ;;  %v1877_v34 = vrot.slane %v1847_v53, %v11226_v6 }
 0x724   : > { %v2201_v26 = vmul.f32 %v11544_v62, %v1250_v1 }
 0x725   : > { %v2056_v24 = vsub.f32 %v1894_v28, %v2048_v43  ;;  %v11634_v28 = vrot.slane %v1999_v3, %v11226_v6 }
 0x726   : > { %v11605_v22 = vpop.permute.xlu0 %2266 }
 0x727   : > { %v2273_v43 = vmul.f32 %v11542_v51, %v2056_v24  ;;  %v2272_v51 = vmul.f32 %v11527_v38, %v2055_v45 }
 0x728   : > { %v2412_v13 = vpop.permute.xlu1 %2411 }
 0x729   : > { %v2436_v0 = vmul.f32 %v2412_v13, %v11608_v2  ;;  %v2291_v13 = vmul.f32 %v11553_v21, %v11261_v54  ;;  %v11649_v62 = vadd.f32 %v2273_v43, %v2201_v26  ;;  %v2003_v54 = vcombine.high %v1999_v3, %v1999_v3  ;;  %v1251_v43 = vld [vmem:[%s10975_s24 + $0x28] sm:$0xff] }
 0x72b   : > { %v11623_v14 = vadd.f32 %v2436_v0, %v2289_v29  ;;  %v2404_v32 = vpop.permute.xlu0 %2403  ;;  %v2001_v29 = vcombine.high %v11580_v50, %v11580_v50  ;;  %v2200_v50 = vmul.f32 %v11529_v23, %v1249_v11  ;;  %v2049_v0 = vmul.f32 %v11634_v28, %v11561_v58 }
 0x72c   : > { %v2434_v49 = vmul.f32 %v2404_v32, %v11618_v55  ;;  %v1792_v33 = vpop.permute.xlu1 %1791 }
 0x72d   : > { %v2685_v20 = vmul.f32 %v11623_v14, %v2015_v48  ;;  %v1895_v48 = vmul.f32 %v1873_v42, %v1785_v30  ;;  %v11653_v24 = vrot.slane %v2001_v29, %v11226_v6  ;;  %v1896_v23 = vmul.f32 %v1877_v34, %v1792_v33 }
 0x72e   : > { %v11629_v5 = vadd.f32 %v2434_v49, %v2287_v47  ;;  %v10670_v47 = vld [vmem:[%s10965_s12 + $0x18] sm:$0xff]  ;;  %v11660_v53 = vadd.f32 %v2272_v51, %v2200_v50  ;;  %v2202_v50 = vmul.f32 %v11551_v27, %v1251_v43 }
 0x72f   : > { %v1799_v9 = vpop.permute.xlu0 %1798  ;;  %v2697_v39 = vsel %vm1360_vm6, %v2685_v20, 0.0  ;;  %v2290_v32 = vmul.f32 %v10670_v47, %v11553_v21  ;;  %v2057_v45 = vsub.f32 %v1895_v48, %v2049_v0  ;;  %v2035_v48 = vrot.slane %v2003_v54, %v11226_v6 }
 0x730   : > { %v2195_v37 = vpop.permute.xlu1 %2194  ;;  %2698 = vadd.xlane.f32.xlu0 %v2697_v39  ;;  %v2683_v35 = vmul.f32 %v11629_v5, %v11568_v31  ;;  %v1849_v31 = vcombine.high %v1845_v18, %v1845_v18  ;;  %v2050_v18 = vmul.f32 %v11653_v24, %v11587_v19 }
 0x732   : > { %v2691_v30 = vsel %vm1360_vm6, %v2683_v35, 0.0  ;;  %v1881_v39 = vrot.slane %v1849_v31, %v11226_v6 }
 0x733   : > { %v2420_v38 = vpop.permute.xlu0 %2419  ;;  %2692 = vadd.xlane.f32.xlu1 %v2691_v30 }
 0x734   : > { %v2438_v49 = vmul.f32 %v2420_v38, %v11649_v62  ;;  %v2669_v58 = vpop.f32.mrf.mxu1  ;;  %v11658_v1 = vpop.f32.mrf.mxu0  ;;  %v1897_v30 = vmul.f32 %v1881_v39, %v1799_v9 }
 0x735   : > { %v2670_v20 = vadd.f32 %v11310_v56, %v2669_v58  ;;  %v2416_v42 = vpop.permute.xlu1 %2415  ;;  %v2058_v56 = vsub.f32 %v1896_v23, %v2050_v18  ;;  %v1252_v23 = vld [vmem:[%s10975_s24 + $0x30] sm:$0xff] }
 0x736   : > { %v11666_v11 = vadd.f32 %v2438_v49, %v2291_v13  ;;  %v2437_v3 = vmul.f32 %v2416_v42, %v11660_v53  ;;  %v10210_v33 = vpop.f32.mrf.mxu1  ;;  %v10218_v29 = vpop.f32.mrf.mxu0  ;;  %v2274_v13 = vmul.f32 %v11549_v7, %v2057_v45  ;;  %v10671_v7 = vld [vmem:[%s10965_s12 + $0x28] sm:$0xff]  ;;  %v2203_v42 = vmul.f32 %v11590_v12, %v1252_v23 }
 0x737   : > { %v11670_v26 = vmax.f32 %v2670_v20, 0.0  ;;  %v2292_v27 = vmul.f32 %v10671_v7, %v11553_v21  ;;  %v2275_v58 = vmul.f32 %v11577_v40, %v2058_v56  ;;  %v2432_v56 = vpop.permute.xlu0 %2431 }
 0x738   : > { %v11673_v35 = vadd.f32 %v2437_v3, %v2290_v32  ;;  %v2672_v51 = vpop.f32.mrf.mxu1  ;;  %v3552_v19 = vpop.f32.mrf.mxu0  ;;  %v2687_v34 = vmul.f32 %v11666_v11, %v11595_v52  ;;  %v1253_v52 = vld [vmem:[%s10975_s24 + $0x38] sm:$0xff]  ;;  %v11689_v49 = vadd.f32 %v2274_v13, %v2202_v50  ;;  %v10672_v3 = vld [vmem:[%s10965_s12 + $0x30] sm:$0xff] }
 0x739   : > { %10016 = vst.msk [vmem:[%s11055_s23 + $0x8] sm:$0xff] %vm2451_vm15, %v11670_v26  ;;  %v1953_v0 = vpop.permute.xlu1 %1952  ;;  %v2293_v33 = vmul.f32 %v10672_v3, %v11553_v21  ;;  %v11702_v51 = vadd.f32 %v2275_v58, %v2203_v42  ;;  %v10673_v19 = vld [vmem:[%s10965_s12 + $0x38] sm:$0xff] }
 0x73a   : > { %v2051_v31 = vmul.f32 %v2035_v48, %v1953_v0  ;;  %v10211_v38 = vpop.f32.mrf.mxu1  ;;  %v10219_v47 = vpop.f32.mrf.mxu0  ;;  %v2703_v32 = vsel %vm1360_vm6, %v2687_v34, 0.0  ;;  %v2686_v54 = vmul.f32 %v11673_v35, %v11601_v44  ;;  %v2204_v44 = vmul.f32 %v2195_v37, %v1253_v52 }
 0x73b   : > { %2704 = vadd.xlane.f32.xlu0 %v2703_v32  ;;  %v2294_v40 = vmul.f32 %v10673_v19, %v11553_v21 }
 0x73c   : > { %v2059_v45 = vsub.f32 %v1897_v30, %v2051_v31  ;;  %v2700_v9 = vsel %vm1360_vm6, %v2686_v54, 0.0 }
 0x73d   : > { %v2424_v20 = vpop.permute.xlu1 %2423  ;;  %2701 = vadd.xlane.f32.xlu1 %v2700_v9 }
 0x73e   : > { %v2276_v43 = vmul.f32 %v11605_v22, %v2059_v45  ;;  %v2439_v18 = vmul.f32 %v2424_v20, %v11689_v49 }
 0x740   : > { %v11698_v29 = vadd.f32 %v2276_v43, %v2204_v44  ;;  %v11700_v39 = vadd.f32 %v2439_v18, %v2292_v27 }
 0x741   : > { %v2428_v34 = vpop.permute.xlu1 %2427 }
 0x742   : > { %v2440_v12 = vmul.f32 %v2428_v34, %v11702_v51  ;;  %v2688_v22 = vmul.f32 %v11700_v39, %v11634_v28  ;;  %v2441_v37 = vmul.f32 %v2432_v56, %v11698_v29 }
 0x744   : > { %v11710_v13 = vadd.f32 %v2440_v12, %v2293_v33  ;;  %v2706_v50 = vsel %vm1360_vm6, %v2688_v22, 0.0  ;;  %v11713_v0 = vadd.f32 %v2441_v37, %v2294_v40  ;;  %v11737_v22 = vld [vmem:[%s14599_s5] ss:$0 sm:$0xff] }
 0x745   : > { %2707 = vadd.xlane.f32.xlu1 %v2706_v50  ;;  %v1056_v37 = vadd.f32 %v11737_v22, %v11149_v36 }
 0x746   : > { %v2689_v30 = vmul.f32 %v11710_v13, %v11653_v24  ;;  %v2690_v31 = vmul.f32 %v11713_v0, %v2035_v48 }
 0x748   : > { %v2709_v38 = vsel %vm1360_vm6, %v2689_v30, 0.0  ;;  %v2712_v47 = vsel %vm1360_vm6, %v2690_v31, 0.0  ;;  %v1085_v30 = vsel %vm1078_vm7, %v1056_v37, 0.0  ;;  %v1105_v31 = vmul.f32 %v1056_v37, %v1056_v37 }
 0x749   : > { %2710 = vadd.xlane.f32.xlu0 %v2709_v38  ;;  %2713 = vadd.xlane.f32.xlu1 %v2712_v47  ;;  %v11744_v38 = vld [vmem:[%s14600_s26] ss:$0 sm:$0xff] }
 0x74a   : > { %v11748_v47 = vadd.f32 %v11744_v38, %v11658_v1 }
 0x74c   : > { %v3558_v36 = vmul.f32 %v11748_v47, %v11748_v47 }
 0x7ac   : > { %v2696_v32 = vpop.xlane.xlu0 %2695 }
 0x7ad   : > { %v2730_v52 = vrot.slane %v2696_v32, %v11285_v16  ;;  %v3555_v32 = vsel %vm1078_vm7, %v11748_v47, 0.0 }
 0x7b9   : > { %v2699_v7 = vpop.xlane.xlu0 %2698 }
 0x7ba   : > { %v2734_v48 = vrot.slane %v2699_v7, %v11285_v16  ;;  %v14629_v7 = vmov 0.0  }
 0x7bc   : > { %v2693_v28 = vpop.xlane.xlu1 %2692 }
 0x7bd   : > { %v2726_v54 = vrot.slane %v2693_v28, %v11285_v16  ;;  %v1117_v28 = vsel %vm1078_vm7, %v1105_v31, 0.0 }
 0x7bf   : > { %v2755_v27 = vsel %vm1698_vm8, %v2730_v52, %v2726_v54  ;;  %v3559_v54 = vsel %vm1078_vm7, %v3558_v36, 0.0  ;;  %v11781_v36 = vld [vmem:[%s14601_s2] ss:$0 sm:$0xff] }
 0x7c0   : > { %v2756_v58 = vsel %vm1700_vm9, %v2734_v48, %v2755_v27  ;;  %14634 = vst [vmem:[#allocation55_spill] sm:$0xff] %v11781_v36 }
 0x7c4   : > { %v2705_v45 = vpop.xlane.xlu0 %2704 }
 0x7c5   : > { %v2742_v44 = vrot.slane %v2705_v45, %v11285_v16 }
 0x7c6   : > { %v2702_v23 = vpop.xlane.xlu1 %2701 }
 0x7c7   : > { %v2738_v24 = vrot.slane %v2702_v23, %v11285_v16  ;;  %v3573_v23 = vld [vmem:[%s10895_s30] sm:$0xf] }
 0x7c8   : > { %v3578_v52 = vsel %vm1364_vm3, %v3573_v23, 0 }
 0x7c9   : > { %v2757_v20 = vsel %vm1702_vm10, %v2738_v24, %v2756_v58  ;;  %10221 = vmatpush3.bf16.msra.mxu1 %v3578_v52 }
 0x7ca   : > { %v2758_v3 = vsel %vm1704_vm11, %v2742_v44, %v2757_v20  ;;  %10234 = vmatprep.subr.bf16.mxu1 %v14629_v7 }
 0x7ce   : > { %v2708_v9 = vpop.xlane.xlu1 %2707 }
 0x7cf   : > { %v2746_v42 = vrot.slane %v2708_v9, %v11285_v16 }
 0x7d1   : > { %v2759_v40 = vsel %vm1706_vm12, %v2746_v42, %v2758_v3 }
 0x7d2   : > { %v2711_v43 = vpop.xlane.xlu0 %2710  ;;  %v2714_v18 = vpop.xlane.xlu1 %2713 }
 0x7d3   : > { %v2750_v33 = vrot.slane %v2711_v43, %v11285_v16  ;;  %v2754_v19 = vrot.slane %v2714_v18, %v11285_v16 }
 0x7d5   : > { %v2760_v56 = vsel %vm1708_vm13, %v2750_v33, %v2759_v40  ;;  %v11762_v33 = vld [vmem:[%s14602_s22] ss:$0 sm:$0xff] }
 0x7d6   : > { %v2761_v34 = vsel %vm1710_vm14, %v2754_v19, %v2760_v56  ;;  %14631 = vst [vmem:[#allocation52_spill] sm:$0xff] %v11762_v33  ;;  %v11766_v40 = vld [vmem:[%s14603_s3] ss:$0 sm:$0xff] }
 0x7d7   : > { %v2763_v12 = vadd.f32 %v2761_v34, %v11670_v26  ;;  %14632 = vst [vmem:[#allocation53_spill] sm:$0xff] %v11766_v40  ;;  %v2769_v34 = vmul.f32 %v11348_v63, %v11344_v59 }
 0x7d9   : > { %v2764_v50 = vsel %vm1714_vm0, %v2763_v12, -inf }
 0x7da   : > { %2765 = vmax.xlane.f32.xlu0 %v2764_v50 }
 0x7de   : > { %1086 = vadd.xlane.f32.xlu0 %v1085_v30  ;;  %v10014_v30 = vmul.f32 -1.442695, %v11670_v26 }
 0x7e2   : > { %1118 = vadd.xlane.f32.xlu0 %v1117_v28 }
 0x7e6   : > { %3556 = vadd.xlane.f32.xlu0 %v3555_v32 }
 0x7ea   : > { %3560 = vadd.xlane.f32.xlu0 %v3559_v54 }
 0x863   : > { %v2766_v1 = vpop.xlane.xlu0 %2765 }
 0x864   : > { %vm2767_vm2 = vcmp.ge.f32.partialorder %v2763_v12, %v2766_v1 }
 0x865   : > { %v2768_v27 = vsel %vm2767_vm2, %v2763_v12, 0.0 }
 0x866   : > { %v2770_v24 = vmul.f32 %v2768_v27, %v11337_v61 }
 0x867   : > { %v1087_v48 = vpop.xlane.xlu0 %1086 }
 0x868   : > { %v1137_v45 = vmul.f32 0.010416667, %v1087_v48  ;;  %2772 = vrot.lane.b32.xlu1 %v2770_v24, %s14630_s18 }
 0x86a   : > { %v1153_v58 = vmul.f32 %v1137_v45, %v1137_v45  ;;  %v1169_v43 = vsub.f32 %v1056_v37, %v1137_v45 }
 0x86b   : > { %v1119_v9 = vpop.xlane.xlu0 %1118 }
 0x86c   : > { %v1145_v20 = vmul.f32 0.010416667, %v1119_v9 }
 0x86e   : > { %v1161_v42 = vsub.f32 %v1145_v20, %v1153_v58 }
 0x870   : > { %v1177_v44 = vadd.f32 1e-05, %v1161_v42 }
 0x872   : > { %10568 = vrsqrt.f32 %v1177_v44  ;;  %v14635_v44 = vmov 1  }
 0x873   : > { %10570 = vpow2.f32 %v10014_v30 }
 0x87f   : > { %v10569_v18 = vpop.eup %10568 }
 0x880   : > { %v1193_v3 = vmul.f32 %v10569_v18, %v1169_v43  ;;  %v10571_v31 = vpop.eup %10570  ;;  %v3557_v18 = vpop.xlane.xlu0 %3556 }
 0x881   : > { %v2679_v28 = vadd.f32 1.0, %v10571_v31 }
 0x882   : > { %v1207_v19 = vmul.f32 %v11762_v33, %v1193_v3 }
 0x883   : > { %10572 = vrcp.f32 %v2679_v28 }
 0x884   : > { %v1221_v56 = vadd.f32 %v11766_v40, %v1207_v19  ;;  %v3561_v3 = vpop.xlane.xlu0 %3560  ;;  %v3562_v19 = vmul.f32 0.010416667, %v3557_v18 }
 0x886   : > { %1229 = vst.msk [vmem:[#allocation2 + $0x10] sm:$0xff] %vm1078_vm7, %v1221_v56  ;;  %v3563_v56 = vmul.f32 0.010416667, %v3561_v3  ;;  %v11805_v3 = vld [vmem:[%s14607_s17] ss:$0 sm:$0xff] }
 0x887   : > { %14637 = vst [vmem:[#allocation57_spill] sm:$0xff] %v11805_v3 }
 0x890   : > { %v11786_v45 = vpop.eup %10572 }
 0x891   : > { %v3113_v9 = vrot.slane %v11786_v45, %v11221_v4 }
 0x893   : > { %v3121_v58 = vcombine.high %v3113_v9, %v3113_v9 }
 0x895   : > { %v11791_v20 = vrot.slane %v3121_v58, %v11221_v4  ;;  %v11801_v58 = vld [vmem:[%s14605_s9] ss:$0 sm:$0xff] }
 0x896   : > { %14636 = vst [vmem:[#allocation56_spill] sm:$0xff] %v11801_v58 }
 0x897   : > { %v3258_v42 = vrot.slane %v11791_v20, %v11226_v6 }
 0x8da   : > { %v2773_v12 = vpop.permute.xlu1 %2772 }
 0x8db   : > { %v11772_v50 = vadd.f32 %v2773_v12, %v2769_v34  ;;  %v3564_v34 = vmul.f32 %v3562_v19, %v3562_v19 }
 0x8dd   : > { %14633 = vst [vmem:[#allocation54_spill] sm:$0xff] %v11772_v50  ;;  %v3572_v37 = vpack.c.bf16 %v11772_v50, %v11772_v50  ;;  %v2800_v43 = vrot.slane %v11772_v50, %v11372_v25  ;;  %v3565_v12 = vsub.f32 %v3563_v56, %v3564_v34  ;;  %v3001_v59 = vcombine.high %v11772_v50, %v11772_v50 }
 0x8df   : > { %10223 = vmatmul.mubr.msk.bf16.vlgmr.msra.gmra.mxu1 %vm1360_vm6, %v3572_v37  ;;  %v3567_v37 = vadd.f32 1e-05, %v3565_v12  ;;  %v3498_v12 = vld [vmem:[#allocation2 + $0x10] sm:$0xff] }
 0x8e0   : > { %10238 = vmatprep.mubr.msk.bf16.mxu1 %vm10816_vm4, %v14629_v7 }
 0x8e1   : > { %10574 = vrsqrt.f32 %v3567_v37  ;;  %v11809_v37 = vld [vmem:[%s14606_s13] ss:$0 sm:$0xff] }
 0x8e2   : > { %14638 = vst [vmem:[#allocation58_spill] sm:$0xff] %v11809_v37 }
 0x99f   : > { %v3614_v32 = vpop.f32.mrf.mxu1 }
 0x9a0   : > { %v3615_v54 = vadd.f32 %v11781_v36, %v3614_v32 }
 0x9a1   : > { %v10224_v23 = vpop.f32.mrf.mxu1 }
 0x9a2   : > { %v3620_v52 = vsel %vm1078_vm7, %v3615_v54, 0.0  ;;  %v3623_v1 = vmul.f32 %v3615_v54, %v3615_v54 }
 0x9a3   : > { %3621 = vadd.xlane.f32.xlu1 %v3620_v52  ;;  %v3617_v27 = vpop.f32.mrf.mxu1 }
 0x9a4   : > { %v3624_v24 = vsel %vm1078_vm7, %v3623_v1, 0.0  ;;  %v10575_v27 = vpop.eup %10574 }
 0x9a5   : > { %3625 = vadd.xlane.f32.xlu0 %v3624_v24  ;;  %v10225_v48 = vpop.f32.mrf.mxu1  ;;  %v3566_v24 = vsub.f32 %v11748_v47, %v3562_v19  ;;  %v11813_v19 = vld [vmem:[%s14608_s20] ss:$0 sm:$0xff] }
 0x9a6   : > { %14639 = vst [vmem:[#allocation59_spill] sm:$0xff] %v11813_v19 }
 0x9a7   : > { %v3569_v48 = vmul.f32 %v10575_v27, %v3566_v24  ;;  %v10522_v27 = vld [vmem:[%s14604_s8] sm:$0xff]  }
 0x9a8   : > { %v10523_v24 = vld [vmem:[%s10885_s19] sm:$0xff]  }
 0x9b4   : > { %2785 = vperm.xlu1 %10445, %v11786_v45  }
 0x9b8   : > { %10447 = vset.pattern.permute.xlu1 %v14635_v44 }
 0x9b9   : > { %3288 = vperm.xlu1 %10447, %v3258_v42   ;;  %v3570_v42 = vmul.f32 %v11801_v58, %v3569_v48 }
 0x9bb   : > { %v3571_v56 = vadd.f32 %v11805_v3, %v3570_v42  ;;  %v3129_v42 = vrot.slane %v3113_v9, %v11221_v4  ;;  %v2793_v9 = vrot.slane %v11772_v50, %v11226_v6 }
 0x9bd   : > { %2802 = vbcast.lane.b32.xlu1 %v2800_v43, 256  ;;  %v3637_v47 = vadd.f32 %v3571_v56, %v3498_v12 }
 0xa2c   : > { %v3622_v30 = vpop.xlane.xlu1 %3621 }
 0xa2d   : > { %v3627_v31 = vmul.f32 0.010416667, %v3622_v30 }
 0xa2e   : > { %v3626_v28 = vpop.xlane.xlu0 %3625 }
 0xa2f   : > { %v3629_v32 = vmul.f32 %v3627_v31, %v3627_v31  ;;  %v3628_v23 = vmul.f32 0.010416667, %v3626_v28  ;;  %v3631_v43 = vsub.f32 %v3615_v54, %v3627_v31 }
 0xa31   : > { %v3630_v52 = vsub.f32 %v3628_v23, %v3629_v32 }
 0xa33   : > { %v3632_v1 = vadd.f32 1e-05, %v3630_v52  ;;  %v10520_v52 = vld [vmem:[%s14604_s8 + $0x8] sm:$0xff]  }
 0xa34   : > { %10227 = vmatpush3.bf16.msra.mxu0 %v10520_v52 }
 0xa35   : > { %10576 = vrsqrt.f32 %v3632_v1  ;;  %v10521_v1 = vld [vmem:[%s10885_s19 + $0x8] sm:$0xff]   ;;  %10228 = vmatprep.subr.bf16.mxu0 %v14629_v7 }
 0xa36   : > { %10235 = vmatpush3.bf16.msra.mxu1 %v10521_v1 }
 0xa37   : > { %10236 = vmatprep.subr.bf16.mxu1 %v14629_v7 }
 0xa38   : > { %10229 = vmatpush3.bf16.msra.mxu0 %v10522_v27 }
 0xa39   : > { %10242 = vmatprep.subr.bf16.mxu0 %v14629_v7 }
 0xa3a   : > { %10237 = vmatpush3.bf16.msra.mxu1 %v10523_v24  ;;  %v2786_v24 = vpop.permute.xlu1 %2785 }
 0xa3b   : > { %10248 = vmatprep.subr.bf16.mxu1 %v14629_v7 }
 0xa42   : > { %v10577_v18 = vpop.eup %10576 }
 0xa43   : > { %v3634_v34 = vmul.f32 %v10577_v18, %v3631_v43  ;;  %v2776_v43 = vsub.f32 1.0, %v11786_v45  ;;  %v3163_v18 = vsub.f32 1.0, %v3129_v42 }
 0xa45   : > { %v3635_v30 = vmul.f32 %v11809_v37, %v3634_v34  ;;  %v3182_v56 = vrot.slane %v3163_v18, %v11226_v6  ;;  %v3164_v34 = vsub.f32 1.0, %v11791_v20  ;;  %v3151_v18 = vcombine.high %v3129_v42, %v3129_v42 }
 0xa47   : > { %v3636_v54 = vadd.f32 %v11813_v19, %v3635_v30  ;;  %v3186_v12 = vrot.slane %v3164_v34, %v11226_v6  ;;  %v3254_v30 = vrot.slane %v3129_v42, %v11226_v6  ;;  %v3106_v42 = vcombine.high %v11786_v45, %v11786_v45 }
 0xa49   : > { %v3638_v31 = vadd.f32 %v3637_v47, %v3636_v54 }
 0xa4b   : > { %v10021_v28 = vmul.f32 -1.442695, %v3638_v31 }
 0xa4d   : > { %10578 = vpow2.f32 %v10021_v28 }
 0xa5a   : > { %v10579_v32 = vpop.eup %10578 }
 0xa5b   : > { %v3642_v23 = vadd.f32 1.0, %v10579_v32 }
 0xa5d   : > { %10580 = vrcp.f32 %v3642_v23 }
 0xa5e   : > { %10582 = vtanh.f32 %v11670_v26  ;;  %v2807_v26 = vrot.slane %v11772_v50, %v11427_v17 }
 0xa6a   : > { %v10581_v48 = vpop.eup %10580 }
 0xa6b   : > { %3648 = vrot.lane.b32.xlu0 %v10581_v48, %s14618_s21  ;;  %v3645_v54 = vsub.f32 1.0, %v10581_v48  ;;  %v10583_v45 = vpop.eup %10582 }
 0xa6d   : > { %v3646_v32 = vmul.f32 %v3645_v54, %v11402_v57 }
 0xa6f   : > { %3653 = vrot.lane.b32.xlu0 %v3638_v31, %s14619_s29 }
 0xa73   : > { %2779 = vperm.xlu0 %10444, %v2776_v43  }
 0xa77   : > { %10446 = vset.pattern.permute.xlu0 %v14635_v44 }
 0xa78   : > { %3212 = vperm.xlu0 %10446, %v3182_v56  }
 0xa7c   : > { %3216 = vperm.xlu0 %10446, %v3186_v12  }
 0xa80   : > { %3284 = vperm.xlu0 %10446, %v3254_v30   ;;  %v3165_v30 = vsub.f32 1.0, %v3151_v18 }
 0xa84   : > { %2795 = vbcast.lane.b32.xlu0 %v2793_v9, 256  ;;  %v3262_v9 = vrot.slane %v3151_v18, %v11226_v6 }
 0xadd   : > { %v3649_v47 = vpop.permute.xlu0 %3648 }
 0xade   : > { %v3651_v31 = vmul.f32 %v10581_v48, %v3649_v47  ;;  %v2788_v48 = vmul.f32 %v2786_v24, %v11348_v63  ;;  %v3190_v63 = vrot.slane %v3165_v30, %v11226_v6  ;;  %v2821_v30 = vrot.slane %v11772_v50, %v11450_v41 }
 0xae1   : > { %v3654_v28 = vpop.permute.xlu0 %3653 }
 0xae2   : > { %v3656_v23 = vmul.f32 %v3654_v28, %v3651_v31  ;;  %v3120_v31 = vrot.slane %v3106_v42, %v11221_v4 }
 0xae4   : > { %v11836_v52 = vadd.f32 %v3656_v23, %v3646_v32  ;;  %v3136_v32 = vrot.slane %v3120_v31, %v11221_v4  ;;  %v3122_v24 = vcombine.high %v3120_v31, %v3120_v31 }
 0xae6   : > { %14640 = vst [vmem:[#allocation60_spill] sm:$0xff] %v11836_v52  ;;  %v3658_v1 = vmax.f32 %v11836_v52, 0.0  ;;  %v3150_v18 = vrot.slane %v3122_v24, %v11221_v4  ;;  %v3340_v24 = vcombine.high %v10583_v45, %v10583_v45 }
 0xae8   : > { %v3659_v27 = vpack.c.bf16 %v3658_v1, %v3658_v1  ;;  %10026 = vst.msk [vmem:[%s11057_s11 + $0x10] sm:$0xff] %vm1279_vm5, %v3658_v1  ;;  %v2814_v1 = vrot.slane %v11772_v50, %v11439_v46 }
 0xaea   : > { %10231 = vmatmul.mubr.msk.bf16.vlgmr.msra.gmra.mxu0 %vm1279_vm5, %v3659_v27  ;;  %10239 = vmatmul.mubr.msk.bf16.vlgmr.msra.gmra.mxu1 %vm1279_vm5, %v3659_v27  ;;  %v3167_v27 = vsub.f32 1.0, %v3136_v32 }
 0xaeb   : > { %10244 = vmatprep.mubr.msk.bf16.mxu0 %vm10816_vm4, %v14629_v7  ;;  %10252 = vmatprep.mubr.msk.bf16.mxu1 %vm10816_vm4, %v14629_v7 }
 0xaee   : > { %v2780_v57 = vpop.permute.xlu0 %2779 }
 0xaef   : > { %v2782_v43 = vmul.f32 %v2780_v57, %v11415_v8  ;;  %v3153_v8 = vcombine.high %v11791_v20, %v11791_v20  ;;  %v3347_v57 = vrot.slane %v10583_v45, %v11221_v4 }
 0xaf1   : > { %v11849_v56 = vadd.f32 %v2788_v48, %v2782_v43  ;;  %v3166_v54 = vsub.f32 1.0, %v3153_v8  ;;  %v3266_v28 = vrot.slane %v3153_v8, %v11226_v6  ;;  %v3270_v48 = vrot.slane %v3136_v32, %v11226_v6 }
 0xaf2   : > { %v3198_v43 = vrot.slane %v3167_v27, %v11226_v6  ;;  %v3274_v8 = vrot.slane %v3150_v18, %v11226_v6 }
 0xaf3   : > { %14641 = vst [vmem:[#allocation61_spill] sm:$0xff] %v11849_v56  ;;  %v2954_v34 = vrot.slane %v11849_v56, %v11372_v25  ;;  %v2947_v12 = vrot.slane %v11849_v56, %v11226_v6  ;;  %v2961_v47 = vrot.slane %v11849_v56, %v11427_v17  ;;  %v3194_v20 = vrot.slane %v3166_v54, %v11226_v6 }
 0xaf4   : > { %v2968_v23 = vrot.slane %v11849_v56, %v11439_v46  ;;  %v3152_v54 = vcombine.high %v3136_v32, %v3136_v32  ;;  %v2989_v32 = vrot.slane %v11849_v56, %v11475_v15 }
 0xaf5   : > { %2956 = vbcast.lane.b32.xlu1 %v2954_v34, 256  ;;  %2949 = vbcast.lane.b32.xlu0 %v2947_v12, 256  ;;  %v3355_v34 = vcombine.high %v3347_v57, %v3347_v57  ;;  %v2975_v12 = vrot.slane %v11849_v56, %v11450_v41 }
 0xaf6   : > { %v3169_v27 = vsub.f32 1.0, %v3152_v54 }
 0xaf9   : > { %3292 = vperm.xlu1 %10447, %v3262_v9   ;;  %3220 = vperm.xlu0 %10446, %v3190_v63   ;;  %v3168_v9 = vsub.f32 1.0, %v3150_v18  ;;  %v3377_v63 = vrot.slane %v3355_v34, %v11221_v4  ;;  %v3206_v34 = vrot.slane %v3169_v27, %v11226_v6 }
 0xafb   : > { %v3202_v42 = vrot.slane %v3168_v9, %v11226_v6 }
 0xafd   : > { %2963 = vbcast.lane.b32.xlu1 %v2961_v47, 256  ;;  %2809 = vbcast.lane.b32.xlu0 %v2807_v26, 256  ;;  %v3398_v47 = vmul.f32 %v3377_v63, %v11460_v60  ;;  %v2982_v26 = vrot.slane %v11849_v56, %v11464_v10 }
 0xaff   : > { %v3420_v31 = vrot.slane %v3398_v47, %v11226_v6 }
 0xb01   : > { %3296 = vperm.xlu1 %10447, %v3266_v28   ;;  %3224 = vperm.xlu0 %10446, %v3194_v20   ;;  %v14642_v28 = vmov 2   ;;  %v3363_v20 = vrot.slane %v3347_v57, %v11221_v4  ;;  %v3354_v57 = vrot.slane %v3340_v24, %v11221_v4 }
 0xb03   : > { %v3397_v45 = vmul.f32 %v3363_v20, %v11460_v60  ;;  %v3356_v9 = vcombine.high %v3354_v57, %v3354_v57 }
 0xb05   : > { %2970 = vbcast.lane.b32.xlu1 %v2968_v23, 256  ;;  %2816 = vbcast.lane.b32.xlu0 %v2814_v1, 256  ;;  %v3278_v23 = vrot.slane %v3152_v54, %v11226_v6  ;;  %v2828_v1 = vrot.slane %v11772_v50, %v11464_v10  ;;  %v3384_v47 = vrot.slane %v3356_v9, %v11221_v4 }
 0xb07   : > { %v3388_v27 = vcombine.high %v3384_v47, %v3384_v47 }
 0xb09   : > { %3300 = vperm.xlu1 %10447, %v3270_v48   ;;  %3228 = vperm.xlu0 %10446, %v3198_v43   ;;  %v3385_v48 = vcombine.high %v3363_v20, %v3363_v20  ;;  %v3154_v43 = vcombine.high %v3150_v18, %v3150_v18  ;;  %v3416_v18 = vrot.slane %v3397_v45, %v11226_v6  ;;  %v14643_v20 = vld [vmem:[#allocation49_spill] sm:$0xff] }
 0xb0b   : > { %v3170_v54 = vsub.f32 1.0, %v3154_v43 }
 0xb0d   : > { %2977 = vbcast.lane.b32.xlu1 %v2975_v12, 256  ;;  %2823 = vbcast.lane.b32.xlu0 %v2821_v30, 256  ;;  %v3399_v12 = vmul.f32 %v3385_v48, %v11460_v60  ;;  %v3282_v30 = vrot.slane %v3154_v43, %v11226_v6  ;;  %v3210_v24 = vrot.slane %v3170_v54, %v11226_v6 }
 0xb11   : > { %3304 = vperm.xlu1 %10447, %v3274_v8   ;;  %3232 = vperm.xlu0 %10446, %v3202_v42   ;;  %v3424_v8 = vrot.slane %v3399_v12, %v11226_v6  ;;  %v3370_v42 = vrot.slane %v3354_v57, %v11221_v4  ;;  %v2996_v57 = vrot.slane %v11849_v56, %v14643_v20 }
 0xb12   : > { %v3402_v12 = vmul.f32 %v3384_v47, %v11460_v60 }
 0xb14   : > { %v3436_v45 = vrot.slane %v3402_v12, %v11226_v6 }
 0xb15   : > { %10448 = vset.pattern.permute.xlu1 %v14642_v28  ;;  %2984 = vbcast.lane.b32.xlu0 %v2982_v26, 256  ;;  %v2835_v26 = vrot.slane %v11772_v50, %v11475_v15 }
 0xb16   : > { %3450 = vperm.xlu1 %10448, %v3420_v31   ;;  %v3387_v31 = vcombine.high %v3377_v63, %v3377_v63  ;;  %v3404_v63 = vmul.f32 %v3388_v27, %v11460_v60 }
 0xb18   : > { %v3400_v48 = vmul.f32 %v3387_v31, %v11460_v60  ;;  %v3289_v31 = vpop.permute.xlu1 %3288 }
 0xb19   : > { %3308 = vperm.xlu0 %10446, %v3278_v23   ;;  %v2842_v23 = vrot.slane %v11772_v50, %v14643_v20 }
 0xb1a   : > { %2830 = vbcast.lane.b32.xlu1 %v2828_v1, 256  ;;  %v3401_v1 = vmul.f32 %v3370_v42, %v11460_v60  ;;  %v3428_v43 = vrot.slane %v3400_v48, %v11226_v6 }
 0xb1b   : > { %10449 = vset.pattern.permute.xlu1 %v14635_v44 }
 0xb1d   : > { %2991 = vbcast.lane.b32.xlu0 %v2989_v32, 256  ;;  %v3432_v32 = vrot.slane %v3401_v1, %v11226_v6 }
 0xb1e   : > { %3236 = vperm.xlu1 %10449, %v3206_v34   ;;  %v3444_v34 = vrot.slane %v3404_v63, %v11226_v6  ;;  %v3008_v63 = vrot.slane %v11772_v50, %v11221_v4  ;;  %v3015_v50 = vrot.slane %v3001_v59, %v11221_v4 }
 0xb20   : > { %v3016_v12 = vcombine.high %v3008_v63, %v3008_v63 }
 0xb21   : > { %3312 = vperm.xlu0 %10446, %v3282_v30   ;;  %v3386_v30 = vcombine.high %v3370_v42, %v3370_v42  ;;  %v2803_v42 = vpop.permute.xlu1 %2802 }
 0xb22   : > { %10450 = vset.pattern.permute.xlu1 %v14642_v28 }
 0xb23   : > { %3454 = vperm.xlu1 %10450, %v3424_v8   ;;  %v3403_v9 = vmul.f32 %v3386_v30, %v11460_v60  ;;  %v14644_v8 = vmov 0  }
 0xb25   : > { %10452 = vset.pattern.permute.xlu0 %v14642_v28 }
 0xb26   : > { %3446 = vperm.xlu0 %10452, %v3416_v18   ;;  %v3440_v18 = vrot.slane %v3403_v9, %v11226_v6  ;;  %v3038_v9 = vrot.slane %v3016_v12, %v11221_v4  ;;  %v3024_v12 = vrot.slane %v3008_v63, %v11221_v4 }
 0xb27   : > { %2837 = vbcast.lane.b32.xlu1 %v2835_v26, 256  ;;  %v11929_v26 = vpop.permute.xlu0 %3212 }
 0xb28   : > { %10451 = vset.pattern.permute.xlu1 %v14635_v44  ;;  %v3057_v15 = vrot.slane %v3038_v9, %v11226_v6  ;;  %v3046_v37 = vcombine.high %v3024_v12, %v3024_v12 }
 0xb2a   : > { %2844 = vbcast.lane.b32.xlu0 %v2842_v23, 256 }
 0xb2b   : > { %3240 = vperm.xlu1 %10451, %v3210_v24   ;;  %v3217_v54 = vpop.permute.xlu0 %3216 }
 0xb2e   : > { %3462 = vperm.xlu0 %10452, %v3432_v32   ;;  %v2854_v32 = vrot.slane %v11849_v56, %v11221_v4 }
 0xb2f   : > { %10453 = vset.pattern.permute.xlu1 %v14642_v28  ;;  %v11931_v23 = vpop.permute.xlu0 %3284 }
 0xb30   : > { %3458 = vperm.xlu1 %10453, %v3428_v43   ;;  %v2870_v17 = vrot.slane %v2854_v32, %v11221_v4 }
 0xb32   : > { %3474 = vperm.xlu0 %10452, %v3444_v34   ;;  %v2892_v3 = vcombine.high %v2870_v17, %v2870_v17 }
 0xb33   : > { %v2796_v47 = vpop.permute.xlu0 %2795 }
 0xb34   : > { %2998 = vbcast.lane.b32.xlu1 %v2996_v57, 256  ;;  %v2862_v57 = vcombine.high %v2854_v32, %v2854_v32 }
 0xb36   : > { %10454 = vset.pattern.permute.xlu0 %v14644_v8 }
 0xb38   : > { %3466 = vperm.xlu1 %10453, %v3436_v45  }
 0xb3c   : > { %3470 = vperm.xlu1 %10453, %v3440_v18   ;;  %v2884_v18 = vrot.slane %v2862_v57, %v11221_v4 }
 0xb3e   : > { %v2903_v28 = vrot.slane %v2884_v18, %v11226_v6 }
 0xb40   : > { %10455 = vset.pattern.permute.xlu1 %v14644_v8  ;;  %v2937_v46 = vmul.f32 %v2903_v28, %v2803_v42  ;;  %v2847_v28 = vcombine.high %v11849_v56, %v11849_v56  ;;  %v3061_v42 = vrot.slane %v3046_v37, %v11226_v6 }
 0xb42   : > { %v2861_v56 = vrot.slane %v2847_v28, %v11221_v4  ;;  %v3048_v28 = vcombine.high %v3038_v9, %v3038_v9 }
 0xb44   : > { %v2877_v33 = vrot.slane %v2861_v56, %v11221_v4  ;;  %v2863_v9 = vcombine.high %v2861_v56, %v2861_v56 }
 0xb67   : > { %v2957_v1 = vpop.permute.xlu1 %2956  ;;  %v2950_v27 = vpop.permute.xlu0 %2949 }
 0xb68   : > { %v3091_v10 = vmul.f32 %v3057_v15, %v2957_v1  ;;  %v14645_v1 = vld [vmem:[#allocation50_spill] sm:$0xff] }
 0xb69   : > { %v3244_v36 = vmul.f32 %v3217_v54, %v14645_v1  ;;  %v11975_v1 = vrot.slane %v3024_v12, %v11226_v6  ;;  %v3031_v12 = vrot.slane %v3015_v50, %v11221_v4 }
 0xb6a   : > { %v3099_v52 = vsub.f32 %v2937_v46, %v3091_v10  ;;  %v2907_v46 = vrot.slane %v2892_v3, %v11226_v6  ;;  %v2899_v3 = vrot.slane %v2870_v17, %v11226_v6 }
 0xb6c   : > { %v3316_v44 = vmul.f32 %v3289_v31, %v3099_v52  ;;  %v14647_v52 = vld [vmem:[#allocation51_spill] sm:$0xff] }
 0xb6d   : > { %v3332_v31 = vmul.f32 %v14647_v52, %v11553_v21  ;;  %v2936_v52 = vmul.f32 %v2899_v3, %v2796_v47  ;;  %v2915_v47 = vrot.slane %v2877_v33, %v11226_v6 }
 0xb6e   : > { %v11970_v32 = vadd.f32 %v3316_v44, %v3244_v36  ;;  %v3090_v36 = vmul.f32 %v11975_v1, %v2950_v27 }
 0xb70   : > { %14646 = vst [vmem:[#allocation50_spill] sm:$0xff] %v11970_v32  ;;  %v3098_v61 = vsub.f32 %v2936_v52, %v3090_v36 }
 0xb74   : > { %v3293_v24 = vpop.permute.xlu1 %3292  ;;  %v11933_v48 = vpop.permute.xlu0 %3220 }
 0xb78   : > { %v2964_v43 = vpop.permute.xlu1 %2963  ;;  %v2810_v34 = vpop.permute.xlu0 %2809 }
 0xb79   : > { %v3092_v63 = vmul.f32 %v3061_v42, %v2964_v43  ;;  %v2938_v40 = vmul.f32 %v2907_v46, %v2810_v34 }
 0xb7b   : > { %v3100_v34 = vsub.f32 %v2938_v40, %v3092_v63  ;;  %v11995_v40 = vrot.slane %v3031_v12, %v11226_v6  ;;  %v3245_v63 = vmul.f32 %v11933_v48, %v11608_v2 }
 0xb7c   : > { %v11939_v30 = vpop.permute.xlu1 %3296  ;;  %v11941_v45 = vpop.permute.xlu0 %3224 }
 0xb80   : > { %v11945_v8 = vpop.permute.xlu1 %2970  ;;  %v11947_v20 = vpop.permute.xlu0 %2816 }
 0xb84   : > { %v11951_v60 = vpop.permute.xlu1 %3300  ;;  %v11953_v41 = vpop.permute.xlu0 %3228 }
 0xb88   : > { %v2978_v57 = vpop.permute.xlu1 %2977  ;;  %v2824_v19 = vpop.permute.xlu0 %2823 }
 0xb89   : > { %v2940_v3 = vmul.f32 %v2915_v47, %v2824_v19 }
 0xb8c   : > { %v11957_v58 = vpop.permute.xlu1 %3304  ;;  %v11959_v25 = vpop.permute.xlu0 %3232 }
 0xb90   : > { %v11968_v10 = vpop.permute.xlu0 %2984 }
 0xb91   : > { %v3451_v54 = vpop.permute.xlu1 %3450 }
 0xb92   : > { %v3478_v37 = vmul.f32 %v3451_v54, %v11970_v32  ;;  %v2894_v54 = vcombine.high %v2884_v18, %v2884_v18 }
 0xb94   : > { %v11982_v44 = vadd.f32 %v3478_v37, %v3332_v31  ;;  %v11984_v43 = vpop.permute.xlu0 %3308  ;;  %v3317_v31 = vmul.f32 %v3293_v24, %v3100_v34  ;;  %v2911_v18 = vrot.slane %v2894_v54, %v11226_v6  ;;  %v3094_v37 = vmul.f32 %v11995_v40, %v2978_v57 }
 0xb95   : > { %v2831_v46 = vpop.permute.xlu1 %2830  ;;  %v3315_v24 = vmul.f32 %v11931_v23, %v3098_v61  ;;  %v3017_v34 = vcombine.high %v3015_v50, %v3015_v50  ;;  %v3333_v57 = vmul.f32 %v11623_v14, %v11553_v21  ;;  %v2891_v61 = vrot.slane %v2863_v9, %v11221_v4 }
 0xb96   : > { %v3728_v59 = vmul.f32 %v11982_v44, %v3057_v15  ;;  %v12001_v15 = vrot.slane %v3048_v28, %v11226_v6  ;;  %v12008_v52 = vadd.f32 %v3317_v31, %v3245_v63  ;;  %v2939_v56 = vmul.f32 %v2911_v18, %v11947_v20 }
 0xb97   : > { %v3102_v28 = vsub.f32 %v2940_v3, %v3094_v37  ;;  %v3045_v23 = vrot.slane %v3017_v34, %v11221_v4  ;;  %v3331_v20 = vmul.f32 %v11629_v5, %v11553_v21  ;;  %v2893_v14 = vcombine.high %v2877_v33, %v2877_v33 }
 0xb98   : > { %v11989_v32 = vpop.permute.xlu0 %2991  ;;  %v3738_v17 = vsel %vm1360_vm6, %v3728_v59, 0.0  ;;  %v3243_v59 = vmul.f32 %v11929_v26, %v11618_v55  ;;  %v3093_v2 = vmul.f32 %v12001_v15, %v11945_v8  ;;  %v2919_v47 = vrot.slane %v2891_v61, %v11226_v6 }
 0xb99   : > { %v11992_v27 = vpop.permute.xlu1 %3236  ;;  %3739 = vadd.xlane.f32.xlu0 %v3738_v17  ;;  %v3319_v9 = vmul.f32 %v11951_v60, %v3102_v28  ;;  %v12033_v18 = vrot.slane %v3045_v23, %v11226_v6  ;;  %v3047_v37 = vcombine.high %v3031_v12, %v3031_v12  ;;  %v3247_v5 = vmul.f32 %v11953_v41, %v11649_v62 }
 0xb9a   : > { %v12019_v50 = vadd.f32 %v3315_v24, %v3243_v59  ;;  %v3101_v26 = vsub.f32 %v2939_v56, %v3093_v2  ;;  %v2941_v34 = vmul.f32 %v2919_v47, %v2831_v46  ;;  %v2923_v60 = vrot.slane %v2893_v14, %v11226_v6 }
 0xb9b   : > { %v3246_v2 = vmul.f32 %v11941_v45, %v11660_v53  ;;  %v3095_v12 = vmul.f32 %v12033_v18, %v11968_v10  ;;  %v12047_v41 = vadd.f32 %v3319_v9, %v3247_v5  ;;  %v12050_v62 = vrot.slane %v3047_v37, %v11226_v6 }
 0xb9c   : > { %v12005_v36 = vpop.permute.xlu0 %3312  ;;  %v3318_v59 = vmul.f32 %v11939_v30, %v3101_v26  ;;  %v2895_v46 = vcombine.high %v2891_v61, %v2891_v61  ;;  %v3335_v30 = vmul.f32 %v11666_v11, %v11553_v21 }
 0xb9e   : > { %v3455_v48 = vpop.permute.xlu1 %3454  ;;  %v12057_v28 = vadd.f32 %v3318_v59, %v3246_v2 }
 0xb9f   : > { %v3479_v19 = vmul.f32 %v3455_v48, %v12008_v52  ;;  %v3049_v48 = vcombine.high %v3045_v23, %v3045_v23  ;;  %v3334_v23 = vmul.f32 %v11673_v35, %v11553_v21 }
 0xba1   : > { %v12022_v54 = vadd.f32 %v3479_v19, %v3333_v57  ;;  %v3447_v55 = vpop.permute.xlu0 %3446  ;;  %v3103_v57 = vsub.f32 %v2941_v34, %v3095_v12  ;;  %v3081_v9 = vrot.slane %v3049_v48, %v11226_v6  ;;  %v3249_v48 = vmul.f32 %v11992_v27, %v11702_v51 }
 0xba2   : > { %v3477_v8 = vmul.f32 %v3447_v55, %v12019_v50  ;;  %v2838_v17 = vpop.permute.xlu1 %2837  ;;  %v12060_v55 = vld [vmem:[%s14611_s16] ss:$0 sm:$0xff]  ;;  %v3337_v51 = vmul.f32 %v11710_v13, %v11553_v21 }
 0xba3   : > { %v3729_v31 = vmul.f32 %v12022_v54, %v3061_v42  ;;  %v2942_v53 = vmul.f32 %v2923_v60, %v2838_v17  ;;  %v3320_v35 = vmul.f32 %v11957_v58, %v3103_v57 }
 0xba4   : > { %v12029_v63 = vadd.f32 %v3477_v8, %v3331_v20  ;;  %v3096_v20 = vmul.f32 %v12050_v62, %v11989_v32 }
 0xba5   : > { %v2845_v3 = vpop.permute.xlu0 %2844  ;;  %v3741_v24 = vsel %vm1360_vm6, %v3729_v31, 0.0  ;;  %v2927_v31 = vrot.slane %v2895_v46, %v11226_v6 }
 0xba6   : > { %v3241_v33 = vpop.permute.xlu1 %3240  ;;  %3742 = vadd.xlane.f32.xlu0 %v3741_v24  ;;  %v3727_v42 = vmul.f32 %v12029_v63, %v11975_v1  ;;  %v3104_v37 = vsub.f32 %v2942_v53, %v3096_v20 }
 0xba7   : > { %v2943_v60 = vmul.f32 %v2927_v31, %v2845_v3  ;;  %v3250_v57 = vmul.f32 %v3241_v33, %v11698_v29 }
 0xba8   : > { %v3735_v56 = vsel %vm1360_vm6, %v3727_v42, 0.0  ;;  %v3248_v42 = vmul.f32 %v11959_v25, %v11689_v49  ;;  %v3321_v25 = vmul.f32 %v11984_v43, %v3104_v37  ;;  %v3336_v49 = vmul.f32 %v11700_v39, %v11553_v21 }
 0xba9   : > { %3736 = vadd.xlane.f32.xlu1 %v3735_v56  ;;  %v3463_v1 = vpop.permute.xlu0 %3462  ;;  %v3338_v39 = vmul.f32 %v11713_v0, %v11553_v21 }
 0xbaa   : > { %v3481_v45 = vmul.f32 %v3463_v1, %v12047_v41  ;;  %v3713_v19 = vpop.f32.mrf.mxu0  ;;  %v12055_v10 = vpop.f32.mrf.mxu1  ;;  %v12087_v1 = vadd.f32 %v3320_v35, %v3248_v42 }
 0xbab   : > { %v3714_v26 = vadd.f32 %v12060_v55, %v3713_v19  ;;  %v3459_v61 = vpop.permute.xlu1 %3458 }
 0xbac   : > { %v12065_v11 = vadd.f32 %v3481_v45, %v3335_v30  ;;  %v3480_v8 = vmul.f32 %v3459_v61, %v12057_v28  ;;  %v10232_v17 = vpop.f32.mrf.mxu0  ;;  %v10240_v14 = vpop.f32.mrf.mxu1 }
 0xbad   : > { %v12071_v47 = vmax.f32 %v3714_v26, 0.0  ;;  %v12102_v26 = vadd.f32 %v3321_v25, %v3249_v48  ;;  %v3475_v43 = vpop.permute.xlu0 %3474 }
 0xbae   : > { %v12074_v24 = vadd.f32 %v3480_v8, %v3334_v23  ;;  %v3716_v32 = vpop.f32.mrf.mxu0  ;;  %v4596_v5 = vpop.f32.mrf.mxu1  ;;  %v3731_v34 = vmul.f32 %v12065_v11, %v11995_v40 }
 0xbaf   : > { %10027 = vst.msk [vmem:[%s11055_s23 + $0x10] sm:$0xff] %vm2451_vm15, %v12071_v47  ;;  %v2999_v59 = vpop.permute.xlu1 %2998 }
 0xbb0   : > { %v3097_v2 = vmul.f32 %v3081_v9, %v2999_v59  ;;  %v10233_v12 = vpop.f32.mrf.mxu0  ;;  %v10241_v56 = vpop.f32.mrf.mxu1  ;;  %v3747_v46 = vsel %vm1360_vm6, %v3731_v34, 0.0  ;;  %v3730_v30 = vmul.f32 %v12074_v24, %v12001_v15 }
 0xbb1   : > { %3748 = vadd.xlane.f32.xlu0 %v3747_v46 }
 0xbb2   : > { %v3105_v40 = vsub.f32 %v2943_v60, %v3097_v2  ;;  %v3744_v58 = vsel %vm1360_vm6, %v3730_v30, 0.0 }
 0xbb3   : > { %v3467_v3 = vpop.permute.xlu1 %3466  ;;  %3745 = vadd.xlane.f32.xlu1 %v3744_v58 }
 0xbb4   : > { %v3322_v15 = vmul.f32 %v12005_v36, %v3105_v40  ;;  %v3482_v53 = vmul.f32 %v3467_v3, %v12087_v1 }
 0xbb6   : > { %v12098_v45 = vadd.f32 %v3322_v15, %v3250_v57  ;;  %v12100_v19 = vadd.f32 %v3482_v53, %v3336_v49  ;;  %v14648_v57 = vld [vmem:[#allocation35_spill] sm:$0xff] }
 0xbb7   : > { %v3471_v61 = vpop.permute.xlu1 %3470  ;;  %v1059_v15 = vadd.f32 %v11737_v22, %v14648_v57 }
 0xbb8   : > { %v3483_v29 = vmul.f32 %v3471_v61, %v12102_v26  ;;  %v3732_v27 = vmul.f32 %v12100_v19, %v12033_v18  ;;  %v3484_v36 = vmul.f32 %v3475_v43, %v12098_v45  ;;  %v12144_v61 = vadd.f32 %v11744_v38, %v12055_v10 }
 0xbb9   : > { %v1106_v43 = vmul.f32 %v1059_v15, %v1059_v15 }
 0xbba   : > { %v12112_v33 = vadd.f32 %v3483_v29, %v3337_v51  ;;  %v3750_v20 = vsel %vm1360_vm6, %v3732_v27, 0.0  ;;  %v12115_v23 = vadd.f32 %v3484_v36, %v3338_v39  ;;  %v1088_v39 = vsel %vm1078_vm7, %v1059_v15, 0.0  ;;  %v4617_v36 = vld [vmem:[%s10895_s30] sm:$0xf] }
 0xbbb   : > { %3751 = vadd.xlane.f32.xlu1 %v3750_v20  ;;  %v1120_v51 = vsel %vm1078_vm7, %v1106_v43, 0.0  ;;  %v4599_v29 = vsel %vm1078_vm7, %v12144_v61, 0.0  ;;  %v4602_v22 = vmul.f32 %v12144_v61, %v12144_v61  ;;  %v4622_v20 = vsel %vm1364_vm3, %v4617_v36, 0 }
 0xbbc   : > { %v3733_v0 = vmul.f32 %v12112_v33, %v12050_v62  ;;  %v3734_v8 = vmul.f32 %v12115_v23, %v3081_v9  ;;  %10243 = vmatpush3.bf16.msra.mxu0 %v4622_v20 }
 0xbbd   : > { %v4603_v27 = vsel %vm1078_vm7, %v4602_v22, 0.0  ;;  %10256 = vmatprep.subr.bf16.mxu0 %v14629_v7 }
 0xbbe   : > { %v3753_v13 = vsel %vm1360_vm6, %v3733_v0, 0.0  ;;  %v3756_v17 = vsel %vm1360_vm6, %v3734_v8, 0.0  ;;  %v14649_v0 = vld [vmem:[#allocation40_spill] sm:$0xff] }
 0xbbf   : > { %3754 = vadd.xlane.f32.xlu0 %v3753_v13  ;;  %3757 = vadd.xlane.f32.xlu1 %v3756_v17 }
 0xc22   : > { %v3740_v14 = vpop.xlane.xlu0 %3739 }
 0xc23   : > { %v3774_v32 = vrot.slane %v3740_v14, %v11285_v16 }
 0xc2f   : > { %v3743_v5 = vpop.xlane.xlu0 %3742 }
 0xc30   : > { %v3778_v9 = vrot.slane %v3743_v5, %v11285_v16 }
 0xc32   : > { %v3737_v18 = vpop.xlane.xlu1 %3736 }
 0xc33   : > { %v3770_v31 = vrot.slane %v3737_v18, %v11285_v16 }
 0xc35   : > { %v3799_v34 = vsel %vm1698_vm8, %v3774_v32, %v3770_v31 }
 0xc36   : > { %v3800_v59 = vsel %vm1700_vm9, %v3778_v9, %v3799_v34  ;;  %v14650_v9 = vld [vmem:[#allocation52_spill] sm:$0xff] }
 0xc3a   : > { %v3749_v35 = vpop.xlane.xlu0 %3748 }
 0xc3b   : > { %v3786_v12 = vrot.slane %v3749_v35, %v11285_v16 }
 0xc3c   : > { %v3746_v37 = vpop.xlane.xlu1 %3745 }
 0xc3d   : > { %v3782_v62 = vrot.slane %v3746_v37, %v11285_v16 }
 0xc3f   : > { %v3801_v60 = vsel %vm1702_vm10, %v3782_v62, %v3800_v59 }
 0xc40   : > { %v3802_v30 = vsel %vm1704_vm11, %v3786_v12, %v3801_v60  ;;  %v14652_v60 = vld [vmem:[#allocation41_spill] sm:$0xff] }
 0xc44   : > { %v3752_v42 = vpop.xlane.xlu1 %3751 }
 0xc45   : > { %v3790_v2 = vrot.slane %v3752_v42, %v11285_v16  ;;  %v14651_v42 = vld [vmem:[#allocation53_spill] sm:$0xff] }
 0xc47   : > { %v3803_v25 = vsel %vm1706_vm12, %v3790_v2, %v3802_v30  ;;  %v14653_v2 = vld [vmem:[#allocation54_spill] sm:$0xff] }
 0xc48   : > { %v3758_v56 = vpop.xlane.xlu1 %3757  ;;  %v3755_v46 = vpop.xlane.xlu0 %3754  ;;  %v3813_v12 = vmul.f32 %v14653_v2, %v14652_v60 }
 0xc49   : > { %v3798_v40 = vrot.slane %v3758_v56, %v11285_v16  ;;  %v3794_v58 = vrot.slane %v3755_v46, %v11285_v16 }
 0xc4b   : > { %v3804_v49 = vsel %vm1708_vm13, %v3794_v58, %v3803_v25 }
 0xc4c   : > { %v3805_v3 = vsel %vm1710_vm14, %v3798_v40, %v3804_v49  ;;  %v10025_v40 = vmul.f32 -1.442695, %v12071_v47 }
 0xc4d   : > { %v3807_v48 = vadd.f32 %v3805_v3, %v12071_v47  ;;  %v14655_v3 = vld [vmem:[#allocation55_spill] sm:$0xff] }
 0xc4f   : > { %v3808_v53 = vsel %vm1714_vm0, %v3807_v48, -inf }
 0xc50   : > { %3809 = vmax.xlane.f32.xlu0 %v3808_v53 }
 0xc54   : > { %1089 = vadd.xlane.f32.xlu0 %v1088_v39 }
 0xc58   : > { %1121 = vadd.xlane.f32.xlu0 %v1120_v51 }
 0xc5c   : > { %4600 = vadd.xlane.f32.xlu0 %v4599_v29 }
 0xc60   : > { %4604 = vadd.xlane.f32.xlu0 %v4603_v27 }
 0xcd9   : > { %v3810_v38 = vpop.xlane.xlu0 %3809 }
 0xcda   : > { %vm3811_vm1 = vcmp.ge.f32.partialorder %v3807_v48, %v3810_v38  ;;  %v14656_v38 = vmov 1  }
 0xcdb   : > { %v3812_v10 = vsel %vm3811_vm1, %v3807_v48, 0.0 }
 0xcdc   : > { %v3814_v8 = vmul.f32 %v3812_v10, %v14649_v0  ;;  %v14657_v10 = vld [vmem:[#allocation42_spill] sm:$0xff] }
 0xcdd   : > { %v1090_v13 = vpop.xlane.xlu0 %1089 }
 0xcde   : > { %v1138_v17 = vmul.f32 0.010416667, %v1090_v13  ;;  %3816 = vrot.lane.b32.xlu1 %v3814_v8, %s14630_s18 }
 0xce0   : > { %v1154_v14 = vmul.f32 %v1138_v17, %v1138_v17  ;;  %v1170_v5 = vsub.f32 %v1059_v15, %v1138_v17 }
 0xce1   : > { %v1122_v18 = vpop.xlane.xlu0 %1121 }
 0xce2   : > { %v1146_v31 = vmul.f32 0.010416667, %v1122_v18 }
 0xce4   : > { %v1162_v37 = vsub.f32 %v1146_v31, %v1154_v14 }
 0xce5   : > { %v4601_v13 = vpop.xlane.xlu0 %4600 }
 0xce6   : > { %v1178_v32 = vadd.f32 1e-05, %v1162_v37  ;;  %v4606_v18 = vmul.f32 0.010416667, %v4601_v13 }
 0xce8   : > { %10584 = vrsqrt.f32 %v1178_v32  ;;  %v4608_v31 = vmul.f32 %v4606_v18, %v4606_v18 }
 0xce9   : > { %10586 = vpow2.f32 %v10025_v40  ;;  %v4605_v17 = vpop.xlane.xlu0 %4604  ;;  %v14658_v40 = vld [vmem:[#allocation56_spill] sm:$0xff] }
 0xcea   : > { %v4607_v14 = vmul.f32 0.010416667, %v4605_v17 }
 0xcec   : > { %v4609_v37 = vsub.f32 %v4607_v14, %v4608_v31  ;;  %v10526_v14 = vld [vmem:[%s14604_s8] sm:$0xff]  }
 0xced   : > { %v10527_v31 = vld [vmem:[%s10885_s19] sm:$0xff]  }
 0xcee   : > { %v4611_v32 = vadd.f32 1e-05, %v4609_v37 }
 0xcf5   : > { %v10585_v34 = vpop.eup %10584 }
 0xcf6   : > { %v1194_v62 = vmul.f32 %v10585_v34, %v1170_v5  ;;  %v10587_v58 = vpop.eup %10586 }
 0xcf7   : > { %v3723_v25 = vadd.f32 1.0, %v10587_v58 }
 0xcf8   : > { %v1208_v35 = vmul.f32 %v14650_v9, %v1194_v62 }
 0xcf9   : > { %10588 = vrcp.f32 %v3723_v25 }
 0xcfa   : > { %v1222_v59 = vadd.f32 %v14651_v42, %v1208_v35  ;;  %10590 = vrsqrt.f32 %v4611_v32 }
 0xcfc   : > { %1230 = vst.msk [vmem:[#allocation2 + $0x18] sm:$0xff] %vm1078_vm7, %v1222_v59 }
 0xd06   : > { %v12173_v29 = vpop.eup %10588 }
 0xd07   : > { %v4157_v22 = vrot.slane %v12173_v29, %v11221_v4 }
 0xd09   : > { %v4165_v27 = vcombine.high %v4157_v22, %v4157_v22  ;;  %v4173_v32 = vrot.slane %v4157_v22, %v11221_v4 }
 0xd0b   : > { %v12178_v36 = vrot.slane %v4165_v27, %v11221_v4  ;;  %v14661_v27 = vld [vmem:[#allocation59_spill] sm:$0xff] }
 0xd0d   : > { %v4302_v20 = vrot.slane %v12178_v36, %v11226_v6 }
 0xd50   : > { %v3817_v56 = vpop.permute.xlu1 %3816 }
 0xd51   : > { %v12162_v46 = vadd.f32 %v3817_v56, %v3813_v12  ;;  %v10591_v12 = vpop.eup %10590  ;;  %v4610_v56 = vsub.f32 %v12144_v61, %v4606_v18  ;;  %v10524_v18 = vld [vmem:[%s14604_s8 + $0x8] sm:$0xff]  }
 0xd52   : > { %10249 = vmatpush3.bf16.msra.mxu1 %v10524_v18  ;;  %v4197_v18 = vcombine.high %v12178_v36, %v12178_v36 }
 0xd53   : > { %14654 = vst [vmem:[#allocation51_spill] sm:$0xff] %v12162_v46  ;;  %v4616_v30 = vpack.c.bf16 %v12162_v46, %v12162_v46  ;;  %v3844_v8 = vrot.slane %v12162_v46, %v14657_v10  ;;  %10250 = vmatprep.subr.bf16.mxu1 %v14629_v7  ;;  %v3837_v22 = vrot.slane %v12162_v46, %v11226_v6 }
 0xd55   : > { %10245 = vmatmul.mubr.msk.bf16.vlgmr.msra.gmra.mxu0 %vm1360_vm6, %v4616_v30  ;;  %v4613_v30 = vmul.f32 %v10591_v12, %v4610_v56 }
 0xd56   : > { %10260 = vmatprep.mubr.msk.bf16.mxu0 %vm10816_vm4, %v14629_v7  ;;  %10251 = vmatpush3.bf16.msra.mxu1 %v10526_v14  ;;  %v14666_v14 = vld [vmem:[#allocation43_spill] sm:$0xff] }
 0xd57   : > { %v4614_v58 = vmul.f32 %v14658_v40, %v4613_v30  ;;  %10264 = vmatprep.subr.bf16.mxu1 %v14629_v7  ;;  %v14662_v40 = vld [vmem:[#allocation60_spill] sm:$0xff] }
 0xe15   : > { %v4658_v49 = vpop.f32.mrf.mxu0 }
 0xe16   : > { %v4659_v48 = vadd.f32 %v14655_v3, %v4658_v49  ;;  %v14659_v3 = vld [vmem:[#allocation57_spill] sm:$0xff] }
 0xe17   : > { %v10246_v57 = vpop.f32.mrf.mxu0 }
 0xe18   : > { %v4664_v15 = vsel %vm1078_vm7, %v4659_v48, 0.0  ;;  %v4667_v53 = vmul.f32 %v4659_v48, %v4659_v48  ;;  %v4615_v57 = vadd.f32 %v14659_v3, %v4614_v58 }
 0xe19   : > { %4665 = vadd.xlane.f32.xlu1 %v4664_v15  ;;  %v4661_v39 = vpop.f32.mrf.mxu0 }
 0xe1a   : > { %v4668_v43 = vsel %vm1078_vm7, %v4667_v53, 0.0  ;;  %v4542_v53 = vld [vmem:[#allocation2 + $0x18] sm:$0xff] }
 0xe1b   : > { %4669 = vadd.xlane.f32.xlu0 %v4668_v43  ;;  %v10247_v51 = vpop.f32.mrf.mxu0  ;;  %v14660_v39 = vld [vmem:[#allocation58_spill] sm:$0xff] }
 0xe1c   : > { %v4681_v51 = vadd.f32 %v4615_v57, %v4542_v53 }
 0xe2a   : > { %3829 = vperm.xlu1 %10455, %v12173_v29  }
 0xe2e   : > { %10457 = vset.pattern.permute.xlu1 %v14656_v38 }
 0xe2f   : > { %4332 = vperm.xlu1 %10457, %v4302_v20  }
 0xe33   : > { %3846 = vbcast.lane.b32.xlu1 %v3844_v8, 256 }
 0xea2   : > { %v4666_v5 = vpop.xlane.xlu1 %4665 }
 0xea3   : > { %v4671_v34 = vmul.f32 0.010416667, %v4666_v5  ;;  %v3820_v5 = vsub.f32 1.0, %v12173_v29 }
 0xea4   : > { %v4670_v62 = vpop.xlane.xlu0 %4669 }
 0xea5   : > { %v4673_v9 = vmul.f32 %v4671_v34, %v4671_v34  ;;  %v4672_v35 = vmul.f32 0.010416667, %v4670_v62  ;;  %v4675_v25 = vsub.f32 %v4659_v48, %v4671_v34  ;;  %v10525_v48 = vld [vmem:[%s10885_s19 + $0x8] sm:$0xff]   ;;  %v4207_v34 = vsub.f32 1.0, %v4173_v32 }
 0xea6   : > { %10257 = vmatpush3.bf16.msra.mxu0 %v10525_v48  ;;  %v4150_v48 = vcombine.high %v12173_v29, %v12173_v29 }
 0xea7   : > { %v4674_v42 = vsub.f32 %v4672_v35, %v4673_v9  ;;  %10258 = vmatprep.subr.bf16.mxu0 %v14629_v7  ;;  %v4226_v62 = vrot.slane %v4207_v34, %v11226_v6  ;;  %v4208_v9 = vsub.f32 1.0, %v12178_v36 }
 0xea9   : > { %v4676_v59 = vadd.f32 1e-05, %v4674_v42  ;;  %v4230_v35 = vrot.slane %v4208_v9, %v11226_v6  ;;  %v4298_v42 = vrot.slane %v4173_v32, %v11226_v6 }
 0xeaa   : > { %10259 = vmatpush3.bf16.msra.mxu0 %v10527_v31 }
 0xeab   : > { %10592 = vrsqrt.f32 %v4676_v59  ;;  %10270 = vmatprep.subr.bf16.mxu0 %v14629_v7 }
 0xeb8   : > { %v10593_v49 = vpop.eup %10592 }
 0xeb9   : > { %v4678_v15 = vmul.f32 %v10593_v49, %v4675_v25 }
 0xebb   : > { %v4679_v43 = vmul.f32 %v14660_v39, %v4678_v15  ;;  %v3830_v15 = vpop.permute.xlu1 %3829 }
 0xebc   : > { %v3832_v39 = vmul.f32 %v3830_v15, %v14653_v2 }
 0xebd   : > { %v4680_v20 = vadd.f32 %v14661_v27, %v4679_v43  ;;  %v14664_v43 = vld [vmem:[#allocation61_spill] sm:$0xff]  ;;  %v4195_v27 = vcombine.high %v4173_v32, %v4173_v32  ;;  %v4164_v32 = vrot.slane %v4150_v48, %v11221_v4 }
 0xebf   : > { %v4682_v8 = vadd.f32 %v4681_v51, %v4680_v20  ;;  %v4180_v34 = vrot.slane %v4164_v32, %v11221_v4 }
 0xec1   : > { %v10032_v61 = vmul.f32 -1.442695, %v4682_v8 }
 0xec3   : > { %10594 = vpow2.f32 %v10032_v61 }
 0xed0   : > { %v10595_v13 = vpop.eup %10594 }
 0xed1   : > { %v4686_v17 = vadd.f32 1.0, %v10595_v13  ;;  %v4209_v13 = vsub.f32 1.0, %v4195_v27 }
 0xed3   : > { %10596 = vrcp.f32 %v4686_v17  ;;  %v4306_v17 = vrot.slane %v4195_v27, %v11226_v6  ;;  %v4234_v2 = vrot.slane %v4209_v13, %v11226_v6  ;;  %v14670_v27 = vld [vmem:[#allocation47_spill] sm:$0xff] }
 0xed4   : > { %10598 = vtanh.f32 %v12071_v47  ;;  %v3851_v47 = vrot.slane %v12162_v46, %v14666_v14  ;;  %v3872_v48 = vrot.slane %v12162_v46, %v14670_v27 }
 0xee0   : > { %v10597_v37 = vpop.eup %10596 }
 0xee1   : > { %4692 = vrot.lane.b32.xlu0 %v10597_v37, %s14618_s21  ;;  %v4689_v12 = vsub.f32 1.0, %v10597_v37  ;;  %v10599_v29 = vpop.eup %10598 }
 0xee3   : > { %v4690_v58 = vmul.f32 %v4689_v12, %v14662_v40  ;;  %v4314_v12 = vrot.slane %v4180_v34, %v11226_v6 }
 0xee5   : > { %4697 = vrot.lane.b32.xlu0 %v4682_v8, %s14619_s29 }
 0xee9   : > { %3823 = vperm.xlu0 %10454, %v3820_v5   ;;  %v4310_v5 = vrot.slane %v4197_v18, %v11226_v6 }
 0xeed   : > { %10456 = vset.pattern.permute.xlu0 %v14656_v38 }
 0xeee   : > { %4256 = vperm.xlu0 %10456, %v4226_v62   ;;  %v14667_v62 = vld [vmem:[#allocation44_spill] sm:$0xff] }
 0xef2   : > { %4260 = vperm.xlu0 %10456, %v4230_v35   ;;  %v3858_v35 = vrot.slane %v12162_v46, %v14667_v62 }
 0xef6   : > { %4328 = vperm.xlu0 %10456, %v4298_v42   ;;  %v4211_v42 = vsub.f32 1.0, %v4180_v34 }
 0xefa   : > { %3839 = vbcast.lane.b32.xlu0 %v3837_v22, 256  ;;  %v4166_v22 = vcombine.high %v4164_v32, %v4164_v32  ;;  %v14672_v32 = vld [vmem:[#allocation48_spill] sm:$0xff] }
 0xf53   : > { %v4693_v59 = vpop.permute.xlu0 %4692 }
 0xf54   : > { %v4695_v56 = vmul.f32 %v10597_v37, %v4693_v59  ;;  %v4210_v37 = vsub.f32 1.0, %v4197_v18  ;;  %v4391_v59 = vrot.slane %v10599_v29, %v11221_v4 }
 0xf56   : > { %v4238_v36 = vrot.slane %v4210_v37, %v11226_v6  ;;  %v4399_v40 = vcombine.high %v4391_v59, %v4391_v59 }
 0xf57   : > { %v4698_v30 = vpop.permute.xlu0 %4697 }
 0xf58   : > { %v4700_v25 = vmul.f32 %v4698_v30, %v4695_v56  ;;  %v4242_v56 = vrot.slane %v4211_v42, %v11226_v6  ;;  %v4194_v30 = vrot.slane %v4166_v22, %v11221_v4  ;;  %v4421_v15 = vrot.slane %v4399_v40, %v11221_v4 }
 0xf59   : > { %v3879_v40 = vrot.slane %v12162_v46, %v14672_v32 }
 0xf5a   : > { %v12211_v49 = vadd.f32 %v4700_v25, %v4690_v58  ;;  %v14668_v58 = vld [vmem:[#allocation45_spill] sm:$0xff] }
 0xf5c   : > { %14663 = vst [vmem:[#allocation35_spill] sm:$0xff] %v12211_v49  ;;  %v4702_v3 = vmax.f32 %v12211_v49, 0.0 }
 0xf5e   : > { %v4703_v57 = vpack.c.bf16 %v4702_v3, %v4702_v3  ;;  %10037 = vst.msk [vmem:[%s11057_s11 + $0x18] sm:$0xff] %vm1279_vm5, %v4702_v3  ;;  %v3865_v3 = vrot.slane %v12162_v46, %v14668_v58 }
 0xf60   : > { %10253 = vmatmul.mubr.msk.bf16.vlgmr.msra.gmra.mxu1 %vm1279_vm5, %v4703_v57  ;;  %10261 = vmatmul.mubr.msk.bf16.vlgmr.msra.gmra.mxu0 %vm1279_vm5, %v4703_v57  ;;  %v4212_v57 = vsub.f32 1.0, %v4194_v30 }
 0xf61   : > { %10266 = vmatprep.mubr.msk.bf16.mxu1 %vm10816_vm4, %v14629_v7  ;;  %10274 = vmatprep.mubr.msk.bf16.mxu0 %vm10816_vm4, %v14629_v7 }
 0xf64   : > { %v3824_v53 = vpop.permute.xlu0 %3823 }
 0xf65   : > { %v3826_v51 = vmul.f32 %v3824_v53, %v14664_v43  ;;  %v4318_v53 = vrot.slane %v4194_v30, %v11226_v6  ;;  %v14669_v43 = vld [vmem:[#allocation46_spill] sm:$0xff] }
 0xf67   : > { %v12224_v20 = vadd.f32 %v3832_v39, %v3826_v51  ;;  %v4246_v39 = vrot.slane %v4212_v57, %v11226_v6  ;;  %v4442_v51 = vmul.f32 %v4421_v15, %v14669_v43  ;;  %v14673_v57 = vld [vmem:[#allocation49_spill] sm:$0xff] }
 0xf69   : > { %14665 = vst [vmem:[#allocation52_spill] sm:$0xff] %v12224_v20  ;;  %v3998_v8 = vrot.slane %v12224_v20, %v14657_v10  ;;  %v3991_v61 = vrot.slane %v12224_v20, %v11226_v6  ;;  %v4005_v31 = vrot.slane %v12224_v20, %v14666_v14  ;;  %v4012_v9 = vrot.slane %v12224_v20, %v14667_v62 }
 0xf6a   : > { %v4019_v25 = vrot.slane %v12224_v20, %v14668_v58  ;;  %v4464_v13 = vrot.slane %v4442_v51, %v11226_v6  ;;  %v3891_v10 = vcombine.high %v12224_v20, %v12224_v20 }
 0xf6b   : > { %4000 = vbcast.lane.b32.xlu1 %v3998_v8, 256  ;;  %3993 = vbcast.lane.b32.xlu0 %v3991_v61, 256  ;;  %v4026_v8 = vrot.slane %v12224_v20, %v14670_v27  ;;  %v4196_v61 = vcombine.high %v4180_v34, %v4180_v34 }
 0xf6d   : > { %v4322_v18 = vrot.slane %v4196_v61, %v11226_v6 }
 0xf6f   : > { %4336 = vperm.xlu1 %10457, %v4306_v17   ;;  %4264 = vperm.xlu0 %10456, %v4234_v2   ;;  %v14671_v17 = vmov 2   ;;  %v4407_v2 = vrot.slane %v4391_v59, %v11221_v4 }
 0xf71   : > { %v4429_v37 = vcombine.high %v4407_v2, %v4407_v2 }
 0xf73   : > { %4007 = vbcast.lane.b32.xlu1 %v4005_v31, 256  ;;  %3853 = vbcast.lane.b32.xlu0 %v3851_v47, 256  ;;  %v4213_v31 = vsub.f32 1.0, %v4196_v61  ;;  %v4384_v47 = vcombine.high %v10599_v29, %v10599_v29  ;;  %v4441_v29 = vmul.f32 %v4407_v2, %v14669_v43 }
 0xf75   : > { %v4250_v34 = vrot.slane %v4213_v31, %v11226_v6 }
 0xf77   : > { %4340 = vperm.xlu1 %10457, %v4310_v5   ;;  %4268 = vperm.xlu0 %10456, %v4238_v36   ;;  %v4033_v5 = vrot.slane %v12224_v20, %v14672_v32  ;;  %v4198_v36 = vcombine.high %v4194_v30, %v4194_v30 }
 0xf79   : > { %v4326_v42 = vrot.slane %v4198_v36, %v11226_v6 }
 0xf7b   : > { %4014 = vbcast.lane.b32.xlu1 %v4012_v9, 256  ;;  %3860 = vbcast.lane.b32.xlu0 %v3858_v35, 256  ;;  %v4398_v9 = vrot.slane %v4384_v47, %v11221_v4  ;;  %v4443_v35 = vmul.f32 %v4429_v37, %v14669_v43 }
 0xf7d   : > { %v4400_v22 = vcombine.high %v4398_v9, %v4398_v9  ;;  %v4468_v59 = vrot.slane %v4443_v35, %v11226_v6 }
 0xf7f   : > { %4344 = vperm.xlu1 %10457, %v4314_v12   ;;  %4272 = vperm.xlu0 %10456, %v4242_v56   ;;  %v4460_v12 = vrot.slane %v4441_v29, %v11226_v6  ;;  %v4414_v56 = vrot.slane %v4398_v9, %v11221_v4  ;;  %v4428_v30 = vrot.slane %v4400_v22, %v11221_v4  ;;  %v12304_v9 = vpop.permute.xlu0 %4256 }
 0xf81   : > { %v4432_v51 = vcombine.high %v4428_v30, %v4428_v30  ;;  %v4446_v31 = vmul.f32 %v4428_v30, %v14669_v43  ;;  %v4430_v47 = vcombine.high %v4414_v56, %v4414_v56 }
 0xf83   : > { %4021 = vbcast.lane.b32.xlu1 %v4019_v25, 256  ;;  %3867 = vbcast.lane.b32.xlu0 %v3865_v3, 256  ;;  %v4214_v25 = vsub.f32 1.0, %v4198_v36  ;;  %v4431_v3 = vcombine.high %v4421_v15, %v4421_v15  ;;  %v4448_v2 = vmul.f32 %v4432_v51, %v14669_v43  ;;  %v4480_v37 = vrot.slane %v4446_v31, %v11226_v6  ;;  %v4261_v35 = vpop.permute.xlu0 %4260 }
 0xf84   : > { %v14674_v36 = vmov 0  }
 0xf85   : > { %v4444_v61 = vmul.f32 %v4431_v3, %v14669_v43  ;;  %v4052_v3 = vrot.slane %v12162_v46, %v11221_v4 }
 0xf87   : > { %4348 = vperm.xlu1 %10457, %v4318_v53   ;;  %4276 = vperm.xlu0 %10456, %v4246_v39   ;;  %v3886_v53 = vrot.slane %v12162_v46, %v14673_v57  ;;  %v4445_v39 = vmul.f32 %v4414_v56, %v14669_v43  ;;  %v4472_v15 = vrot.slane %v4444_v61, %v11226_v6  ;;  %v12306_v29 = vpop.permute.xlu0 %4328 }
 0xf8b   : > { %10458 = vset.pattern.permute.xlu1 %v14671_v17  ;;  %4028 = vbcast.lane.b32.xlu0 %v4026_v8, 256  ;;  %v4254_v8 = vrot.slane %v4214_v25, %v11226_v6  ;;  %v3898_v25 = vrot.slane %v12224_v20, %v11221_v4 }
 0xf8c   : > { %4494 = vperm.xlu1 %10458, %v4464_v13   ;;  %v4476_v13 = vrot.slane %v4445_v39, %v11226_v6 }
 0xf8d   : > { %v3906_v51 = vcombine.high %v3898_v25, %v3898_v25 }
 0xf8f   : > { %4352 = vperm.xlu0 %10456, %v4322_v18   ;;  %v4488_v18 = vrot.slane %v4448_v2, %v11226_v6  ;;  %v3928_v2 = vrot.slane %v3906_v51, %v11221_v4  ;;  %v4068_v51 = vrot.slane %v4052_v3, %v11221_v4 }
 0xf90   : > { %3874 = vbcast.lane.b32.xlu1 %v3872_v48, 256  ;;  %v4040_v48 = vrot.slane %v12224_v20, %v14673_v57  ;;  %v3914_v57 = vrot.slane %v3898_v25, %v11221_v4 }
 0xf91   : > { %10459 = vset.pattern.permute.xlu1 %v14656_v38  ;;  %v3947_v31 = vrot.slane %v3928_v2, %v11226_v6 }
 0xf92   : > { %v3936_v27 = vcombine.high %v3914_v57, %v3914_v57 }
 0xf93   : > { %4035 = vbcast.lane.b32.xlu0 %v4033_v5, 256  ;;  %v4447_v5 = vmul.f32 %v4430_v47, %v14669_v43  ;;  %v4090_v43 = vcombine.high %v4068_v51, %v4068_v51 }
 0xf94   : > { %4280 = vperm.xlu1 %10459, %v4250_v34   ;;  %v3951_v25 = vrot.slane %v3936_v27, %v11226_v6 }
 0xf95   : > { %v4484_v34 = vrot.slane %v4447_v5, %v11226_v6 }
 0xf97   : > { %4356 = vperm.xlu0 %10456, %v4326_v42   ;;  %v4333_v42 = vpop.permute.xlu1 %4332 }
 0xf98   : > { %10460 = vset.pattern.permute.xlu1 %v14671_v17 }
 0xf99   : > { %4498 = vperm.xlu1 %10460, %v4468_v59   ;;  %v3840_v59 = vpop.permute.xlu0 %3839 }
 0xf9b   : > { %10462 = vset.pattern.permute.xlu0 %v14671_v17  ;;  %v3847_v22 = vpop.permute.xlu1 %3846 }
 0xf9c   : > { %4490 = vperm.xlu0 %10462, %v4460_v12  }
 0xf9d   : > { %3881 = vbcast.lane.b32.xlu1 %v3879_v40, 256 }
 0xf9e   : > { %10461 = vset.pattern.permute.xlu1 %v14656_v38 }
 0xfa0   : > { %3888 = vbcast.lane.b32.xlu0 %v3886_v53, 256 }
 0xfa1   : > { %4284 = vperm.xlu1 %10461, %v4254_v8   ;;  %v4060_v8 = vcombine.high %v4052_v3, %v4052_v3 }
 0xfa4   : > { %4506 = vperm.xlu0 %10462, %v4476_v13  }
 0xfa5   : > { %10463 = vset.pattern.permute.xlu1 %v14671_v17 }
 0xfa6   : > { %4502 = vperm.xlu1 %10463, %v4472_v15   ;;  %v4082_v15 = vrot.slane %v4060_v8, %v11221_v4 }
 0xfa8   : > { %4518 = vperm.xlu0 %10462, %v4488_v18   ;;  %v4101_v47 = vrot.slane %v4082_v15, %v11226_v6 }
 0xfaa   : > { %4042 = vbcast.lane.b32.xlu1 %v4040_v48, 256 }
 0xfac   : > { %10464 = vset.pattern.permute.xlu0 %v14674_v36 }
 0xfae   : > { %4510 = vperm.xlu1 %10463, %v4480_v37  }
 0xfb2   : > { %4514 = vperm.xlu1 %10463, %v4484_v34  }
 0xfb6   : > { %10465 = vset.pattern.permute.xlu1 %v14674_v36  ;;  %v3981_v36 = vmul.f32 %v3947_v31, %v3847_v22  ;;  %v4045_v22 = vcombine.high %v12162_v46, %v12162_v46 }
 0xfb8   : > { %v4059_v20 = vrot.slane %v4045_v22, %v11221_v4  ;;  %v4092_v22 = vcombine.high %v4082_v15, %v4082_v15 }
 0xfba   : > { %v4075_v46 = vrot.slane %v4059_v20, %v11221_v4  ;;  %v12376_v15 = vrot.slane %v4092_v22, %v11226_v6 }
 0xfdd   : > { %v3994_v12 = vpop.permute.xlu0 %3993  ;;  %v4001_v56 = vpop.permute.xlu1 %4000 }
 0xfde   : > { %v4135_v37 = vmul.f32 %v4101_v47, %v4001_v56  ;;  %v14675_v56 = vld [vmem:[#allocation50_spill] sm:$0xff] }
 0xfdf   : > { %v4288_v49 = vmul.f32 %v4261_v35, %v14675_v56  ;;  %v3905_v56 = vrot.slane %v3891_v10, %v11221_v4 }
 0xfe0   : > { %v4143_v32 = vsub.f32 %v3981_v36, %v4135_v37  ;;  %v4105_v36 = vrot.slane %v4090_v43, %v11226_v6  ;;  %v3943_v43 = vrot.slane %v3914_v57, %v11226_v6 }
 0xfe2   : > { %v4360_v14 = vmul.f32 %v4333_v42, %v4143_v32  ;;  %v4376_v32 = vmul.f32 %v11982_v44, %v11553_v21  ;;  %v12350_v42 = vrot.slane %v4068_v51, %v11226_v6  ;;  %v3921_v51 = vrot.slane %v3905_v56, %v11221_v4 }
 0xfe4   : > { %v12345_v31 = vadd.f32 %v4360_v14, %v4288_v49  ;;  %v4134_v49 = vmul.f32 %v12350_v42, %v3994_v12 }
 0xfe6   : > { %14676 = vst [vmem:[#allocation53_spill] sm:$0xff] %v12345_v31 }
 0xfea   : > { %v12308_v30 = vpop.permute.xlu0 %4264  ;;  %v4337_v40 = vpop.permute.xlu1 %4336 }
 0xfee   : > { %v3854_v53 = vpop.permute.xlu0 %3853  ;;  %v4008_v39 = vpop.permute.xlu1 %4007 }
 0xfef   : > { %v3982_v37 = vmul.f32 %v3951_v25, %v3854_v53  ;;  %v4136_v38 = vmul.f32 %v4105_v36, %v4008_v39  ;;  %v3980_v25 = vmul.f32 %v3943_v43, %v3840_v59  ;;  %v12371_v59 = vrot.slane %v4075_v46, %v11226_v6 }
 0xff1   : > { %v4144_v39 = vsub.f32 %v3982_v37, %v4136_v38  ;;  %v4142_v60 = vsub.f32 %v3980_v25, %v4134_v49  ;;  %v3959_v38 = vrot.slane %v3921_v51, %v11226_v6  ;;  %v4289_v37 = vmul.f32 %v12308_v30, %v12008_v52 }
 0xff2   : > { %v12314_v61 = vpop.permute.xlu0 %4268  ;;  %v12316_v13 = vpop.permute.xlu1 %4340 }
 0xff6   : > { %v12320_v18 = vpop.permute.xlu0 %3860  ;;  %v12322_v48 = vpop.permute.xlu1 %4014 }
 0xff7   : > { %v4137_v30 = vmul.f32 %v12376_v15, %v12322_v48 }
 0xffa   : > { %v12326_v5 = vpop.permute.xlu0 %4272  ;;  %v12328_v34 = vpop.permute.xlu1 %4344 }
 0xffe   : > { %v3868_v8 = vpop.permute.xlu0 %3867  ;;  %v4022_v17 = vpop.permute.xlu1 %4021 }
 0xfff   : > { %v4138_v43 = vmul.f32 %v12371_v59, %v4022_v17 }
0x1002   : > { %v12332_v58 = vpop.permute.xlu0 %4276  ;;  %v12334_v62 = vpop.permute.xlu1 %4348 }
0x1006   : > { %v12343_v3 = vpop.permute.xlu0 %4028 }
0x1007   : > { %v4495_v35 = vpop.permute.xlu1 %4494 }
0x1008   : > { %v4522_v27 = vmul.f32 %v4495_v35, %v12345_v31  ;;  %v3938_v35 = vcombine.high %v3928_v2, %v3928_v2  ;;  %v3907_v2 = vcombine.high %v3905_v56, %v3905_v56 }
0x100a   : > { %v12357_v14 = vadd.f32 %v4522_v27, %v4376_v32  ;;  %v12359_v53 = vpop.permute.xlu0 %4352  ;;  %v4361_v32 = vmul.f32 %v4337_v40, %v4144_v39  ;;  %v3984_v27 = vmul.f32 %v3959_v38, %v3868_v8  ;;  %v4359_v40 = vmul.f32 %v12306_v29, %v4142_v60 }
0x100b   : > { %v3875_v44 = vpop.permute.xlu1 %3874  ;;  %v4061_v39 = vcombine.high %v4059_v20, %v4059_v20  ;;  %v4377_v8 = vmul.f32 %v12022_v54, %v11553_v21  ;;  %v3935_v60 = vrot.slane %v3907_v2, %v11221_v4  ;;  %v3937_v54 = vcombine.high %v3921_v51, %v3921_v51 }
0x100c   : > { %v4772_v10 = vmul.f32 %v12357_v14, %v4101_v47  ;;  %v3955_v47 = vrot.slane %v3938_v35, %v11226_v6  ;;  %v12383_v25 = vadd.f32 %v4361_v32, %v4289_v37  ;;  %v4146_v22 = vsub.f32 %v3984_v27, %v4138_v43 }
0x100d   : > { %v4089_v29 = vrot.slane %v4061_v39, %v11221_v4  ;;  %v3963_v38 = vrot.slane %v3935_v60, %v11226_v6  ;;  %v4091_v27 = vcombine.high %v4075_v46, %v4075_v46 }
0x100e   : > { %v12364_v31 = vpop.permute.xlu0 %4035  ;;  %v4782_v57 = vsel %vm1360_vm6, %v4772_v10, 0.0  ;;  %v4287_v10 = vmul.f32 %v12304_v9, %v12019_v50  ;;  %v3983_v52 = vmul.f32 %v3955_v47, %v12320_v18  ;;  %v4375_v18 = vmul.f32 %v12029_v63, %v11553_v21 }
0x100f   : > { %4783 = vadd.xlane.f32.xlu0 %v4782_v57  ;;  %v12367_v12 = vpop.permute.xlu1 %4280  ;;  %v4363_v2 = vmul.f32 %v12328_v34, %v4146_v22  ;;  %v12408_v47 = vrot.slane %v4089_v29, %v11226_v6  ;;  %v4291_v63 = vmul.f32 %v12326_v5, %v12047_v41  ;;  %v3985_v39 = vmul.f32 %v3963_v38, %v3875_v44 }
0x1010   : > { %v12394_v20 = vadd.f32 %v4359_v40, %v4287_v10  ;;  %v4145_v9 = vsub.f32 %v3983_v52, %v4137_v30  ;;  %v3967_v34 = vrot.slane %v3937_v54, %v11226_v6  ;;  %v4290_v52 = vmul.f32 %v12314_v61, %v12057_v28 }
0x1011   : > { %v4139_v46 = vmul.f32 %v12408_v47, %v12343_v3  ;;  %v12421_v30 = vadd.f32 %v4363_v2, %v4291_v63  ;;  %v12425_v5 = vrot.slane %v4091_v27, %v11226_v6  ;;  %v3939_v44 = vcombine.high %v3935_v60, %v3935_v60 }
0x1012   : > { %v12380_v49 = vpop.permute.xlu0 %4356  ;;  %v4362_v10 = vmul.f32 %v12316_v13, %v4145_v9  ;;  %v4292_v63 = vmul.f32 %v12332_v58, %v12087_v1  ;;  %v4380_v58 = vmul.f32 %v12100_v19, %v11553_v21  ;;  %v4381_v19 = vmul.f32 %v12112_v33, %v11553_v21 }
0x1013   : > { %v4140_v60 = vmul.f32 %v12425_v5, %v12364_v31  ;;  %v3971_v54 = vrot.slane %v3939_v44, %v11226_v6 }
0x1014   : > { %v4499_v56 = vpop.permute.xlu1 %4498  ;;  %v12432_v22 = vadd.f32 %v4362_v10, %v4290_v52 }
0x1015   : > { %v4523_v17 = vmul.f32 %v4499_v56, %v12383_v25  ;;  %v4093_v56 = vcombine.high %v4089_v29, %v4089_v29  ;;  %v4378_v29 = vmul.f32 %v12074_v24, %v11553_v21 }
0x1017   : > { %v12397_v35 = vadd.f32 %v4523_v17, %v4377_v8  ;;  %v4491_v50 = vpop.permute.xlu0 %4490  ;;  %v4147_v8 = vsub.f32 %v3985_v39, %v4139_v46 }
0x1018   : > { %v4521_v48 = vmul.f32 %v4491_v50, %v12394_v20  ;;  %v3882_v57 = vpop.permute.xlu1 %3881 }
0x1019   : > { %v4773_v32 = vmul.f32 %v12397_v35, %v4105_v36  ;;  %v3986_v17 = vmul.f32 %v3967_v34, %v3882_v57  ;;  %v4364_v24 = vmul.f32 %v12334_v62, %v4147_v8 }
0x101a   : > { %v12404_v37 = vadd.f32 %v4521_v48, %v4375_v18 }
0x101b   : > { %v3889_v43 = vpop.permute.xlu0 %3888  ;;  %v4785_v40 = vsel %vm1360_vm6, %v4773_v32, 0.0  ;;  %v4148_v38 = vsub.f32 %v3986_v17, %v4140_v60  ;;  %v12460_v44 = vadd.f32 %v4364_v24, %v4292_v63 }
0x101c   : > { %4786 = vadd.xlane.f32.xlu0 %v4785_v40  ;;  %v4285_v51 = vpop.permute.xlu1 %4284  ;;  %v4771_v36 = vmul.f32 %v12404_v37, %v12350_v42  ;;  %v4379_v42 = vmul.f32 %v12065_v11, %v11553_v21 }
0x101d   : > { %v4365_v1 = vmul.f32 %v12359_v53, %v4148_v38 }
0x101e   : > { %v4779_v41 = vsel %vm1360_vm6, %v4771_v36, 0.0  ;;  %v3987_v36 = vmul.f32 %v3971_v54, %v3889_v43 }
0x101f   : > { %v4507_v13 = vpop.permute.xlu0 %4506  ;;  %4780 = vadd.xlane.f32.xlu1 %v4779_v41 }
0x1020   : > { %v4525_v28 = vmul.f32 %v4507_v13, %v12421_v30  ;;  %v4757_v61 = vpop.f32.mrf.mxu1  ;;  %v12430_v3 = vpop.f32.mrf.mxu0  ;;  %v4294_v13 = vmul.f32 %v4285_v51, %v12098_v45 }
0x1021   : > { %v4758_v50 = vadd.f32 %v12060_v55, %v4757_v61  ;;  %v4503_v9 = vpop.permute.xlu1 %4502  ;;  %v4125_v55 = vrot.slane %v4093_v56, %v11226_v6 }
0x1022   : > { %v12437_v11 = vadd.f32 %v4525_v28, %v4379_v42  ;;  %v4524_v18 = vmul.f32 %v4503_v9, %v12432_v22  ;;  %v10254_v48 = vpop.f32.mrf.mxu1  ;;  %v10262_v57 = vpop.f32.mrf.mxu0  ;;  %v4293_v42 = vmul.f32 %v12367_v12, %v12102_v26  ;;  %v4382_v26 = vmul.f32 %v12115_v23, %v11553_v21 }
0x1023   : > { %v12443_v32 = vmax.f32 %v4758_v50, 0.0  ;;  %v4519_v53 = vpop.permute.xlu0 %4518 }
0x1024   : > { %v12446_v2 = vadd.f32 %v4524_v18, %v4378_v29  ;;  %v4760_v31 = vpop.f32.mrf.mxu1  ;;  %v5640_v27 = vpop.f32.mrf.mxu0  ;;  %v4775_v40 = vmul.f32 %v12437_v11, %v12371_v59  ;;  %v12474_v28 = vadd.f32 %v4365_v1, %v4293_v42  ;;  %v14677_v42 = vld [vmem:[#allocation37_spill] sm:$0xff] }
0x1025   : > { %10038 = vst.msk [vmem:[%s11055_s23 + $0x18] sm:$0xff] %vm2451_vm15, %v12443_v32  ;;  %v4043_v39 = vpop.permute.xlu1 %4042 }
0x1026   : > { %v4141_v10 = vmul.f32 %v4125_v55, %v4043_v39  ;;  %v10255_v34 = vpop.f32.mrf.mxu1  ;;  %v10263_v52 = vpop.f32.mrf.mxu0  ;;  %v4791_v46 = vsel %vm1360_vm6, %v4775_v40, 0.0  ;;  %v4774_v41 = vmul.f32 %v12446_v2, %v12376_v15 }
0x1027   : > { %4792 = vadd.xlane.f32.xlu0 %v4791_v46 }
0x1028   : > { %v4149_v59 = vsub.f32 %v3987_v36, %v4141_v10  ;;  %v4788_v62 = vsel %vm1360_vm6, %v4774_v41, 0.0 }
0x1029   : > { %4789 = vadd.xlane.f32.xlu1 %v4788_v62  ;;  %v4511_v43 = vpop.permute.xlu1 %4510 }
0x102a   : > { %v4366_v15 = vmul.f32 %v12380_v49, %v4149_v59  ;;  %v4526_v56 = vmul.f32 %v4511_v43, %v12460_v44  ;;  %v12511_v43 = vld [vmem:[%s14599_s5] ss:$0 sm:$0xff] }
0x102c   : > { %v12470_v8 = vadd.f32 %v4366_v15, %v4294_v13  ;;  %v12472_v17 = vadd.f32 %v4526_v56, %v4380_v58  ;;  %v1064_v13 = vadd.f32 %v12511_v43, %v14677_v42 }
0x102d   : > { %v4515_v61 = vpop.permute.xlu1 %4514 }
0x102e   : > { %v4527_v50 = vmul.f32 %v4515_v61, %v12474_v28  ;;  %v4776_v45 = vmul.f32 %v12472_v17, %v12408_v47  ;;  %v4528_v12 = vmul.f32 %v4519_v53, %v12470_v8  ;;  %v1091_v56 = vsel %vm1078_vm7, %v1064_v13, 0.0 }
0x102f   : > { %v1107_v53 = vmul.f32 %v1064_v13, %v1064_v13 }
0x1030   : > { %v12484_v49 = vadd.f32 %v4527_v50, %v4381_v19  ;;  %v4794_v51 = vsel %vm1360_vm6, %v4776_v45, 0.0  ;;  %v12487_v9 = vadd.f32 %v4528_v12, %v4382_v26  ;;  %v12518_v19 = vld [vmem:[%s14600_s26] ss:$0 sm:$0xff] }
0x1031   : > { %4795 = vadd.xlane.f32.xlu1 %v4794_v51  ;;  %v12522_v61 = vadd.f32 %v12518_v19, %v12430_v3  ;;  %v1123_v50 = vsel %vm1078_vm7, %v1107_v53, 0.0  ;;  %v5661_v51 = vld [vmem:[%s10895_s30] sm:$0xf] }
0x1032   : > { %v4778_v33 = vmul.f32 %v12487_v9, %v4125_v55  ;;  %v4777_v60 = vmul.f32 %v12484_v49, %v12425_v5 }
0x1033   : > { %v5643_v45 = vsel %vm1078_vm7, %v12522_v61, 0.0  ;;  %v5646_v26 = vmul.f32 %v12522_v61, %v12522_v61 }
0x1034   : > { %v4800_v29 = vsel %vm1360_vm6, %v4778_v33, 0.0  ;;  %v4797_v47 = vsel %vm1360_vm6, %v4777_v60, 0.0  ;;  %v5666_v33 = vsel %vm1364_vm3, %v5661_v51, 0 }
0x1035   : > { %4801 = vadd.xlane.f32.xlu1 %v4800_v29  ;;  %4798 = vadd.xlane.f32.xlu0 %v4797_v47  ;;  %v5647_v12 = vsel %vm1078_vm7, %v5646_v26, 0.0 }
0x1036   : > { %10265 = vmatpush3.bf16.msra.mxu1 %v5666_v33 }
0x1037   : > { %10278 = vmatprep.subr.bf16.mxu1 %v14629_v7 }
0x1098   : > { %v4784_v18 = vpop.xlane.xlu0 %4783 }
0x1099   : > { %v4818_v54 = vrot.slane %v4784_v18, %v11285_v16 }
0x10a5   : > { %v4787_v38 = vpop.xlane.xlu0 %4786 }
0x10a6   : > { %v4822_v5 = vrot.slane %v4787_v38, %v11285_v16 }
0x10a8   : > { %v4781_v23 = vpop.xlane.xlu1 %4780 }
0x10a9   : > { %v4814_v48 = vrot.slane %v4781_v23, %v11285_v16 }
0x10ab   : > { %v4843_v31 = vsel %vm1698_vm8, %v4818_v54, %v4814_v48 }
0x10ac   : > { %v4844_v24 = vsel %vm1700_vm9, %v4822_v5, %v4843_v31 }
0x10b0   : > { %v4793_v27 = vpop.xlane.xlu0 %4792 }
0x10b1   : > { %v4830_v36 = vrot.slane %v4793_v27, %v11285_v16  ;;  %v12536_v27 = vld [vmem:[%s14602_s22] ss:$0 sm:$0xff] }
0x10b2   : > { %v4790_v57 = vpop.xlane.xlu1 %4789  ;;  %14678 = vst [vmem:[#allocation54_spill] sm:$0xff] %v12536_v27 }
0x10b3   : > { %v4826_v55 = vrot.slane %v4790_v57, %v11285_v16 }
0x10b5   : > { %v4845_v63 = vsel %vm1702_vm10, %v4826_v55, %v4844_v24  ;;  %v12540_v24 = vld [vmem:[%s14603_s3] ss:$0 sm:$0xff] }
0x10b6   : > { %v4846_v52 = vsel %vm1704_vm11, %v4830_v36, %v4845_v63  ;;  %14679 = vst [vmem:[#allocation55_spill] sm:$0xff] %v12540_v24  ;;  %v14681_v36 = vld [vmem:[#allocation51_spill] sm:$0xff] }
0x10ba   : > { %v4796_v40 = vpop.xlane.xlu1 %4795 }
0x10bb   : > { %v4834_v39 = vrot.slane %v4796_v40, %v11285_v16 }
0x10bd   : > { %v4847_v59 = vsel %vm1706_vm12, %v4834_v39, %v4846_v52  ;;  %v14680_v39 = vld [vmem:[#allocation41_spill] sm:$0xff] }
0x10be   : > { %v4799_v10 = vpop.xlane.xlu0 %4798  ;;  %v4802_v34 = vpop.xlane.xlu1 %4801 }
0x10bf   : > { %v4838_v46 = vrot.slane %v4799_v10, %v11285_v16  ;;  %v4842_v41 = vrot.slane %v4802_v34, %v11285_v16  ;;  %v4857_v10 = vmul.f32 %v14681_v36, %v14680_v39 }
0x10c1   : > { %v4848_v62 = vsel %vm1708_vm13, %v4838_v46, %v4847_v59 }
0x10c2   : > { %v4849_v1 = vsel %vm1710_vm14, %v4842_v41, %v4848_v62  ;;  %v10036_v41 = vmul.f32 -1.442695, %v12443_v32 }
0x10c3   : > { %v4851_v58 = vadd.f32 %v4849_v1, %v12443_v32 }
0x10c5   : > { %v4852_v15 = vsel %vm1714_vm0, %v4851_v58, -inf }
0x10c6   : > { %4853 = vmax.xlane.f32.xlu0 %v4852_v15 }
0x10ca   : > { %1092 = vadd.xlane.f32.xlu0 %v1091_v56 }
0x10ce   : > { %1124 = vadd.xlane.f32.xlu0 %v1123_v50 }
0x10d2   : > { %5644 = vadd.xlane.f32.xlu0 %v5643_v45 }
0x10d6   : > { %5648 = vadd.xlane.f32.xlu0 %v5647_v12 }
0x114f   : > { %v4854_v3 = vpop.xlane.xlu0 %4853 }
0x1150   : > { %vm4855_vm2 = vcmp.ge.f32.partialorder %v4851_v58, %v4854_v3 }
0x1151   : > { %v4856_v60 = vsel %vm4855_vm2, %v4851_v58, 0.0  ;;  %v12555_v58 = vld [vmem:[%s14601_s2] ss:$0 sm:$0xff] }
0x1152   : > { %v4858_v29 = vmul.f32 %v4856_v60, %v14649_v0  ;;  %14683 = vst [vmem:[#allocation57_spill] sm:$0xff] %v12555_v58  ;;  %v14684_v60 = vmov 1  }
0x1153   : > { %v1093_v47 = vpop.xlane.xlu0 %1092 }
0x1154   : > { %v1139_v23 = vmul.f32 0.010416667, %v1093_v47  ;;  %4860 = vrot.lane.b32.xlu1 %v4858_v29, %s14630_s18  ;;  %v14685_v29 = vld [vmem:[#allocation42_spill] sm:$0xff] }
0x1156   : > { %v1155_v48 = vmul.f32 %v1139_v23, %v1139_v23  ;;  %v1171_v31 = vsub.f32 %v1064_v13, %v1139_v23 }
0x1157   : > { %v1125_v18 = vpop.xlane.xlu0 %1124 }
0x1158   : > { %v1147_v57 = vmul.f32 0.010416667, %v1125_v18 }
0x115a   : > { %v1163_v54 = vsub.f32 %v1147_v57, %v1155_v48 }
0x115b   : > { %v5645_v23 = vpop.xlane.xlu0 %5644 }
0x115c   : > { %v1179_v38 = vadd.f32 1e-05, %v1163_v54  ;;  %v5650_v48 = vmul.f32 0.010416667, %v5645_v23  ;;  %v12587_v23 = vld [vmem:[%s14608_s20] ss:$0 sm:$0xff] }
0x115d   : > { %14689 = vst [vmem:[#allocation61_spill] sm:$0xff] %v12587_v23 }
0x115e   : > { %10600 = vrsqrt.f32 %v1179_v38  ;;  %v5652_v54 = vmul.f32 %v5650_v48, %v5650_v48 }
0x115f   : > { %10602 = vpow2.f32 %v10036_v41  ;;  %v5649_v18 = vpop.xlane.xlu0 %5648 }
0x1160   : > { %v5651_v57 = vmul.f32 0.010416667, %v5649_v18 }
0x1162   : > { %v5653_v38 = vsub.f32 %v5651_v57, %v5652_v54 }
0x116b   : > { %v10601_v55 = vpop.eup %10600 }
0x116c   : > { %v1195_v5 = vmul.f32 %v10601_v55, %v1171_v31  ;;  %v10603_v59 = vpop.eup %10602  ;;  %v5655_v31 = vadd.f32 1e-05, %v5653_v38  ;;  %v10528_v38 = vld [vmem:[%s14604_s8 + $0x8] sm:$0xff]  }
0x116d   : > { %v4767_v62 = vadd.f32 1.0, %v10603_v59  ;;  %v5654_v59 = vsub.f32 %v12522_v61, %v5650_v48  ;;  %10271 = vmatpush3.bf16.msra.mxu0 %v10528_v38  ;;  %v14692_v38 = vld [vmem:[#allocation52_spill] sm:$0xff] }
0x116e   : > { %v1209_v40 = vmul.f32 %v12536_v27, %v1195_v5  ;;  %10272 = vmatprep.subr.bf16.mxu0 %v14629_v7 }
0x116f   : > { %10604 = vrcp.f32 %v4767_v62 }
0x1170   : > { %v1223_v63 = vadd.f32 %v12540_v24, %v1209_v40  ;;  %10606 = vrsqrt.f32 %v5655_v31  ;;  %v10529_v31 = vld [vmem:[%s10885_s19 + $0x8] sm:$0xff]  }
0x1172   : > { %1231 = vst.msk [vmem:[#allocation2 + $0x20] sm:$0xff] %vm1078_vm7, %v1223_v63 }
0x117c   : > { %v12560_v26 = vpop.eup %10604 }
0x117d   : > { %v5201_v12 = vrot.slane %v12560_v26, %v11221_v4  ;;  %v10607_v41 = vpop.eup %10606 }
0x117e   : > { %v5657_v62 = vmul.f32 %v10607_v41, %v5654_v59 }
0x117f   : > { %v5209_v51 = vcombine.high %v5201_v12, %v5201_v12 }
0x1181   : > { %v12565_v33 = vrot.slane %v5209_v51, %v11221_v4  ;;  %v5586_v51 = vld [vmem:[#allocation2 + $0x20] sm:$0xff] }
0x1183   : > { %v5346_v3 = vrot.slane %v12565_v33, %v11226_v6  ;;  %v5252_v41 = vsub.f32 1.0, %v12565_v33 }
0x1185   : > { %v5274_v59 = vrot.slane %v5252_v41, %v11226_v6  ;;  %v5194_v41 = vcombine.high %v12560_v26, %v12560_v26 }
0x11c6   : > { %v4861_v34 = vpop.permute.xlu1 %4860 }
0x11c7   : > { %v12546_v52 = vadd.f32 %v4861_v34, %v4857_v10 }
0x11c9   : > { %14682 = vst [vmem:[#allocation56_spill] sm:$0xff] %v12546_v52  ;;  %v5660_v46 = vpack.c.bf16 %v12546_v52, %v12546_v52  ;;  %v4888_v47 = vrot.slane %v12546_v52, %v14685_v29  ;;  %v5089_v24 = vcombine.high %v12546_v52, %v12546_v52 }
0x11cb   : > { %10267 = vmatmul.mubr.msk.bf16.vlgmr.msra.gmra.mxu1 %vm1360_vm6, %v5660_v46 }
0x11cc   : > { %10282 = vmatprep.mubr.msk.bf16.mxu1 %vm10816_vm4, %v14629_v7  ;;  %10279 = vmatpush3.bf16.msra.mxu1 %v10529_v31 }
0x11cd   : > { %10280 = vmatprep.subr.bf16.mxu1 %v14629_v7 }
0x128b   : > { %v5702_v1 = vpop.f32.mrf.mxu1 }
0x128c   : > { %v5703_v42 = vadd.f32 %v12555_v58, %v5702_v1  ;;  %v12575_v1 = vld [vmem:[%s14605_s9] ss:$0 sm:$0xff] }
0x128d   : > { %v10268_v13 = vpop.f32.mrf.mxu1  ;;  %14686 = vst [vmem:[#allocation58_spill] sm:$0xff] %v12575_v1 }
0x128e   : > { %v5708_v15 = vsel %vm1078_vm7, %v5703_v42, 0.0  ;;  %v5711_v56 = vmul.f32 %v5703_v42, %v5703_v42  ;;  %v5658_v13 = vmul.f32 %v12575_v1, %v5657_v62 }
0x128f   : > { %v5705_v53 = vpop.f32.mrf.mxu1  ;;  %5709 = vadd.xlane.f32.xlu0 %v5708_v15 }
0x1290   : > { %v5712_v50 = vsel %vm1078_vm7, %v5711_v56, 0.0  ;;  %v12579_v53 = vld [vmem:[%s14607_s17] ss:$0 sm:$0xff] }
0x1291   : > { %5713 = vadd.xlane.f32.xlu1 %v5712_v50  ;;  %v10269_v45 = vpop.f32.mrf.mxu1  ;;  %14687 = vst [vmem:[#allocation59_spill] sm:$0xff] %v12579_v53  ;;  %v5659_v50 = vadd.f32 %v12579_v53, %v5658_v13 }
0x1293   : > { %v5725_v61 = vadd.f32 %v5659_v50, %v5586_v51 }
0x12a2   : > { %4873 = vperm.xlu1 %10465, %v12560_v26  }
0x12a6   : > { %10467 = vset.pattern.permute.xlu1 %v14684_v60 }
0x12a7   : > { %5376 = vperm.xlu1 %10467, %v5346_v3   ;;  %v12583_v3 = vld [vmem:[%s14606_s13] ss:$0 sm:$0xff] }
0x12a8   : > { %14688 = vst [vmem:[#allocation60_spill] sm:$0xff] %v12583_v3 }
0x12ab   : > { %4890 = vbcast.lane.b32.xlu1 %v4888_v47, 256 }
0x1318   : > { %v5710_v55 = vpop.xlane.xlu0 %5709 }
0x1319   : > { %v5715_v5 = vmul.f32 0.010416667, %v5710_v55  ;;  %v10530_v55 = vld [vmem:[%s14604_s8] sm:$0xff]  }
0x131a   : > { %v5714_v40 = vpop.xlane.xlu1 %5713  ;;  %10273 = vmatpush3.bf16.msra.mxu0 %v10530_v55 }
0x131b   : > { %v5717_v63 = vmul.f32 %v5715_v5, %v5715_v5  ;;  %v5716_v10 = vmul.f32 0.010416667, %v5714_v40  ;;  %v5719_v15 = vsub.f32 %v5703_v42, %v5715_v5  ;;  %v10531_v5 = vld [vmem:[%s10885_s19] sm:$0xff]   ;;  %10286 = vmatprep.subr.bf16.mxu0 %v14629_v7 }
0x131c   : > { %10281 = vmatpush3.bf16.msra.mxu1 %v10531_v5 }
0x131d   : > { %v5718_v34 = vsub.f32 %v5716_v10, %v5717_v63  ;;  %10292 = vmatprep.subr.bf16.mxu1 %v14629_v7  ;;  %v5217_v63 = vrot.slane %v5201_v12, %v11221_v4  ;;  %v4864_v10 = vsub.f32 1.0, %v12560_v26  ;;  %v4881_v12 = vrot.slane %v12546_v52, %v11226_v6 }
0x131f   : > { %v5720_v46 = vadd.f32 1e-05, %v5718_v34  ;;  %v5251_v34 = vsub.f32 1.0, %v5217_v63  ;;  %v5342_v62 = vrot.slane %v5217_v63, %v11226_v6  ;;  %v5239_v55 = vcombine.high %v5217_v63, %v5217_v63 }
0x1320   : > { %v5241_v63 = vcombine.high %v12565_v33, %v12565_v33 }
0x1321   : > { %10608 = vrsqrt.f32 %v5720_v46  ;;  %v5270_v46 = vrot.slane %v5251_v34, %v11226_v6  ;;  %v5253_v34 = vsub.f32 1.0, %v5239_v55 }
0x132e   : > { %v10609_v56 = vpop.eup %10608 }
0x132f   : > { %v5722_v45 = vmul.f32 %v10609_v56, %v5719_v15 }
0x1331   : > { %v5723_v47 = vmul.f32 %v12583_v3, %v5722_v45  ;;  %v14690_v45 = vld [vmem:[#allocation35_spill] sm:$0xff] }
0x1333   : > { %v5724_v42 = vadd.f32 %v12587_v23, %v5723_v47 }
0x1335   : > { %v5726_v18 = vadd.f32 %v5725_v61, %v5724_v42 }
0x1337   : > { %v10043_v48 = vmul.f32 -1.442695, %v5726_v18 }
0x1339   : > { %10610 = vpow2.f32 %v10043_v48  ;;  %v4874_v48 = vpop.permute.xlu1 %4873 }
0x1346   : > { %v10611_v57 = vpop.eup %10610 }
0x1347   : > { %v5730_v54 = vadd.f32 1.0, %v10611_v57 }
0x1349   : > { %10612 = vrcp.f32 %v5730_v54  ;;  %v4876_v54 = vmul.f32 %v4874_v48, %v14681_v36  ;;  %v5278_v36 = vrot.slane %v5253_v34, %v11226_v6 }
0x134a   : > { %10614 = vtanh.f32 %v12443_v32 }
0x1356   : > { %v10613_v40 = vpop.eup %10612 }
0x1357   : > { %5736 = vrot.lane.b32.xlu0 %v10613_v40, %s14618_s21  ;;  %v5733_v15 = vsub.f32 1.0, %v10613_v40  ;;  %v10615_v26 = vpop.eup %10614 }
0x1359   : > { %v5734_v51 = vmul.f32 %v5733_v15, %v14690_v45  ;;  %v5354_v15 = vrot.slane %v5241_v63, %v11226_v6 }
0x135b   : > { %5741 = vrot.lane.b32.xlu0 %v5726_v18, %s14619_s29 }
0x135f   : > { %4867 = vperm.xlu0 %10464, %v4864_v10  }
0x1363   : > { %10466 = vset.pattern.permute.xlu0 %v14684_v60 }
0x1364   : > { %5300 = vperm.xlu0 %10466, %v5270_v46   ;;  %v5350_v46 = vrot.slane %v5239_v55, %v11226_v6 }
0x1368   : > { %5304 = vperm.xlu0 %10466, %v5274_v59   ;;  %v14694_v59 = vld [vmem:[#allocation43_spill] sm:$0xff] }
0x1369   : > { %v4895_v32 = vrot.slane %v12546_v52, %v14694_v59 }
0x136c   : > { %5372 = vperm.xlu0 %10466, %v5342_v62  }
0x1370   : > { %4883 = vbcast.lane.b32.xlu0 %v4881_v12, 256  ;;  %v5254_v12 = vsub.f32 1.0, %v5241_v63  ;;  %v14697_v63 = vld [vmem:[#allocation46_spill] sm:$0xff] }
0x1372   : > { %v5282_v33 = vrot.slane %v5254_v12, %v11226_v6 }
0x13c9   : > { %v5737_v13 = vpop.permute.xlu0 %5736 }
0x13ca   : > { %v5739_v56 = vmul.f32 %v10613_v40, %v5737_v13  ;;  %v5208_v13 = vrot.slane %v5194_v41, %v11221_v4 }
0x13cd   : > { %v5742_v50 = vpop.permute.xlu0 %5741 }
0x13ce   : > { %v5744_v47 = vmul.f32 %v5742_v50, %v5739_v56  ;;  %v5224_v56 = vrot.slane %v5208_v13, %v11221_v4  ;;  %v14695_v50 = vld [vmem:[#allocation44_spill] sm:$0xff] }
0x13d0   : > { %v12610_v61 = vadd.f32 %v5744_v47, %v5734_v51  ;;  %v4902_v51 = vrot.slane %v12546_v52, %v14695_v50  ;;  %v5255_v47 = vsub.f32 1.0, %v5224_v56  ;;  %v5358_v48 = vrot.slane %v5224_v56, %v11226_v6 }
0x13d1   : > { %v5240_v12 = vcombine.high %v5224_v56, %v5224_v56  ;;  %v14700_v56 = vld [vmem:[#allocation48_spill] sm:$0xff] }
0x13d2   : > { %14691 = vst [vmem:[#allocation50_spill] sm:$0xff] %v12610_v61  ;;  %v5746_v42 = vmax.f32 %v12610_v61, 0.0 }
0x13d4   : > { %v5747_v18 = vpack.c.bf16 %v5746_v42, %v5746_v42  ;;  %10048 = vst.msk [vmem:[%s11057_s11 + $0x20] sm:$0xff] %vm1279_vm5, %v5746_v42  ;;  %v5210_v42 = vcombine.high %v5208_v13, %v5208_v13 }
0x13d6   : > { %10275 = vmatmul.mubr.msk.bf16.vlgmr.msra.gmra.mxu0 %vm1279_vm5, %v5747_v18  ;;  %10283 = vmatmul.mubr.msk.bf16.vlgmr.msra.gmra.mxu1 %vm1279_vm5, %v5747_v18  ;;  %v5435_v18 = vrot.slane %v10615_v26, %v11221_v4 }
0x13d7   : > { %10288 = vmatprep.mubr.msk.bf16.mxu0 %vm10816_vm4, %v14629_v7  ;;  %10296 = vmatprep.mubr.msk.bf16.mxu1 %vm10816_vm4, %v14629_v7 }
0x13da   : > { %v4868_v57 = vpop.permute.xlu0 %4867 }
0x13db   : > { %v4870_v31 = vmul.f32 %v4868_v57, %v14692_v38  ;;  %v5286_v57 = vrot.slane %v5255_v47, %v11226_v6  ;;  %v5443_v38 = vcombine.high %v5435_v18, %v5435_v18  ;;  %v5257_v47 = vsub.f32 1.0, %v5240_v12 }
0x13dd   : > { %v12623_v5 = vadd.f32 %v4876_v54, %v4870_v31  ;;  %v5238_v54 = vrot.slane %v5210_v42, %v11221_v4  ;;  %v14696_v31 = vld [vmem:[#allocation45_spill] sm:$0xff]  ;;  %v5465_v34 = vrot.slane %v5443_v38, %v11221_v4  ;;  %v5428_v42 = vcombine.high %v10615_v26, %v10615_v26 }
0x13df   : > { %14693 = vst [vmem:[#allocation37_spill] sm:$0xff] %v12623_v5  ;;  %v5042_v40 = vrot.slane %v12623_v5, %v14685_v29  ;;  %v5035_v10 = vrot.slane %v12623_v5, %v11226_v6  ;;  %v5049_v62 = vrot.slane %v12623_v5, %v14694_v59  ;;  %v5056_v45 = vrot.slane %v12623_v5, %v14695_v50 }
0x13e0   : > { %v5063_v55 = vrot.slane %v12623_v5, %v14696_v31  ;;  %v5486_v41 = vmul.f32 %v5465_v34, %v14697_v63  ;;  %v5242_v38 = vcombine.high %v5238_v54, %v5238_v54 }
0x13e1   : > { %5044 = vbcast.lane.b32.xlu1 %v5042_v40, 256  ;;  %5037 = vbcast.lane.b32.xlu0 %v5035_v10, 256  ;;  %v4909_v40 = vrot.slane %v12546_v52, %v14696_v31  ;;  %v5256_v10 = vsub.f32 1.0, %v5238_v54 }
0x13e2   : > { %v5508_v13 = vrot.slane %v5486_v41, %v11226_v6 }
0x13e5   : > { %5380 = vperm.xlu1 %10467, %v5350_v46   ;;  %5308 = vperm.xlu0 %10466, %v5278_v36   ;;  %v5362_v46 = vrot.slane %v5238_v54, %v11226_v6  ;;  %v5290_v36 = vrot.slane %v5256_v10, %v11226_v6  ;;  %v5370_v10 = vrot.slane %v5242_v38, %v11226_v6 }
0x13e9   : > { %5051 = vbcast.lane.b32.xlu1 %v5049_v62, 256  ;;  %4897 = vbcast.lane.b32.xlu0 %v4895_v32, 256  ;;  %v14698_v62 = vld [vmem:[#allocation47_spill] sm:$0xff] }
0x13ea   : > { %v5070_v32 = vrot.slane %v12623_v5, %v14698_v62 }
0x13ed   : > { %5384 = vperm.xlu1 %10467, %v5354_v15   ;;  %5312 = vperm.xlu0 %10466, %v5282_v33   ;;  %v14699_v15 = vmov 2   ;;  %v5451_v33 = vrot.slane %v5435_v18, %v11221_v4  ;;  %v5442_v18 = vrot.slane %v5428_v42, %v11221_v4 }
0x13ef   : > { %v5485_v26 = vmul.f32 %v5451_v33, %v14697_v63  ;;  %v5458_v41 = vrot.slane %v5442_v18, %v11221_v4 }
0x13f1   : > { %5058 = vbcast.lane.b32.xlu1 %v5056_v45, 256  ;;  %4904 = vbcast.lane.b32.xlu0 %v4902_v51, 256  ;;  %v5366_v45 = vrot.slane %v5240_v12, %v11226_v6  ;;  %v4916_v51 = vrot.slane %v12546_v52, %v14698_v62  ;;  %v5504_v54 = vrot.slane %v5485_v26, %v11226_v6 }
0x13f2   : > { %v4923_v12 = vrot.slane %v12546_v52, %v14700_v56  ;;  %v5474_v26 = vcombine.high %v5458_v41, %v5458_v41 }
0x13f5   : > { %5388 = vperm.xlu1 %10467, %v5358_v48   ;;  %5316 = vperm.xlu0 %10466, %v5286_v57   ;;  %v5473_v48 = vcombine.high %v5451_v33, %v5451_v33  ;;  %v5077_v57 = vrot.slane %v12623_v5, %v14700_v56  ;;  %v5475_v33 = vcombine.high %v5465_v34, %v5465_v34 }
0x13f9   : > { %5065 = vbcast.lane.b32.xlu1 %v5063_v55, 256  ;;  %4911 = vbcast.lane.b32.xlu0 %v4909_v40, 256  ;;  %v5294_v55 = vrot.slane %v5257_v47, %v11226_v6  ;;  %v5487_v40 = vmul.f32 %v5473_v48, %v14697_v63  ;;  %v5489_v47 = vmul.f32 %v5458_v41, %v14697_v63 }
0x13fd   : > { %5392 = vperm.xlu1 %10467, %v5362_v46   ;;  %5320 = vperm.xlu0 %10466, %v5290_v36   ;;  %v5444_v46 = vcombine.high %v5442_v18, %v5442_v18  ;;  %v5512_v36 = vrot.slane %v5487_v40, %v11226_v6 }
0x1401   : > { %10468 = vset.pattern.permute.xlu1 %v14699_v15  ;;  %5072 = vbcast.lane.b32.xlu0 %v5070_v32, 256  ;;  %v5472_v32 = vrot.slane %v5444_v46, %v11221_v4 }
0x1402   : > { %5538 = vperm.xlu1 %10468, %v5508_v13   ;;  %v5258_v13 = vsub.f32 1.0, %v5242_v38 }
0x1403   : > { %v5476_v42 = vcombine.high %v5472_v32, %v5472_v32 }
0x1404   : > { %v5298_v48 = vrot.slane %v5258_v13, %v11226_v6  ;;  %v12703_v13 = vpop.permute.xlu0 %5300 }
0x1405   : > { %5396 = vperm.xlu0 %10466, %v5366_v45   ;;  %v14701_v45 = vld [vmem:[#allocation49_spill] sm:$0xff]  ;;  %v5492_v38 = vmul.f32 %v5476_v42, %v14697_v63 }
0x1406   : > { %4918 = vbcast.lane.b32.xlu1 %v4916_v51, 256  ;;  %v4930_v51 = vrot.slane %v12546_v52, %v14701_v45  ;;  %v5084_v40 = vrot.slane %v12623_v5, %v14701_v45 }
0x1407   : > { %10469 = vset.pattern.permute.xlu1 %v14684_v60  ;;  %v5532_v18 = vrot.slane %v5492_v38, %v11226_v6  ;;  %v4942_v38 = vrot.slane %v12623_v5, %v11221_v4 }
0x1409   : > { %5079 = vbcast.lane.b32.xlu0 %v5077_v57, 256  ;;  %v5488_v57 = vmul.f32 %v5475_v33, %v14697_v63  ;;  %v5305_v33 = vpop.permute.xlu0 %5304  ;;  %v4958_v61 = vrot.slane %v4942_v38, %v11221_v4 }
0x140a   : > { %5324 = vperm.xlu1 %10469, %v5294_v55   ;;  %v5520_v55 = vrot.slane %v5489_v47, %v11226_v6 }
0x140b   : > { %v5516_v34 = vrot.slane %v5488_v57, %v11226_v6  ;;  %v4980_v3 = vcombine.high %v4958_v61, %v4958_v61 }
0x140d   : > { %5400 = vperm.xlu0 %10466, %v5370_v10   ;;  %v5490_v10 = vmul.f32 %v5472_v32, %v14697_v63  ;;  %v12705_v47 = vpop.permute.xlu0 %5372 }
0x140e   : > { %10470 = vset.pattern.permute.xlu1 %v14699_v15 }
0x140f   : > { %5542 = vperm.xlu1 %10470, %v5512_v36   ;;  %v5524_v46 = vrot.slane %v5490_v10, %v11226_v6  ;;  %v5491_v36 = vmul.f32 %v5474_v26, %v14697_v63  ;;  %v4950_v10 = vcombine.high %v4942_v38, %v4942_v38 }
0x1411   : > { %10472 = vset.pattern.permute.xlu0 %v14699_v15  ;;  %v4884_v32 = vpop.permute.xlu0 %4883 }
0x1412   : > { %5534 = vperm.xlu0 %10472, %v5504_v54   ;;  %v14702_v54 = vmov 0  }
0x1413   : > { %4925 = vbcast.lane.b32.xlu1 %v4923_v12, 256  ;;  %v5528_v12 = vrot.slane %v5491_v36, %v11226_v6 }
0x1414   : > { %10471 = vset.pattern.permute.xlu1 %v14684_v60 }
0x1416   : > { %4932 = vbcast.lane.b32.xlu0 %v4930_v51, 256  ;;  %v5377_v51 = vpop.permute.xlu1 %5376 }
0x1417   : > { %5328 = vperm.xlu1 %10471, %v5298_v48  }
0x141a   : > { %5550 = vperm.xlu0 %10472, %v5520_v55   ;;  %v4891_v41 = vpop.permute.xlu1 %4890 }
0x141b   : > { %10473 = vset.pattern.permute.xlu1 %v14699_v15 }
0x141c   : > { %5546 = vperm.xlu1 %10473, %v5516_v34   ;;  %v5096_v34 = vrot.slane %v12546_v52, %v11221_v4 }
0x141e   : > { %5562 = vperm.xlu0 %10472, %v5532_v18   ;;  %v5104_v26 = vcombine.high %v5096_v34, %v5096_v34 }
0x1420   : > { %5086 = vbcast.lane.b32.xlu1 %v5084_v40, 256 }
0x1422   : > { %10474 = vset.pattern.permute.xlu0 %v14702_v54  ;;  %v4972_v54 = vrot.slane %v4950_v10, %v11221_v4 }
0x1424   : > { %5554 = vperm.xlu1 %10473, %v5524_v46   ;;  %v4991_v15 = vrot.slane %v4972_v54, %v11226_v6 }
0x1426   : > { %v5025_v59 = vmul.f32 %v4991_v15, %v4891_v41  ;;  %v4935_v15 = vcombine.high %v12623_v5, %v12623_v5 }
0x1428   : > { %5558 = vperm.xlu1 %10473, %v5528_v12   ;;  %v5126_v12 = vrot.slane %v5104_v26, %v11221_v4  ;;  %v5112_v26 = vrot.slane %v5096_v34, %v11221_v4  ;;  %v4949_v5 = vrot.slane %v4935_v15, %v11221_v4 }
0x142a   : > { %v5145_v56 = vrot.slane %v5126_v12, %v11226_v6  ;;  %v5134_v23 = vcombine.high %v5112_v26, %v5112_v26  ;;  %v4965_v52 = vrot.slane %v4949_v5, %v11221_v4  ;;  %v5136_v15 = vcombine.high %v5126_v12, %v5126_v12 }
0x142c   : > { %10476 = vset.pattern.permute.xlu1 %v14684_v60  ;;  %v5149_v41 = vrot.slane %v5134_v23, %v11226_v6 }
0x1453   : > { %v5045_v42 = vpop.permute.xlu1 %5044  ;;  %v5038_v48 = vpop.permute.xlu0 %5037 }
0x1454   : > { %v5179_v63 = vmul.f32 %v5145_v56, %v5045_v42  ;;  %v14703_v42 = vld [vmem:[#allocation53_spill] sm:$0xff] }
0x1455   : > { %v5332_v39 = vmul.f32 %v5305_v33, %v14703_v42  ;;  %v5103_v42 = vrot.slane %v5089_v24, %v11221_v4 }
0x1456   : > { %v5187_v29 = vsub.f32 %v5025_v59, %v5179_v63  ;;  %v4995_v59 = vrot.slane %v4980_v3, %v11226_v6  ;;  %v4987_v3 = vrot.slane %v4958_v61, %v11226_v6 }
0x1458   : > { %v5404_v58 = vmul.f32 %v5377_v51, %v5187_v29  ;;  %v5420_v29 = vmul.f32 %v12357_v14, %v11553_v21  ;;  %v12749_v51 = vrot.slane %v5112_v26, %v11226_v6  ;;  %v5119_v26 = vrot.slane %v5103_v42, %v11221_v4 }
0x145a   : > { %v12744_v38 = vadd.f32 %v5404_v58, %v5332_v39  ;;  %v5178_v39 = vmul.f32 %v12749_v51, %v5038_v48 }
0x145c   : > { %14704 = vst [vmem:[#allocation51_spill] sm:$0xff] %v12744_v38 }
0x1460   : > { %v5381_v57 = vpop.permute.xlu1 %5380  ;;  %v12707_v55 = vpop.permute.xlu0 %5308 }
0x1464   : > { %v5052_v18 = vpop.permute.xlu1 %5051  ;;  %v4898_v40 = vpop.permute.xlu0 %4897 }
0x1465   : > { %v5180_v34 = vmul.f32 %v5149_v41, %v5052_v18  ;;  %v5026_v27 = vmul.f32 %v4995_v59, %v4898_v40  ;;  %v5024_v59 = vmul.f32 %v4987_v3, %v4884_v32  ;;  %v5003_v32 = vrot.slane %v4965_v52, %v11226_v6 }
0x1467   : > { %v5188_v40 = vsub.f32 %v5026_v27, %v5180_v34  ;;  %v5186_v0 = vsub.f32 %v5024_v59, %v5178_v39  ;;  %v12769_v27 = vrot.slane %v5119_v26, %v11226_v6  ;;  %v5333_v34 = vmul.f32 %v12707_v55, %v12383_v25 }
0x1468   : > { %v12713_v46 = vpop.permute.xlu1 %5384  ;;  %v12715_v36 = vpop.permute.xlu0 %5312 }
0x146c   : > { %v12719_v45 = vpop.permute.xlu1 %5058  ;;  %v12721_v62 = vpop.permute.xlu0 %4904 }
0x1470   : > { %v12725_v31 = vpop.permute.xlu1 %5388  ;;  %v12727_v50 = vpop.permute.xlu0 %5316 }
0x1474   : > { %v5066_v10 = vpop.permute.xlu1 %5065  ;;  %v4912_v60 = vpop.permute.xlu0 %4911 }
0x1475   : > { %v5028_v3 = vmul.f32 %v5003_v32, %v4912_v60 }
0x1478   : > { %v12731_v53 = vpop.permute.xlu1 %5392  ;;  %v12733_v1 = vpop.permute.xlu0 %5320 }
0x147c   : > { %v12742_v63 = vpop.permute.xlu0 %5072 }
0x147d   : > { %v5539_v33 = vpop.permute.xlu1 %5538 }
0x147e   : > { %v5566_v23 = vmul.f32 %v5539_v33, %v12744_v38  ;;  %v4982_v33 = vcombine.high %v4972_v54, %v4972_v54  ;;  %v4951_v54 = vcombine.high %v4949_v5, %v4949_v5 }
0x1480   : > { %v12756_v58 = vadd.f32 %v5566_v23, %v5420_v29  ;;  %v12758_v18 = vpop.permute.xlu0 %5396  ;;  %v5405_v29 = vmul.f32 %v5381_v57, %v5188_v40  ;;  %v4999_v12 = vrot.slane %v4982_v33, %v11226_v6  ;;  %v5182_v23 = vmul.f32 %v12769_v27, %v5066_v10 }
0x1481   : > { %v4919_v14 = vpop.permute.xlu1 %4918  ;;  %v5403_v57 = vmul.f32 %v12705_v47, %v5186_v0  ;;  %v5105_v40 = vcombine.high %v5103_v42, %v5103_v42  ;;  %v5421_v10 = vmul.f32 %v12397_v35, %v11553_v21  ;;  %v4979_v0 = vrot.slane %v4951_v54, %v11221_v4 }
0x1482   : > { %v5816_v24 = vmul.f32 %v12756_v58, %v5145_v56  ;;  %v12775_v56 = vrot.slane %v5136_v15, %v11226_v6  ;;  %v12782_v59 = vadd.f32 %v5405_v29, %v5333_v34  ;;  %v5027_v5 = vmul.f32 %v4999_v12, %v12721_v62 }
0x1483   : > { %v5190_v15 = vsub.f32 %v5028_v3, %v5182_v23  ;;  %v5133_v42 = vrot.slane %v5105_v40, %v11221_v4  ;;  %v5419_v62 = vmul.f32 %v12404_v37, %v11553_v21  ;;  %v4981_v35 = vcombine.high %v4965_v52, %v4965_v52 }
0x1484   : > { %v12763_v38 = vpop.permute.xlu0 %5079  ;;  %v5826_v61 = vsel %vm1360_vm6, %v5816_v24, 0.0  ;;  %v5331_v24 = vmul.f32 %v12703_v13, %v12394_v20  ;;  %v5181_v25 = vmul.f32 %v12775_v56, %v12719_v45  ;;  %v5007_v32 = vrot.slane %v4979_v0, %v11226_v6 }
0x1485   : > { %v12766_v48 = vpop.permute.xlu1 %5324  ;;  %5827 = vadd.xlane.f32.xlu0 %v5826_v61  ;;  %v5407_v54 = vmul.f32 %v12725_v31, %v5190_v15  ;;  %v12807_v12 = vrot.slane %v5133_v42, %v11226_v6  ;;  %v5135_v23 = vcombine.high %v5119_v26, %v5119_v26  ;;  %v5335_v37 = vmul.f32 %v12727_v50, %v12421_v30 }
0x1486   : > { %v12793_v47 = vadd.f32 %v5403_v57, %v5331_v24  ;;  %v5189_v13 = vsub.f32 %v5027_v5, %v5181_v25  ;;  %v5029_v40 = vmul.f32 %v5007_v32, %v4919_v14  ;;  %v5011_v31 = vrot.slane %v4981_v35, %v11226_v6 }
0x1487   : > { %v5334_v25 = vmul.f32 %v12715_v36, %v12432_v22  ;;  %v5183_v26 = vmul.f32 %v12807_v12, %v12742_v63  ;;  %v12821_v30 = vadd.f32 %v5407_v54, %v5335_v37  ;;  %v12824_v50 = vrot.slane %v5135_v23, %v11226_v6 }
0x1488   : > { %v12779_v39 = vpop.permute.xlu0 %5400  ;;  %v5406_v24 = vmul.f32 %v12713_v46, %v5189_v13  ;;  %v4983_v14 = vcombine.high %v4979_v0, %v4979_v0  ;;  %v5423_v46 = vmul.f32 %v12437_v11, %v11553_v21 }
0x148a   : > { %v5543_v55 = vpop.permute.xlu1 %5542  ;;  %v12831_v15 = vadd.f32 %v5406_v24, %v5334_v25 }
0x148b   : > { %v5567_v60 = vmul.f32 %v5543_v55, %v12782_v59  ;;  %v5137_v55 = vcombine.high %v5133_v42, %v5133_v42  ;;  %v5422_v42 = vmul.f32 %v12446_v2, %v11553_v21 }
0x148d   : > { %v12796_v33 = vadd.f32 %v5567_v60, %v5421_v10  ;;  %v5535_v20 = vpop.permute.xlu0 %5534  ;;  %v5191_v10 = vsub.f32 %v5029_v40, %v5183_v26  ;;  %v5169_v54 = vrot.slane %v5137_v55, %v11226_v6  ;;  %v5337_v55 = vmul.f32 %v12766_v48, %v12474_v28 }
0x148e   : > { %v5565_v45 = vmul.f32 %v5535_v20, %v12793_v47  ;;  %v4926_v61 = vpop.permute.xlu1 %4925  ;;  %v12834_v20 = vld [vmem:[%s14611_s16] ss:$0 sm:$0xff]  ;;  %v5426_v28 = vmul.f32 %v12487_v9, %v11553_v21 }
0x148f   : > { %v5817_v29 = vmul.f32 %v12796_v33, %v5149_v41  ;;  %v5030_v22 = vmul.f32 %v5011_v31, %v4926_v61  ;;  %v5408_v2 = vmul.f32 %v12731_v53, %v5191_v10 }
0x1490   : > { %v12803_v34 = vadd.f32 %v5565_v45, %v5419_v62  ;;  %v5184_v62 = vmul.f32 %v12824_v50, %v12763_v38 }
0x1491   : > { %v4933_v3 = vpop.permute.xlu0 %4932  ;;  %v5829_v57 = vsel %vm1360_vm6, %v5817_v29, 0.0  ;;  %v5015_v29 = vrot.slane %v4983_v14, %v11226_v6 }
0x1492   : > { %v5329_v52 = vpop.permute.xlu1 %5328  ;;  %5830 = vadd.xlane.f32.xlu0 %v5829_v57  ;;  %v5815_v41 = vmul.f32 %v12803_v34, %v12749_v51  ;;  %v5192_v23 = vsub.f32 %v5030_v22, %v5184_v62 }
0x1493   : > { %v5031_v31 = vmul.f32 %v5015_v29, %v4933_v3  ;;  %v5338_v10 = vmul.f32 %v5329_v52, %v12470_v8 }
0x1494   : > { %v5823_v5 = vsel %vm1360_vm6, %v5815_v41, 0.0  ;;  %v5336_v41 = vmul.f32 %v12733_v1, %v12460_v44  ;;  %v5409_v44 = vmul.f32 %v12758_v18, %v5192_v23  ;;  %v5424_v1 = vmul.f32 %v12472_v17, %v11553_v21 }
0x1495   : > { %5824 = vadd.xlane.f32.xlu1 %v5823_v5  ;;  %v5551_v51 = vpop.permute.xlu0 %5550  ;;  %v5425_v17 = vmul.f32 %v12484_v49, %v11553_v21 }
0x1496   : > { %v5569_v36 = vmul.f32 %v5551_v51, %v12821_v30  ;;  %v5801_v60 = vpop.f32.mrf.mxu0  ;;  %v12829_v63 = vpop.f32.mrf.mxu1  ;;  %v12861_v51 = vadd.f32 %v5408_v2, %v5336_v41 }
0x1497   : > { %v5802_v13 = vadd.f32 %v12834_v20, %v5801_v60  ;;  %v5547_v0 = vpop.permute.xlu1 %5546 }
0x1498   : > { %v12839_v11 = vadd.f32 %v5569_v36, %v5423_v46  ;;  %v5568_v45 = vmul.f32 %v5547_v0, %v12831_v15  ;;  %v10276_v61 = vpop.f32.mrf.mxu0  ;;  %v10284_v35 = vpop.f32.mrf.mxu1 }
0x1499   : > { %v12845_v32 = vmax.f32 %v5802_v13, 0.0  ;;  %v12876_v13 = vadd.f32 %v5409_v44, %v5337_v55  ;;  %v5563_v18 = vpop.permute.xlu0 %5562 }
0x149a   : > { %v12848_v57 = vadd.f32 %v5568_v45, %v5422_v42  ;;  %v5804_v38 = vpop.f32.mrf.mxu0  ;;  %v6684_v37 = vpop.f32.mrf.mxu1  ;;  %v5819_v40 = vmul.f32 %v12839_v11, %v12769_v27 }
0x149b   : > { %10049 = vst.msk [vmem:[%s11055_s23 + $0x20] sm:$0xff] %vm2451_vm15, %v12845_v32  ;;  %v5087_v24 = vpop.permute.xlu1 %5086 }
0x149c   : > { %v5185_v25 = vmul.f32 %v5169_v54, %v5087_v24  ;;  %v10277_v26 = vpop.f32.mrf.mxu0  ;;  %v10285_v5 = vpop.f32.mrf.mxu1  ;;  %v5835_v14 = vsel %vm1360_vm6, %v5819_v40, 0.0  ;;  %v5818_v46 = vmul.f32 %v12848_v57, %v12775_v56 }
0x149d   : > { %5836 = vadd.xlane.f32.xlu1 %v5835_v14 }
0x149e   : > { %v5193_v27 = vsub.f32 %v5031_v31, %v5185_v25  ;;  %v5832_v53 = vsel %vm1360_vm6, %v5818_v46, 0.0 }
0x149f   : > { %v5555_v3 = vpop.permute.xlu1 %5554  ;;  %5833 = vadd.xlane.f32.xlu0 %v5832_v53 }
0x14a0   : > { %v5410_v56 = vmul.f32 %v12779_v39, %v5193_v27  ;;  %v5570_v22 = vmul.f32 %v5555_v3, %v12861_v51 }
0x14a2   : > { %v12872_v36 = vadd.f32 %v5410_v56, %v5338_v10  ;;  %v12874_v60 = vadd.f32 %v5570_v22, %v5424_v1  ;;  %v14705_v10 = vld [vmem:[#allocation39_spill] sm:$0xff] }
0x14a3   : > { %v5559_v0 = vpop.permute.xlu1 %5558  ;;  %v1067_v56 = vadd.f32 %v12511_v43, %v14705_v10 }
0x14a4   : > { %v5571_v62 = vmul.f32 %v5559_v0, %v12876_v13  ;;  %v5820_v8 = vmul.f32 %v12874_v60, %v12807_v12  ;;  %v5572_v48 = vmul.f32 %v5563_v18, %v12872_v36  ;;  %v12918_v0 = vadd.f32 %v12518_v19, %v12829_v63 }
0x14a5   : > { %v1094_v18 = vsel %vm1078_vm7, %v1067_v56, 0.0 }
0x14a6   : > { %v12886_v39 = vadd.f32 %v5571_v62, %v5425_v17  ;;  %v5838_v52 = vsel %vm1360_vm6, %v5820_v8, 0.0  ;;  %v12889_v42 = vadd.f32 %v5572_v48, %v5426_v28  ;;  %v1108_v17 = vmul.f32 %v1067_v56, %v1067_v56  ;;  %v6705_v48 = vld [vmem:[%s10895_s30] sm:$0xf] }
0x14a7   : > { %5839 = vadd.xlane.f32.xlu0 %v5838_v52  ;;  %v6687_v8 = vsel %vm1078_vm7, %v12918_v0, 0.0  ;;  %v6690_v43 = vmul.f32 %v12918_v0, %v12918_v0  ;;  %v6710_v52 = vsel %vm1364_vm3, %v6705_v48, 0 }
0x14a8   : > { %v5821_v49 = vmul.f32 %v12886_v39, %v12824_v50  ;;  %v5822_v45 = vmul.f32 %v12889_v42, %v5169_v54  ;;  %v1126_v62 = vsel %vm1078_vm7, %v1108_v17, 0.0  ;;  %10287 = vmatpush3.bf16.msra.mxu0 %v6710_v52 }
0x14a9   : > { %v6691_v28 = vsel %vm1078_vm7, %v6690_v43, 0.0  ;;  %10300 = vmatprep.subr.bf16.mxu0 %v14629_v7 }
0x14aa   : > { %v5841_v61 = vsel %vm1360_vm6, %v5821_v49, 0.0  ;;  %v5844_v12 = vsel %vm1360_vm6, %v5822_v45, 0.0  ;;  %v14706_v49 = vld [vmem:[#allocation40_spill] sm:$0xff] }
0x14ab   : > { %5842 = vadd.xlane.f32.xlu1 %v5841_v61  ;;  %5845 = vadd.xlane.f32.xlu0 %v5844_v12 }
0x150e   : > { %v5828_v9 = vpop.xlane.xlu0 %5827 }
0x150f   : > { %v5862_v37 = vrot.slane %v5828_v9, %v11285_v16 }
0x151b   : > { %v5831_v35 = vpop.xlane.xlu0 %5830 }
0x151c   : > { %v5866_v54 = vrot.slane %v5831_v35, %v11285_v16 }
0x151e   : > { %v5825_v29 = vpop.xlane.xlu1 %5824 }
0x151f   : > { %v5858_v23 = vrot.slane %v5825_v29, %v11285_v16 }
0x1521   : > { %v5887_v40 = vsel %vm1698_vm8, %v5862_v37, %v5858_v23 }
0x1522   : > { %v5888_v24 = vsel %vm1700_vm9, %v5866_v54, %v5887_v40  ;;  %v14707_v54 = vld [vmem:[#allocation54_spill] sm:$0xff] }
0x1526   : > { %v5837_v2 = vpop.xlane.xlu1 %5836 }
0x1527   : > { %v5874_v26 = vrot.slane %v5837_v2, %v11285_v16 }
0x1528   : > { %v5834_v38 = vpop.xlane.xlu0 %5833 }
0x1529   : > { %v5870_v50 = vrot.slane %v5834_v38, %v11285_v16 }
0x152b   : > { %v5889_v31 = vsel %vm1702_vm10, %v5870_v50, %v5888_v24 }
0x152c   : > { %v5890_v46 = vsel %vm1704_vm11, %v5874_v26, %v5889_v31  ;;  %v14709_v31 = vld [vmem:[#allocation41_spill] sm:$0xff] }
0x1530   : > { %v5840_v41 = vpop.xlane.xlu0 %5839 }
0x1531   : > { %v5878_v25 = vrot.slane %v5840_v41, %v11285_v16  ;;  %v14708_v41 = vld [vmem:[#allocation55_spill] sm:$0xff] }
0x1533   : > { %v5891_v44 = vsel %vm1706_vm12, %v5878_v25, %v5890_v46  ;;  %v14710_v25 = vld [vmem:[#allocation56_spill] sm:$0xff] }
0x1534   : > { %v5843_v5 = vpop.xlane.xlu1 %5842  ;;  %v5846_v14 = vpop.xlane.xlu0 %5845  ;;  %v5901_v26 = vmul.f32 %v14710_v25, %v14709_v31 }
0x1535   : > { %v5882_v27 = vrot.slane %v5843_v5, %v11285_v16  ;;  %v5886_v53 = vrot.slane %v5846_v14, %v11285_v16 }
0x1537   : > { %v5892_v1 = vsel %vm1708_vm13, %v5882_v27, %v5891_v44 }
0x1538   : > { %v5893_v3 = vsel %vm1710_vm14, %v5886_v53, %v5892_v1  ;;  %v14712_v53 = vld [vmem:[#allocation57_spill] sm:$0xff] }
0x1539   : > { %v5895_v55 = vadd.f32 %v5893_v3, %v12845_v32 }
0x153b   : > { %v5896_v22 = vsel %vm1714_vm0, %v5895_v55, -inf }
0x153c   : > { %5897 = vmax.xlane.f32.xlu1 %v5896_v22 }
0x1540   : > { %1095 = vadd.xlane.f32.xlu1 %v1094_v18  ;;  %v10047_v18 = vmul.f32 -1.442695, %v12845_v32 }
0x1544   : > { %1127 = vadd.xlane.f32.xlu1 %v1126_v62 }
0x1548   : > { %6688 = vadd.xlane.f32.xlu1 %v6687_v8 }
0x154c   : > { %6692 = vadd.xlane.f32.xlu1 %v6691_v28 }
0x15c5   : > { %v5898_v19 = vpop.xlane.xlu1 %5897 }
0x15c6   : > { %vm5899_vm1 = vcmp.ge.f32.partialorder %v5895_v55, %v5898_v19 }
0x15c7   : > { %v5900_v63 = vsel %vm5899_vm1, %v5895_v55, 0.0 }
0x15c8   : > { %v5902_v45 = vmul.f32 %v5900_v63, %v14706_v49 }
0x15c9   : > { %v1096_v61 = vpop.xlane.xlu1 %1095 }
0x15ca   : > { %v1140_v12 = vmul.f32 0.010416667, %v1096_v61  ;;  %5904 = vrot.lane.b32.xlu0 %v5902_v45, %s14630_s18 }
0x15cc   : > { %v1156_v35 = vmul.f32 %v1140_v12, %v1140_v12  ;;  %v1172_v37 = vsub.f32 %v1067_v56, %v1140_v12 }
0x15cd   : > { %v1128_v9 = vpop.xlane.xlu1 %1127 }
0x15ce   : > { %v1148_v29 = vmul.f32 0.010416667, %v1128_v9 }
0x15d0   : > { %v1164_v23 = vsub.f32 %v1148_v29, %v1156_v35 }
0x15d1   : > { %v6689_v17 = vpop.xlane.xlu1 %6688 }
0x15d2   : > { %v1180_v38 = vadd.f32 1e-05, %v1164_v23  ;;  %v6694_v8 = vmul.f32 0.010416667, %v6689_v17 }
0x15d4   : > { %10616 = vrsqrt.f32 %v1180_v38  ;;  %v6696_v28 = vmul.f32 %v6694_v8, %v6694_v8 }
0x15d5   : > { %10618 = vpow2.f32 %v10047_v18  ;;  %v6693_v62 = vpop.xlane.xlu1 %6692 }
0x15d6   : > { %v6695_v43 = vmul.f32 0.010416667, %v6693_v62 }
0x15d8   : > { %v6697_v48 = vsub.f32 %v6695_v43, %v6696_v28 }
0x15da   : > { %v6699_v19 = vadd.f32 1e-05, %v6697_v48 }
0x15dc   : > { %10620 = vrsqrt.f32 %v6699_v19  ;;  %v10532_v19 = vld [vmem:[%s14604_s8 + $0x8] sm:$0xff]  }
0x15dd   : > { %10293 = vmatpush3.bf16.msra.mxu1 %v10532_v19 }
0x15de   : > { %10294 = vmatprep.subr.bf16.mxu1 %v14629_v7 }
0x15e1   : > { %v10617_v40 = vpop.eup %10616 }
0x15e2   : > { %v1196_v50 = vmul.f32 %v10617_v40, %v1172_v37  ;;  %v10619_v52 = vpop.eup %10618  ;;  %v6698_v37 = vsub.f32 %v12918_v0, %v6694_v8  ;;  %v14716_v0 = vld [vmem:[#allocation61_spill] sm:$0xff] }
0x15e3   : > { %v5811_v63 = vadd.f32 1.0, %v10619_v52 }
0x15e4   : > { %v1210_v2 = vmul.f32 %v14707_v54, %v1196_v50 }
0x15e5   : > { %10622 = vrcp.f32 %v5811_v63  ;;  %v10533_v63 = vld [vmem:[%s10885_s19 + $0x8] sm:$0xff]  }
0x15e6   : > { %v1224_v24 = vadd.f32 %v14708_v41, %v1210_v2  ;;  %v14713_v2 = vld [vmem:[#allocation58_spill] sm:$0xff] }
0x15e8   : > { %1232 = vst.msk [vmem:[#allocation2 + $0x28] sm:$0xff] %vm1078_vm7, %v1224_v24 }
0x15e9   : > { %v10621_v38 = vpop.eup %10620 }
0x15ea   : > { %v6701_v50 = vmul.f32 %v10621_v38, %v6698_v37  ;;  %v14718_v37 = vld [vmem:[#allocation42_spill] sm:$0xff] }
0x15ec   : > { %v6702_v41 = vmul.f32 %v14713_v2, %v6701_v50 }
0x15f2   : > { %v12948_v40 = vpop.eup %10622 }
0x15f3   : > { %v6245_v54 = vrot.slane %v12948_v40, %v11221_v4 }
0x15f5   : > { %v6261_v8 = vrot.slane %v6245_v54, %v11221_v4 }
0x15f7   : > { %v6386_v43 = vrot.slane %v6261_v8, %v11226_v6 }
0x163c   : > { %v5905_v5 = vpop.permute.xlu0 %5904 }
0x163d   : > { %v12936_v14 = vadd.f32 %v5905_v5, %v5901_v26  ;;  %v6253_v26 = vcombine.high %v6245_v54, %v6245_v54 }
0x163f   : > { %14711 = vst [vmem:[#allocation35_spill] sm:$0xff] %v12936_v14  ;;  %v6704_v46 = vpack.c.bf16 %v12936_v14, %v12936_v14  ;;  %v5925_v28 = vrot.slane %v12936_v14, %v11226_v6  ;;  %v5932_v50 = vrot.slane %v12936_v14, %v14718_v37 }
0x1641   : > { %10289 = vmatmul.mubr.msk.bf16.vlgmr.msra.gmra.mxu0 %vm1360_vm6, %v6704_v46  ;;  %v14714_v46 = vld [vmem:[#allocation59_spill] sm:$0xff] }
0x1642   : > { %10304 = vmatprep.mubr.msk.bf16.mxu0 %vm10816_vm4, %v14629_v7  ;;  %10301 = vmatpush3.bf16.msra.mxu0 %v10533_v63 }
0x1643   : > { %10302 = vmatprep.subr.bf16.mxu0 %v14629_v7 }
0x1701   : > { %v6746_v27 = vpop.f32.mrf.mxu0 }
0x1702   : > { %v6747_v44 = vadd.f32 %v14712_v53, %v6746_v27  ;;  %v6703_v27 = vadd.f32 %v14714_v46, %v6702_v41 }
0x1703   : > { %v10290_v1 = vpop.f32.mrf.mxu0 }
0x1704   : > { %v6752_v3 = vsel %vm1078_vm7, %v6747_v44, 0.0  ;;  %v6755_v55 = vmul.f32 %v6747_v44, %v6747_v44  ;;  %v6630_v1 = vld [vmem:[#allocation2 + $0x28] sm:$0xff] }
0x1705   : > { %6753 = vadd.xlane.f32.xlu1 %v6752_v3  ;;  %v6749_v10 = vpop.f32.mrf.mxu0  ;;  %v14715_v3 = vld [vmem:[#allocation60_spill] sm:$0xff] }
0x1706   : > { %v6756_v22 = vsel %vm1078_vm7, %v6755_v55, 0.0  ;;  %v12956_v10 = vrot.slane %v6253_v26, %v11221_v4  ;;  %v14719_v26 = vld [vmem:[#allocation50_spill] sm:$0xff] }
0x1707   : > { %v10291_v56 = vpop.f32.mrf.mxu0 }
0x1708   : > { %v6296_v17 = vsub.f32 1.0, %v12956_v10  ;;  %v6390_v38 = vrot.slane %v12956_v10, %v11226_v6 }
0x1709   : > { %6757 = vadd.xlane.f32.xlu1 %v6756_v22  ;;  %v6769_v22 = vadd.f32 %v6703_v27, %v6630_v1 }
0x170a   : > { %v6318_v62 = vrot.slane %v6296_v17, %v11226_v6 }
0x178e   : > { %v6754_v45 = vpop.xlane.xlu1 %6753 }
0x178f   : > { %v6759_v61 = vmul.f32 0.010416667, %v6754_v45  ;;  %v10534_v45 = vld [vmem:[%s14604_s8] sm:$0xff]  }
0x1790   : > { %10295 = vmatpush3.bf16.msra.mxu1 %v10534_v45 }
0x1791   : > { %v6761_v9 = vmul.f32 %v6759_v61, %v6759_v61  ;;  %v6763_v24 = vsub.f32 %v6747_v44, %v6759_v61  ;;  %v10535_v61 = vld [vmem:[%s10885_s19] sm:$0xff]   ;;  %10308 = vmatprep.subr.bf16.mxu1 %v14629_v7 }
0x1792   : > { %v6758_v12 = vpop.xlane.xlu1 %6757  ;;  %10303 = vmatpush3.bf16.msra.mxu0 %v10535_v61 }
0x1793   : > { %v6760_v35 = vmul.f32 0.010416667, %v6758_v12  ;;  %10314 = vmatprep.subr.bf16.mxu0 %v14629_v7 }
0x1795   : > { %v6762_v29 = vsub.f32 %v6760_v35, %v6761_v9  ;;  %v5908_v9 = vsub.f32 1.0, %v12948_v40  ;;  %v6295_v35 = vsub.f32 1.0, %v6261_v8 }
0x1797   : > { %v6764_v23 = vadd.f32 1e-05, %v6762_v29  ;;  %v6314_v29 = vrot.slane %v6295_v35, %v11226_v6 }
0x1799   : > { %10624 = vrsqrt.f32 %v6764_v23  ;;  %v14717_v23 = vmov 1  }
0x17a6   : > { %v10625_v5 = vpop.eup %10624 }
0x17a7   : > { %v6766_v53 = vmul.f32 %v10625_v5, %v6763_v24 }
0x17a9   : > { %v6767_v55 = vmul.f32 %v14715_v3, %v6766_v53 }
0x17ab   : > { %v6768_v56 = vadd.f32 %v14716_v0, %v6767_v55  ;;  %v14721_v0 = vld [vmem:[#allocation37_spill] sm:$0xff] }
0x17ad   : > { %v6770_v18 = vadd.f32 %v6769_v22, %v6768_v56 }
0x17af   : > { %6785 = vrot.lane.b32.xlu1 %v6770_v18, %s14619_s29  ;;  %v10054_v44 = vmul.f32 -1.442695, %v6770_v18  ;;  %v6283_v18 = vcombine.high %v6261_v8, %v6261_v8  ;;  %v14723_v8 = vld [vmem:[#allocation43_spill] sm:$0xff] }
0x17b0   : > { %v5939_v63 = vrot.slane %v12936_v14, %v14723_v8 }
0x17b1   : > { %10626 = vpow2.f32 %v10054_v44 }
0x17b3   : > { %6348 = vperm.xlu1 %10476, %v6318_v62  }
0x17b7   : > { %6416 = vperm.xlu1 %10476, %v6386_v43   ;;  %v6297_v43 = vsub.f32 1.0, %v6283_v18 }
0x17bb   : > { %5927 = vbcast.lane.b32.xlu1 %v5925_v28, 256  ;;  %v6394_v28 = vrot.slane %v6283_v18, %v11226_v6 }
0x17be   : > { %v10627_v48 = vpop.eup %10626 }
0x17bf   : > { %v6774_v52 = vadd.f32 1.0, %v10627_v48  ;;  %v6322_v48 = vrot.slane %v6297_v43, %v11226_v6 }
0x17c1   : > { %10628 = vrcp.f32 %v6774_v52  ;;  %v6285_v52 = vcombine.high %v12956_v10, %v12956_v10 }
0x17c2   : > { %10630 = vtanh.f32 %v12845_v32  ;;  %v14724_v32 = vld [vmem:[#allocation44_spill] sm:$0xff] }
0x17c3   : > { %v6298_v45 = vsub.f32 1.0, %v6285_v52  ;;  %v6398_v10 = vrot.slane %v6285_v52, %v11226_v6  ;;  %v5946_v35 = vrot.slane %v12936_v14, %v14724_v32  ;;  %v14728_v52 = vld [vmem:[#allocation48_spill] sm:$0xff] }
0x17ce   : > { %v10629_v12 = vpop.eup %10628 }
0x17cf   : > { %6780 = vrot.lane.b32.xlu0 %v10629_v12, %s14618_s21  ;;  %v6777_v54 = vsub.f32 1.0, %v10629_v12 }
0x17d1   : > { %v6778_v5 = vmul.f32 %v6777_v54, %v14719_v26  ;;  %v14725_v26 = vld [vmem:[#allocation45_spill] sm:$0xff] }
0x17d3   : > { %5911 = vperm.xlu0 %10474, %v5908_v9  }
0x17d7   : > { %5917 = vperm.xlu0 %10474, %v12948_v40  }
0x17db   : > { %10475 = vset.pattern.permute.xlu0 %v14717_v23 }
0x17dc   : > { %6344 = vperm.xlu0 %10475, %v6314_v29  }
0x17e0   : > { %6420 = vperm.xlu0 %10475, %v6390_v38  }
0x17e4   : > { %5934 = vbcast.lane.b32.xlu0 %v5932_v50, 256  ;;  %v10631_v50 = vpop.eup %10630 }
0x1821   : > { %v6786_v24 = vpop.permute.xlu1 %6785 }
0x1841   : > { %v6781_v2 = vpop.permute.xlu0 %6780 }
0x1842   : > { %v6783_v41 = vmul.f32 %v10629_v12, %v6781_v2  ;;  %v6326_v12 = vrot.slane %v6298_v45, %v11226_v6 }
0x1844   : > { %v6788_v46 = vmul.f32 %v6786_v24, %v6783_v41  ;;  %v6479_v24 = vrot.slane %v10631_v50, %v11221_v4 }
0x1846   : > { %v12984_v27 = vadd.f32 %v6788_v46, %v6778_v5  ;;  %v5953_v46 = vrot.slane %v12936_v14, %v14725_v26 }
0x1848   : > { %14720 = vst [vmem:[#allocation52_spill] sm:$0xff] %v12984_v27  ;;  %v6790_v53 = vmax.f32 %v12984_v27, 0.0 }
0x184a   : > { %v6791_v1 = vpack.c.bf16 %v6790_v53, %v6790_v53  ;;  %10059 = vst.msk [vmem:[%s11057_s11 + $0x28] sm:$0xff] %vm1279_vm5, %v6790_v53 }
0x184c   : > { %10297 = vmatmul.mubr.msk.bf16.vlgmr.msra.gmra.mxu1 %vm1279_vm5, %v6791_v1  ;;  %10305 = vmatmul.mubr.msk.bf16.vlgmr.msra.gmra.mxu0 %vm1279_vm5, %v6791_v1 }
0x184d   : > { %10310 = vmatprep.mubr.msk.bf16.mxu1 %vm10816_vm4, %v14629_v7  ;;  %10318 = vmatprep.mubr.msk.bf16.mxu0 %vm10816_vm4, %v14629_v7 }
0x184e   : > { %v5912_v3 = vpop.permute.xlu0 %5911 }
0x184f   : > { %v5914_v56 = vmul.f32 %v5912_v3, %v14721_v0  ;;  %v6495_v3 = vrot.slane %v6479_v24, %v11221_v4 }
0x1852   : > { %v5918_v55 = vpop.permute.xlu0 %5917 }
0x1853   : > { %v5920_v22 = vmul.f32 %v5918_v55, %v14710_v25  ;;  %v6238_v25 = vcombine.high %v12948_v40, %v12948_v40 }
0x1855   : > { %v12997_v17 = vadd.f32 %v5920_v22, %v5914_v56  ;;  %v6252_v61 = vrot.slane %v6238_v25, %v11221_v4  ;;  %v14726_v22 = vld [vmem:[#allocation46_spill] sm:$0xff]  ;;  %v5967_v25 = vrot.slane %v12936_v14, %v14728_v52 }
0x1856   : > { %v6529_v18 = vmul.f32 %v6495_v3, %v14726_v22 }
0x1857   : > { %14722 = vst [vmem:[#allocation53_spill] sm:$0xff] %v12997_v17  ;;  %v6086_v44 = vrot.slane %v12997_v17, %v14718_v37  ;;  %v6079_v62 = vrot.slane %v12997_v17, %v11226_v6  ;;  %v6093_v19 = vrot.slane %v12997_v17, %v14723_v8  ;;  %v6268_v40 = vrot.slane %v6252_v61, %v11221_v4 }
0x1858   : > { %v6100_v9 = vrot.slane %v12997_v17, %v14724_v32  ;;  %v6254_v38 = vcombine.high %v6252_v61, %v6252_v61  ;;  %v6107_v5 = vrot.slane %v12997_v17, %v14725_v26  ;;  %v6548_v43 = vrot.slane %v6529_v18, %v11226_v6 }
0x1859   : > { %6088 = vbcast.lane.b32.xlu0 %v6086_v44, 256  ;;  %6081 = vbcast.lane.b32.xlu1 %v6079_v62, 256  ;;  %v6299_v29 = vsub.f32 1.0, %v6268_v40  ;;  %v6402_v54 = vrot.slane %v6268_v40, %v11226_v6  ;;  %v6284_v1 = vcombine.high %v6268_v40, %v6268_v40  ;;  %v6133_v26 = vcombine.high %v12936_v14, %v12936_v14 }
0x185a   : > { %v6282_v41 = vrot.slane %v6254_v38, %v11221_v4  ;;  %v6517_v38 = vcombine.high %v6495_v3, %v6495_v3 }
0x185b   : > { %v6330_v2 = vrot.slane %v6299_v29, %v11226_v6  ;;  %v6301_v56 = vsub.f32 1.0, %v6284_v1 }
0x185c   : > { %v6300_v53 = vsub.f32 1.0, %v6282_v41  ;;  %v6406_v55 = vrot.slane %v6282_v41, %v11226_v6  ;;  %v6286_v62 = vcombine.high %v6282_v41, %v6282_v41 }
0x185d   : > { %6424 = vperm.xlu0 %10475, %v6394_v28   ;;  %6352 = vperm.xlu1 %10476, %v6322_v48   ;;  %v6338_v44 = vrot.slane %v6301_v56, %v11226_v6  ;;  %v6487_v28 = vcombine.high %v6479_v24, %v6479_v24  ;;  %v14727_v48 = vmov 2   ;;  %v6531_v24 = vmul.f32 %v6517_v38, %v14726_v22 }
0x185e   : > { %v6334_v0 = vrot.slane %v6300_v53, %v11226_v6  ;;  %v6414_v18 = vrot.slane %v6286_v62, %v11226_v6 }
0x185f   : > { %v6509_v61 = vrot.slane %v6487_v28, %v11221_v4  ;;  %v6556_v3 = vrot.slane %v6531_v24, %v11226_v6 }
0x1861   : > { %6095 = vbcast.lane.b32.xlu0 %v6093_v19, 256  ;;  %5941 = vbcast.lane.b32.xlu1 %v5939_v63, 256  ;;  %v6302_v19 = vsub.f32 1.0, %v6286_v62  ;;  %v14729_v63 = vld [vmem:[#allocation47_spill] sm:$0xff] }
0x1862   : > { %v5960_v45 = vrot.slane %v12936_v14, %v14729_v63  ;;  %v6114_v40 = vrot.slane %v12997_v17, %v14729_v63 }
0x1865   : > { %6428 = vperm.xlu0 %10475, %v6398_v10   ;;  %6356 = vperm.xlu1 %10476, %v6326_v12   ;;  %v6472_v10 = vcombine.high %v10631_v50, %v10631_v50  ;;  %v6342_v12 = vrot.slane %v6302_v19, %v11226_v6  ;;  %v6410_v50 = vrot.slane %v6284_v1, %v11226_v6  ;;  %v14731_v19 = vmov 0  }
0x1867   : > { %v6486_v29 = vrot.slane %v6472_v10, %v11221_v4 }
0x1869   : > { %6102 = vbcast.lane.b32.xlu0 %v6100_v9, 256  ;;  %5948 = vbcast.lane.b32.xlu1 %v5946_v35, 256  ;;  %v6530_v9 = vmul.f32 %v6509_v61, %v14726_v22  ;;  %v6519_v35 = vcombine.high %v6509_v61, %v6509_v61  ;;  %v6502_v41 = vrot.slane %v6486_v29, %v11221_v4 }
0x186b   : > { %v6518_v53 = vcombine.high %v6502_v41, %v6502_v41 }
0x186d   : > { %6432 = vperm.xlu0 %10475, %v6402_v54   ;;  %6360 = vperm.xlu1 %10476, %v6330_v2   ;;  %v6552_v54 = vrot.slane %v6530_v9, %v11226_v6  ;;  %v6532_v2 = vmul.f32 %v6519_v35, %v14726_v22  ;;  %v13077_v9 = vpop.permute.xlu1 %6348  ;;  %v6345_v35 = vpop.permute.xlu0 %6344 }
0x1871   : > { %6109 = vbcast.lane.b32.xlu0 %v6107_v5, 256  ;;  %5955 = vbcast.lane.b32.xlu1 %v5953_v46, 256  ;;  %v6560_v5 = vrot.slane %v6532_v2, %v11226_v6  ;;  %v6533_v46 = vmul.f32 %v6502_v41, %v14726_v22  ;;  %v13079_v38 = vpop.permute.xlu0 %6420 }
0x1873   : > { %v6564_v1 = vrot.slane %v6533_v46, %v11226_v6 }
0x1875   : > { %6436 = vperm.xlu0 %10475, %v6406_v55   ;;  %6364 = vperm.xlu1 %10476, %v6334_v0   ;;  %v6535_v55 = vmul.f32 %v6518_v53, %v14726_v22  ;;  %v6121_v0 = vrot.slane %v12997_v17, %v14728_v52 }
0x1877   : > { %v6572_v56 = vrot.slane %v6535_v55, %v11226_v6 }
0x1879   : > { %6368 = vperm.xlu0 %10475, %v6338_v44   ;;  %10477 = vset.pattern.permute.xlu1 %v14727_v48  ;;  %v6488_v44 = vcombine.high %v6486_v29, %v6486_v29  ;;  %v6417_v29 = vpop.permute.xlu1 %6416 }
0x187a   : > { %6578 = vperm.xlu1 %10477, %v6548_v43   ;;  %v14730_v43 = vld [vmem:[#allocation49_spill] sm:$0xff] }
0x187b   : > { %v5974_v28 = vrot.slane %v12936_v14, %v14730_v43 }
0x187d   : > { %5969 = vbcast.lane.b32.xlu0 %v5967_v25, 256  ;;  %v6516_v25 = vrot.slane %v6488_v44, %v11221_v4 }
0x187e   : > { %5962 = vbcast.lane.b32.xlu1 %v5960_v45, 256  ;;  %v6128_v45 = vrot.slane %v12997_v17, %v14730_v43 }
0x187f   : > { %10478 = vset.pattern.permute.xlu1 %v14717_v23  ;;  %v6534_v61 = vmul.f32 %v6516_v25, %v14726_v22  ;;  %v6520_v10 = vcombine.high %v6516_v25, %v6516_v25 }
0x1881   : > { %6372 = vperm.xlu0 %10475, %v6342_v12   ;;  %v6568_v62 = vrot.slane %v6534_v61, %v11226_v6  ;;  %v6536_v12 = vmul.f32 %v6520_v10, %v14726_v22 }
0x1882   : > { %6116 = vbcast.lane.b32.xlu1 %v6114_v40, 256 }
0x1883   : > { %v6576_v40 = vrot.slane %v6536_v12, %v11226_v6 }
0x1885   : > { %10480 = vset.pattern.permute.xlu0 %v14727_v48 }
0x1886   : > { %6582 = vperm.xlu0 %10480, %v6552_v54   ;;  %6440 = vperm.xlu1 %10478, %v6410_v50   ;;  %v5928_v54 = vpop.permute.xlu1 %5927  ;;  %v5935_v50 = vpop.permute.xlu0 %5934 }
0x188a   : > { %6590 = vperm.xlu0 %10480, %v6560_v5   ;;  %10479 = vset.pattern.permute.xlu1 %v14727_v48 }
0x188b   : > { %6586 = vperm.xlu1 %10479, %v6556_v3   ;;  %v5986_v3 = vrot.slane %v12997_v17, %v11221_v4 }
0x188d   : > { %v5994_v12 = vcombine.high %v5986_v3, %v5986_v3 }
0x188e   : > { %6594 = vperm.xlu0 %10480, %v6564_v1   ;;  %v6140_v1 = vrot.slane %v12936_v14, %v11221_v4 }
0x188f   : > { %6123 = vbcast.lane.b32.xlu1 %v6121_v0, 256  ;;  %v6016_v63 = vrot.slane %v5994_v12, %v11221_v4 }
0x1890   : > { %10481 = vset.pattern.permute.xlu1 %v14717_v23 }
0x1892   : > { %6602 = vperm.xlu0 %10480, %v6572_v56   ;;  %v6156_v56 = vrot.slane %v6140_v1, %v11221_v4 }
0x1893   : > { %6444 = vperm.xlu1 %10481, %v6414_v18   ;;  %v6002_v18 = vrot.slane %v5986_v3, %v11221_v4 }
0x1894   : > { %v6185_v25 = vrot.slane %v6156_v56, %v11226_v6  ;;  %v6178_v37 = vcombine.high %v6156_v56, %v6156_v56 }
0x1895   : > { %v6024_v27 = vcombine.high %v6002_v18, %v6002_v18 }
0x1896   : > { %10483 = vset.pattern.permute.xlu0 %v14731_v19 }
0x1897   : > { %5976 = vbcast.lane.b32.xlu1 %v5974_v28, 256 }
0x1898   : > { %10482 = vset.pattern.permute.xlu1 %v14727_v48 }
0x189b   : > { %6130 = vbcast.lane.b32.xlu1 %v6128_v45, 256  ;;  %v6031_v45 = vrot.slane %v6002_v18, %v11226_v6 }
0x189f   : > { %6598 = vperm.xlu1 %10482, %v6568_v62  }
0x18a3   : > { %6606 = vperm.xlu1 %10482, %v6576_v40   ;;  %v6148_v40 = vcombine.high %v6140_v1, %v6140_v1  ;;  %v13116_v1 = vrot.slane %v6133_v26, %v11221_v4 }
0x18a5   : > { %v6170_v22 = vrot.slane %v6148_v40, %v11221_v4  ;;  %v13129_v26 = vrot.slane %v13116_v1, %v11221_v4 }
0x18a7   : > { %10484 = vset.pattern.permute.xlu1 %v14731_v19  ;;  %v6068_v19 = vmul.f32 %v6031_v45, %v5928_v54  ;;  %v6035_v54 = vrot.slane %v6016_v63, %v11226_v6  ;;  %v6375_v45 = vmul.f32 %v6345_v35, %v12793_v47  ;;  %v6180_v12 = vcombine.high %v6170_v22, %v6170_v22 }
0x18a8   : > { %v6463_v47 = vmul.f32 %v12803_v34, %v11553_v21 }
0x18a9   : > { %v6069_v23 = vmul.f32 %v6035_v54, %v5935_v50  ;;  %v13135_v35 = vrot.slane %v6180_v12, %v11226_v6  ;;  %v6039_v50 = vrot.slane %v6024_v27, %v11226_v6 }
0x18cb   : > { %v6082_v2 = vpop.permute.xlu1 %6081  ;;  %v6089_v41 = vpop.permute.xlu0 %6088 }
0x18cc   : > { %v6222_v61 = vmul.f32 %v6185_v25, %v6082_v2  ;;  %v5979_v2 = vcombine.high %v12997_v17, %v12997_v17 }
0x18ce   : > { %v6230_v43 = vsub.f32 %v6068_v19, %v6222_v61  ;;  %v13113_v19 = vrot.slane %v6170_v22, %v11226_v6  ;;  %v6026_v61 = vcombine.high %v6016_v63, %v6016_v63  ;;  %v13120_v40 = vrot.slane %v5979_v2, %v11221_v4 }
0x18cf   : > { %v13142_v2 = vrot.slane %v6178_v37, %v11226_v6 }
0x18d0   : > { %v6447_v3 = vmul.f32 %v6417_v29, %v6230_v43  ;;  %v6223_v17 = vmul.f32 %v13113_v19, %v6089_v41  ;;  %v6043_v63 = vrot.slane %v6026_v61, %v11226_v6  ;;  %v6009_v41 = vrot.slane %v13120_v40, %v11221_v4 }
0x18d2   : > { %v13125_v29 = vadd.f32 %v6447_v3, %v6375_v45  ;;  %v6231_v18 = vsub.f32 %v6069_v23, %v6223_v17  ;;  %v6047_v31 = vrot.slane %v6009_v41, %v11226_v6  ;;  %v13153_v23 = vrot.slane %v13129_v26, %v11226_v6 }
0x18d4   : > { %14732 = vst [vmem:[#allocation39_spill] sm:$0xff] %v13125_v29  ;;  %v6448_v27 = vmul.f32 %v13079_v38, %v6231_v18 }
0x18d8   : > { %v13081_v24 = vpop.permute.xlu1 %6352  ;;  %v13083_v5 = vpop.permute.xlu0 %6424 }
0x18dc   : > { %v5942_v46 = vpop.permute.xlu1 %5941  ;;  %v6096_v53 = vpop.permute.xlu0 %6095 }
0x18dd   : > { %v6070_v61 = vmul.f32 %v6039_v50, %v5942_v46  ;;  %v6224_v12 = vmul.f32 %v13142_v2, %v6096_v53 }
0x18df   : > { %v6232_v53 = vsub.f32 %v6070_v61, %v6224_v12 }
0x18e0   : > { %v13089_v55 = vpop.permute.xlu1 %6356  ;;  %v13091_v0 = vpop.permute.xlu0 %6428 }
0x18e4   : > { %v5949_v44 = vpop.permute.xlu1 %5948  ;;  %v6103_v28 = vpop.permute.xlu0 %6102 }
0x18e5   : > { %v6071_v3 = vmul.f32 %v6043_v63, %v5949_v44  ;;  %v6225_v34 = vmul.f32 %v13135_v35, %v6103_v28  ;;  %v14733_v63 = vld [vmem:[#allocation51_spill] sm:$0xff] }
0x18e7   : > { %v6233_v17 = vsub.f32 %v6071_v3, %v6225_v34  ;;  %v6464_v3 = vmul.f32 %v12756_v58, %v11553_v21  ;;  %v6377_v34 = vmul.f32 %v13081_v24, %v12782_v59 }
0x18e8   : > { %v13097_v10 = vpop.permute.xlu1 %6360  ;;  %v13099_v62 = vpop.permute.xlu0 %6432 }
0x18e9   : > { %v6379_v59 = vmul.f32 %v13097_v10, %v12821_v30 }
0x18ec   : > { %v5956_v52 = vpop.permute.xlu1 %5955  ;;  %v6110_v48 = vpop.permute.xlu0 %6109 }
0x18ed   : > { %v6072_v44 = vmul.f32 %v6047_v31, %v5956_v52  ;;  %v6226_v28 = vmul.f32 %v13153_v23, %v6110_v48  ;;  %v6449_v31 = vmul.f32 %v13083_v5, %v6232_v53  ;;  %v6378_v48 = vmul.f32 %v13089_v55, %v12831_v15 }
0x18ee   : > { %v6149_v52 = vcombine.high %v13116_v1, %v13116_v1  ;;  %v6025_v55 = vcombine.high %v6009_v41, %v6009_v41  ;;  %v6466_v1 = vmul.f32 %v12848_v57, %v11553_v21  ;;  %v6465_v57 = vmul.f32 %v12796_v33, %v11553_v21 }
0x18ef   : > { %v6234_v50 = vsub.f32 %v6072_v44, %v6226_v28  ;;  %v13185_v58 = vadd.f32 %v6449_v31, %v6377_v34 }
0x18f0   : > { %v13107_v32 = vpop.permute.xlu1 %6364  ;;  %v13109_v8 = vpop.permute.xlu0 %6436  ;;  %v6177_v24 = vrot.slane %v6149_v52, %v11221_v4  ;;  %v6055_v10 = vrot.slane %v6025_v55, %v11226_v6 }
0x18f1   : > { %v6451_v15 = vmul.f32 %v13099_v62, %v6234_v50  ;;  %v6467_v50 = vmul.f32 %v12839_v11, %v11553_v21 }
0x18f2   : > { %v13209_v33 = vrot.slane %v6177_v24, %v11226_v6 }
0x18f3   : > { %v13202_v30 = vadd.f32 %v6451_v15, %v6379_v59 }
0x18f4   : > { %v13123_v43 = vpop.permute.xlu0 %6368 }
0x18f5   : > { %v6579_v22 = vpop.permute.xlu1 %6578 }
0x18f6   : > { %v6609_v56 = vmul.f32 %v6579_v22, %v13125_v29 }
0x18f8   : > { %v13145_v54 = vadd.f32 %v6609_v56, %v6463_v47  ;;  %v5970_v45 = vpop.permute.xlu0 %5969  ;;  %v6376_v56 = vmul.f32 %v13077_v9, %v14733_v63 }
0x18f9   : > { %v13148_v14 = vpop.permute.xlu1 %5962 }
0x18fa   : > { %v6859_v37 = vmul.f32 %v13145_v54, %v6185_v25  ;;  %v13163_v29 = vadd.f32 %v6448_v27, %v6376_v56  ;;  %v6450_v25 = vmul.f32 %v13091_v0, %v6233_v17  ;;  %v5995_v0 = vcombine.high %v13120_v40, %v13120_v40 }
0x18fb   : > { %v6074_v56 = vmul.f32 %v6055_v10, %v5970_v45 }
0x18fc   : > { %v13158_v47 = vpop.permute.xlu0 %6372  ;;  %v6867_v46 = vsel %vm1360_vm6, %v6859_v37, 0.0  ;;  %v13180_v5 = vadd.f32 %v6450_v25, %v6378_v48  ;;  %v6179_v37 = vcombine.high %v13129_v26, %v13129_v26  ;;  %v6023_v17 = vrot.slane %v5995_v0, %v11221_v4 }
0x18fd   : > { %v6117_v22 = vpop.permute.xlu1 %6116  ;;  %6868 = vadd.xlane.f32.xlu0 %v6867_v46 }
0x18fe   : > { %v6051_v31 = vrot.slane %v6023_v17, %v11226_v6  ;;  %v6227_v48 = vmul.f32 %v13209_v33, %v6117_v22  ;;  %v6381_v22 = vmul.f32 %v13123_v43, %v12876_v13  ;;  %v6027_v59 = vcombine.high %v6023_v17, %v6023_v17 }
0x1900   : > { %v6073_v55 = vmul.f32 %v6051_v31, %v13148_v14 }
0x1901   : > { %v6441_v38 = vpop.permute.xlu1 %6440  ;;  %v6583_v18 = vpop.permute.xlu0 %6582 }
0x1902   : > { %v6610_v9 = vmul.f32 %v6583_v18, %v13163_v29 }
0x1904   : > { %v13178_v61 = vadd.f32 %v6610_v9, %v6464_v3 }
0x1905   : > { %v6591_v12 = vpop.permute.xlu0 %6590 }
0x1906   : > { %v6612_v40 = vmul.f32 %v6591_v12, %v13180_v5  ;;  %v6587_v27 = vpop.permute.xlu1 %6586  ;;  %v6860_v62 = vmul.f32 %v13178_v61, %v13113_v19  ;;  %v6209_v19 = vrot.slane %v6179_v37, %v11226_v6 }
0x1907   : > { %v6611_v41 = vmul.f32 %v6587_v27, %v13185_v58  ;;  %v6235_v27 = vsub.f32 %v6073_v55, %v6227_v48 }
0x1908   : > { %v13199_v44 = vadd.f32 %v6612_v40, %v6466_v1  ;;  %v6870_v26 = vsel %vm1360_vm6, %v6860_v62, 0.0  ;;  %v6181_v40 = vcombine.high %v6177_v24, %v6177_v24 }
0x1909   : > { %v13205_v28 = vadd.f32 %v6611_v41, %v6465_v57  ;;  %6871 = vadd.xlane.f32.xlu1 %v6870_v26  ;;  %v6595_v46 = vpop.permute.xlu0 %6594 }
0x190a   : > { %v6613_v53 = vmul.f32 %v6595_v46, %v13202_v30  ;;  %v6124_v63 = vpop.permute.xlu1 %6123  ;;  %v6862_v9 = vmul.f32 %v13199_v44, %v13135_v35  ;;  %v6213_v26 = vrot.slane %v6181_v40, %v11226_v6  ;;  %v6059_v46 = vrot.slane %v6027_v59, %v11226_v6 }
0x190b   : > { %v6228_v25 = vmul.f32 %v6209_v19, %v6124_v63  ;;  %v6861_v18 = vmul.f32 %v13205_v28, %v13142_v2  ;;  %v6452_v63 = vmul.f32 %v13109_v8, %v6235_v27  ;;  %v6468_v8 = vmul.f32 %v12874_v60, %v11553_v21 }
0x190c   : > { %v6845_v52 = vpop.f32.mrf.mxu1  ;;  %v13218_v3 = vpop.f32.mrf.mxu0  ;;  %v13222_v34 = vadd.f32 %v6613_v53, %v6467_v50  ;;  %v6876_v41 = vsel %vm1360_vm6, %v6862_v9, 0.0  ;;  %v6382_v9 = vmul.f32 %v13158_v47, %v12872_v36 }
0x190d   : > { %v6236_v45 = vsub.f32 %v6074_v56, %v6228_v25  ;;  %v6846_v11 = vadd.f32 %v12834_v20, %v6845_v52  ;;  %v6873_v0 = vsel %vm1360_vm6, %v6861_v18, 0.0  ;;  %v6603_v62 = vpop.permute.xlu0 %6602  ;;  %v6380_v56 = vmul.f32 %v13107_v32, %v12861_v51 }
0x190e   : > { %v6445_v15 = vpop.permute.xlu1 %6444  ;;  %6874 = vadd.xlane.f32.xlu0 %v6873_v0  ;;  %v10298_v2 = vpop.f32.mrf.mxu1  ;;  %v6863_v13 = vmul.f32 %v13222_v34, %v13153_v23  ;;  %v6470_v0 = vmul.f32 %v12889_v42, %v11553_v21 }
0x190f   : > { %v13229_v1 = vmax.f32 %v6846_v11, 0.0  ;;  %v6453_v12 = vmul.f32 %v6441_v38, %v6236_v45  ;;  %v10306_v35 = vpop.f32.mrf.mxu0  ;;  %v6469_v38 = vmul.f32 %v12886_v39, %v11553_v21  ;;  %v13251_v31 = vadd.f32 %v6452_v63, %v6380_v56 }
0x1910   : > { %v6848_v37 = vpop.f32.mrf.mxu1  ;;  %v6879_v53 = vsel %vm1360_vm6, %v6863_v13, 0.0 }
0x1911   : > { %10060 = vst.msk [vmem:[%s11055_s23 + $0x28] sm:$0xff] %vm2451_vm15, %v13229_v1  ;;  %v13234_v20 = vadd.f32 %v6453_v12, %v6381_v22  ;;  %v7728_v57 = vpop.f32.mrf.mxu0 }
0x1912   : > { %v5977_v14 = vpop.permute.xlu1 %5976  ;;  %6877 = vadd.xlane.f32.xlu0 %v6876_v41  ;;  %v10299_v43 = vpop.f32.mrf.mxu1 }
0x1913   : > { %v6615_v24 = vmul.f32 %v6603_v62, %v13234_v20  ;;  %v10307_v17 = vpop.f32.mrf.mxu0  ;;  %v6075_v50 = vmul.f32 %v6059_v46, %v5977_v14 }
0x1915   : > { %v13243_v10 = vadd.f32 %v6615_v24, %v6469_v38 }
0x1916   : > { %v6131_v23 = vpop.permute.xlu1 %6130  ;;  %6880 = vadd.xlane.f32.xlu0 %v6879_v53 }
0x1917   : > { %v6229_v39 = vmul.f32 %v6213_v26, %v6131_v23  ;;  %v6865_v25 = vmul.f32 %v13243_v10, %v6209_v19 }
0x1919   : > { %v6237_v18 = vsub.f32 %v6075_v50, %v6229_v39  ;;  %v6885_v48 = vsel %vm1360_vm6, %v6865_v25, 0.0  ;;  %v13290_v50 = vld [vmem:[%s14599_s5] ss:$0 sm:$0xff]  ;;  %v14734_v39 = vld [vmem:[#allocation36_spill] sm:$0xff] }
0x191a   : > { %v6599_v52 = vpop.permute.xlu1 %6598  ;;  %6886 = vadd.xlane.f32.xlu0 %v6885_v48  ;;  %v1072_v25 = vadd.f32 %v13290_v50, %v14734_v39 }
0x191b   : > { %v6614_v45 = vmul.f32 %v6599_v52, %v13251_v31  ;;  %v6454_v51 = vmul.f32 %v6445_v15, %v6237_v18 }
0x191c   : > { %v1097_v48 = vsel %vm1078_vm7, %v1072_v25, 0.0  ;;  %v1109_v52 = vmul.f32 %v1072_v25, %v1072_v25 }
0x191d   : > { %v13259_v32 = vadd.f32 %v6614_v45, %v6468_v8  ;;  %v13261_v11 = vadd.f32 %v6454_v51, %v6382_v9  ;;  %v13297_v9 = vld [vmem:[%s14600_s26] ss:$0 sm:$0xff] }
0x191e   : > { %v6607_v19 = vpop.permute.xlu1 %6606  ;;  %v13301_v8 = vadd.f32 %v13297_v9, %v13218_v3  ;;  %v1129_v45 = vsel %vm1078_vm7, %v1109_v52, 0.0 }
0x191f   : > { %v6616_v2 = vmul.f32 %v6607_v19, %v13261_v11  ;;  %v6864_v22 = vmul.f32 %v13259_v32, %v13209_v33 }
0x1920   : > { %v7731_v51 = vsel %vm1078_vm7, %v13301_v8, 0.0  ;;  %v7734_v19 = vmul.f32 %v13301_v8, %v13301_v8 }
0x1921   : > { %v13268_v36 = vadd.f32 %v6616_v2, %v6470_v0  ;;  %v6882_v60 = vsel %vm1360_vm6, %v6864_v22, 0.0  ;;  %v7749_v2 = vld [vmem:[%s10895_s30] sm:$0xf] }
0x1922   : > { %6883 = vadd.xlane.f32.xlu1 %v6882_v60  ;;  %v7735_v0 = vsel %vm1078_vm7, %v7734_v19, 0.0  ;;  %v7754_v22 = vsel %vm1364_vm3, %v7749_v2, 0 }
0x1923   : > { %v6866_v47 = vmul.f32 %v13268_v36, %v6213_v26  ;;  %10309 = vmatpush3.bf16.msra.mxu1 %v7754_v22 }
0x1924   : > { %10322 = vmatprep.subr.bf16.mxu1 %v14629_v7 }
0x1925   : > { %v6888_v15 = vsel %vm1360_vm6, %v6866_v47, 0.0 }
0x1926   : > { %6889 = vadd.xlane.f32.xlu1 %v6888_v15 }
0x1986   : > { %v6869_v55 = vpop.xlane.xlu0 %6868 }
0x1987   : > { %v6902_v33 = vrot.slane %v6869_v55, %v11285_v16 }
0x1992   : > { %v6872_v37 = vpop.xlane.xlu1 %6871 }
0x1993   : > { %v6906_v42 = vrot.slane %v6872_v37, %v11285_v16 }
0x1995   : > { %v6931_v57 = vsel %vm1698_vm8, %v6906_v42, %v6902_v33 }
0x1997   : > { %v6875_v12 = vpop.xlane.xlu0 %6874 }
0x1998   : > { %v6910_v40 = vrot.slane %v6875_v12, %v11285_v16 }
0x199a   : > { %v6932_v41 = vsel %vm1700_vm9, %v6910_v40, %v6931_v57 }
0x199b   : > { %v6878_v35 = vpop.xlane.xlu0 %6877 }
0x199c   : > { %v6914_v27 = vrot.slane %v6878_v35, %v11285_v16 }
0x199e   : > { %v6933_v14 = vsel %vm1702_vm10, %v6914_v27, %v6932_v41  ;;  %v13319_v41 = vld [vmem:[%s14603_s3] ss:$0 sm:$0xff]  ;;  %s10719_s3 = scalar_lea.vmem %s14188_s25, 1024 }
0x199f   : > { %v6881_v59 = vpop.xlane.xlu0 %6880  ;;  %14735 = vst [vmem:[#allocation54_spill] sm:$0xff] %v13319_v41  ;;  %p10720_p7 = scmp.ne.s32.totalorder %s14188_s25, %s10719_s3 }
0x19a0   : > { %v6918_v62 = vrot.slane %v6881_v59, %v11285_v16 }
0x19a1   : > { %p10721_p9 = pnand %p10720_p7, %p14808_p8 }
0x19a2   : > { %v6934_v24 = vsel %vm1704_vm11, %v6918_v62, %v6933_v14  ;;  %v13315_v62 = vld [vmem:[%s14602_s22] ss:$0 sm:$0xff]  ;;  %v14736_v14 = vld [vmem:[#allocation41_spill] sm:$0xff] }
0x19a3   : > { %v6887_v43 = vpop.xlane.xlu0 %6886  ;;  %p10722_p10 = pneg %p10721_p9 }
0x19a4   : > { %v6926_v26 = vrot.slane %v6887_v43, %v11285_v16  ;;  %v14737_v43 = vld [vmem:[#allocation35_spill] sm:$0xff] }
0x19ab   : > { %v6884_v13 = vpop.xlane.xlu1 %6883 }
0x19ac   : > { %v6922_v38 = vrot.slane %v6884_v13, %v11285_v16 }
0x19ae   : > { %v6935_v17 = vsel %vm1706_vm12, %v6922_v38, %v6934_v24  ;;  %v6945_v38 = vmul.f32 %v14737_v43, %v14736_v14 }
0x19af   : > { %v6890_v46 = vpop.xlane.xlu1 %6889  ;;  %v6936_v63 = vsel %vm1708_vm13, %v6926_v26, %v6935_v17 }
0x19b0   : > { %v6930_v53 = vrot.slane %v6890_v46, %v11285_v16  ;;  %v10058_v46 = vmul.f32 -1.442695, %v13229_v1 }
0x19b2   : > { %v6937_v23 = vsel %vm1710_vm14, %v6930_v53, %v6936_v63 }
0x19b3   : > { %v6939_v56 = vadd.f32 %v6937_v23, %v13229_v1 }
0x19b5   : > { %v6940_v18 = vsel %vm1714_vm0, %v6939_v56, -inf }
0x19b6   : > { %6941 = vmax.xlane.f32.xlu0 %v6940_v18 }
0x19ba   : > { %1098 = vadd.xlane.f32.xlu0 %v1097_v48 }
0x19be   : > { %1130 = vadd.xlane.f32.xlu0 %v1129_v45 }
0x19c2   : > { %7732 = vadd.xlane.f32.xlu0 %v7731_v51 }
0x19c6   : > { %7736 = vadd.xlane.f32.xlu0 %v7735_v0 }
0x1a3f   : > { %v6942_v3 = vpop.xlane.xlu0 %6941 }
0x1a40   : > { %vm6943_vm2 = vcmp.ge.f32.partialorder %v6939_v56, %v6942_v3 }
0x1a41   : > { %v6944_v60 = vsel %vm6943_vm2, %v6939_v56, 0.0  ;;  %v13334_v56 = vld [vmem:[%s14601_s2] ss:$0 sm:$0xff] }
0x1a42   : > { %v6946_v47 = vmul.f32 %v6944_v60, %v14706_v49  ;;  %14739 = vst [vmem:[#allocation56_spill] sm:$0xff] %v13334_v56  ;;  %v14740_v60 = vmov 1  }
0x1a43   : > { %v1099_v15 = vpop.xlane.xlu0 %1098 }
0x1a44   : > { %v1141_v55 = vmul.f32 0.010416667, %v1099_v15  ;;  %6948 = vrot.lane.b32.xlu1 %v6946_v47, %s14630_s18  ;;  %v14741_v47 = vld [vmem:[#allocation42_spill] sm:$0xff] }
0x1a46   : > { %v1157_v35 = vmul.f32 %v1141_v55, %v1141_v55  ;;  %v1173_v40 = vsub.f32 %v1072_v25, %v1141_v55 }
0x1a47   : > { %v1131_v12 = vpop.xlane.xlu0 %1130 }
0x1a48   : > { %v1149_v37 = vmul.f32 0.010416667, %v1131_v12 }
0x1a4a   : > { %v1165_v42 = vsub.f32 %v1149_v37, %v1157_v35 }
0x1a4b   : > { %v7733_v55 = vpop.xlane.xlu0 %7732 }
0x1a4c   : > { %v1181_v59 = vadd.f32 1e-05, %v1165_v42  ;;  %v7738_v35 = vmul.f32 0.010416667, %v7733_v55  ;;  %v13366_v55 = vld [vmem:[%s14608_s20] ss:$0 sm:$0xff] }
0x1a4d   : > { %14745 = vst [vmem:[#allocation60_spill] sm:$0xff] %v13366_v55 }
0x1a4e   : > { %10632 = vrsqrt.f32 %v1181_v59  ;;  %v7740_v42 = vmul.f32 %v7738_v35, %v7738_v35 }
0x1a4f   : > { %10634 = vpow2.f32 %v10058_v46  ;;  %v7737_v12 = vpop.xlane.xlu0 %7736 }
0x1a50   : > { %v7739_v37 = vmul.f32 0.010416667, %v7737_v12 }
0x1a52   : > { %v7741_v59 = vsub.f32 %v7739_v37, %v7740_v42 }
0x1a5b   : > { %v10633_v33 = vpop.eup %10632 }
0x1a5c   : > { %v1197_v27 = vmul.f32 %v10633_v33, %v1173_v40  ;;  %v10635_v53 = vpop.eup %10634  ;;  %v7743_v40 = vadd.f32 1e-05, %v7741_v59  ;;  %v10536_v59 = vld [vmem:[%s14604_s8 + $0x8] sm:$0xff]  }
0x1a5d   : > { %v6855_v63 = vadd.f32 1.0, %v10635_v53  ;;  %v7742_v53 = vsub.f32 %v13301_v8, %v7738_v35  ;;  %10315 = vmatpush3.bf16.msra.mxu0 %v10536_v59  ;;  %v14748_v59 = vld [vmem:[#allocation53_spill] sm:$0xff] }
0x1a5e   : > { %v1211_v57 = vmul.f32 %v13315_v62, %v1197_v27  ;;  %10316 = vmatprep.subr.bf16.mxu0 %v14629_v7 }
0x1a5f   : > { %10636 = vrcp.f32 %v6855_v63 }
0x1a60   : > { %v1225_v13 = vadd.f32 %v13319_v41, %v1211_v57  ;;  %10638 = vrsqrt.f32 %v7743_v40  ;;  %v10537_v40 = vld [vmem:[%s10885_s19 + $0x8] sm:$0xff]  }
0x1a62   : > { %1233 = vst.msk [vmem:[#allocation2 + $0x30] sm:$0xff] %vm1078_vm7, %v1225_v13 }
0x1a6c   : > { %v13339_v19 = vpop.eup %10636 }
0x1a6d   : > { %v7289_v0 = vrot.slane %v13339_v19, %v11221_v4  ;;  %v10639_v46 = vpop.eup %10638 }
0x1a6e   : > { %v7745_v63 = vmul.f32 %v10639_v46, %v7742_v53 }
0x1a6f   : > { %v7297_v2 = vcombine.high %v7289_v0, %v7289_v0 }
0x1a71   : > { %v13344_v22 = vrot.slane %v7297_v2, %v11221_v4  ;;  %v7674_v2 = vld [vmem:[#allocation2 + $0x30] sm:$0xff] }
0x1a73   : > { %v7434_v3 = vrot.slane %v13344_v22, %v11226_v6  ;;  %v7340_v46 = vsub.f32 1.0, %v13344_v22 }
0x1a75   : > { %v7362_v53 = vrot.slane %v7340_v46, %v11226_v6  ;;  %v7282_v46 = vcombine.high %v13339_v19, %v13339_v19 }
0x1ab6   : > { %v6949_v24 = vpop.permute.xlu1 %6948 }
0x1ab7   : > { %v13325_v17 = vadd.f32 %v6949_v24, %v6945_v38 }
0x1ab9   : > { %14738 = vst [vmem:[#allocation55_spill] sm:$0xff] %v13325_v17  ;;  %v7748_v26 = vpack.c.bf16 %v13325_v17, %v13325_v17  ;;  %v6976_v15 = vrot.slane %v13325_v17, %v14741_v47 }
0x1abb   : > { %10311 = vmatmul.mubr.msk.bf16.vlgmr.msra.gmra.mxu1 %vm1360_vm6, %v7748_v26 }
0x1abc   : > { %10326 = vmatprep.mubr.msk.bf16.mxu1 %vm10816_vm4, %v14629_v7  ;;  %10323 = vmatpush3.bf16.msra.mxu1 %v10537_v40 }
0x1abd   : > { %10324 = vmatprep.subr.bf16.mxu1 %v14629_v7 }
0x1b7b   : > { %v7790_v23 = vpop.f32.mrf.mxu1 }
0x1b7c   : > { %v7791_v39 = vadd.f32 %v13334_v56, %v7790_v23  ;;  %v13354_v23 = vld [vmem:[%s14605_s9] ss:$0 sm:$0xff]  ;;  %v7177_v56 = vcombine.high %v13325_v17, %v13325_v17 }
0x1b7d   : > { %v10312_v25 = vpop.f32.mrf.mxu1  ;;  %14742 = vst [vmem:[#allocation57_spill] sm:$0xff] %v13354_v23 }
0x1b7e   : > { %v7796_v18 = vsel %vm1078_vm7, %v7791_v39, 0.0  ;;  %v7799_v48 = vmul.f32 %v7791_v39, %v7791_v39  ;;  %v7746_v25 = vmul.f32 %v13354_v23, %v7745_v63 }
0x1b7f   : > { %7797 = vadd.xlane.f32.xlu1 %v7796_v18  ;;  %v7793_v52 = vpop.f32.mrf.mxu1 }
0x1b80   : > { %v7800_v45 = vsel %vm1078_vm7, %v7799_v48, 0.0  ;;  %v13358_v52 = vld [vmem:[%s14607_s17] ss:$0 sm:$0xff] }
0x1b81   : > { %v10313_v51 = vpop.f32.mrf.mxu1  ;;  %7801 = vadd.xlane.f32.xlu0 %v7800_v45  ;;  %14743 = vst [vmem:[#allocation58_spill] sm:$0xff] %v13358_v52  ;;  %v7747_v45 = vadd.f32 %v13358_v52, %v7746_v25 }
0x1b83   : > { %v7813_v8 = vadd.f32 %v7747_v45, %v7674_v2 }
0x1b90   : > { %6961 = vperm.xlu1 %10484, %v13339_v19  }
0x1b94   : > { %10486 = vset.pattern.permute.xlu1 %v14740_v60 }
0x1b95   : > { %7464 = vperm.xlu1 %10486, %v7434_v3   ;;  %v13362_v3 = vld [vmem:[%s14606_s13] ss:$0 sm:$0xff] }
0x1b96   : > { %14744 = vst [vmem:[#allocation59_spill] sm:$0xff] %v13362_v3 }
0x1b99   : > { %6978 = vbcast.lane.b32.xlu1 %v6976_v15, 256 }
0x1c08   : > { %v7798_v33 = vpop.xlane.xlu1 %7797 }
0x1c09   : > { %v7803_v27 = vmul.f32 0.010416667, %v7798_v33  ;;  %v10538_v33 = vld [vmem:[%s14604_s8] sm:$0xff]  }
0x1c0a   : > { %v7802_v57 = vpop.xlane.xlu0 %7801  ;;  %10317 = vmatpush3.bf16.msra.mxu0 %v10538_v33 }
0x1c0b   : > { %v7805_v13 = vmul.f32 %v7803_v27, %v7803_v27  ;;  %v7804_v38 = vmul.f32 0.010416667, %v7802_v57  ;;  %v7807_v18 = vsub.f32 %v7791_v39, %v7803_v27  ;;  %v10539_v27 = vld [vmem:[%s10885_s19] sm:$0xff]   ;;  %10330 = vmatprep.subr.bf16.mxu0 %v14629_v7 }
0x1c0c   : > { %10325 = vmatpush3.bf16.msra.mxu1 %v10539_v27 }
0x1c0d   : > { %v7806_v24 = vsub.f32 %v7804_v38, %v7805_v13  ;;  %10336 = vmatprep.subr.bf16.mxu1 %v14629_v7  ;;  %v7305_v13 = vrot.slane %v7289_v0, %v11221_v4  ;;  %v6952_v38 = vsub.f32 1.0, %v13339_v19  ;;  %v6969_v0 = vrot.slane %v13325_v17, %v11226_v6 }
0x1c0f   : > { %v7808_v26 = vadd.f32 1e-05, %v7806_v24  ;;  %v7339_v24 = vsub.f32 1.0, %v7305_v13  ;;  %v7430_v63 = vrot.slane %v7305_v13, %v11226_v6  ;;  %v7327_v33 = vcombine.high %v7305_v13, %v7305_v13 }
0x1c10   : > { %v7329_v13 = vcombine.high %v13344_v22, %v13344_v22 }
0x1c11   : > { %10640 = vrsqrt.f32 %v7808_v26  ;;  %v7358_v26 = vrot.slane %v7339_v24, %v11226_v6  ;;  %v7341_v24 = vsub.f32 1.0, %v7327_v33 }
0x1c1e   : > { %v10641_v48 = vpop.eup %10640 }
0x1c1f   : > { %v7810_v51 = vmul.f32 %v10641_v48, %v7807_v18 }
0x1c21   : > { %v7811_v15 = vmul.f32 %v13362_v3, %v7810_v51  ;;  %v14746_v51 = vld [vmem:[#allocation52_spill] sm:$0xff] }
0x1c23   : > { %v7812_v39 = vadd.f32 %v13366_v55, %v7811_v15 }
0x1c25   : > { %v7814_v12 = vadd.f32 %v7813_v8, %v7812_v39 }
0x1c27   : > { %v10065_v35 = vmul.f32 -1.442695, %v7814_v12 }
0x1c29   : > { %10642 = vpow2.f32 %v10065_v35  ;;  %v6962_v35 = vpop.permute.xlu1 %6961 }
0x1c36   : > { %v10643_v37 = vpop.eup %10642 }
0x1c37   : > { %v7818_v42 = vadd.f32 1.0, %v10643_v37 }
0x1c39   : > { %10644 = vrcp.f32 %v7818_v42  ;;  %v6964_v42 = vmul.f32 %v6962_v35, %v14737_v43  ;;  %v7366_v43 = vrot.slane %v7341_v24, %v11226_v6 }
0x1c3a   : > { %10646 = vtanh.f32 %v13229_v1 }
0x1c46   : > { %v10645_v57 = vpop.eup %10644 }
0x1c47   : > { %7824 = vrot.lane.b32.xlu0 %v10645_v57, %s14618_s21  ;;  %v7821_v18 = vsub.f32 1.0, %v10645_v57  ;;  %v10647_v19 = vpop.eup %10646 }
0x1c49   : > { %v7822_v2 = vmul.f32 %v7821_v18, %v14746_v51  ;;  %v7442_v18 = vrot.slane %v7329_v13, %v11226_v6 }
0x1c4b   : > { %7829 = vrot.lane.b32.xlu0 %v7814_v12, %s14619_s29 }
0x1c4f   : > { %6955 = vperm.xlu0 %10483, %v6952_v38  }
0x1c53   : > { %10485 = vset.pattern.permute.xlu0 %v14740_v60 }
0x1c54   : > { %7388 = vperm.xlu0 %10485, %v7358_v26   ;;  %v7438_v26 = vrot.slane %v7327_v33, %v11226_v6 }
0x1c58   : > { %7392 = vperm.xlu0 %10485, %v7362_v53   ;;  %v14750_v53 = vld [vmem:[#allocation43_spill] sm:$0xff] }
0x1c59   : > { %v6983_v1 = vrot.slane %v13325_v17, %v14750_v53 }
0x1c5c   : > { %7460 = vperm.xlu0 %10485, %v7430_v63  }
0x1c60   : > { %6971 = vbcast.lane.b32.xlu0 %v6969_v0, 256  ;;  %v7342_v0 = vsub.f32 1.0, %v7329_v13  ;;  %v14753_v13 = vld [vmem:[#allocation46_spill] sm:$0xff] }
0x1c62   : > { %v7370_v22 = vrot.slane %v7342_v0, %v11226_v6 }
0x1cb9   : > { %v7825_v25 = vpop.permute.xlu0 %7824 }
0x1cba   : > { %v7827_v48 = vmul.f32 %v10645_v57, %v7825_v25  ;;  %v7296_v25 = vrot.slane %v7282_v46, %v11221_v4 }
0x1cbd   : > { %v7830_v45 = vpop.permute.xlu0 %7829 }
0x1cbe   : > { %v7832_v15 = vmul.f32 %v7830_v45, %v7827_v48  ;;  %v7312_v48 = vrot.slane %v7296_v25, %v11221_v4  ;;  %v14751_v45 = vld [vmem:[#allocation44_spill] sm:$0xff] }
0x1cc0   : > { %v13389_v8 = vadd.f32 %v7832_v15, %v7822_v2  ;;  %v6990_v2 = vrot.slane %v13325_v17, %v14751_v45  ;;  %v7343_v15 = vsub.f32 1.0, %v7312_v48  ;;  %v7446_v35 = vrot.slane %v7312_v48, %v11226_v6 }
0x1cc1   : > { %v7328_v0 = vcombine.high %v7312_v48, %v7312_v48  ;;  %v14756_v48 = vld [vmem:[#allocation48_spill] sm:$0xff] }
0x1cc2   : > { %14747 = vst [vmem:[#allocation61_spill] sm:$0xff] %v13389_v8  ;;  %v7834_v39 = vmax.f32 %v13389_v8, 0.0 }
0x1cc4   : > { %v7835_v12 = vpack.c.bf16 %v7834_v39, %v7834_v39  ;;  %10070 = vst.msk [vmem:[%s11057_s11 + $0x30] sm:$0xff] %vm1279_vm5, %v7834_v39  ;;  %v7298_v39 = vcombine.high %v7296_v25, %v7296_v25 }
0x1cc6   : > { %10319 = vmatmul.mubr.msk.bf16.vlgmr.msra.gmra.mxu0 %vm1279_vm5, %v7835_v12  ;;  %10327 = vmatmul.mubr.msk.bf16.vlgmr.msra.gmra.mxu1 %vm1279_vm5, %v7835_v12  ;;  %v7523_v12 = vrot.slane %v10647_v19, %v11221_v4 }
0x1cc7   : > { %10332 = vmatprep.mubr.msk.bf16.mxu0 %vm10816_vm4, %v14629_v7  ;;  %10340 = vmatprep.mubr.msk.bf16.mxu1 %vm10816_vm4, %v14629_v7 }
0x1cca   : > { %v6956_v37 = vpop.permute.xlu0 %6955 }
0x1ccb   : > { %v6958_v40 = vmul.f32 %v6956_v37, %v14748_v59  ;;  %v7374_v37 = vrot.slane %v7343_v15, %v11226_v6  ;;  %v7531_v59 = vcombine.high %v7523_v12, %v7523_v12  ;;  %v7345_v15 = vsub.f32 1.0, %v7328_v0 }
0x1ccd   : > { %v13402_v27 = vadd.f32 %v6964_v42, %v6958_v40  ;;  %v7326_v42 = vrot.slane %v7298_v39, %v11221_v4  ;;  %v14752_v40 = vld [vmem:[#allocation45_spill] sm:$0xff]  ;;  %v7553_v24 = vrot.slane %v7531_v59, %v11221_v4  ;;  %v7516_v39 = vcombine.high %v10647_v19, %v10647_v19 }
0x1ccf   : > { %14749 = vst [vmem:[#allocation50_spill] sm:$0xff] %v13402_v27  ;;  %v7130_v57 = vrot.slane %v13402_v27, %v14741_v47  ;;  %v7123_v38 = vrot.slane %v13402_v27, %v11226_v6  ;;  %v7137_v63 = vrot.slane %v13402_v27, %v14750_v53  ;;  %v7144_v51 = vrot.slane %v13402_v27, %v14751_v45 }
0x1cd0   : > { %v7151_v33 = vrot.slane %v13402_v27, %v14752_v40  ;;  %v7574_v46 = vmul.f32 %v7553_v24, %v14753_v13  ;;  %v7330_v59 = vcombine.high %v7326_v42, %v7326_v42 }
0x1cd1   : > { %7132 = vbcast.lane.b32.xlu1 %v7130_v57, 256  ;;  %7125 = vbcast.lane.b32.xlu0 %v7123_v38, 256  ;;  %v6997_v57 = vrot.slane %v13325_v17, %v14752_v40  ;;  %v7344_v38 = vsub.f32 1.0, %v7326_v42 }
0x1cd2   : > { %v7596_v25 = vrot.slane %v7574_v46, %v11226_v6 }
0x1cd5   : > { %7468 = vperm.xlu1 %10486, %v7438_v26   ;;  %7396 = vperm.xlu0 %10485, %v7366_v43   ;;  %v7450_v26 = vrot.slane %v7326_v42, %v11226_v6  ;;  %v7378_v43 = vrot.slane %v7344_v38, %v11226_v6  ;;  %v7458_v38 = vrot.slane %v7330_v59, %v11226_v6 }
0x1cd9   : > { %7139 = vbcast.lane.b32.xlu1 %v7137_v63, 256  ;;  %6985 = vbcast.lane.b32.xlu0 %v6983_v1, 256  ;;  %v14754_v63 = vld [vmem:[#allocation47_spill] sm:$0xff] }
0x1cda   : > { %v7158_v1 = vrot.slane %v13402_v27, %v14754_v63 }
0x1cdd   : > { %7472 = vperm.xlu1 %10486, %v7442_v18   ;;  %7400 = vperm.xlu0 %10485, %v7370_v22   ;;  %v14755_v18 = vmov 2   ;;  %v7539_v22 = vrot.slane %v7523_v12, %v11221_v4  ;;  %v7530_v12 = vrot.slane %v7516_v39, %v11221_v4 }
0x1cdf   : > { %v7573_v19 = vmul.f32 %v7539_v22, %v14753_v13  ;;  %v7546_v46 = vrot.slane %v7530_v12, %v11221_v4 }
0x1ce1   : > { %7146 = vbcast.lane.b32.xlu1 %v7144_v51, 256  ;;  %6992 = vbcast.lane.b32.xlu0 %v6990_v2, 256  ;;  %v7454_v51 = vrot.slane %v7328_v0, %v11226_v6  ;;  %v7004_v2 = vrot.slane %v13325_v17, %v14754_v63  ;;  %v7592_v42 = vrot.slane %v7573_v19, %v11226_v6 }
0x1ce2   : > { %v7011_v0 = vrot.slane %v13325_v17, %v14756_v48  ;;  %v7562_v19 = vcombine.high %v7546_v46, %v7546_v46 }
0x1ce5   : > { %7476 = vperm.xlu1 %10486, %v7446_v35   ;;  %7404 = vperm.xlu0 %10485, %v7374_v37   ;;  %v7561_v35 = vcombine.high %v7539_v22, %v7539_v22  ;;  %v7165_v37 = vrot.slane %v13402_v27, %v14756_v48  ;;  %v7563_v22 = vcombine.high %v7553_v24, %v7553_v24 }
0x1ce9   : > { %7153 = vbcast.lane.b32.xlu1 %v7151_v33, 256  ;;  %6999 = vbcast.lane.b32.xlu0 %v6997_v57, 256  ;;  %v7382_v33 = vrot.slane %v7345_v15, %v11226_v6  ;;  %v7575_v57 = vmul.f32 %v7561_v35, %v14753_v13  ;;  %v7577_v15 = vmul.f32 %v7546_v46, %v14753_v13 }
0x1ced   : > { %7480 = vperm.xlu1 %10486, %v7450_v26   ;;  %7408 = vperm.xlu0 %10485, %v7378_v43   ;;  %v7532_v26 = vcombine.high %v7530_v12, %v7530_v12  ;;  %v7600_v43 = vrot.slane %v7575_v57, %v11226_v6 }
0x1cf1   : > { %10487 = vset.pattern.permute.xlu1 %v14755_v18  ;;  %7160 = vbcast.lane.b32.xlu0 %v7158_v1, 256  ;;  %v7560_v1 = vrot.slane %v7532_v26, %v11221_v4 }
0x1cf2   : > { %7626 = vperm.xlu1 %10487, %v7596_v25   ;;  %v7346_v25 = vsub.f32 1.0, %v7330_v59 }
0x1cf3   : > { %v7564_v39 = vcombine.high %v7560_v1, %v7560_v1 }
0x1cf4   : > { %v7386_v35 = vrot.slane %v7346_v25, %v11226_v6  ;;  %v13482_v25 = vpop.permute.xlu0 %7388 }
0x1cf5   : > { %7484 = vperm.xlu0 %10485, %v7454_v51   ;;  %v14757_v51 = vld [vmem:[#allocation49_spill] sm:$0xff]  ;;  %v7580_v59 = vmul.f32 %v7564_v39, %v14753_v13 }
0x1cf6   : > { %7006 = vbcast.lane.b32.xlu1 %v7004_v2, 256  ;;  %v7018_v2 = vrot.slane %v13325_v17, %v14757_v51  ;;  %v7172_v57 = vrot.slane %v13402_v27, %v14757_v51 }
0x1cf7   : > { %10488 = vset.pattern.permute.xlu1 %v14740_v60  ;;  %v7620_v12 = vrot.slane %v7580_v59, %v11226_v6  ;;  %v7030_v59 = vrot.slane %v13402_v27, %v11221_v4 }
0x1cf9   : > { %7167 = vbcast.lane.b32.xlu0 %v7165_v37, 256  ;;  %v7576_v37 = vmul.f32 %v7563_v22, %v14753_v13  ;;  %v7393_v22 = vpop.permute.xlu0 %7392  ;;  %v7046_v8 = vrot.slane %v7030_v59, %v11221_v4 }
0x1cfa   : > { %7412 = vperm.xlu1 %10488, %v7382_v33   ;;  %v7608_v33 = vrot.slane %v7577_v15, %v11226_v6 }
0x1cfb   : > { %v7604_v24 = vrot.slane %v7576_v37, %v11226_v6  ;;  %v7068_v52 = vcombine.high %v7046_v8, %v7046_v8 }
0x1cfd   : > { %7488 = vperm.xlu0 %10485, %v7458_v38   ;;  %v7578_v38 = vmul.f32 %v7560_v1, %v14753_v13  ;;  %v13484_v15 = vpop.permute.xlu0 %7460 }
0x1cfe   : > { %10489 = vset.pattern.permute.xlu1 %v14755_v18 }
0x1cff   : > { %7630 = vperm.xlu1 %10489, %v7600_v43   ;;  %v7612_v26 = vrot.slane %v7578_v38, %v11226_v6  ;;  %v7579_v43 = vmul.f32 %v7562_v19, %v14753_v13  ;;  %v7038_v38 = vcombine.high %v7030_v59, %v7030_v59 }
0x1d01   : > { %10491 = vset.pattern.permute.xlu0 %v14755_v18  ;;  %v6972_v1 = vpop.permute.xlu0 %6971 }
0x1d02   : > { %7622 = vperm.xlu0 %10491, %v7592_v42   ;;  %v14758_v42 = vmov 0  }
0x1d03   : > { %7013 = vbcast.lane.b32.xlu1 %v7011_v0, 256  ;;  %v7616_v0 = vrot.slane %v7579_v43, %v11226_v6 }
0x1d04   : > { %10490 = vset.pattern.permute.xlu1 %v14740_v60 }
0x1d06   : > { %7020 = vbcast.lane.b32.xlu0 %v7018_v2, 256  ;;  %v7465_v2 = vpop.permute.xlu1 %7464 }
0x1d07   : > { %7416 = vperm.xlu1 %10490, %v7386_v35  }
0x1d0a   : > { %7638 = vperm.xlu0 %10491, %v7608_v33   ;;  %v6979_v46 = vpop.permute.xlu1 %6978 }
0x1d0b   : > { %10492 = vset.pattern.permute.xlu1 %v14755_v18 }
0x1d0c   : > { %7634 = vperm.xlu1 %10492, %v7604_v24   ;;  %v7184_v24 = vrot.slane %v13325_v17, %v11221_v4 }
0x1d0e   : > { %7650 = vperm.xlu0 %10491, %v7620_v12   ;;  %v7192_v19 = vcombine.high %v7184_v24, %v7184_v24 }
0x1d10   : > { %7174 = vbcast.lane.b32.xlu1 %v7172_v57, 256 }
0x1d12   : > { %10493 = vset.pattern.permute.xlu0 %v14758_v42 }
0x1d14   : > { %7642 = vperm.xlu1 %10492, %v7612_v26  }
0x1d18   : > { %7646 = vperm.xlu1 %10492, %v7616_v0   ;;  %v7214_v0 = vrot.slane %v7192_v19, %v11221_v4  ;;  %v7200_v19 = vrot.slane %v7184_v24, %v11221_v4 }
0x1d1a   : > { %v7233_v18 = vrot.slane %v7214_v0, %v11226_v6  ;;  %v7222_v3 = vcombine.high %v7200_v19, %v7200_v19 }
0x1d1c   : > { %10494 = vset.pattern.permute.xlu1 %v14758_v42  ;;  %v7060_v42 = vrot.slane %v7038_v38, %v11221_v4 }
0x1d1e   : > { %v7079_v63 = vrot.slane %v7060_v42, %v11226_v6 }
0x1d20   : > { %v7113_v53 = vmul.f32 %v7079_v63, %v6979_v46  ;;  %v7023_v63 = vcombine.high %v13402_v27, %v13402_v27  ;;  %v7237_v46 = vrot.slane %v7222_v3, %v11226_v6 }
0x1d22   : > { %v7037_v27 = vrot.slane %v7023_v63, %v11221_v4  ;;  %v7224_v63 = vcombine.high %v7214_v0, %v7214_v0 }
0x1d24   : > { %v7053_v17 = vrot.slane %v7037_v27, %v11221_v4 }
0x1d43   : > { %v7133_v39 = vpop.permute.xlu1 %7132  ;;  %v7126_v35 = vpop.permute.xlu0 %7125 }
0x1d44   : > { %v7267_v13 = vmul.f32 %v7233_v18, %v7133_v39  ;;  %v7420_v39 = vmul.f32 %v7393_v22, %v13163_v29  ;;  %v13528_v22 = vrot.slane %v7200_v19, %v11226_v6 }
0x1d46   : > { %v7275_v7 = vsub.f32 %v7113_v53, %v7267_v13  ;;  %v7083_v53 = vrot.slane %v7068_v52, %v11226_v6  ;;  %v7075_v52 = vrot.slane %v7046_v8, %v11226_v6 }
0x1d48   : > { %v7492_v60 = vmul.f32 %v7465_v2, %v7275_v7  ;;  %v7508_v7 = vmul.f32 %v13178_v61, %v11553_v21  ;;  %v7191_v2 = vrot.slane %v7177_v56, %v11221_v4 }
0x1d4a   : > { %v13523_v59 = vadd.f32 %v7492_v60, %v7420_v39  ;;  %v7266_v60 = vmul.f32 %v13528_v22, %v7126_v35  ;;  %v7207_v19 = vrot.slane %v7191_v2, %v11221_v4 }
0x1d4c   : > { %14759 = vst [vmem:[#allocation37_spill] sm:$0xff] %v13523_v59 }
0x1d50   : > { %v7469_v37 = vpop.permute.xlu1 %7468  ;;  %v13486_v33 = vpop.permute.xlu0 %7396 }
0x1d54   : > { %v7140_v12 = vpop.permute.xlu1 %7139  ;;  %v6986_v57 = vpop.permute.xlu0 %6985 }
0x1d55   : > { %v7268_v24 = vmul.f32 %v7237_v46, %v7140_v12  ;;  %v7114_v14 = vmul.f32 %v7083_v53, %v6986_v57  ;;  %v7112_v53 = vmul.f32 %v7075_v52, %v6972_v1  ;;  %v7091_v1 = vrot.slane %v7053_v17, %v11226_v6 }
0x1d57   : > { %v7276_v57 = vsub.f32 %v7114_v14, %v7268_v24  ;;  %v7274_v41 = vsub.f32 %v7112_v53, %v7266_v60  ;;  %v13548_v14 = vrot.slane %v7207_v19, %v11226_v6  ;;  %v7421_v24 = vmul.f32 %v13486_v33, %v13185_v58 }
0x1d58   : > { %v13492_v26 = vpop.permute.xlu1 %7472  ;;  %v13494_v43 = vpop.permute.xlu0 %7400 }
0x1d5c   : > { %v13498_v51 = vpop.permute.xlu1 %7146  ;;  %v13500_v48 = vpop.permute.xlu0 %6992 }
0x1d60   : > { %v13504_v40 = vpop.permute.xlu1 %7476  ;;  %v13506_v45 = vpop.permute.xlu0 %7404 }
0x1d64   : > { %v7154_v38 = vpop.permute.xlu1 %7153  ;;  %v7000_v55 = vpop.permute.xlu0 %6999 }
0x1d65   : > { %v7116_v52 = vmul.f32 %v7091_v1, %v7000_v55 }
0x1d68   : > { %v13510_v23 = vpop.permute.xlu1 %7480  ;;  %v13512_v47 = vpop.permute.xlu0 %7408 }
0x1d6c   : > { %v13521_v13 = vpop.permute.xlu0 %7160 }
0x1d6d   : > { %v7627_v29 = vpop.permute.xlu1 %7626 }
0x1d6e   : > { %v7654_v3 = vmul.f32 %v7627_v29, %v13523_v59  ;;  %v7070_v29 = vcombine.high %v7060_v42, %v7060_v42  ;;  %v7039_v42 = vcombine.high %v7037_v27, %v7037_v27 }
0x1d70   : > { %v13535_v39 = vadd.f32 %v7654_v3, %v7508_v7  ;;  %v13537_v12 = vpop.permute.xlu0 %7484  ;;  %v7493_v7 = vmul.f32 %v7469_v37, %v7276_v57  ;;  %v7087_v0 = vrot.slane %v7070_v29, %v11226_v6  ;;  %v7270_v3 = vmul.f32 %v13548_v14, %v7154_v38 }
0x1d71   : > { %v7007_v61 = vpop.permute.xlu1 %7006  ;;  %v7491_v37 = vmul.f32 %v13484_v15, %v7274_v41  ;;  %v7193_v57 = vcombine.high %v7191_v2, %v7191_v2  ;;  %v7509_v38 = vmul.f32 %v13205_v28, %v11553_v21  ;;  %v7067_v41 = vrot.slane %v7039_v42, %v11221_v4 }
0x1d72   : > { %v7904_v56 = vmul.f32 %v13535_v39, %v7233_v18  ;;  %v13554_v18 = vrot.slane %v7224_v63, %v11226_v6  ;;  %v13561_v53 = vadd.f32 %v7493_v7, %v7421_v24  ;;  %v7115_v27 = vmul.f32 %v7087_v0, %v13500_v48 }
0x1d73   : > { %v7278_v63 = vsub.f32 %v7116_v52, %v7270_v3  ;;  %v7221_v2 = vrot.slane %v7193_v57, %v11221_v4  ;;  %v7507_v48 = vmul.f32 %v13145_v54, %v11553_v21  ;;  %v7069_v28 = vcombine.high %v7053_v17, %v7053_v17 }
0x1d74   : > { %v13542_v59 = vpop.permute.xlu0 %7167  ;;  %v7914_v8 = vsel %vm1360_vm6, %v7904_v56, 0.0  ;;  %v14760_v56 = vld [vmem:[#allocation39_spill] sm:$0xff]  ;;  %v7269_v58 = vmul.f32 %v13554_v18, %v13498_v51  ;;  %v7095_v0 = vrot.slane %v7067_v41, %v11226_v6  ;;  %v7423_v54 = vmul.f32 %v13506_v45, %v13202_v30 }
0x1d75   : > { %v13545_v35 = vpop.permute.xlu1 %7412  ;;  %7915 = vadd.xlane.f32.xlu0 %v7914_v8  ;;  %v7419_v8 = vmul.f32 %v13482_v25, %v14760_v56  ;;  %v7495_v3 = vmul.f32 %v13504_v40, %v7278_v63  ;;  %v13586_v52 = vrot.slane %v7221_v2, %v11226_v6  ;;  %v7099_v40 = vrot.slane %v7069_v28, %v11226_v6 }
0x1d76   : > { %v7277_v7 = vsub.f32 %v7115_v27, %v7269_v58  ;;  %v7422_v27 = vmul.f32 %v13494_v43, %v13180_v5 }
0x1d77   : > { %v13572_v15 = vadd.f32 %v7491_v37, %v7419_v8  ;;  %v7223_v37 = vcombine.high %v7207_v19, %v7207_v19  ;;  %v7117_v8 = vmul.f32 %v7095_v0, %v7007_v61  ;;  %v7271_v19 = vmul.f32 %v13586_v52, %v13521_v13 }
0x1d78   : > { %v13558_v60 = vpop.permute.xlu0 %7488  ;;  %v7494_v58 = vmul.f32 %v13492_v26, %v7277_v7  ;;  %v13600_v30 = vadd.f32 %v7495_v3, %v7423_v54  ;;  %v7071_v61 = vcombine.high %v7067_v41, %v7067_v41  ;;  %v7511_v26 = vmul.f32 %v13222_v34, %v11553_v21  ;;  %v13613_v7 = vld [vmem:[%s14611_s16] ss:$0 sm:$0xff] }
0x1d79   : > { %v13603_v45 = vrot.slane %v7223_v37, %v11226_v6 }
0x1d7a   : > { %v7631_v33 = vpop.permute.xlu1 %7630  ;;  %v7103_v0 = vrot.slane %v7071_v61, %v11226_v6 }
0x1d7b   : > { %v7655_v55 = vmul.f32 %v7631_v33, %v13561_v53 }
0x1d7d   : > { %v13575_v29 = vadd.f32 %v7655_v55, %v7509_v38  ;;  %v7623_v25 = vpop.permute.xlu0 %7622  ;;  %v7225_v38 = vcombine.high %v7221_v2, %v7221_v2  ;;  %v7279_v55 = vsub.f32 %v7117_v8, %v7271_v19  ;;  %v7510_v2 = vmul.f32 %v13199_v44, %v11553_v21 }
0x1d7e   : > { %v7653_v51 = vmul.f32 %v7623_v25, %v13572_v15  ;;  %v7014_v1 = vpop.permute.xlu1 %7013  ;;  %v13610_v25 = vadd.f32 %v7494_v58, %v7422_v27  ;;  %v7424_v58 = vmul.f32 %v13512_v47, %v13251_v31  ;;  %v7512_v47 = vmul.f32 %v13259_v32, %v11553_v21 }
0x1d7f   : > { %v7905_v24 = vmul.f32 %v13575_v29, %v7237_v46  ;;  %v7118_v5 = vmul.f32 %v7099_v40, %v7014_v1  ;;  %v7257_v37 = vrot.slane %v7225_v38, %v11226_v6  ;;  %v7496_v44 = vmul.f32 %v13510_v23, %v7279_v55 }
0x1d80   : > { %v13582_v42 = vadd.f32 %v7653_v51, %v7507_v48  ;;  %v7272_v51 = vmul.f32 %v13603_v45, %v13542_v59  ;;  %v7425_v55 = vmul.f32 %v13545_v35, %v13234_v20  ;;  %v7513_v32 = vmul.f32 %v13243_v10, %v11553_v21 }
0x1d81   : > { %v7021_v57 = vpop.permute.xlu0 %7020  ;;  %v7917_v56 = vsel %vm1360_vm6, %v7905_v24, 0.0  ;;  %v13640_v38 = vadd.f32 %v7496_v44, %v7424_v58  ;;  %v7514_v20 = vmul.f32 %v13268_v36, %v11553_v21 }
0x1d82   : > { %v7417_v17 = vpop.permute.xlu1 %7416  ;;  %7918 = vadd.xlane.f32.xlu0 %v7917_v56  ;;  %v7903_v46 = vmul.f32 %v13582_v42, %v13528_v22  ;;  %v7280_v56 = vsub.f32 %v7118_v5, %v7272_v51  ;;  %v7119_v27 = vmul.f32 %v7103_v0, %v7021_v57 }
0x1d83   : > { %v7426_v5 = vmul.f32 %v7417_v17, %v13261_v11 }
0x1d84   : > { %v7911_v33 = vsel %vm1360_vm6, %v7903_v46, 0.0  ;;  %v7497_v31 = vmul.f32 %v13537_v12, %v7280_v56 }
0x1d85   : > { %7912 = vadd.xlane.f32.xlu1 %v7911_v33  ;;  %v7639_v22 = vpop.permute.xlu0 %7638 }
0x1d86   : > { %v7657_v43 = vmul.f32 %v7639_v22, %v13600_v30  ;;  %v7889_v63 = vpop.f32.mrf.mxu0  ;;  %v13608_v13 = vpop.f32.mrf.mxu1 }
0x1d87   : > { %v7890_v48 = vadd.f32 %v13613_v7, %v7889_v63  ;;  %v7635_v41 = vpop.permute.xlu1 %7634 }
0x1d88   : > { %v13618_v34 = vadd.f32 %v7657_v43, %v7511_v26  ;;  %v7656_v1 = vmul.f32 %v7635_v41, %v13610_v25  ;;  %v10320_v28 = vpop.f32.mrf.mxu0  ;;  %v10328_v24 = vpop.f32.mrf.mxu1  ;;  %v13655_v41 = vadd.f32 %v7497_v31, %v7425_v55 }
0x1d89   : > { %v13624_v3 = vmax.f32 %v7890_v48, 0.0  ;;  %v7651_v12 = vpop.permute.xlu0 %7650 }
0x1d8a   : > { %v13627_v54 = vadd.f32 %v7656_v1, %v7510_v2  ;;  %v7892_v59 = vpop.f32.mrf.mxu0  ;;  %v8772_v8 = vpop.f32.mrf.mxu1  ;;  %v7907_v46 = vmul.f32 %v13618_v34, %v13548_v14 }
0x1d8b   : > { %10071 = vst.msk [vmem:[%s11055_s23 + $0x30] sm:$0xff] %vm2451_vm15, %v13624_v3  ;;  %v7175_v40 = vpop.permute.xlu1 %7174 }
0x1d8c   : > { %v7273_v19 = vmul.f32 %v7257_v37, %v7175_v40  ;;  %v10321_v33 = vpop.f32.mrf.mxu0  ;;  %v10329_v61 = vpop.f32.mrf.mxu1  ;;  %v7923_v26 = vsel %vm1360_vm6, %v7907_v46, 0.0  ;;  %v7906_v22 = vmul.f32 %v13627_v54, %v13554_v18 }
0x1d8d   : > { %7924 = vadd.xlane.f32.xlu0 %v7923_v26 }
0x1d8e   : > { %v7281_v14 = vsub.f32 %v7119_v27, %v7273_v19  ;;  %v7920_v23 = vsel %vm1360_vm6, %v7906_v22, 0.0 }
0x1d8f   : > { %v7643_v57 = vpop.permute.xlu1 %7642  ;;  %7921 = vadd.xlane.f32.xlu1 %v7920_v23 }
0x1d90   : > { %v7498_v18 = vmul.f32 %v13558_v60, %v7281_v14  ;;  %v7658_v43 = vmul.f32 %v7643_v57, %v13640_v38 }
0x1d92   : > { %v13651_v63 = vadd.f32 %v7498_v18, %v7426_v5  ;;  %v13653_v48 = vadd.f32 %v7658_v43, %v7512_v47  ;;  %v14761_v18 = vld [vmem:[#allocation38_spill] sm:$0xff] }
0x1d93   : > { %v7647_v51 = vpop.permute.xlu1 %7646  ;;  %v1075_v43 = vadd.f32 %v13290_v50, %v14761_v18 }
0x1d94   : > { %v7659_v11 = vmul.f32 %v7647_v51, %v13655_v41  ;;  %v7908_v35 = vmul.f32 %v13653_v48, %v13586_v52  ;;  %v7660_v60 = vmul.f32 %v7651_v12, %v13651_v63 }
0x1d95   : > { %v1110_v51 = vmul.f32 %v1075_v43, %v1075_v43 }
0x1d96   : > { %v13665_v17 = vadd.f32 %v7659_v11, %v7513_v32  ;;  %v7926_v2 = vsel %vm1360_vm6, %v7908_v35, 0.0  ;;  %v13668_v1 = vadd.f32 %v7660_v60, %v7514_v20  ;;  %v1100_v32 = vsel %vm1078_vm7, %v1075_v43, 0.0 }
0x1d97   : > { %7927 = vadd.xlane.f32.xlu1 %v7926_v2  ;;  %v13697_v20 = vadd.f32 %v13297_v9, %v13608_v13  ;;  %v1132_v11 = vsel %vm1078_vm7, %v1110_v51, 0.0  ;;  %v8793_v2 = vld [vmem:[%s10895_s30] sm:$0xf] }
0x1d98   : > { %v7909_v10 = vmul.f32 %v13665_v17, %v13603_v45  ;;  %v7910_v28 = vmul.f32 %v13668_v1, %v7257_v37 }
0x1d99   : > { %v8775_v35 = vsel %vm1078_vm7, %v13697_v20, 0.0  ;;  %v8778_v50 = vmul.f32 %v13697_v20, %v13697_v20 }
0x1d9a   : > { %v7929_v36 = vsel %vm1360_vm6, %v7909_v10, 0.0  ;;  %v7932_v24 = vsel %vm1360_vm6, %v7910_v28, 0.0  ;;  %v8798_v10 = vsel %vm1364_vm3, %v8793_v2, 0  ;;  %v14767_v2 = vmov 1  }
0x1d9b   : > { %7930 = vadd.xlane.f32.xlu0 %v7929_v36  ;;  %7933 = vadd.xlane.f32.xlu1 %v7932_v24  ;;  %v8779_v60 = vsel %vm1078_vm7, %v8778_v50, 0.0 }
0x1d9c   : > { %10331 = vmatpush3.bf16.msra.mxu0 %v8798_v10  ;;  %v14768_v10 = vld [vmem:[#allocation42_spill] sm:$0xff] }
0x1dfe   : > { %v7916_v0 = vpop.xlane.xlu0 %7915 }
0x1dff   : > { %v7950_v8 = vrot.slane %v7916_v0, %v11285_v16 }
0x1e0b   : > { %v7919_v46 = vpop.xlane.xlu0 %7918 }
0x1e0c   : > { %v7954_v37 = vrot.slane %v7919_v46, %v11285_v16 }
0x1e0e   : > { %v7913_v52 = vpop.xlane.xlu1 %7912 }
0x1e0f   : > { %v7946_v56 = vrot.slane %v7913_v52, %v11285_v16 }
0x1e11   : > { %v7975_v44 = vsel %vm1698_vm8, %v7950_v8, %v7946_v56 }
0x1e12   : > { %v7976_v27 = vsel %vm1700_vm9, %v7954_v37, %v7975_v44 }
0x1e16   : > { %v7925_v58 = vpop.xlane.xlu0 %7924 }
0x1e17   : > { %v7962_v61 = vrot.slane %v7925_v58, %v11285_v16  ;;  %v14762_v58 = vld [vmem:[#allocation54_spill] sm:$0xff] }
0x1e18   : > { %v7922_v59 = vpop.xlane.xlu1 %7921 }
0x1e19   : > { %v7958_v45 = vrot.slane %v7922_v59, %v11285_v16 }
0x1e1b   : > { %v7977_v19 = vsel %vm1702_vm10, %v7958_v45, %v7976_v27  ;;  %v14763_v27 = vld [vmem:[#allocation41_spill] sm:$0xff] }
0x1e1c   : > { %v7978_v14 = vsel %vm1704_vm11, %v7962_v61, %v7977_v19  ;;  %v14764_v19 = vld [vmem:[#allocation55_spill] sm:$0xff] }
0x1e20   : > { %v7928_v40 = vpop.xlane.xlu1 %7927 }
0x1e21   : > { %v7966_v33 = vrot.slane %v7928_v40, %v11285_v16 }
0x1e23   : > { %v7979_v47 = vsel %vm1706_vm12, %v7966_v33, %v7978_v14  ;;  %v7989_v33 = vmul.f32 %v14764_v19, %v14763_v27  ;;  %v10069_v14 = vmul.f32 -1.442695, %v13624_v3 }
0x1e24   : > { %v7934_v26 = vpop.xlane.xlu1 %7933  ;;  %v7931_v22 = vpop.xlane.xlu0 %7930 }
0x1e25   : > { %v7974_v23 = vrot.slane %v7934_v26, %v11285_v16  ;;  %v7970_v31 = vrot.slane %v7931_v22, %v11285_v16 }
0x1e27   : > { %v7980_v57 = vsel %vm1708_vm13, %v7970_v31, %v7979_v47  ;;  %v14766_v47 = vld [vmem:[#allocation56_spill] sm:$0xff] }
0x1e28   : > { %v7981_v55 = vsel %vm1710_vm14, %v7974_v23, %v7980_v57 }
0x1e29   : > { %v7983_v5 = vadd.f32 %v7981_v55, %v13624_v3 }
0x1e2b   : > { %v7984_v12 = vsel %vm1714_vm0, %v7983_v5, -inf }
0x1e2c   : > { %7985 = vmax.xlane.f32.xlu0 %v7984_v12 }
0x1e30   : > { %1101 = vadd.xlane.f32.xlu0 %v1100_v32 }
0x1e34   : > { %1133 = vadd.xlane.f32.xlu0 %v1132_v11 }
0x1e38   : > { %8776 = vadd.xlane.f32.xlu0 %v8775_v35 }
0x1e3c   : > { %8780 = vadd.xlane.f32.xlu0 %v8779_v60 }
0x1eb5   : > { %v7986_v28 = vpop.xlane.xlu0 %7985 }
0x1eb6   : > { %vm7987_vm4 = vcmp.ge.f32.partialorder %v7983_v5, %v7986_v28 }
0x1eb7   : > { %v7988_v9 = vsel %vm7987_vm4, %v7983_v5, 0.0 }
0x1eb8   : > { %v7990_v13 = vmul.f32 %v7988_v9, %v14706_v49 }
0x1eb9   : > { %v1102_v36 = vpop.xlane.xlu0 %1101 }
0x1eba   : > { %v1142_v24 = vmul.f32 0.010416667, %v1102_v36  ;;  %7992 = vrot.lane.b32.xlu1 %v7990_v13, %s14630_s18 }
0x1ebc   : > { %v1158_v0 = vmul.f32 %v1142_v24, %v1142_v24  ;;  %v1174_v46 = vsub.f32 %v1075_v43, %v1142_v24 }
0x1ebd   : > { %v1134_v52 = vpop.xlane.xlu0 %1133 }
0x1ebe   : > { %v1150_v56 = vmul.f32 0.010416667, %v1134_v52 }
0x1ec0   : > { %v1166_v59 = vsub.f32 %v1150_v56, %v1158_v0 }
0x1ec1   : > { %v8777_v9 = vpop.xlane.xlu0 %8776 }
0x1ec2   : > { %v1182_v8 = vadd.f32 1e-05, %v1166_v59  ;;  %v8782_v36 = vmul.f32 0.010416667, %v8777_v9 }
0x1ec4   : > { %10648 = vrsqrt.f32 %v1182_v8  ;;  %v8784_v52 = vmul.f32 %v8782_v36, %v8782_v36 }
0x1ec5   : > { %10650 = vpow2.f32 %v10069_v14  ;;  %v8781_v13 = vpop.xlane.xlu0 %8780 }
0x1ec6   : > { %v8783_v24 = vmul.f32 0.010416667, %v8781_v13  ;;  %v10540_v13 = vld [vmem:[%s14604_s8 + $0x8] sm:$0xff]  }
0x1ec7   : > { %10337 = vmatpush3.bf16.msra.mxu1 %v10540_v13  ;;  %v14777_v13 = vld [vmem:[#allocation43_spill] sm:$0xff] }
0x1ec8   : > { %v8785_v0 = vsub.f32 %v8783_v24, %v8784_v52 }
0x1eca   : > { %v8787_v56 = vadd.f32 1e-05, %v8785_v0 }
0x1ed1   : > { %v10649_v44 = vpop.eup %10648 }
0x1ed2   : > { %v1198_v45 = vmul.f32 %v10649_v44, %v1174_v46  ;;  %v10651_v23 = vpop.eup %10650 }
0x1ed4   : > { %v1212_v37 = vmul.f32 %v13315_v62, %v1198_v45  ;;  %v7899_v62 = vadd.f32 1.0, %v10651_v23 }
0x1ed6   : > { %v1226_v40 = vadd.f32 %v14762_v58, %v1212_v37  ;;  %10652 = vrcp.f32 %v7899_v62 }
0x1ed7   : > { %10654 = vrsqrt.f32 %v8787_v56 }
0x1ed8   : > { %1234 = vst.msk [vmem:[#allocation2 + $0x38] sm:$0xff] %vm1078_vm7, %v1226_v40 }
0x1ee3   : > { %v13723_v51 = vpop.eup %10652 }
0x1ee4   : > { %v8333_v11 = vrot.slane %v13723_v51, %v11221_v4  ;;  %v10655_v40 = vpop.eup %10654  ;;  %v7996_v0 = vsub.f32 1.0, %v13723_v51 }
0x1ee6   : > { %v8341_v35 = vcombine.high %v8333_v11, %v8333_v11  ;;  %v8349_v52 = vrot.slane %v8333_v11, %v11221_v4 }
0x1ee8   : > { %v13728_v50 = vrot.slane %v8341_v35, %v11221_v4  ;;  %v8383_v56 = vsub.f32 1.0, %v8349_v52  ;;  %v8474_v11 = vrot.slane %v8349_v52, %v11226_v6 }
0x1eea   : > { %v8478_v60 = vrot.slane %v13728_v50, %v11226_v6 }
0x1f2c   : > { %v7993_v61 = vpop.permute.xlu1 %7992 }
0x1f2d   : > { %v13714_v26 = vadd.f32 %v7993_v61, %v7989_v33  ;;  %v8786_v33 = vsub.f32 %v13697_v20, %v8782_v36  ;;  %v10541_v36 = vld [vmem:[%s14604_s8] sm:$0xff]  }
0x1f2f   : > { %14765 = vst [vmem:[#allocation51_spill] sm:$0xff] %v13714_v26  ;;  %v8792_v22 = vpack.c.bf16 %v13714_v26, %v13714_v26  ;;  %v8020_v28 = vrot.slane %v13714_v26, %v14768_v10  ;;  %v8789_v61 = vmul.f32 %v10655_v40, %v8786_v33  ;;  %v14774_v33 = vld [vmem:[#allocation61_spill] sm:$0xff] }
0x1f31   : > { %10333 = vmatmul.mubr.msk.bf16.vlgmr.msra.gmra.mxu0 %vm1360_vm6, %v8792_v22  ;;  %v14769_v22 = vld [vmem:[#allocation57_spill] sm:$0xff] }
0x1f32   : > { %v8790_v14 = vmul.f32 %v14769_v22, %v8789_v61 }
0x1ff1   : > { %v8834_v31 = vpop.f32.mrf.mxu0 }
0x1ff2   : > { %v8835_v57 = vadd.f32 %v14766_v47, %v8834_v31  ;;  %v14770_v31 = vld [vmem:[#allocation58_spill] sm:$0xff] }
0x1ff3   : > { %v10334_v55 = vpop.f32.mrf.mxu0  ;;  %v8791_v47 = vadd.f32 %v14770_v31, %v8790_v14 }
0x1ff4   : > { %v8840_v5 = vsel %vm1078_vm7, %v8835_v57, 0.0  ;;  %v8843_v18 = vmul.f32 %v8835_v57, %v8835_v57 }
0x1ff5   : > { %8841 = vadd.xlane.f32.xlu1 %v8840_v5  ;;  %v8837_v43 = vpop.f32.mrf.mxu0  ;;  %v8718_v5 = vld [vmem:[#allocation2 + $0x38] sm:$0xff] }
0x1ff6   : > { %v8844_v12 = vsel %vm1078_vm7, %v8843_v18, 0.0  ;;  %v14771_v18 = vld [vmem:[#allocation59_spill] sm:$0xff] }
0x1ff7   : > { %8845 = vadd.xlane.f32.xlu0 %v8844_v12  ;;  %v10335_v32 = vpop.f32.mrf.mxu0  ;;  %v8857_v12 = vadd.f32 %v8791_v47, %v8718_v5  ;;  %v14775_v5 = vld [vmem:[#allocation50_spill] sm:$0xff] }
0x1ff8   : > { %v14772_v32 = vld [vmem:[#allocation60_spill] sm:$0xff] }
0x2006   : > { %8005 = vperm.xlu1 %10494, %v13723_v51  }
0x200a   : > { %10496 = vset.pattern.permute.xlu1 %v14767_v2 }
0x200b   : > { %8508 = vperm.xlu1 %10496, %v8478_v60  }
0x200f   : > { %8022 = vbcast.lane.b32.xlu1 %v8020_v28, 256 }
0x207e   : > { %v8842_v59 = vpop.xlane.xlu1 %8841 }
0x207f   : > { %v8847_v8 = vmul.f32 0.010416667, %v8842_v59  ;;  %v8402_v59 = vrot.slane %v8383_v56, %v11226_v6  ;;  %v14778_v56 = vld [vmem:[#allocation44_spill] sm:$0xff] }
0x2080   : > { %v8846_v46 = vpop.xlane.xlu0 %8845 }
0x2081   : > { %v8849_v44 = vmul.f32 %v8847_v8, %v8847_v8  ;;  %v8848_v45 = vmul.f32 0.010416667, %v8846_v46  ;;  %v8851_v23 = vsub.f32 %v8835_v57, %v8847_v8  ;;  %v14773_v57 = vmov 0.0  }
0x2082   : > { %10338 = vmatprep.subr.bf16.mxu1 %v14773_v57  ;;  %v8384_v8 = vsub.f32 1.0, %v13728_v50  ;;  %v8006_v31 = vpop.permute.xlu1 %8005 }
0x2083   : > { %v8850_v37 = vsub.f32 %v8848_v45, %v8849_v44  ;;  %10339 = vmatpush3.bf16.msra.mxu1 %v10541_v36  ;;  %v8013_v44 = vrot.slane %v13714_v26, %v11226_v6 }
0x2084   : > { %v8406_v46 = vrot.slane %v8384_v8, %v11226_v6  ;;  %v8034_v8 = vrot.slane %v13714_v26, %v14778_v56 }
0x2085   : > { %v8852_v58 = vadd.f32 1e-05, %v8850_v37 }
0x2087   : > { %10656 = vrsqrt.f32 %v8852_v58 }
0x2094   : > { %v10657_v62 = vpop.eup %10656 }
0x2095   : > { %v8854_v55 = vmul.f32 %v10657_v62, %v8851_v23 }
0x2097   : > { %v8855_v43 = vmul.f32 %v14771_v18, %v8854_v55  ;;  %v8008_v55 = vmul.f32 %v8006_v31, %v14764_v19 }
0x2099   : > { %v8856_v35 = vadd.f32 %v14772_v32, %v8855_v43  ;;  %v8371_v43 = vcombine.high %v8349_v52, %v8349_v52 }
0x209b   : > { %v8858_v60 = vadd.f32 %v8857_v12, %v8856_v35 }
0x209d   : > { %v10076_v28 = vmul.f32 -1.442695, %v8858_v60 }
0x209f   : > { %10658 = vpow2.f32 %v10076_v28  ;;  %v8482_v28 = vrot.slane %v8371_v43, %v11226_v6 }
0x20ac   : > { %v10659_v20 = vpop.eup %10658 }
0x20ad   : > { %v8862_v9 = vadd.f32 1.0, %v10659_v20  ;;  %v8373_v20 = vcombine.high %v13728_v50, %v13728_v50 }
0x20af   : > { %10660 = vrcp.f32 %v8862_v9  ;;  %v8326_v9 = vcombine.high %v13723_v51, %v13723_v51  ;;  %v8386_v36 = vsub.f32 1.0, %v8373_v20  ;;  %v8486_v52 = vrot.slane %v8373_v20, %v11226_v6 }
0x20b0   : > { %10662 = vtanh.f32 %v13624_v3  ;;  %v8027_v3 = vrot.slane %v13714_v26, %v14777_v13 }
0x20b1   : > { %v8414_v50 = vrot.slane %v8386_v36, %v11226_v6 }
0x20bc   : > { %v10661_v24 = vpop.eup %10660 }
0x20bd   : > { %8868 = vrot.lane.b32.xlu0 %v10661_v24, %s14618_s21  ;;  %v8865_v37 = vsub.f32 1.0, %v10661_v24  ;;  %v10663_v51 = vpop.eup %10662  ;;  %s10088_s21 = sshll.u32 %s11003_s0, 10 }
0x20bf   : > { %v8866_v61 = vmul.f32 %v8865_v37, %v14774_v33  ;;  %v14779_v33 = vld [vmem:[#allocation45_spill] sm:$0xff] }
0x20c1   : > { %8873 = vrot.lane.b32.xlu0 %v8858_v60, %s14619_s29  ;;  %v8385_v60 = vsub.f32 1.0, %v8371_v43 }
0x20c3   : > { %v8410_v19 = vrot.slane %v8385_v60, %v11226_v6 }
0x20c5   : > { %7999 = vperm.xlu0 %10493, %v7996_v0  }
0x20c9   : > { %10495 = vset.pattern.permute.xlu0 %v14767_v2 }
0x20ca   : > { %8432 = vperm.xlu0 %10495, %v8402_v59  }
0x20ce   : > { %8436 = vperm.xlu0 %10495, %v8406_v46  }
0x20d2   : > { %8504 = vperm.xlu0 %10495, %v8474_v11  }
0x20d6   : > { %8015 = vbcast.lane.b32.xlu0 %v8013_v44, 256  ;;  %v8567_v44 = vrot.slane %v10663_v51, %v11221_v4 }
0x20d8   : > { %v8583_v60 = vrot.slane %v8567_v44, %v11221_v4 }
0x212f   : > { %v8869_v45 = vpop.permute.xlu0 %8868 }
0x2130   : > { %v8871_v58 = vmul.f32 %v10661_v24, %v8869_v45  ;;  %v8340_v24 = vrot.slane %v8326_v9, %v11221_v4  ;;  %v8560_v9 = vcombine.high %v10663_v51, %v10663_v51 }
0x2132   : > { %v8356_v0 = vrot.slane %v8340_v24, %v11221_v4  ;;  %v8342_v11 = vcombine.high %v8340_v24, %v8340_v24 }
0x2133   : > { %v8874_v40 = vpop.permute.xlu0 %8873 }
0x2134   : > { %v8876_v22 = vmul.f32 %v8874_v40, %v8871_v58  ;;  %v8387_v46 = vsub.f32 1.0, %v8356_v0  ;;  %v8490_v45 = vrot.slane %v8356_v0, %v11226_v6  ;;  %v8370_v58 = vrot.slane %v8342_v11, %v11221_v4 }
0x2135   : > { %v8575_v40 = vcombine.high %v8567_v44, %v8567_v44  ;;  %v8372_v43 = vcombine.high %v8356_v0, %v8356_v0 }
0x2136   : > { %v8877_v14 = vadd.f32 %v8876_v22, %v8866_v61  ;;  %v8418_v37 = vrot.slane %v8387_v46, %v11226_v6  ;;  %v8041_v22 = vrot.slane %v13714_v26, %v14779_v33  ;;  %v8374_v24 = vcombine.high %v8370_v58, %v8370_v58 }
0x2137   : > { %v8389_v20 = vsub.f32 1.0, %v8372_v43 }
0x2138   : > { %v8878_v23 = vmax.f32 %v8877_v14, 0.0  ;;  %9762 = vst.msk [vmem:[%s14581_s4] sm:$0xff] %vm1279_vm5, %v8877_v14  ;;  %v8388_v14 = vsub.f32 1.0, %v8370_v58  ;;  %s10824_s4 = smov [#allocation6]  }
0x2139   : > { %s10723_s5 = sshll.u32 %s10824_s4, 4  ;;  %s10724_s5 = int_to_ptr.vmem [resolvable:$false] %s10723_s5 }
0x213a   : > { %v8879_v62 = vpack.c.bf16 %v8878_v23, %v8878_v23  ;;  %10081 = vst.msk [vmem:[%s11057_s11 + $0x38] sm:$0xff] %vm1279_vm5, %v8878_v23  ;;  %9761 = vst.msk [vmem:[%s10955_s27] sm:$0xff] %vm1279_vm5, %v8878_v23  ;;  %v8597_v23 = vrot.slane %v8575_v40, %v11221_v4  ;;  %v8422_v31 = vrot.slane %v8388_v14, %v11226_v6  ;;  %s10725_s0 = scalar_lea.vmem %s10724_s5, 2048  ;;  %p10726_p11 = scmp.lt.s32.totalorder %s14188_s25, %s10724_s5 }
0x213b   : > { %p10727_p12 = scmp.lt.s32.totalorder %s10725_s0, %s10719_s3 }
0x213c   : > { %10341 = vmatmul.mubr.msk.bf16.vlgmr.msra.gmra.mxu1 %vm1279_vm5, %v8879_v62  ;;  %v8494_v62 = vrot.slane %v8370_v58, %v11226_v6  ;;  %v8390_v58 = vsub.f32 1.0, %v8374_v24  ;;  %v8607_v40 = vcombine.high %v8597_v23, %v8597_v23 }
0x213d   : > { %p10728_p13 = por %p10727_p12, %p10726_p11 }
0x213f   : > { %p10729_p0 = pnand %p10728_p13, %p10722_p10 }
0x2140   : > { %v8000_v47 = vpop.permute.xlu0 %7999 }
0x2141   : > { %v8002_v18 = vmul.f32 %v8000_v47, %v14775_v5  ;;  %v14780_v47 = vld [vmem:[#allocation46_spill] sm:$0xff]  ;;  %v14781_v5 = vld [vmem:[#allocation47_spill] sm:$0xff] }
0x2142   : > { %v8617_v51 = vmul.f32 %v8583_v60, %v14780_v47 }
0x2143   : > { %v13765_v12 = vadd.f32 %v8008_v55, %v8002_v18  ;;  %v8618_v55 = vmul.f32 %v8597_v23, %v14780_v47 }
0x2144   : > { %v8636_v11 = vrot.slane %v8617_v51, %v11226_v6 }
0x2145   : > { %14776 = vst [vmem:[#allocation36_spill] sm:$0xff] %v13765_v12  ;;  %v8174_v32 = vrot.slane %v13765_v12, %v14768_v10  ;;  %v8167_v35 = vrot.slane %v13765_v12, %v11226_v6  ;;  %v8181_v57 = vrot.slane %v13765_v12, %v14777_v13  ;;  %v8188_v59 = vrot.slane %v13765_v12, %v14778_v56 }
0x2146   : > { %v8195_v61 = vrot.slane %v13765_v12, %v14779_v33  ;;  %v8202_v18 = vrot.slane %v13765_v12, %v14781_v5  ;;  %v8067_v10 = vcombine.high %v13765_v12, %v13765_v12 }
0x2147   : > { %8176 = vbcast.lane.b32.xlu1 %v8174_v32, 256  ;;  %8169 = vbcast.lane.b32.xlu0 %v8167_v35, 256  ;;  %v8640_v32 = vrot.slane %v8618_v55, %v11226_v6  ;;  %v14782_v35 = vmov 2   ;;  %v8620_v55 = vmul.f32 %v8607_v40, %v14780_v47 }
0x2149   : > { %v8648_v23 = vrot.slane %v8620_v55, %v11226_v6 }
0x214b   : > { %8512 = vperm.xlu1 %10496, %v8482_v28   ;;  %8440 = vperm.xlu0 %10495, %v8410_v19   ;;  %v8498_v28 = vrot.slane %v8372_v43, %v11226_v6  ;;  %v8048_v19 = vrot.slane %v13714_v26, %v14781_v5 }
0x214f   : > { %8183 = vbcast.lane.b32.xlu1 %v8181_v57, 256  ;;  %8029 = vbcast.lane.b32.xlu0 %v8027_v3, 256  ;;  %v8605_v57 = vcombine.high %v8583_v60, %v8583_v60  ;;  %v14783_v3 = vld [vmem:[#allocation48_spill] sm:$0xff] }
0x2150   : > { %v8209_v36 = vrot.slane %v13765_v12, %v14783_v3 }
0x2151   : > { %v8619_v0 = vmul.f32 %v8605_v57, %v14780_v47  ;;  %v14785_v57 = vmov 0  }
0x2153   : > { %8516 = vperm.xlu1 %10496, %v8486_v52   ;;  %8444 = vperm.xlu0 %10495, %v8414_v50   ;;  %v8426_v52 = vrot.slane %v8389_v20, %v11226_v6  ;;  %v8574_v50 = vrot.slane %v8560_v9, %v11221_v4  ;;  %v8644_v46 = vrot.slane %v8619_v0, %v11226_v6 }
0x2155   : > { %v8590_v44 = vrot.slane %v8574_v50, %v11221_v4 }
0x2157   : > { %8190 = vbcast.lane.b32.xlu1 %v8188_v59, 256  ;;  %8036 = vbcast.lane.b32.xlu0 %v8034_v8, 256  ;;  %v8502_v59 = vrot.slane %v8374_v24, %v11226_v6  ;;  %v8576_v8 = vcombine.high %v8574_v50, %v8574_v50  ;;  %v8621_v14 = vmul.f32 %v8590_v44, %v14780_v47  ;;  %v13845_v24 = vpop.permute.xlu0 %8432  ;;  %v8509_v50 = vpop.permute.xlu1 %8508 }
0x215b   : > { %8520 = vperm.xlu1 %10496, %v8490_v45   ;;  %8448 = vperm.xlu0 %10495, %v8418_v37   ;;  %v8604_v45 = vrot.slane %v8576_v8, %v11221_v4  ;;  %v8055_v37 = vrot.slane %v13714_v26, %v14783_v3 }
0x215f   : > { %8197 = vbcast.lane.b32.xlu1 %v8195_v61, 256  ;;  %8043 = vbcast.lane.b32.xlu0 %v8041_v22, 256  ;;  %v14784_v61 = vld [vmem:[#allocation49_spill] sm:$0xff] }
0x2160   : > { %v8062_v22 = vrot.slane %v13714_v26, %v14784_v61  ;;  %v8216_v60 = vrot.slane %v13765_v12, %v14784_v61 }
0x2163   : > { %8524 = vperm.xlu1 %10496, %v8494_v62   ;;  %8452 = vperm.xlu0 %10495, %v8422_v31   ;;  %v8608_v62 = vcombine.high %v8604_v45, %v8604_v45  ;;  %v8430_v31 = vrot.slane %v8390_v58, %v11226_v6 }
0x2165   : > { %v8624_v43 = vmul.f32 %v8608_v62, %v14780_v47 }
0x2167   : > { %10497 = vset.pattern.permute.xlu1 %v14782_v35  ;;  %8204 = vbcast.lane.b32.xlu0 %v8202_v18, 256  ;;  %v8652_v18 = vrot.slane %v8621_v14, %v11226_v6 }
0x2168   : > { %8670 = vperm.xlu1 %10497, %v8640_v32   ;;  %v8664_v32 = vrot.slane %v8624_v43, %v11226_v6 }
0x216b   : > { %8528 = vperm.xlu0 %10495, %v8498_v28   ;;  %v8622_v28 = vmul.f32 %v8604_v45, %v14780_v47  ;;  %v8074_v45 = vrot.slane %v13765_v12, %v11221_v4 }
0x216c   : > { %8050 = vbcast.lane.b32.xlu1 %v8048_v19, 256  ;;  %v8606_v19 = vcombine.high %v8590_v44, %v8590_v44 }
0x216d   : > { %10498 = vset.pattern.permute.xlu1 %v14767_v2  ;;  %v8656_v20 = vrot.slane %v8622_v28, %v11226_v6 }
0x216e   : > { %v8623_v9 = vmul.f32 %v8606_v19, %v14780_v47 }
0x216f   : > { %8211 = vbcast.lane.b32.xlu0 %v8209_v36, 256 }
0x2170   : > { %8456 = vperm.xlu1 %10498, %v8426_v52   ;;  %v8660_v36 = vrot.slane %v8623_v9, %v11226_v6  ;;  %v8437_v52 = vpop.permute.xlu0 %8436 }
0x2173   : > { %8532 = vperm.xlu0 %10495, %v8502_v59   ;;  %v8023_v59 = vpop.permute.xlu1 %8022 }
0x2174   : > { %10499 = vset.pattern.permute.xlu1 %v14782_v35  ;;  %v13847_v0 = vpop.permute.xlu0 %8504 }
0x2175   : > { %8674 = vperm.xlu1 %10499, %v8644_v46  }
0x2177   : > { %10501 = vset.pattern.permute.xlu0 %v14782_v35 }
0x2178   : > { %8666 = vperm.xlu0 %10501, %v8636_v11   ;;  %v8016_v51 = vpop.permute.xlu0 %8015 }
0x2179   : > { %8057 = vbcast.lane.b32.xlu1 %v8055_v37, 256  ;;  %v8228_v37 = vrot.slane %v13714_v26, %v11221_v4 }
0x217a   : > { %10500 = vset.pattern.permute.xlu1 %v14767_v2 }
0x217b   : > { %v8236_v14 = vcombine.high %v8228_v37, %v8228_v37 }
0x217c   : > { %8064 = vbcast.lane.b32.xlu0 %v8062_v22, 256  ;;  %v8082_v22 = vcombine.high %v8074_v45, %v8074_v45 }
0x217d   : > { %8460 = vperm.xlu1 %10500, %v8430_v31  }
0x217e   : > { %v8104_v55 = vrot.slane %v8082_v22, %v11221_v4 }
0x2180   : > { %8682 = vperm.xlu0 %10501, %v8652_v18   ;;  %v8258_v18 = vrot.slane %v8236_v14, %v11221_v4 }
0x2181   : > { %10502 = vset.pattern.permute.xlu1 %v14782_v35 }
0x2182   : > { %8678 = vperm.xlu1 %10502, %v8648_v23  }
0x2184   : > { %8694 = vperm.xlu0 %10501, %v8664_v32   ;;  %v8123_v32 = vrot.slane %v8104_v55, %v11226_v6 }
0x2186   : > { %8218 = vbcast.lane.b32.xlu1 %v8216_v60, 256  ;;  %v8277_v60 = vrot.slane %v8258_v18, %v11226_v6  ;;  %v8157_v9 = vmul.f32 %v8123_v32, %v8023_v59  ;;  %v8221_v59 = vcombine.high %v13714_v26, %v13714_v26 }
0x2188   : > { %10504 = vset.pattern.permute.xlu0 %v14785_v57  ;;  %v8235_v12 = vrot.slane %v8221_v59, %v11221_v4  ;;  %v8268_v59 = vcombine.high %v8258_v18, %v8258_v18 }
0x218a   : > { %8686 = vperm.xlu1 %10502, %v8656_v20   ;;  %v8251_v26 = vrot.slane %v8235_v12, %v11221_v4  ;;  %v13917_v18 = vrot.slane %v8268_v59, %v11226_v6 }
0x218e   : > { %8690 = vperm.xlu1 %10502, %v8660_v36   ;;  %v8244_v36 = vrot.slane %v8228_v37, %v11221_v4 }
0x2190   : > { %v8266_v33 = vcombine.high %v8244_v36, %v8244_v36 }
0x2192   : > { %10503 = vset.pattern.permute.xlu1 %v14785_v57  ;;  %v8090_v57 = vrot.slane %v8074_v45, %v11221_v4  ;;  %v8281_v37 = vrot.slane %v8266_v33, %v11226_v6 }
0x2194   : > { %v8112_v3 = vcombine.high %v8090_v57, %v8090_v57  ;;  %v8119_v33 = vrot.slane %v8090_v57, %v11226_v6 }
0x2196   : > { %v8127_v45 = vrot.slane %v8112_v3, %v11226_v6 }
0x21b9   : > { %v8170_v8 = vpop.permute.xlu0 %8169  ;;  %v8177_v46 = vpop.permute.xlu1 %8176 }
0x21ba   : > { %v8311_v28 = vmul.f32 %v8277_v60, %v8177_v46  ;;  %v14786_v46 = vld [vmem:[#allocation37_spill] sm:$0xff] }
0x21bb   : > { %v8464_v56 = vmul.f32 %v8437_v52, %v14786_v46  ;;  %v8081_v46 = vrot.slane %v8067_v10, %v11221_v4 }
0x21bc   : > { %v8319_v22 = vsub.f32 %v8157_v9, %v8311_v28 }
0x21be   : > { %v8536_v5 = vmul.f32 %v8509_v50, %v8319_v22  ;;  %v8552_v50 = vmul.f32 %v13535_v39, %v11553_v21  ;;  %v13891_v22 = vrot.slane %v8244_v36, %v11226_v6  ;;  %v8097_v36 = vrot.slane %v8081_v46, %v11221_v4 }
0x21c0   : > { %v13886_v28 = vadd.f32 %v8536_v5, %v8464_v56  ;;  %v8310_v56 = vmul.f32 %v13891_v22, %v8170_v8 }
0x21c2   : > { %14787 = vst [vmem:[#allocation35_spill] sm:$0xff] %v13886_v28 }
0x21c6   : > { %v13849_v11 = vpop.permute.xlu0 %8440  ;;  %v8513_v44 = vpop.permute.xlu1 %8512 }
0x21ca   : > { %v8030_v58 = vpop.permute.xlu0 %8029  ;;  %v8184_v40 = vpop.permute.xlu1 %8183 }
0x21cb   : > { %v8158_v9 = vmul.f32 %v8127_v45, %v8030_v58  ;;  %v8312_v49 = vmul.f32 %v8281_v37, %v8184_v40  ;;  %v8156_v45 = vmul.f32 %v8119_v33, %v8016_v51  ;;  %v13912_v51 = vrot.slane %v8251_v26, %v11226_v6 }
0x21cd   : > { %v8320_v40 = vsub.f32 %v8158_v9, %v8312_v49  ;;  %v8318_v35 = vsub.f32 %v8156_v45, %v8310_v56  ;;  %v8135_v49 = vrot.slane %v8097_v36, %v11226_v6  ;;  %v8465_v9 = vmul.f32 %v13849_v11, %v13561_v53 }
0x21ce   : > { %v13855_v62 = vpop.permute.xlu0 %8444  ;;  %v13857_v31 = vpop.permute.xlu1 %8516 }
0x21d2   : > { %v13861_v43 = vpop.permute.xlu0 %8036  ;;  %v13863_v23 = vpop.permute.xlu1 %8190 }
0x21d3   : > { %v8313_v11 = vmul.f32 %v13917_v18, %v13863_v23 }
0x21d6   : > { %v13867_v19 = vpop.permute.xlu0 %8448  ;;  %v13869_v20 = vpop.permute.xlu1 %8520 }
0x21da   : > { %v8044_v14 = vpop.permute.xlu0 %8043  ;;  %v8198_v27 = vpop.permute.xlu1 %8197 }
0x21db   : > { %v8314_v33 = vmul.f32 %v13912_v51, %v8198_v27 }
0x21de   : > { %v13873_v13 = vpop.permute.xlu0 %8452  ;;  %v13875_v61 = vpop.permute.xlu1 %8524 }
0x21e2   : > { %v13884_v32 = vpop.permute.xlu0 %8204 }
0x21e3   : > { %v8671_v52 = vpop.permute.xlu1 %8670 }
0x21e4   : > { %v8698_v3 = vmul.f32 %v8671_v52, %v13886_v28  ;;  %v8114_v52 = vcombine.high %v8104_v55, %v8104_v55  ;;  %v8083_v55 = vcombine.high %v8081_v46, %v8081_v46 }
0x21e6   : > { %v13898_v5 = vadd.f32 %v8698_v3, %v8552_v50  ;;  %v13900_v58 = vpop.permute.xlu0 %8528  ;;  %v8537_v50 = vmul.f32 %v8513_v44, %v8320_v40  ;;  %v8160_v3 = vmul.f32 %v8135_v49, %v8044_v14  ;;  %v8535_v44 = vmul.f32 %v13847_v0, %v8318_v35 }
0x21e7   : > { %v8051_v39 = vpop.permute.xlu1 %8050  ;;  %v8237_v40 = vcombine.high %v8235_v12, %v8235_v12  ;;  %v8553_v14 = vmul.f32 %v13575_v29, %v11553_v21  ;;  %v8111_v35 = vrot.slane %v8083_v55, %v11221_v4  ;;  %v8113_v29 = vcombine.high %v8097_v36, %v8097_v36 }
0x21e8   : > { %v8948_v10 = vmul.f32 %v13898_v5, %v8277_v60  ;;  %v8131_v60 = vrot.slane %v8114_v52, %v11226_v6  ;;  %v13924_v45 = vadd.f32 %v8537_v50, %v8465_v9  ;;  %v8322_v59 = vsub.f32 %v8160_v3, %v8314_v33 }
0x21e9   : > { %v8265_v0 = vrot.slane %v8237_v40, %v11221_v4  ;;  %v8139_v49 = vrot.slane %v8111_v35, %v11226_v6  ;;  %v8267_v3 = vcombine.high %v8251_v26, %v8251_v26 }
0x21ea   : > { %v13905_v28 = vpop.permute.xlu0 %8211  ;;  %v8958_v8 = vsel %vm1360_vm6, %v8948_v10, 0.0  ;;  %v8463_v10 = vmul.f32 %v13845_v24, %v13572_v15  ;;  %v8159_v53 = vmul.f32 %v8131_v60, %v13861_v43  ;;  %v8551_v43 = vmul.f32 %v13582_v42, %v11553_v21 }
0x21eb   : > { %8959 = vadd.xlane.f32.xlu0 %v8958_v8  ;;  %v13908_v57 = vpop.permute.xlu1 %8456  ;;  %v8539_v55 = vmul.f32 %v13869_v20, %v8322_v59  ;;  %v13949_v60 = vrot.slane %v8265_v0, %v11226_v6  ;;  %v8467_v42 = vmul.f32 %v13867_v19, %v13600_v30  ;;  %v8161_v40 = vmul.f32 %v8139_v49, %v8051_v39 }
0x21ec   : > { %v13935_v12 = vadd.f32 %v8535_v44, %v8463_v10  ;;  %v8321_v24 = vsub.f32 %v8159_v53, %v8313_v11  ;;  %v8143_v20 = vrot.slane %v8113_v29, %v11226_v6  ;;  %v8466_v53 = vmul.f32 %v13855_v62, %v13610_v25 }
0x21ed   : > { %v8315_v26 = vmul.f32 %v13949_v60, %v13884_v32  ;;  %v13962_v11 = vadd.f32 %v8539_v55, %v8467_v42  ;;  %v13966_v19 = vrot.slane %v8267_v3, %v11226_v6  ;;  %v8115_v39 = vcombine.high %v8111_v35, %v8111_v35 }
0x21ee   : > { %v13921_v56 = vpop.permute.xlu0 %8532  ;;  %v8538_v10 = vmul.f32 %v13857_v31, %v8321_v24 }
0x21ef   : > { %v8316_v35 = vmul.f32 %v13966_v19, %v13905_v28 }
0x21f0   : > { %v8675_v46 = vpop.permute.xlu1 %8674  ;;  %v13971_v32 = vadd.f32 %v8538_v10, %v8466_v53 }
0x21f1   : > { %v8699_v27 = vmul.f32 %v8675_v46, %v13924_v45  ;;  %v8269_v46 = vcombine.high %v8265_v0, %v8265_v0 }
0x21f3   : > { %v13938_v52 = vadd.f32 %v8699_v27, %v8553_v14  ;;  %v8667_v15 = vpop.permute.xlu0 %8666  ;;  %v8323_v14 = vsub.f32 %v8161_v40, %v8315_v26  ;;  %v8301_v29 = vrot.slane %v8269_v46, %v11226_v6  ;;  %v8469_v26 = vmul.f32 %v13908_v57, %v13655_v41 }
0x21f4   : > { %v8697_v23 = vmul.f32 %v8667_v15, %v13935_v12  ;;  %v8058_v8 = vpop.permute.xlu1 %8057  ;;  %v8558_v41 = vmul.f32 %v13668_v1, %v11553_v21 }
0x21f5   : > { %v8949_v50 = vmul.f32 %v13938_v52, %v8281_v37  ;;  %v8162_v27 = vmul.f32 %v8143_v20, %v8058_v8  ;;  %v8540_v55 = vmul.f32 %v13875_v61, %v8323_v14 }
0x21f6   : > { %v13945_v9 = vadd.f32 %v8697_v23, %v8551_v43  ;;  %v8147_v23 = vrot.slane %v8115_v39, %v11226_v6 }
0x21f7   : > { %v8065_v33 = vpop.permute.xlu0 %8064  ;;  %v8961_v44 = vsel %vm1360_vm6, %v8949_v50, 0.0 }
0x21f8   : > { %8962 = vadd.xlane.f32.xlu0 %v8961_v44  ;;  %v8461_v36 = vpop.permute.xlu1 %8460  ;;  %v8947_v37 = vmul.f32 %v13945_v9, %v13891_v22  ;;  %v8555_v22 = vmul.f32 %v13618_v34, %v11553_v21  ;;  %v8554_v34 = vmul.f32 %v13627_v54, %v11553_v21  ;;  %v8468_v54 = vmul.f32 %v13873_v13, %v13640_v38 }
0x21f9   : > { %v8163_v42 = vmul.f32 %v8147_v23, %v8065_v33  ;;  %v8556_v33 = vmul.f32 %v13653_v48, %v11553_v21  ;;  %v8557_v48 = vmul.f32 %v13665_v17, %v11553_v21 }
0x21fa   : > { %v8955_v30 = vsel %vm1360_vm6, %v8947_v37, 0.0  ;;  %v14000_v38 = vadd.f32 %v8540_v55, %v8468_v54 }
0x21fb   : > { %v8683_v31 = vpop.permute.xlu0 %8682  ;;  %8956 = vadd.xlane.f32.xlu1 %v8955_v30  ;;  %v8470_v30 = vmul.f32 %v8461_v36, %v13651_v63 }
0x21fc   : > { %v8701_v25 = vmul.f32 %v8683_v31, %v13962_v11  ;;  %v8933_v62 = vpop.f32.mrf.mxu1  ;;  %14789 = vst [vmem:[#allocation53_spill] sm:$0xff] %v14000_v38 }
0x21fd   : > { %v8934_v59 = vadd.f32 %v13613_v7, %v8933_v62  ;;  %v8679_v15 = vpop.permute.xlu1 %8678  ;;  %v8324_v7 = vsub.f32 %v8162_v27, %v8316_v35 }
0x21fe   : > { %v13976_v24 = vadd.f32 %v8701_v25, %v8555_v22  ;;  %v8700_v0 = vmul.f32 %v8679_v15, %v13971_v32  ;;  %v10342_v43 = vpop.f32.mrf.mxu1 }
0x21ff   : > { %v13982_v8 = vmax.f32 %v8934_v59, 0.0  ;;  %v8541_v13 = vmul.f32 %v13900_v58, %v8324_v7  ;;  %v8695_v58 = vpop.permute.xlu0 %8694 }
0x2200   : > { %14788 = vst [vmem:[#allocation52_spill] sm:$0xff] %v13976_v24  ;;  %v13985_v50 = vadd.f32 %v8700_v0, %v8554_v34  ;;  %v8936_v49 = vpop.f32.mrf.mxu1  ;;  %v8951_v28 = vmul.f32 %v13976_v24, %v13912_v51 }
0x2201   : > { %v10080_v3 = vmul.f32 -1.442695, %v13982_v8  ;;  %10082 = vst.msk [vmem:[%s11055_s23 + $0x38] sm:$0xff] %vm2451_vm15, %v13982_v8  ;;  %v8219_v44 = vpop.permute.xlu1 %8218  ;;  %v14014_v46 = vadd.f32 %v8541_v13, %v8469_v26  ;;  %s14806_s23 = sld [smem:[#allocation29_spill]] }
0x2202   : > { %v8317_v40 = vmul.f32 %v8301_v29, %v8219_v44  ;;  %v10343_v37 = vpop.f32.mrf.mxu1  ;;  %v8967_v10 = vsel %vm1360_vm6, %v8951_v28, 0.0  ;;  %v8950_v20 = vmul.f32 %v13985_v50, %v13917_v18 }
0x2203   : > { %10664 = vpow2.f32 %v10080_v3  ;;  %8968 = vadd.xlane.f32.xlu0 %v8967_v10  ;;  %14791 = vst [vmem:[#allocation38_spill] sm:$0xff] %v14014_v46 }
0x2204   : > { %v8325_v61 = vsub.f32 %v8163_v42, %v8317_v40  ;;  %v8964_v51 = vsel %vm1360_vm6, %v8950_v20, 0.0 }
0x2205   : > { %8965 = vadd.xlane.f32.xlu1 %v8964_v51  ;;  %v8687_v53 = vpop.permute.xlu1 %8686 }
0x2206   : > { %v8542_v18 = vmul.f32 %v13921_v56, %v8325_v61  ;;  %v8702_v39 = vmul.f32 %v8687_v53, %v14000_v38 }
0x2207   : > { %s14185_s29 = scalar_lea.hbm %s14806_s23, %s10088_s21 }
0x2208   : > { %v14010_v22 = vadd.f32 %v8542_v18, %v8470_v30  ;;  %v14012_v31 = vadd.f32 %v8702_v39, %v8556_v33 }
0x2209   : > { %v8691_v14 = vpop.permute.xlu1 %8690 }
0x220a   : > { %14790 = vst [vmem:[#allocation39_spill] sm:$0xff] %v14012_v31  ;;  %v8703_v27 = vmul.f32 %v8691_v14, %v14014_v46  ;;  %v8952_v63 = vmul.f32 %v14012_v31, %v13949_v60  ;;  %v8704_v57 = vmul.f32 %v8695_v58, %v14010_v22 }
0x220c   : > { %v14024_v56 = vadd.f32 %v8703_v27, %v8557_v48  ;;  %v8970_v36 = vsel %vm1360_vm6, %v8952_v63, 0.0  ;;  %v14027_v25 = vadd.f32 %v8704_v57, %v8558_v41 }
0x220d   : > { %8971 = vadd.xlane.f32.xlu1 %v8970_v36 }
0x220e   : > { %14792 = vst [vmem:[#allocation54_spill] sm:$0xff] %v14024_v56  ;;  %v8954_v17 = vmul.f32 %v14027_v25, %v8301_v29  ;;  %v8953_v62 = vmul.f32 %v14024_v56, %v13966_v19 }
0x2210   : > { %v10665_v59 = vpop.eup %10664  ;;  %v8976_v60 = vsel %vm1360_vm6, %v8954_v17, 0.0  ;;  %v8973_v15 = vsel %vm1360_vm6, %v8953_v62, 0.0 }
0x2211   : > { %v8943_v1 = vadd.f32 1.0, %v10665_v59  ;;  %8977 = vadd.xlane.f32.xlu1 %v8976_v60  ;;  %8974 = vadd.xlane.f32.xlu0 %v8973_v15 }
0x2213   : > { %10666 = vrcp.f32 %v8943_v1 }
0x2214   : > { %10668 = vtanh.f32 %v13982_v8 }
0x2220   : > { %v10667_v35 = vpop.eup %10666 }
0x2221   : > { %v9377_v34 = vrot.slane %v10667_v35, %v11221_v4  ;;  %v9370_v49 = vcombine.high %v10667_v35, %v10667_v35 }
0x2222   : > { %9049 = vperm.xlu1 %10503, %v10667_v35  }
0x2223   : > { %v9393_v0 = vrot.slane %v9377_v34, %v11221_v4  ;;  %v9385_v43 = vcombine.high %v9377_v34, %v9377_v34  ;;  %v9384_v54 = vrot.slane %v9370_v49, %v11221_v4 }
0x2225   : > { %v9427_v23 = vsub.f32 1.0, %v9393_v0  ;;  %v14039_v29 = vrot.slane %v9385_v43, %v11221_v4  ;;  %v9415_v7 = vcombine.high %v9393_v0, %v9393_v0  ;;  %v9386_v42 = vcombine.high %v9384_v54, %v9384_v54 }
0x2226   : > { %10506 = vset.pattern.permute.xlu1 %v14767_v2 }
0x2227   : > { %v9446_v19 = vrot.slane %v9427_v23, %v11226_v6  ;;  %v9522_v28 = vrot.slane %v14039_v29, %v11226_v6  ;;  %v9429_v55 = vsub.f32 1.0, %v9415_v7  ;;  %v9417_v44 = vcombine.high %v14039_v29, %v14039_v29 }
0x2228   : > { %v14049_v10 = vrot.slane %v9386_v42, %v11221_v4  ;;  %v9400_v42 = vrot.slane %v9384_v54, %v11221_v4 }
0x2229   : > { %9476 = vperm.xlu1 %10506, %v9446_v19   ;;  %v9454_v3 = vrot.slane %v9429_v55, %v11226_v6  ;;  %v9530_v40 = vrot.slane %v9417_v44, %v11226_v6  ;;  %v9430_v37 = vsub.f32 1.0, %v9417_v44  ;;  %v9518_v44 = vrot.slane %v9393_v0, %v11226_v6 }
0x222a   : > { %v9432_v61 = vsub.f32 1.0, %v14049_v10  ;;  %v14055_v51 = vcombine.high %v14049_v10, %v14049_v10 }
0x222b   : > { %v9458_v20 = vrot.slane %v9430_v37, %v11226_v6  ;;  %v9428_v37 = vsub.f32 1.0, %v14039_v29 }
0x222c   : > { %v9466_v13 = vrot.slane %v9432_v61, %v11226_v6  ;;  %v9434_v33 = vsub.f32 1.0, %v14055_v51  ;;  %v9416_v61 = vcombine.high %v9400_v42, %v9400_v42 }
0x222d   : > { %9552 = vperm.xlu1 %10506, %v9522_v28  }
0x222e   : > { %v9474_v53 = vrot.slane %v9434_v33, %v11226_v6 }
0x2231   : > { %9484 = vperm.xlu1 %10506, %v9454_v3   ;;  %v9040_v3 = vsub.f32 1.0, %v10667_v35  ;;  %v9450_v35 = vrot.slane %v9428_v37, %v11226_v6 }
0x2235   : > { %9560 = vperm.xlu1 %10506, %v9530_v40   ;;  %v9534_v40 = vrot.slane %v9400_v42, %v11226_v6 }
0x2239   : > { %9488 = vperm.xlu1 %10506, %v9458_v20   ;;  %v10669_v20 = vpop.eup %10668 }
0x223a   : > { %v9611_v0 = vrot.slane %v10669_v20, %v11221_v4  ;;  %v9604_v33 = vcombine.high %v10669_v20, %v10669_v20 }
0x223d   : > { %9496 = vperm.xlu1 %10506, %v9466_v13   ;;  %v9433_v13 = vsub.f32 1.0, %v9416_v61 }
0x223f   : > { %v9470_v54 = vrot.slane %v9433_v13, %v11226_v6  ;;  %v14800_v13 = vld [vmem:[#allocation49_spill] sm:$0xff] }
0x2241   : > { %9504 = vperm.xlu1 %10506, %v9474_v53   ;;  %v9627_v53 = vrot.slane %v9611_v0, %v11221_v4 }
0x2274   : > { %v8960_v30 = vpop.xlane.xlu0 %8959 }
0x2275   : > { %v8994_v58 = vrot.slane %v8960_v30, %v11285_v16  ;;  %v9542_v30 = vrot.slane %v9416_v61, %v11226_v6  ;;  %v14799_v61 = vld [vmem:[#allocation47_spill] sm:$0xff] }
0x2281   : > { %v8963_v48 = vpop.xlane.xlu0 %8962 }
0x2282   : > { %v8998_v63 = vrot.slane %v8963_v48, %v11285_v16 }
0x2284   : > { %v8957_v26 = vpop.xlane.xlu1 %8956 }
0x2285   : > { %v8990_v18 = vrot.slane %v8957_v26, %v11285_v16  ;;  %v9618_v26 = vrot.slane %v9604_v33, %v11221_v4 }
0x2287   : > { %v9019_v14 = vsel %vm1698_vm8, %v8994_v58, %v8990_v18  ;;  %v9661_v18 = vmul.f32 %v9627_v53, %v14780_v47  ;;  %v9620_v58 = vcombine.high %v9618_v26, %v9618_v26  ;;  %v9634_v37 = vrot.slane %v9618_v26, %v11221_v4 }
0x2288   : > { %v9020_v36 = vsel %vm1700_vm9, %v8998_v63, %v9019_v14  ;;  %v14793_v63 = vmov 2  }
0x2289   : > { %v9680_v48 = vrot.slane %v9661_v18, %v11226_v6 }
0x228c   : > { %v8969_v41 = vpop.xlane.xlu0 %8968 }
0x228d   : > { %v9006_v59 = vrot.slane %v8969_v41, %v11285_v16 }
0x228e   : > { %v8966_v39 = vpop.xlane.xlu1 %8965 }
0x228f   : > { %v9002_v27 = vrot.slane %v8966_v39, %v11285_v16 }
0x2291   : > { %v9021_v17 = vsel %vm1702_vm10, %v9002_v27, %v9020_v36  ;;  %v14096_v27 = vrot.slane %v9620_v58, %v11221_v4 }
0x2292   : > { %v9022_v1 = vsel %vm1704_vm11, %v9006_v59, %v9021_v17  ;;  %v14794_v59 = vld [vmem:[#allocation40_spill] sm:$0xff] }
0x2296   : > { %v8972_v57 = vpop.xlane.xlu1 %8971 }
0x2297   : > { %v9010_v62 = vrot.slane %v8972_v57, %v11285_v16  ;;  %v9666_v57 = vmul.f32 %v14096_v27, %v14780_v47 }
0x2299   : > { %v9023_v23 = vsel %vm1706_vm12, %v9010_v62, %v9022_v1  ;;  %v9700_v36 = vrot.slane %v9666_v57, %v11226_v6  ;;  %v9538_v1 = vrot.slane %v14049_v10, %v11226_v6 }
0x229a   : > { %v8975_v60 = vpop.xlane.xlu0 %8974  ;;  %v8978_v15 = vpop.xlane.xlu1 %8977 }
0x229b   : > { %v9014_v34 = vrot.slane %v8975_v60, %v11285_v16  ;;  %v9018_v43 = vrot.slane %v8978_v15, %v11285_v16  ;;  %v9526_v16 = vrot.slane %v9415_v7, %v11226_v6  ;;  %v9619_v7 = vcombine.high %v9611_v0, %v9611_v0 }
0x229d   : > { %v9024_v19 = vsel %vm1708_vm13, %v9014_v34, %v9023_v23  ;;  %v9641_v29 = vrot.slane %v9619_v7, %v11221_v4 }
0x229e   : > { %v9025_v49 = vsel %vm1710_vm14, %v9018_v43, %v9024_v19  ;;  %v9050_v15 = vpop.permute.xlu1 %9049  ;;  %v14795_v43 = vld [vmem:[#allocation51_spill] sm:$0xff]  ;;  %v14796_v19 = vld [vmem:[#allocation36_spill] sm:$0xff] }
0x229f   : > { %v9027_v28 = vadd.f32 %v9025_v49, %v13982_v8  ;;  %v9431_v8 = vsub.f32 1.0, %v9400_v42  ;;  %v9651_v39 = vcombine.high %v9641_v29, %v9641_v29  ;;  %v9052_v23 = vmul.f32 %v9050_v15, %v14795_v43 }
0x22a1   : > { %v9028_v55 = vsel %vm1714_vm0, %v9027_v28, -inf  ;;  %v9664_v14 = vmul.f32 %v9651_v39, %v14780_v47 }
0x22a2   : > { %9029 = vmax.xlane.f32.xlu0 %v9028_v55 }
0x22a3   : > { %v9692_v41 = vrot.slane %v9664_v14, %v11226_v6 }
0x22a4   : > { %v14140_v39 = vpop.permute.xlu1 %9476 }
0x22a8   : > { %v14142_v58 = vpop.permute.xlu1 %9552 }
0x22b8   : > { %9043 = vperm.xlu0 %10504, %v9040_v3   ;;  %v9546_v3 = vrot.slane %v14055_v51, %v11226_v6  ;;  %v14798_v51 = vld [vmem:[#allocation44_spill] sm:$0xff] }
0x22bc   : > { %10505 = vset.pattern.permute.xlu0 %v14767_v2  ;;  %v9462_v2 = vrot.slane %v9431_v8, %v11226_v6  ;;  %v9665_v8 = vmul.f32 %v9634_v37, %v14780_v47 }
0x22bd   : > { %9548 = vperm.xlu0 %10505, %v9518_v44   ;;  %v9649_v44 = vcombine.high %v9627_v53, %v9627_v53 }
0x22c1   : > { %9556 = vperm.xlu0 %10505, %v9526_v16   ;;  %v14797_v16 = vld [vmem:[#allocation42_spill] sm:$0xff] }
0x22c5   : > { %9564 = vperm.xlu0 %10505, %v9534_v40   ;;  %v9663_v40 = vmul.f32 %v9649_v44, %v14780_v47 }
0x22c9   : > { %9480 = vperm.xlu0 %10505, %v9450_v35   ;;  %v9688_v35 = vrot.slane %v9663_v40, %v11226_v6 }
0x22cd   : > { %9492 = vperm.xlu0 %10505, %v9462_v2   ;;  %v9696_v2 = vrot.slane %v9665_v8, %v11226_v6 }
0x22d1   : > { %9500 = vperm.xlu0 %10505, %v9470_v54   ;;  %v14801_v54 = vld [vmem:[#allocation43_spill] sm:$0xff] }
0x22d5   : > { %9572 = vperm.xlu0 %10505, %v9542_v30   ;;  %v14803_v30 = vld [vmem:[#allocation48_spill] sm:$0xff] }
0x22d9   : > { %10507 = vset.pattern.permute.xlu0 %v14793_v63 }
0x22da   : > { %9710 = vperm.xlu0 %10507, %v9680_v48   ;;  %v14144_v48 = vpop.permute.xlu1 %9484 }
0x22de   : > { %9722 = vperm.xlu0 %10507, %v9692_v41   ;;  %v14146_v14 = vpop.permute.xlu1 %9560 }
0x22e2   : > { %9730 = vperm.xlu0 %10507, %v9700_v36   ;;  %v14805_v36 = vld [vmem:[#allocation41_spill] sm:$0xff] }
0x232b   : > { %v9030_v17 = vpop.xlane.xlu0 %9029 }
0x232c   : > { %vm9031_vm3 = vcmp.ge.f32.partialorder %v9027_v28, %v9030_v17  ;;  %v9033_v17 = vmul.f32 %v14795_v43, %v14805_v36 }
0x232d   : > { %v9032_v62 = vsel %vm9031_vm3, %v9027_v28, 0.0  ;;  %v9662_v28 = vmul.f32 %v9641_v29, %v14780_v47  ;;  %v14802_v29 = vld [vmem:[#allocation45_spill] sm:$0xff] }
0x232e   : > { %v9034_v60 = vmul.f32 %v9032_v62, %v14794_v59  ;;  %v9652_v62 = vcombine.high %v14096_v27, %v14096_v27 }
0x232f   : > { %v9684_v42 = vrot.slane %v9662_v28, %v11226_v6  ;;  %v9650_v28 = vcombine.high %v9634_v37, %v9634_v37 }
0x2330   : > { %9036 = vrot.lane.b32.xlu1 %v9034_v60, %s14630_s18  ;;  %s14807_s18 = sand.u32 1, %s10775_s10  }
0x2331   : > { %s14192_s2 = scalar_lea.sflag [#allocation4], %s14807_s18 }
0x2333   : > { %v9044_v34 = vpop.permute.xlu0 %9043 }
0x2334   : > { %v9046_v49 = vmul.f32 %v9044_v34, %v14796_v19  ;;  %9568 = vperm.xlu1 %10506, %v9538_v1   ;;  %v9668_v34 = vmul.f32 %v9652_v62, %v14780_v47 }
0x2336   : > { %v14109_v55 = vadd.f32 %v9052_v23, %v9046_v49  ;;  %v9708_v43 = vrot.slane %v9668_v34, %v11226_v6 }
0x2338   : > { %9771 = vst.msk [vmem:[%s10970_s6] sm:$0xff] %vm1360_vm6, %v14109_v55  ;;  %9576 = vperm.xlu1 %10506, %v9546_v3   ;;  %v9218_v10 = vrot.slane %v14109_v55, %v14797_v16  ;;  %v9232_v20 = vrot.slane %v14109_v55, %v14798_v51  ;;  %v9246_v0 = vrot.slane %v14109_v55, %v14799_v61 }
0x2339   : > { %v9260_v7 = vrot.slane %v14109_v55, %v14800_v13  ;;  %v9211_v33 = vrot.slane %v14109_v55, %v11226_v6  ;;  %v9225_v53 = vrot.slane %v14109_v55, %v14801_v54  ;;  %v9239_v26 = vrot.slane %v14109_v55, %v14802_v29 }
0x233a   : > { %9220 = vbcast.lane.b32.xlu0 %v9218_v10, 256  ;;  %v9253_v18 = vrot.slane %v14109_v55, %v14803_v30 }
0x233c   : > { %10508 = vset.pattern.permute.xlu1 %v14793_v63  ;;  %v14148_v63 = vpop.permute.xlu1 %9488 }
0x233d   : > { %9714 = vperm.xlu1 %10508, %v9684_v42  }
0x233e   : > { %9234 = vbcast.lane.b32.xlu0 %v9232_v20, 256 }
0x2340   : > { %v14150_v41 = vpop.permute.xlu1 %9496 }
0x2341   : > { %9718 = vperm.xlu1 %10508, %v9688_v35   ;;  %14804 = vst [vmem:[#allocation55_spill] sm:$0xff] %v14150_v41 }
0x2342   : > { %9248 = vbcast.lane.b32.xlu0 %v9246_v0, 256 }
0x2344   : > { %v14152_v57 = vpop.permute.xlu1 %9504 }
0x2345   : > { %9726 = vperm.xlu1 %10508, %v9696_v2  }
0x2346   : > { %9262 = vbcast.lane.b32.xlu0 %v9260_v7, 256 }
0x2349   : > { %9213 = vbcast.lane.b32.xlu1 %v9211_v33, 256 }
0x234d   : > { %9227 = vbcast.lane.b32.xlu1 %v9225_v53, 256 }
0x2351   : > { %9241 = vbcast.lane.b32.xlu1 %v9239_v26, 256 }
0x2355   : > { %9255 = vbcast.lane.b32.xlu1 %v9253_v18, 256 }
0x23a2   : > { %v9037_v59 = vpop.permute.xlu1 %9036 }
0x23a3   : > { %v14158_v60 = vadd.f32 %v9037_v59, %v9033_v17 }
0x23a5   : > { %9780 = vst.msk [vmem:[%s10980_s14] sm:$0xff] %vm1360_vm6, %v14158_v60  ;;  %v9106_v15 = vrot.slane %v14158_v60, %v14800_v13  ;;  %v9057_v1 = vrot.slane %v14158_v60, %v11226_v6  ;;  %v9064_v27 = vrot.slane %v14158_v60, %v14797_v16  ;;  %v9071_v23 = vrot.slane %v14158_v60, %v14801_v54 }
0x23a6   : > { %v9078_v19 = vrot.slane %v14158_v60, %v14798_v51  ;;  %v9085_v49 = vrot.slane %v14158_v60, %v14802_v29  ;;  %v9092_v3 = vrot.slane %v14158_v60, %v14799_v61  ;;  %v9099_v44 = vrot.slane %v14158_v60, %v14803_v30 }
0x23a7   : > { %9108 = vbcast.lane.b32.xlu0 %v9106_v15, 256  ;;  %9059 = vbcast.lane.b32.xlu1 %v9057_v1, 256  ;;  %v9667_v16 = vmul.f32 %v9650_v28, %v14780_v47 }
0x23a9   : > { %v9704_v10 = vrot.slane %v9667_v16, %v11226_v6 }
0x23ab   : > { %9738 = vperm.xlu0 %10507, %v9708_v43   ;;  %9066 = vbcast.lane.b32.xlu1 %v9064_v27, 256 }
0x23af   : > { %9073 = vbcast.lane.b32.xlu1 %v9071_v23, 256 }
0x23b3   : > { %9080 = vbcast.lane.b32.xlu1 %v9078_v19, 256 }
0x23b7   : > { %9087 = vbcast.lane.b32.xlu1 %v9085_v49, 256 }
0x23bb   : > { %9094 = vbcast.lane.b32.xlu1 %v9092_v3, 256 }
0x23bf   : > { %9101 = vbcast.lane.b32.xlu1 %v9099_v44, 256 }
0x23c3   : > { %9734 = vperm.xlu1 %10508, %v9704_v10  }
0x23c4   : > { %10732 = shalt.err (!%p10729_p0)
}
0x23c5   : > { %s10733_s11 = scalar_lea.hbm %s14185_s29, 1024  ;;  %s10737_s21 = scalar_lea.hbm %s14806_s23, 2048 }
0x23c6   : > { %p10734_p1 = scmp.ne.s32.totalorder %s14185_s29, %s10733_s11  ;;  %p10738_p4 = scmp.lt.s32.totalorder %s14185_s29, %s14806_s23 }
0x23c7   : > { %p10739_p5 = scmp.lt.s32.totalorder %s10737_s21, %s10733_s11 }
0x23c8   : > { %p10735_p2 = pnand %p10734_p1, %p14808_p8 }
0x23c9   : > { %p10740_p6 = por %p10739_p5, %p10738_p4 }
0x23ca   : > { %p10736_p3 = pneg %p10735_p2 }
0x23cc   : > { %p10741_p7 = pnand %p10740_p6, %p10736_p3 }
0x23ce   : > { %10744 = shalt.err (!%p10741_p7)
}
0x23cf   : > { %s10825_s3 = smov 128   ;;  %s10826_s4 = smov 8   ;;  %v9549_v47 = vpop.permute.xlu0 %9548  ;;  %v14219_v20 = vpop.permute.xlu1 %9568  ;;  %v9265_v26 = vcombine.high %v14158_v60, %v14158_v60  ;;  %v9111_v30 = vcombine.high %v14109_v55, %v14109_v55  ;;  %v9272_v1 = vrot.slane %v14158_v60, %v11221_v4  ;;  %v9118_v27 = vrot.slane %v14109_v55, %v11221_v4 }
0x23d0   : > { %10348 = dma.vmem_to_hbm [thread:$0]  (%p14808_p8), %s14188_s25, 1024, %s14185_s29, %s14192_s2, %s10825_s3, %s10825_s3, %s10826_s4   ;;  %14810 = vst [vmem:[#allocation57_spill] sm:$0xff] %v14219_v20  ;;  %v9507_v38 = vmul.f32 %v14140_v39, %v13935_v12  ;;  %v9595_v12 = vmul.f32 %v13945_v9, %v11553_v21 }
0x23d1   : > { %v9279_v18 = vrot.slane %v9265_v26, %v11221_v4  ;;  %v9125_v36 = vrot.slane %v9111_v30, %v11221_v4  ;;  %v9280_v49 = vcombine.high %v9272_v1, %v9272_v1  ;;  %v9134_v3 = vrot.slane %v9118_v27, %v11221_v4 }
0x23d2   : > { %v9288_v60 = vrot.slane %v9272_v1, %v11221_v4  ;;  %v9126_v16 = vcombine.high %v9118_v27, %v9118_v27 }
0x23d3   : > { %v14211_v42 = vpop.permute.xlu0 %9556  ;;  %v9577_v8 = vpop.permute.xlu1 %9576  ;;  %v9281_v59 = vcombine.high %v9279_v18, %v9279_v18  ;;  %v9127_v15 = vcombine.high %v9125_v36, %v9125_v36  ;;  %v9302_v55 = vrot.slane %v9280_v49, %v11221_v4  ;;  %v9163_v30 = vrot.slane %v9134_v3, %v11226_v6 }
0x23d4   : > { %v9156_v20 = vcombine.high %v9134_v3, %v9134_v3 }
0x23d5   : > { %v14254_v23 = vrot.slane %v9281_v59, %v11221_v4  ;;  %v14257_v19 = vrot.slane %v9127_v15, %v11221_v4  ;;  %v9317_v15 = vrot.slane %v9288_v60, %v11226_v6  ;;  %v9321_v1 = vrot.slane %v9302_v55, %v11226_v6 }
0x23d7   : > { %v14213_v40 = vpop.permute.xlu0 %9564  ;;  %v14225_v0 = vpop.permute.xlu1 %9714  ;;  %v9313_v28 = vcombine.high %v14254_v23, %v14254_v23  ;;  %v9159_v44 = vcombine.high %v14257_v19, %v14257_v19 }
0x23d8   : > { %14809 = vst [vmem:[#allocation56_spill] sm:$0xff] %v14213_v40 }
0x23d9   : > { %v9345_v59 = vrot.slane %v9313_v28, %v11226_v6  ;;  %v9191_v56 = vrot.slane %v9159_v44, %v11226_v6  ;;  %v9514_v44 = vmul.f32 %v14152_v57, %v14010_v22  ;;  %v14816_v22 = vld [vmem:[#allocation35_spill] sm:$0xff] }
0x23db   : > { %v14215_v37 = vpop.permute.xlu0 %9480  ;;  %v14229_v13 = vpop.permute.xlu1 %9718 }
0x23dc   : > { %v9508_v39 = vmul.f32 %v14215_v37, %v14816_v22 }
0x23df   : > { %v14217_v51 = vpop.permute.xlu0 %9492  ;;  %v14233_v33 = vpop.permute.xlu1 %9726 }
0x23e0   : > { %14813 = vst [vmem:[#allocation60_spill] sm:$0xff] %v14233_v33  ;;  %v9310_v33 = vcombine.high %v9288_v60, %v9288_v60 }
0x23e3   : > { %v14221_v35 = vpop.permute.xlu0 %9500  ;;  %v9214_v29 = vpop.permute.xlu1 %9213 }
0x23e4   : > { %14811 = vst [vmem:[#allocation58_spill] sm:$0xff] %v14221_v35  ;;  %v9354_v46 = vmul.f32 %v9317_v15, %v9214_v29 }
0x23e7   : > { %v14223_v61 = vpop.permute.xlu0 %9572  ;;  %v9228_v62 = vpop.permute.xlu1 %9227 }
0x23e8   : > { %14812 = vst [vmem:[#allocation59_spill] sm:$0xff] %v14223_v61  ;;  %v9148_v61 = vrot.slane %v9126_v16, %v11221_v4 }
0x23ea   : > { %v9167_v28 = vrot.slane %v9148_v61, %v11226_v6 }
0x23eb   : > { %v14227_v2 = vpop.permute.xlu0 %9710  ;;  %v14249_v43 = vpop.permute.xlu1 %9241 }
0x23ef   : > { %v14231_v7 = vpop.permute.xlu0 %9722  ;;  %v14266_v26 = vpop.permute.xlu1 %9255 }
0x23f0   : > { %14815 = vst [vmem:[#allocation50_spill] sm:$0xff] %v14266_v26 }
0x23f3   : > { %v14235_v54 = vpop.permute.xlu0 %9730 }
0x23f4   : > { %14814 = vst [vmem:[#allocation61_spill] sm:$0xff] %v14235_v54 }
0x23f7   : > { %v9221_v53 = vpop.permute.xlu0 %9220 }
0x23f8   : > { %v9355_v24 = vmul.f32 %v9321_v1, %v9221_v53 }
0x23fb   : > { %v14243_v17 = vpop.permute.xlu0 %9234 }
0x23ff   : > { %v14247_v34 = vpop.permute.xlu0 %9248 }
0x2403   : > { %v9263_v10 = vpop.permute.xlu0 %9262 }
0x2404   : > { %v9361_v27 = vmul.f32 %v9345_v59, %v9263_v10  ;;  %v9597_v59 = vmul.f32 %v13938_v52, %v11553_v21  ;;  %v9183_v52 = vrot.slane %v14257_v19, %v11226_v6 }
0x2419   : > { %v9109_v54 = vpop.permute.xlu0 %9108  ;;  %v9060_v35 = vpop.permute.xlu1 %9059 }
0x241a   : > { %v9207_v49 = vmul.f32 %v9191_v56, %v9109_v54  ;;  %v9200_v31 = vmul.f32 %v9163_v30, %v9060_v35  ;;  %v9312_v56 = vcombine.high %v9302_v55, %v9302_v55  ;;  %v9171_v35 = vrot.slane %v9156_v20, %v11226_v6 }
0x241b   : > { %v9158_v54 = vcombine.high %v9148_v61, %v9148_v61 }
0x241c   : > { %v9369_v26 = vsub.f32 %v9207_v49, %v9361_v27  ;;  %v9362_v41 = vsub.f32 %v9200_v31, %v9354_v46  ;;  %v9325_v31 = vrot.slane %v9310_v33, %v11226_v6  ;;  %v9596_v33 = vmul.f32 %v13898_v5, %v11553_v21 }
0x241d   : > { %v9067_v16 = vpop.permute.xlu1 %9066  ;;  %v9175_v9 = vrot.slane %v9158_v54, %v11226_v6  ;;  %v9602_v5 = vmul.f32 %v14027_v25, %v11553_v21 }
0x241e   : > { %v9579_v40 = vmul.f32 %v9549_v47, %v9362_v41  ;;  %v9201_v10 = vmul.f32 %v9167_v28, %v9067_v16  ;;  %v9586_v29 = vmul.f32 %v9577_v8, %v9369_v26  ;;  %v9356_v41 = vmul.f32 %v9325_v31, %v9228_v62 }
0x2420   : > { %v9587_v46 = vadd.f32 %v9579_v40, %v9507_v38  ;;  %v9363_v3 = vsub.f32 %v9201_v10, %v9355_v24  ;;  %v9594_v60 = vadd.f32 %v9586_v29, %v9514_v44  ;;  %v9295_v24 = vrot.slane %v9279_v18, %v11221_v4 }
0x2421   : > { %v9074_v57 = vpop.permute.xlu1 %9073  ;;  %v9141_v38 = vrot.slane %v9125_v36, %v11221_v4  ;;  %v9329_v40 = vrot.slane %v9312_v56, %v11226_v6  ;;  %v9598_v10 = vmul.f32 %v13985_v50, %v11553_v21 }
0x2422   : > { %v9741_v47 = vmul.f32 %v14227_v2, %v9587_v46  ;;  %9772 = vst.msk [vmem:[%s10975_s24] sm:$0xff] %vm1360_vm6, %v9587_v46  ;;  %v9580_v20 = vmul.f32 %v14142_v58, %v9363_v3  ;;  %v9202_v8 = vmul.f32 %v9171_v35, %v9074_v57  ;;  %9779 = vst.msk [vmem:[%s10975_s24 + $0x38] sm:$0xff] %vm1360_vm6, %v9594_v60 }
0x2423   : > { %v9509_v58 = vmul.f32 %v14144_v48, %v13924_v45  ;;  %v9357_v62 = vmul.f32 %v9329_v40, %v14243_v17  ;;  %v9179_v45 = vrot.slane %v9141_v38, %v11226_v6  ;;  %v9333_v48 = vrot.slane %v9295_v24, %v11226_v6  ;;  %v14824_v40 = vld [vmem:[#allocation39_spill] sm:$0xff] }
0x2424   : > { %v9749_v37 = vadd.f32 %v9741_v47, %v9595_v12  ;;  %v9588_v61 = vadd.f32 %v9580_v20, %v9508_v39  ;;  %v9364_v2 = vsub.f32 %v9202_v8, %v9356_v41  ;;  %v9311_v44 = vcombine.high %v9295_v24, %v9295_v24  ;;  %v14820_v12 = vld [vmem:[#allocation55_spill] sm:$0xff]  ;;  %v14821_v39 = vld [vmem:[#allocation50_spill] sm:$0xff]  ;;  %v14822_v41 = vld [vmem:[#allocation60_spill] sm:$0xff] }
0x2425   : > { %v9081_v53 = vpop.permute.xlu1 %9080  ;;  %v9358_v27 = vmul.f32 %v9333_v48, %v14249_v43 }
0x2426   : > { %9763 = vst.msk [vmem:[%s10965_s12] sm:$0xff] %vm1360_vm6, %v9749_v37  ;;  %v9742_v18 = vmul.f32 %v14225_v0, %v9588_v61  ;;  %9773 = vst.msk [vmem:[%s10975_s24 + $0x8] sm:$0xff] %vm1360_vm6, %v9588_v61  ;;  %v9581_v4 = vmul.f32 %v14211_v42, %v9364_v2  ;;  %v9203_v36 = vmul.f32 %v9175_v9, %v9081_v53  ;;  %v9739_v55 = vpop.permute.xlu0 %9738  ;;  %v14825_v61 = vld [vmem:[#allocation38_spill] sm:$0xff] }
0x2427   : > { %v9748_v26 = vmul.f32 %v9739_v55, %v9594_v60  ;;  %v9510_v42 = vmul.f32 %v14148_v63, %v13971_v32  ;;  %v9157_v32 = vcombine.high %v9141_v38, %v9141_v38  ;;  %v9337_v63 = vrot.slane %v14254_v23, %v11226_v6  ;;  %v14817_v23 = vld [vmem:[#allocation56_spill] sm:$0xff]  ;;  %v14819_v60 = vld [vmem:[#allocation53_spill] sm:$0xff]  ;;  %v14826_v2 = vld [vmem:[#allocation58_spill] sm:$0xff] }
0x2428   : > { %v9750_v17 = vadd.f32 %v9742_v18, %v9596_v33  ;;  %v9589_v30 = vadd.f32 %v9581_v4, %v9509_v58  ;;  %v9365_v0 = vsub.f32 %v9203_v36, %v9357_v62  ;;  %v9341_v50 = vrot.slane %v9311_v44, %v11226_v6  ;;  %v14827_v58 = vld [vmem:[#allocation61_spill] sm:$0xff]  ;;  %v14828_v62 = vld [vmem:[#allocation59_spill] sm:$0xff] }
0x2429   : > { %v9756_v15 = vadd.f32 %v9748_v26, %v9602_v5  ;;  %v9088_v1 = vpop.permute.xlu1 %9087  ;;  %v9359_v56 = vmul.f32 %v9337_v63, %v14247_v34  ;;  %v9187_v31 = vrot.slane %v9157_v32, %v11226_v6  ;;  %v14818_v34 = vld [vmem:[#allocation52_spill] sm:$0xff]  ;;  %v14823_v6 = vld [vmem:[#allocation57_spill] sm:$0xff]  ;;  %v9600_v37 = vmul.f32 %v14824_v40, %v11553_v21  ;;  %v14829_v5 = vld [vmem:[#allocation54_spill] sm:$0xff] }
0x242a   : > { %9764 = vst.msk [vmem:[%s10965_s12 + $0x8] sm:$0xff] %vm1360_vm6, %v9750_v17  ;;  %v9743_v25 = vmul.f32 %v14229_v13, %v9589_v30  ;;  %9774 = vst.msk [vmem:[%s10975_s24 + $0x10] sm:$0xff] %vm1360_vm6, %v9589_v30  ;;  %v9582_v49 = vmul.f32 %v14146_v14, %v9365_v0  ;;  %v9204_v28 = vmul.f32 %v9179_v45, %v9088_v1 }
0x242b   : > { %9770 = vst.msk [vmem:[%s10965_s12 + $0x38] sm:$0xff] %vm1360_vm6, %v9756_v15  ;;  %v9511_v14 = vmul.f32 %v14217_v51, %v13962_v11  ;;  %v9599_v3 = vmul.f32 %v14818_v34, %v11553_v21  ;;  %v9360_v57 = vmul.f32 %v9341_v50, %v14821_v39  ;;  %v9513_v33 = vmul.f32 %v14826_v2, %v14825_v61 }
0x242c   : > { %v9751_v43 = vadd.f32 %v9743_v25, %v9597_v59  ;;  %v9590_v16 = vadd.f32 %v9582_v49, %v9510_v42  ;;  %v9366_v13 = vsub.f32 %v9204_v28, %v9358_v27  ;;  %v9601_v26 = vmul.f32 %v14829_v5, %v11553_v21 }
0x242d   : > { %v9095_v29 = vpop.permute.xlu1 %9094 }
0x242e   : > { %9765 = vst.msk [vmem:[%s10965_s12 + $0x10] sm:$0xff] %vm1360_vm6, %v9751_v43  ;;  %v9744_v19 = vmul.f32 %v14231_v7, %v9590_v16  ;;  %9775 = vst.msk [vmem:[%s10975_s24 + $0x18] sm:$0xff] %vm1360_vm6, %v9590_v16  ;;  %v9583_v35 = vmul.f32 %v14817_v23, %v9366_v13  ;;  %v9205_v54 = vmul.f32 %v9183_v52, %v9095_v29 }
0x242f   : > { %v9512_v7 = vmul.f32 %v14820_v12, %v14819_v60 }
0x2430   : > { %v9752_v46 = vadd.f32 %v9744_v19, %v9598_v10  ;;  %v9591_v11 = vadd.f32 %v9583_v35, %v9511_v14  ;;  %v9367_v51 = vsub.f32 %v9205_v54, %v9359_v56 }
0x2431   : > { %v9102_v22 = vpop.permute.xlu1 %9101 }
0x2432   : > { %9766 = vst.msk [vmem:[%s10965_s12 + $0x18] sm:$0xff] %vm1360_vm6, %v9752_v46  ;;  %v9745_v47 = vmul.f32 %v14822_v41, %v9591_v11  ;;  %9776 = vst.msk [vmem:[%s10975_s24 + $0x20] sm:$0xff] %vm1360_vm6, %v9591_v11  ;;  %v9584_v20 = vmul.f32 %v14823_v6, %v9367_v51  ;;  %v9206_v8 = vmul.f32 %v9187_v31, %v9102_v22 }
0x2434   : > { %v9753_v24 = vadd.f32 %v9745_v47, %v9599_v3  ;;  %v9592_v9 = vadd.f32 %v9584_v20, %v9512_v7  ;;  %v9368_v38 = vsub.f32 %v9206_v8, %v9360_v57 }
0x2436   : > { %9767 = vst.msk [vmem:[%s10965_s12 + $0x20] sm:$0xff] %vm1360_vm6, %v9753_v24  ;;  %v9746_v53 = vmul.f32 %v14827_v58, %v9592_v9  ;;  %9777 = vst.msk [vmem:[%s10975_s24 + $0x28] sm:$0xff] %vm1360_vm6, %v9592_v9  ;;  %v9585_v18 = vmul.f32 %v14828_v62, %v9368_v38 }
0x2438   : > { %v9754_v4 = vadd.f32 %v9746_v53, %v9600_v37  ;;  %v9593_v36 = vadd.f32 %v9585_v18, %v9513_v33 }
0x243a   : > { %9768 = vst.msk [vmem:[%s10965_s12 + $0x28] sm:$0xff] %vm1360_vm6, %v9754_v4  ;;  %9778 = vst.msk [vmem:[%s10975_s24 + $0x30] sm:$0xff] %vm1360_vm6, %v9593_v36 }
0x243e   : > { %v9735_v55 = vpop.permute.xlu1 %9734 }
0x243f   : > { %v9747_v45 = vmul.f32 %v9735_v55, %v9593_v36 }
0x2441   : > { %v9755_v48 = vadd.f32 %v9747_v45, %v9601_v26 }
0x2443   : > { %9769 = vst.msk [vmem:[%s10965_s12 + $0x30] sm:$0xff] %vm1360_vm6, %v9755_v48 }
0x2444 PF: > { %p10360_p8 = scmp.ge.s32.totalorder %s10783_s15, 2  ;;  %s9855_s28 = sand.u32 1, %s10771_s7  }
0x2445   : > { %p14830_p9 = scmp.ne.s32.totalorder %s14589_s1, 0  ;;  %s9856_s5 = scalar_lea.sflag [#allocation4], %s9855_s28 }
0x2447   : > { %p10355_p10 = pnand %p10360_p8, %p14830_p9 }
0x2449   : > { %p10356_p11 = pneg %p10355_p10 }
0x244b   : > { %10766 = dma.done.wait (%p10356_p11), %s9856_s5, 1024  }
0x244c   : > { %10768 = vsyncadd (%p10356_p11), %s9856_s5, 4294966272  ;;  %s14831_s15 = sld [smem:[#allocation33_spill]]  ;;  %s14834_s7 = smov %s10775_s10 }
0x244d   : > { %s14832_s2 = sld [smem:[#allocation32_spill]] }
0x244e   : > { %s14833_s11 = sld [smem:[#allocation34_spill]] }
0x2452   : > { %p71_p12 = scmp.ge.s32.totalorder %s14831_s15, 4  }
0x2453   : > { %s14835_s10 = smov %s14832_s2 }
0x2454   :  { %73 = sbr.rel (!%p71_p12) target bundleno = 61 (0x3d), region = 262 }
0x2459   :  { %9869 = vsyncpa [#allocation4], 1 }
0x245a   :  { %9871 = vsyncpa [#allocation4 + $0x1], 1 }
0x245b   :  { %9872 = vsyncpa [#allocation5], 1 }
0x245c   :  { %9874 = vsyncpa [#allocation5 + $0x1], 1 }

</bundles_post_ra>
